<compile_context>
chip_gen: v7x
topology: tpu7x:2x2x1
jax: 0.10.0
libtpu: 0.0.40
codegen_flags: <defaults>
</compile_context>

<pallas_src>
import functools

import jax
import jax.numpy as jnp
from jax.experimental import pallas as pl
from jax.experimental.pallas import tpu as pltpu


# --------------------------------------------------------------------------- #
# Kernel
# --------------------------------------------------------------------------- #
def _gru_kernel(x_ref, h0_ref, wih_ref, bih_ref, whh_ref, bhh_ref,
                out_ref, gi_scr, h_scr, *, t_block, b_block, hidden):
    """One grid step == t_block time steps of the GRU for one batch block.

    x_ref  : (t_block, b_block, H)   embedded input, time-major, compute dtype
    h0_ref : (b_block, H)            initial hidden (resident across time axis)
    wih_ref: (H, 3H)                 fused transposed input weights (resident)
    bih_ref: (1, 3H)  f32            fused input bias (resident)
    whh_ref: (H, 3H)                 fused transposed hidden weights (resident)
    bhh_ref: (1, 3H)  f32            fused hidden bias (resident)
    out_ref: (t_block, b_block, H)   per-step hidden states, time-major
    gi_scr : (t_block, b_block, 3H)  f32 scratch for the fused input projection
    h_scr  : (b_block, H)            f32 scratch carrying h across grid steps
    """
    H = hidden

    @pl.when(pl.program_id(1) == 0)
    def _init():
        h_scr[...] = h0_ref[...].astype(jnp.float32)

    # Fused input projection for the whole time block: a single tall-LHS MXU
    # matmul (t_block*b_block, H) @ (H, 3H) with f32 accumulation.  The reshape
    # only merges/splits leading dims, so it never crosses an (8,128) tile.
    x_blk = x_ref[...].reshape(t_block * b_block, H)
    gi = jnp.dot(x_blk, wih_ref[...], preferred_element_type=jnp.float32)
    gi_scr[...] = (gi + bih_ref[...].astype(jnp.float32)).reshape(
        t_block, b_block, 3 * H)

    def step(i, carry):
        h_prev = h_scr[...]                                      # (b, H) f32
        gi_i = gi_scr[i]                                         # (b, 3H) full-tile load
        # Single fused hidden-side matmul for all three gates (lane-dense 3H
        # output).  RHS is read from the resident VMEM ref inside the dot (not
        # hoisted into SSA vregs across the unrolled loop).
        gh = jnp.dot(h_prev.astype(whh_ref.dtype), whh_ref[...],
                     preferred_element_type=jnp.float32)
        gh = gh + bhh_ref[...].astype(jnp.float32)               # (b, 3H)
        r = jax.nn.sigmoid(gi_i[:, :H] + gh[:, :H])
        z = jax.nn.sigmoid(gi_i[:, H:2 * H] + gh[:, H:2 * H])
        # PyTorch GRU: b_hh stays inside the r ⊙ (W_hn h + b_hn) term.
        n = jnp.tanh(gi_i[:, 2 * H:] + r * gh[:, 2 * H:])
        h_new = (1.0 - z) * n + z * h_prev
        h_scr[...] = h_new
        out_ref[i] = h_new.astype(out_ref.dtype)                 # full-tile store
        return carry

    jax.lax.fori_loop(0, t_block, step, 0, unroll=True)


# --------------------------------------------------------------------------- #
# Tiling heuristics
# --------------------------------------------------------------------------- #
def _pick_t_block(T, requested):
    """Snap t_block to an exact divisor of T when one is close (no wasted tail)."""
    requested = max(1, min(requested, T))
    if T % requested == 0:
        return requested
    for d in range(requested - 1, max(requested // 2, 0), -1):
        if T % d == 0:
            return d
    return requested          # no good divisor: pad the tail


def _default_b_block(B):
    """Full batch per block on single-TC chips; split in two on v7x megacore."""
    try:
        kind = jax.devices()[0].device_kind.lower()
    except Exception:
        kind = ""
    if ("v7" in kind or "tpu7" in kind) and B % 16 == 0:
        return B // 2
    return B


def _pick_vmem_limit(tile_bytes):
    """Scoped-VMEM budget from the real tile footprint, capped by chip capacity."""
    try:
        cap = int(getattr(pltpu.get_tpu_info(), "vmem_capacity_bytes",
                          64 * 1024 * 1024))
    except Exception:
        cap = 64 * 1024 * 1024
    want = max(4 * tile_bytes, 32 * 1024 * 1024)
    return int(max(16 * 1024 * 1024,
                   min(want, cap - 8 * 1024 * 1024, 100 * 1024 * 1024)))


# --------------------------------------------------------------------------- #
# Wrapper
# --------------------------------------------------------------------------- #
def gru_forward_pallas(x_bth, h0_1bh, w_ih_t, w_hh_t, b_ih, b_hh,
                       *, t_block=32, b_block=None, out_dtype=jnp.float32):
    """x_bth: (B, T, H) embedded input (batch-first); h0_1bh: (1, B, H).

    w_ih_t, w_hh_t: (H, 3H) fused transposed weights (gate order r, z, n),
    optionally bf16.  b_ih, b_hh: (3H,) f32.
    Returns (output (B, T, H), hidden (1, B, H)) like nn.GRU(batch_first=True).
    """
    B, T, H = x_bth.shape
    h0 = h0_1bh[0].astype(jnp.float32)                           # (B, H)

    if b_block is None:
        b_block = _default_b_block(B)
    assert B % b_block == 0 and (b_block == B or b_block % 8 == 0), \
        "batch block must divide B and be sublane-aligned (multiple of 8)"
    n_b = B // b_block

    t_blk = _pick_t_block(T, t_block)
    n_t = pl.cdiv(T, t_blk)
    t_pad = n_t * t_blk

    cd = w_ih_t.dtype
    # Time-major input so every per-step kernel access is a dense (b, ·) slab.
    x_tbh = jnp.transpose(x_bth, (1, 0, 2)).astype(cd)           # (T, B, H)
    if t_pad != T:
        # Padded steps see x = 0 (gi = b_ih); they are computed and discarded.
        x_tbh = jnp.pad(x_tbh, ((0, t_pad - T), (0, 0), (0, 0)))

    bih_row = b_ih.reshape(1, 3 * H).astype(jnp.float32)
    bhh_row = b_hh.reshape(1, 3 * H).astype(jnp.float32)

    kernel = functools.partial(_gru_kernel, t_block=t_blk, b_block=b_block,
                               hidden=H)

    out_itemsize = jnp.dtype(out_dtype).itemsize
    tile_bytes = (
        2 * t_blk * b_block * H * jnp.dtype(cd).itemsize         # x blocks (dbl-buf)
        + 2 * t_blk * b_block * H * out_itemsize                 # out blocks (dbl-buf)
        + t_blk * b_block * 3 * H * 4                            # GI scratch (f32)
        + b_block * H * 4                                        # carried hidden (f32)
        + 2 * H * 3 * H * jnp.dtype(cd).itemsize                 # W_ih^T + W_hh^T
        + 2 * b_block * H * 4                                    # h0 block
    )

    out_tmj = pl.pallas_call(
        kernel,
        out_shape=jax.ShapeDtypeStruct((t_pad, B, H), out_dtype),
        grid_spec=pltpu.PrefetchScalarGridSpec(
            num_scalar_prefetch=0,
            grid=(n_b, n_t),                                     # (batch, time)
            in_specs=[
                pl.BlockSpec((t_blk, b_block, H), lambda b, t: (t, b, 0)),  # x
                pl.BlockSpec((b_block, H), lambda b, t: (b, 0)),            # h0
                pl.BlockSpec((H, 3 * H), lambda b, t: (0, 0)),              # W_ih^T
                pl.BlockSpec((1, 3 * H), lambda b, t: (0, 0)),              # b_ih
                pl.BlockSpec((H, 3 * H), lambda b, t: (0, 0)),              # W_hh^T
                pl.BlockSpec((1, 3 * H), lambda b, t: (0, 0)),              # b_hh
            ],
            out_specs=pl.BlockSpec((t_blk, b_block, H), lambda b, t: (t, b, 0)),
            scratch_shapes=[
                pltpu.VMEM((t_blk, b_block, 3 * H), jnp.float32),  # GI block
                pltpu.VMEM((b_block, H), jnp.float32),             # carried hidden
            ],
        ),
        compiler_params=pltpu.CompilerParams(
            # batch blocks are independent (megacore on v7x); time is sequential.
            dimension_semantics=("parallel", "arbitrary"),
            vmem_limit_bytes=_pick_vmem_limit(tile_bytes),
        ),
    )(x_tbh, h0, w_ih_t, bih_row, w_hh_t, bhh_row)

    hidden = out_tmj[T - 1][None]                                # (1, B, H), no transpose
    output = jnp.transpose(out_tmj[:T], (1, 0, 2))               # (B, T, H)
    return output, hidden


# --------------------------------------------------------------------------- #
# Module
# --------------------------------------------------------------------------- #
class EncoderRNNPallas:
    """Deterministically-initialized Embedding + GRU; recurrence runs in Pallas."""

    def __init__(self, input_size, hidden_size, key, compute_dtype=jnp.bfloat16):
        self.hidden_size = hidden_size
        self.compute_dtype = compute_dtype
        H = hidden_size
        k_emb, k_wih, k_whh, k_bih, k_bhh = jax.random.split(key, 5)
        bound = 1.0 / float(jnp.sqrt(jnp.float32(H)))
        # nn.Embedding default init ~ N(0, 1)
        self.embedding = jax.random.normal(k_emb, (input_size, H), jnp.float32)
        # nn.GRU default init ~ U(-1/sqrt(H), 1/sqrt(H)); gate order (r, z, n)
        self.w_ih = jax.random.uniform(k_wih, (3 * H, H), jnp.float32, -bound, bound)
        self.w_hh = jax.random.uniform(k_whh, (3 * H, H), jnp.float32, -bound, bound)
        self.b_ih = jax.random.uniform(k_bih, (3 * H,), jnp.float32, -bound, bound)
        self.b_hh = jax.random.uniform(k_bhh, (3 * H,), jnp.float32, -bound, bound)
        # Fused / transposed matmul operands prepared ONCE here (not per call).
        # Only the matmul operands may be bf16; biases, the hidden state and
        # all elementwise/EUP math stay f32.
        self.w_ih_t = self.w_ih.T.astype(compute_dtype)   # (H, 3H)
        self.w_hh_t = self.w_hh.T.astype(compute_dtype)   # (H, 3H)

    def init_hidden(self, batch_size):
        return jnp.zeros((1, batch_size, self.hidden_size), jnp.float32)

    def __call__(self, token_ids, hidden, *, t_block=32, b_block=None):
        # Embedding lookup is glue (gather); the GRU recurrence runs in Pallas.
        x = jnp.take(self.embedding, token_ids, axis=0)    # (B, T, H) f32
        return gru_forward_pallas(x, hidden, self.w_ih_t, self.w_hh_t,
                                  self.b_ih, self.b_hh,
                                  t_block=t_block, b_block=b_block)


# --------------------------------------------------------------------------- #
# Pure-JAX reference (PyTorch GRU semantics, HIGHEST precision)
# --------------------------------------------------------------------------- #
def _gru_reference(x_btH, h0_1bH, w_ih, w_hh, b_ih, b_hh):
    hp = jax.lax.Precision.HIGHEST
    Wir, Wiz, Win = jnp.split(w_ih, 3, axis=0)
    Whr, Whz, Whn = jnp.split(w_hh, 3, axis=0)
    bir, biz, bin_ = jnp.split(b_ih, 3)
    bhr, bhz, bhn = jnp.split(b_hh, 3)

    def step(h, x_t):
        r = jax.nn.sigmoid(jnp.dot(x_t, Wir.T, precision=hp) + bir
                           + jnp.dot(h, Whr.T, precision=hp) + bhr)
        z = jax.nn.sigmoid(jnp.dot(x_t, Wiz.T, precision=hp) + biz
                           + jnp.dot(h, Whz.T, precision=hp) + bhz)
        n = jnp.tanh(jnp.dot(x_t, Win.T, precision=hp) + bin_
                     + r * (jnp.dot(h, Whn.T, precision=hp) + bhn))
        h_new = (1.0 - z) * n + z * h
        return h_new, h_new

    x_tbH = jnp.transpose(x_btH, (1, 0, 2))
    h_last, out_tbH = jax.lax.scan(step, h0_1bH[0], x_tbH)
    return jnp.transpose(out_tbH, (1, 0, 2)), h_last[None]


# --------------------------------------------------------------------------- #
# Test
# --------------------------------------------------------------------------- #
if __name__ == "__main__":
    key = jax.random.PRNGKey(0)
    k_model, k_tokens = jax.random.split(key)

    vocab_size = 64
    hidden = 256          # matches the spec's hidden_size; 3H = 768 lane-aligned
    batch = 16            # sublane-aligned
    seq = 10

    token_ids = jax.random.randint(k_tokens, (batch, seq), 0, vocab_size, jnp.int32)

    # --- f32 matmul operands (tightest check) ---
    model = EncoderRNNPallas(vocab_size, hidden, k_model, compute_dtype=jnp.float32)
    h0 = model.init_hidden(batch)

    x_emb = jnp.take(model.embedding, token_ids, axis=0)
    ref_out, ref_hid = _gru_reference(x_emb, h0, model.w_ih, model.w_hh,
                                      model.b_ih, model.b_hh)

    # 1) default tiling: single batch block, t_block snapped to T (no padding)
    output, hidden_out = model(token_ids, h0)
    jax.block_until_ready((output, hidden_out))
    assert output.shape == (batch, seq, hidden)
    assert hidden_out.shape == (1, batch, hidden)
    assert jnp.allclose(output, ref_out, atol=2e-2), "f32 output mismatch"
    assert jnp.allclose(hidden_out, ref_hid, atol=2e-2), "f32 hidden mismatch"

    # 2) forced batch blocking + time-tail padding path (t_block=4 does not
    #    divide T=10 and has no nearby divisor -> padded tail steps)
    out_blk, hid_blk = model(token_ids, h0, t_block=4, b_block=8)
    jax.block_until_ready((out_blk, hid_blk))
    assert jnp.allclose(out_blk, ref_out, atol=2e-2), "blocked f32 output mismatch"
    assert jnp.allclose(hid_blk, ref_hid, atol=2e-2), "blocked f32 hidden mismatch"

    # --- bf16 matmul operands (default), f32 accumulation / state / elementwise ---
    model_bf16 = EncoderRNNPallas(vocab_size, hidden, k_model)
    out_bf16, hid_bf16 = model_bf16(token_ids, h0)
    jax.block_until_ready((out_bf16, hid_bf16))
    assert jnp.allclose(out_bf16, ref_out, atol=7.5e-2), "bf16 output mismatch"
    assert jnp.allclose(hid_bf16, ref_hid, atol=7.5e-2), "bf16 hidden mismatch"

    print("KERNEL_OK")
</pallas_src>

<mosaic_0001>
module attributes {stable_mosaic.version = 11 : i64} {
  func.func @_gru_kernel(%arg0: i32, %arg1: i32, %arg2: memref<10x16x256xf32, #tpu.memory_space<vmem>>, %arg3: memref<16x256xf32, #tpu.memory_space<vmem>>, %arg4: memref<256x768xf32, #tpu.memory_space<vmem>>, %arg5: memref<1x768xf32, #tpu.memory_space<vmem>>, %arg6: memref<256x768xf32, #tpu.memory_space<vmem>>, %arg7: memref<1x768xf32, #tpu.memory_space<vmem>>, %arg8: memref<10x16x256xf32, #tpu.memory_space<vmem>>, %arg9: memref<10x16x768xf32, #tpu.memory_space<vmem>>, %arg10: memref<16x256xf32, #tpu.memory_space<vmem>>) attributes {dimension_semantics = [#tpu.dimension_semantics<parallel>, #tpu.dimension_semantics<arbitrary>], iteration_bounds = array<i64: 1, 1>, scalar_prefetch = 0 : i64, scratch_operands = 2 : i64, tpu.core_type = #tpu.core_type<tc>, window_params = [{transform_indices = @transform_0, window_bounds = array<i64: 10, 16, 256>}, {transform_indices = @transform_1, window_bounds = array<i64: 16, 256>}, {pipeline_mode = #tpu.pipeline_mode<synchronous>, transform_indices = @transform_2, window_bounds = array<i64: 256, 768>}, {pipeline_mode = #tpu.pipeline_mode<synchronous>, transform_indices = @transform_3, window_bounds = array<i64: 1, 768>}, {pipeline_mode = #tpu.pipeline_mode<synchronous>, transform_indices = @transform_4, window_bounds = array<i64: 256, 768>}, {pipeline_mode = #tpu.pipeline_mode<synchronous>, transform_indices = @transform_5, window_bounds = array<i64: 1, 768>}, {transform_indices = @transform_6, window_bounds = array<i64: 10, 16, 256>}]} {
    %c0_i32 = arith.constant 0 : i32
    %0 = arith.cmpi eq, %arg1, %c0_i32 : i32
    %1 = arith.extui %0 : i1 to i32
    %c0_i32_0 = arith.constant 0 : i32
    %2 = arith.cmpi ne, %1, %c0_i32_0 : i32
    scf.if %2 {
      %c0_171 = arith.constant 0 : index
      %c0_172 = arith.constant 0 : index
      %412 = vector.load %arg3[%c0_171, %c0_172] : memref<16x256xf32, #tpu.memory_space<vmem>>, vector<16x256xf32>
      %c0_173 = arith.constant 0 : index
      %c0_174 = arith.constant 0 : index
      %413 = vector.load %arg10[%c0_173, %c0_174] : memref<16x256xf32, #tpu.memory_space<vmem>>, vector<16x256xf32>
      tpu.vector_store %arg10[%c0_173, %c0_174], %412 {strides = array<i32>} : memref<16x256xf32, #tpu.memory_space<vmem>>, vector<16x256xf32>,
    } else {
    }
    %c0 = arith.constant 0 : index
    %c0_1 = arith.constant 0 : index
    %c0_2 = arith.constant 0 : index
    %3 = vector.load %arg2[%c0, %c0_1, %c0_2] : memref<10x16x256xf32, #tpu.memory_space<vmem>>, vector<10x16x256xf32>
    %4 = vector.shape_cast %3 : vector<10x16x256xf32> to vector<160x256xf32>
    %c0_3 = arith.constant 0 : index
    %c0_4 = arith.constant 0 : index
    %5 = vector.load %arg4[%c0_3, %c0_4] : memref<256x768xf32, #tpu.memory_space<vmem>>, vector<256x768xf32>
    %cst = arith.constant dense<0.000000e+00> : vector<160x768xf32>
    %6 = tpu.matmul %4, %5, %cst {dimension_numbers = #tpu.dot_dimension_numbers<[1], [0], [0], [1], [0, 0, 1, 1], [], []>} : vector<160x256xf32>, vector<256x768xf32>, vector<160x768xf32> -> vector<160x768xf32>
    %c0_5 = arith.constant 0 : index
    %c0_6 = arith.constant 0 : index
    %7 = vector.load %arg5[%c0_5, %c0_6] : memref<1x768xf32, #tpu.memory_space<vmem>>, vector<1x768xf32>
    %8 = vector.broadcast %7 : vector<1x768xf32> to vector<160x768xf32>
    %9 = arith.addf %6, %8 : vector<160x768xf32>
    %10 = vector.shape_cast %9 : vector<160x768xf32> to vector<10x16x768xf32>
    %c0_7 = arith.constant 0 : index
    %c0_8 = arith.constant 0 : index
    %c0_9 = arith.constant 0 : index
    %11 = vector.load %arg9[%c0_7, %c0_8, %c0_9] : memref<10x16x768xf32, #tpu.memory_space<vmem>>, vector<10x16x768xf32>
    tpu.vector_store %arg9[%c0_7, %c0_8, %c0_9], %10 {strides = array<i32>} : memref<10x16x768xf32, #tpu.memory_space<vmem>>, vector<10x16x768xf32>,
    %c0_i32_10 = arith.constant 0 : i32
    %c0_11 = arith.constant 0 : index
    %c0_12 = arith.constant 0 : index
    %12 = vector.load %arg10[%c0_11, %c0_12] : memref<16x256xf32, #tpu.memory_space<vmem>>, vector<16x256xf32>
    %13 = arith.index_cast %c0_i32_10 : i32 to index
    %c0_13 = arith.constant 0 : index
    %c0_14 = arith.constant 0 : index
    %14 = vector.load %arg9[%13, %c0_13, %c0_14] : memref<10x16x768xf32, #tpu.memory_space<vmem>>, vector<1x16x768xf32>
    %15 = vector.shape_cast %14 : vector<1x16x768xf32> to vector<16x768xf32>
    %c0_15 = arith.constant 0 : index
    %c0_16 = arith.constant 0 : index
    %16 = vector.load %arg6[%c0_15, %c0_16] : memref<256x768xf32, #tpu.memory_space<vmem>>, vector<256x768xf32>
    %cst_17 = arith.constant dense<0.000000e+00> : vector<16x768xf32>
    %17 = tpu.matmul %12, %16, %cst_17 {dimension_numbers = #tpu.dot_dimension_numbers<[1], [0], [0], [1], [0, 0, 1, 1], [], []>} : vector<16x256xf32>, vector<256x768xf32>, vector<16x768xf32> -> vector<16x768xf32>
    %c0_18 = arith.constant 0 : index
    %c0_19 = arith.constant 0 : index
    %18 = vector.load %arg7[%c0_18, %c0_19] : memref<1x768xf32, #tpu.memory_space<vmem>>, vector<1x768xf32>
    %19 = vector.broadcast %18 : vector<1x768xf32> to vector<16x768xf32>
    %20 = arith.addf %17, %19 : vector<16x768xf32>
    %21 = vector.extract_strided_slice %15 {offsets = [0, 0], sizes = [16, 256], strides = [1, 1]} : vector<16x768xf32> to vector<16x256xf32>
    %22 = vector.extract_strided_slice %20 {offsets = [0, 0], sizes = [16, 256], strides = [1, 1]} : vector<16x768xf32> to vector<16x256xf32>
    %23 = arith.addf %21, %22 : vector<16x256xf32>
    %24 = arith.negf %23 : vector<16x256xf32>
    %25 = math.exp %24 : vector<16x256xf32>
    %cst_20 = arith.constant 1.000000e+00 : f32
    %26 = vector.broadcast %cst_20 : f32 to vector<16x256xf32>
    %27 = arith.addf %26, %25 : vector<16x256xf32>
    %28 = arith.divf %26, %27 : vector<16x256xf32>
    %29 = vector.extract_strided_slice %15 {offsets = [0, 256], sizes = [16, 256], strides = [1, 1]} : vector<16x768xf32> to vector<16x256xf32>
    %30 = vector.extract_strided_slice %20 {offsets = [0, 256], sizes = [16, 256], strides = [1, 1]} : vector<16x768xf32> to vector<16x256xf32>
    %31 = arith.addf %29, %30 : vector<16x256xf32>
    %32 = arith.negf %31 : vector<16x256xf32>
    %33 = math.exp %32 : vector<16x256xf32>
    %cst_21 = arith.constant 1.000000e+00 : f32
    %34 = vector.broadcast %cst_21 : f32 to vector<16x256xf32>
    %35 = arith.addf %34, %33 : vector<16x256xf32>
    %36 = arith.divf %34, %35 : vector<16x256xf32>
    %37 = vector.extract_strided_slice %15 {offsets = [0, 512], sizes = [16, 256], strides = [1, 1]} : vector<16x768xf32> to vector<16x256xf32>
    %38 = vector.extract_strided_slice %20 {offsets = [0, 512], sizes = [16, 256], strides = [1, 1]} : vector<16x768xf32> to vector<16x256xf32>
    %39 = arith.mulf %28, %38 : vector<16x256xf32>
    %40 = arith.addf %37, %39 : vector<16x256xf32>
    %41 = math.tanh %40 : vector<16x256xf32>
    %cst_22 = arith.constant 1.000000e+00 : f32
    %42 = vector.broadcast %cst_22 : f32 to vector<16x256xf32>
    %43 = arith.subf %42, %36 : vector<16x256xf32>
    %44 = arith.mulf %43, %41 : vector<16x256xf32>
    %45 = arith.mulf %36, %12 : vector<16x256xf32>
    %46 = arith.addf %44, %45 : vector<16x256xf32>
    %c0_23 = arith.constant 0 : index
    %c0_24 = arith.constant 0 : index
    %47 = vector.load %arg10[%c0_23, %c0_24] : memref<16x256xf32, #tpu.memory_space<vmem>>, vector<16x256xf32>
    tpu.vector_store %arg10[%c0_23, %c0_24], %46 {strides = array<i32>} : memref<16x256xf32, #tpu.memory_space<vmem>>, vector<16x256xf32>,
    %48 = arith.index_cast %c0_i32_10 : i32 to index
    %c0_25 = arith.constant 0 : index
    %c0_26 = arith.constant 0 : index
    %49 = vector.load %arg8[%48, %c0_25, %c0_26] : memref<10x16x256xf32, #tpu.memory_space<vmem>>, vector<1x16x256xf32>
    %50 = vector.shape_cast %49 : vector<1x16x256xf32> to vector<16x256xf32>
    %51 = vector.shape_cast %46 : vector<16x256xf32> to vector<1x16x256xf32>
    tpu.vector_store %arg8[%48, %c0_25, %c0_26], %51 {strides = array<i32>} : memref<10x16x256xf32, #tpu.memory_space<vmem>>, vector<1x16x256xf32>,
    %c1_i32 = arith.constant 1 : i32
    %c0_27 = arith.constant 0 : index
    %c0_28 = arith.constant 0 : index
    %52 = vector.load %arg10[%c0_27, %c0_28] : memref<16x256xf32, #tpu.memory_space<vmem>>, vector<16x256xf32>
    %53 = arith.index_cast %c1_i32 : i32 to index
    %c0_29 = arith.constant 0 : index
    %c0_30 = arith.constant 0 : index
    %54 = vector.load %arg9[%53, %c0_29, %c0_30] : memref<10x16x768xf32, #tpu.memory_space<vmem>>, vector<1x16x768xf32>
    %55 = vector.shape_cast %54 : vector<1x16x768xf32> to vector<16x768xf32>
    %c0_31 = arith.constant 0 : index
    %c0_32 = arith.constant 0 : index
    %56 = vector.load %arg6[%c0_31, %c0_32] : memref<256x768xf32, #tpu.memory_space<vmem>>, vector<256x768xf32>
    %cst_33 = arith.constant dense<0.000000e+00> : vector<16x768xf32>
    %57 = tpu.matmul %52, %56, %cst_33 {dimension_numbers = #tpu.dot_dimension_numbers<[1], [0], [0], [1], [0, 0, 1, 1], [], []>} : vector<16x256xf32>, vector<256x768xf32>, vector<16x768xf32> -> vector<16x768xf32>
    %c0_34 = arith.constant 0 : index
    %c0_35 = arith.constant 0 : index
    %58 = vector.load %arg7[%c0_34, %c0_35] : memref<1x768xf32, #tpu.memory_space<vmem>>, vector<1x768xf32>
    %59 = vector.broadcast %58 : vector<1x768xf32> to vector<16x768xf32>
    %60 = arith.addf %57, %59 : vector<16x768xf32>
    %61 = vector.extract_strided_slice %55 {offsets = [0, 0], sizes = [16, 256], strides = [1, 1]} : vector<16x768xf32> to vector<16x256xf32>
    %62 = vector.extract_strided_slice %60 {offsets = [0, 0], sizes = [16, 256], strides = [1, 1]} : vector<16x768xf32> to vector<16x256xf32>
    %63 = arith.addf %61, %62 : vector<16x256xf32>
    %64 = arith.negf %63 : vector<16x256xf32>
    %65 = math.exp %64 : vector<16x256xf32>
    %cst_36 = arith.constant 1.000000e+00 : f32
    %66 = vector.broadcast %cst_36 : f32 to vector<16x256xf32>
    %67 = arith.addf %66, %65 : vector<16x256xf32>
    %68 = arith.divf %66, %67 : vector<16x256xf32>
    %69 = vector.extract_strided_slice %55 {offsets = [0, 256], sizes = [16, 256], strides = [1, 1]} : vector<16x768xf32> to vector<16x256xf32>
    %70 = vector.extract_strided_slice %60 {offsets = [0, 256], sizes = [16, 256], strides = [1, 1]} : vector<16x768xf32> to vector<16x256xf32>
    %71 = arith.addf %69, %70 : vector<16x256xf32>
    %72 = arith.negf %71 : vector<16x256xf32>
    %73 = math.exp %72 : vector<16x256xf32>
    %cst_37 = arith.constant 1.000000e+00 : f32
    %74 = vector.broadcast %cst_37 : f32 to vector<16x256xf32>
    %75 = arith.addf %74, %73 : vector<16x256xf32>
    %76 = arith.divf %74, %75 : vector<16x256xf32>
    %77 = vector.extract_strided_slice %55 {offsets = [0, 512], sizes = [16, 256], strides = [1, 1]} : vector<16x768xf32> to vector<16x256xf32>
    %78 = vector.extract_strided_slice %60 {offsets = [0, 512], sizes = [16, 256], strides = [1, 1]} : vector<16x768xf32> to vector<16x256xf32>
    %79 = arith.mulf %68, %78 : vector<16x256xf32>
    %80 = arith.addf %77, %79 : vector<16x256xf32>
    %81 = math.tanh %80 : vector<16x256xf32>
    %cst_38 = arith.constant 1.000000e+00 : f32
    %82 = vector.broadcast %cst_38 : f32 to vector<16x256xf32>
    %83 = arith.subf %82, %76 : vector<16x256xf32>
    %84 = arith.mulf %83, %81 : vector<16x256xf32>
    %85 = arith.mulf %76, %52 : vector<16x256xf32>
    %86 = arith.addf %84, %85 : vector<16x256xf32>
    %c0_39 = arith.constant 0 : index
    %c0_40 = arith.constant 0 : index
    %87 = vector.load %arg10[%c0_39, %c0_40] : memref<16x256xf32, #tpu.memory_space<vmem>>, vector<16x256xf32>
    tpu.vector_store %arg10[%c0_39, %c0_40], %86 {strides = array<i32>} : memref<16x256xf32, #tpu.memory_space<vmem>>, vector<16x256xf32>,
    %88 = arith.index_cast %c1_i32 : i32 to index
    %c0_41 = arith.constant 0 : index
    %c0_42 = arith.constant 0 : index
    %89 = vector.load %arg8[%88, %c0_41, %c0_42] : memref<10x16x256xf32, #tpu.memory_space<vmem>>, vector<1x16x256xf32>
    %90 = vector.shape_cast %89 : vector<1x16x256xf32> to vector<16x256xf32>
    %91 = vector.shape_cast %86 : vector<16x256xf32> to vector<1x16x256xf32>
    tpu.vector_store %arg8[%88, %c0_41, %c0_42], %91 {strides = array<i32>} : memref<10x16x256xf32, #tpu.memory_space<vmem>>, vector<1x16x256xf32>,
    %c2_i32 = arith.constant 2 : i32
    %c0_43 = arith.constant 0 : index
    %c0_44 = arith.constant 0 : index
    %92 = vector.load %arg10[%c0_43, %c0_44] : memref<16x256xf32, #tpu.memory_space<vmem>>, vector<16x256xf32>
    %93 = arith.index_cast %c2_i32 : i32 to index
    %c0_45 = arith.constant 0 : index
    %c0_46 = arith.constant 0 : index
    %94 = vector.load %arg9[%93, %c0_45, %c0_46] : memref<10x16x768xf32, #tpu.memory_space<vmem>>, vector<1x16x768xf32>
    %95 = vector.shape_cast %94 : vector<1x16x768xf32> to vector<16x768xf32>
    %c0_47 = arith.constant 0 : index
    %c0_48 = arith.constant 0 : index
    %96 = vector.load %arg6[%c0_47, %c0_48] : memref<256x768xf32, #tpu.memory_space<vmem>>, vector<256x768xf32>
    %cst_49 = arith.constant dense<0.000000e+00> : vector<16x768xf32>
    %97 = tpu.matmul %92, %96, %cst_49 {dimension_numbers = #tpu.dot_dimension_numbers<[1], [0], [0], [1], [0, 0, 1, 1], [], []>} : vector<16x256xf32>, vector<256x768xf32>, vector<16x768xf32> -> vector<16x768xf32>
    %c0_50 = arith.constant 0 : index
    %c0_51 = arith.constant 0 : index
    %98 = vector.load %arg7[%c0_50, %c0_51] : memref<1x768xf32, #tpu.memory_space<vmem>>, vector<1x768xf32>
    %99 = vector.broadcast %98 : vector<1x768xf32> to vector<16x768xf32>
    %100 = arith.addf %97, %99 : vector<16x768xf32>
    %101 = vector.extract_strided_slice %95 {offsets = [0, 0], sizes = [16, 256], strides = [1, 1]} : vector<16x768xf32> to vector<16x256xf32>
    %102 = vector.extract_strided_slice %100 {offsets = [0, 0], sizes = [16, 256], strides = [1, 1]} : vector<16x768xf32> to vector<16x256xf32>
    %103 = arith.addf %101, %102 : vector<16x256xf32>
    %104 = arith.negf %103 : vector<16x256xf32>
    %105 = math.exp %104 : vector<16x256xf32>
    %cst_52 = arith.constant 1.000000e+00 : f32
    %106 = vector.broadcast %cst_52 : f32 to vector<16x256xf32>
    %107 = arith.addf %106, %105 : vector<16x256xf32>
    %108 = arith.divf %106, %107 : vector<16x256xf32>
    %109 = vector.extract_strided_slice %95 {offsets = [0, 256], sizes = [16, 256], strides = [1, 1]} : vector<16x768xf32> to vector<16x256xf32>
    %110 = vector.extract_strided_slice %100 {offsets = [0, 256], sizes = [16, 256], strides = [1, 1]} : vector<16x768xf32> to vector<16x256xf32>
    %111 = arith.addf %109, %110 : vector<16x256xf32>
    %112 = arith.negf %111 : vector<16x256xf32>
    %113 = math.exp %112 : vector<16x256xf32>
    %cst_53 = arith.constant 1.000000e+00 : f32
    %114 = vector.broadcast %cst_53 : f32 to vector<16x256xf32>
    %115 = arith.addf %114, %113 : vector<16x256xf32>
    %116 = arith.divf %114, %115 : vector<16x256xf32>
    %117 = vector.extract_strided_slice %95 {offsets = [0, 512], sizes = [16, 256], strides = [1, 1]} : vector<16x768xf32> to vector<16x256xf32>
    %118 = vector.extract_strided_slice %100 {offsets = [0, 512], sizes = [16, 256], strides = [1, 1]} : vector<16x768xf32> to vector<16x256xf32>
    %119 = arith.mulf %108, %118 : vector<16x256xf32>
    %120 = arith.addf %117, %119 : vector<16x256xf32>
    %121 = math.tanh %120 : vector<16x256xf32>
    %cst_54 = arith.constant 1.000000e+00 : f32
    %122 = vector.broadcast %cst_54 : f32 to vector<16x256xf32>
    %123 = arith.subf %122, %116 : vector<16x256xf32>
    %124 = arith.mulf %123, %121 : vector<16x256xf32>
    %125 = arith.mulf %116, %92 : vector<16x256xf32>
    %126 = arith.addf %124, %125 : vector<16x256xf32>
    %c0_55 = arith.constant 0 : index
    %c0_56 = arith.constant 0 : index
    %127 = vector.load %arg10[%c0_55, %c0_56] : memref<16x256xf32, #tpu.memory_space<vmem>>, vector<16x256xf32>
    tpu.vector_store %arg10[%c0_55, %c0_56], %126 {strides = array<i32>} : memref<16x256xf32, #tpu.memory_space<vmem>>, vector<16x256xf32>,
    %128 = arith.index_cast %c2_i32 : i32 to index
    %c0_57 = arith.constant 0 : index
    %c0_58 = arith.constant 0 : index
    %129 = vector.load %arg8[%128, %c0_57, %c0_58] : memref<10x16x256xf32, #tpu.memory_space<vmem>>, vector<1x16x256xf32>
    %130 = vector.shape_cast %129 : vector<1x16x256xf32> to vector<16x256xf32>
    %131 = vector.shape_cast %126 : vector<16x256xf32> to vector<1x16x256xf32>
    tpu.vector_store %arg8[%128, %c0_57, %c0_58], %131 {strides = array<i32>} : memref<10x16x256xf32, #tpu.memory_space<vmem>>, vector<1x16x256xf32>,
    %c3_i32 = arith.constant 3 : i32
    %c0_59 = arith.constant 0 : index
    %c0_60 = arith.constant 0 : index
    %132 = vector.load %arg10[%c0_59, %c0_60] : memref<16x256xf32, #tpu.memory_space<vmem>>, vector<16x256xf32>
    %133 = arith.index_cast %c3_i32 : i32 to index
    %c0_61 = arith.constant 0 : index
    %c0_62 = arith.constant 0 : index
    %134 = vector.load %arg9[%133, %c0_61, %c0_62] : memref<10x16x768xf32, #tpu.memory_space<vmem>>, vector<1x16x768xf32>
    %135 = vector.shape_cast %134 : vector<1x16x768xf32> to vector<16x768xf32>
    %c0_63 = arith.constant 0 : index
    %c0_64 = arith.constant 0 : index
    %136 = vector.load %arg6[%c0_63, %c0_64] : memref<256x768xf32, #tpu.memory_space<vmem>>, vector<256x768xf32>
    %cst_65 = arith.constant dense<0.000000e+00> : vector<16x768xf32>
    %137 = tpu.matmul %132, %136, %cst_65 {dimension_numbers = #tpu.dot_dimension_numbers<[1], [0], [0], [1], [0, 0, 1, 1], [], []>} : vector<16x256xf32>, vector<256x768xf32>, vector<16x768xf32> -> vector<16x768xf32>
    %c0_66 = arith.constant 0 : index
    %c0_67 = arith.constant 0 : index
    %138 = vector.load %arg7[%c0_66, %c0_67] : memref<1x768xf32, #tpu.memory_space<vmem>>, vector<1x768xf32>
    %139 = vector.broadcast %138 : vector<1x768xf32> to vector<16x768xf32>
    %140 = arith.addf %137, %139 : vector<16x768xf32>
    %141 = vector.extract_strided_slice %135 {offsets = [0, 0], sizes = [16, 256], strides = [1, 1]} : vector<16x768xf32> to vector<16x256xf32>
    %142 = vector.extract_strided_slice %140 {offsets = [0, 0], sizes = [16, 256], strides = [1, 1]} : vector<16x768xf32> to vector<16x256xf32>
    %143 = arith.addf %141, %142 : vector<16x256xf32>
    %144 = arith.negf %143 : vector<16x256xf32>
    %145 = math.exp %144 : vector<16x256xf32>
    %cst_68 = arith.constant 1.000000e+00 : f32
    %146 = vector.broadcast %cst_68 : f32 to vector<16x256xf32>
    %147 = arith.addf %146, %145 : vector<16x256xf32>
    %148 = arith.divf %146, %147 : vector<16x256xf32>
    %149 = vector.extract_strided_slice %135 {offsets = [0, 256], sizes = [16, 256], strides = [1, 1]} : vector<16x768xf32> to vector<16x256xf32>
    %150 = vector.extract_strided_slice %140 {offsets = [0, 256], sizes = [16, 256], strides = [1, 1]} : vector<16x768xf32> to vector<16x256xf32>
    %151 = arith.addf %149, %150 : vector<16x256xf32>
    %152 = arith.negf %151 : vector<16x256xf32>
    %153 = math.exp %152 : vector<16x256xf32>
    %cst_69 = arith.constant 1.000000e+00 : f32
    %154 = vector.broadcast %cst_69 : f32 to vector<16x256xf32>
    %155 = arith.addf %154, %153 : vector<16x256xf32>
    %156 = arith.divf %154, %155 : vector<16x256xf32>
    %157 = vector.extract_strided_slice %135 {offsets = [0, 512], sizes = [16, 256], strides = [1, 1]} : vector<16x768xf32> to vector<16x256xf32>
    %158 = vector.extract_strided_slice %140 {offsets = [0, 512], sizes = [16, 256], strides = [1, 1]} : vector<16x768xf32> to vector<16x256xf32>
    %159 = arith.mulf %148, %158 : vector<16x256xf32>
    %160 = arith.addf %157, %159 : vector<16x256xf32>
    %161 = math.tanh %160 : vector<16x256xf32>
    %cst_70 = arith.constant 1.000000e+00 : f32
    %162 = vector.broadcast %cst_70 : f32 to vector<16x256xf32>
    %163 = arith.subf %162, %156 : vector<16x256xf32>
    %164 = arith.mulf %163, %161 : vector<16x256xf32>
    %165 = arith.mulf %156, %132 : vector<16x256xf32>
    %166 = arith.addf %164, %165 : vector<16x256xf32>
    %c0_71 = arith.constant 0 : index
    %c0_72 = arith.constant 0 : index
    %167 = vector.load %arg10[%c0_71, %c0_72] : memref<16x256xf32, #tpu.memory_space<vmem>>, vector<16x256xf32>
    tpu.vector_store %arg10[%c0_71, %c0_72], %166 {strides = array<i32>} : memref<16x256xf32, #tpu.memory_space<vmem>>, vector<16x256xf32>,
    %168 = arith.index_cast %c3_i32 : i32 to index
    %c0_73 = arith.constant 0 : index
    %c0_74 = arith.constant 0 : index
    %169 = vector.load %arg8[%168, %c0_73, %c0_74] : memref<10x16x256xf32, #tpu.memory_space<vmem>>, vector<1x16x256xf32>
    %170 = vector.shape_cast %169 : vector<1x16x256xf32> to vector<16x256xf32>
    %171 = vector.shape_cast %166 : vector<16x256xf32> to vector<1x16x256xf32>
    tpu.vector_store %arg8[%168, %c0_73, %c0_74], %171 {strides = array<i32>} : memref<10x16x256xf32, #tpu.memory_space<vmem>>, vector<1x16x256xf32>,
    %c4_i32 = arith.constant 4 : i32
    %c0_75 = arith.constant 0 : index
    %c0_76 = arith.constant 0 : index
    %172 = vector.load %arg10[%c0_75, %c0_76] : memref<16x256xf32, #tpu.memory_space<vmem>>, vector<16x256xf32>
    %173 = arith.index_cast %c4_i32 : i32 to index
    %c0_77 = arith.constant 0 : index
    %c0_78 = arith.constant 0 : index
    %174 = vector.load %arg9[%173, %c0_77, %c0_78] : memref<10x16x768xf32, #tpu.memory_space<vmem>>, vector<1x16x768xf32>
    %175 = vector.shape_cast %174 : vector<1x16x768xf32> to vector<16x768xf32>
    %c0_79 = arith.constant 0 : index
    %c0_80 = arith.constant 0 : index
    %176 = vector.load %arg6[%c0_79, %c0_80] : memref<256x768xf32, #tpu.memory_space<vmem>>, vector<256x768xf32>
    %cst_81 = arith.constant dense<0.000000e+00> : vector<16x768xf32>
    %177 = tpu.matmul %172, %176, %cst_81 {dimension_numbers = #tpu.dot_dimension_numbers<[1], [0], [0], [1], [0, 0, 1, 1], [], []>} : vector<16x256xf32>, vector<256x768xf32>, vector<16x768xf32> -> vector<16x768xf32>
    %c0_82 = arith.constant 0 : index
    %c0_83 = arith.constant 0 : index
    %178 = vector.load %arg7[%c0_82, %c0_83] : memref<1x768xf32, #tpu.memory_space<vmem>>, vector<1x768xf32>
    %179 = vector.broadcast %178 : vector<1x768xf32> to vector<16x768xf32>
    %180 = arith.addf %177, %179 : vector<16x768xf32>
    %181 = vector.extract_strided_slice %175 {offsets = [0, 0], sizes = [16, 256], strides = [1, 1]} : vector<16x768xf32> to vector<16x256xf32>
    %182 = vector.extract_strided_slice %180 {offsets = [0, 0], sizes = [16, 256], strides = [1, 1]} : vector<16x768xf32> to vector<16x256xf32>
    %183 = arith.addf %181, %182 : vector<16x256xf32>
    %184 = arith.negf %183 : vector<16x256xf32>
    %185 = math.exp %184 : vector<16x256xf32>
    %cst_84 = arith.constant 1.000000e+00 : f32
    %186 = vector.broadcast %cst_84 : f32 to vector<16x256xf32>
    %187 = arith.addf %186, %185 : vector<16x256xf32>
    %188 = arith.divf %186, %187 : vector<16x256xf32>
    %189 = vector.extract_strided_slice %175 {offsets = [0, 256], sizes = [16, 256], strides = [1, 1]} : vector<16x768xf32> to vector<16x256xf32>
    %190 = vector.extract_strided_slice %180 {offsets = [0, 256], sizes = [16, 256], strides = [1, 1]} : vector<16x768xf32> to vector<16x256xf32>
    %191 = arith.addf %189, %190 : vector<16x256xf32>
    %192 = arith.negf %191 : vector<16x256xf32>
    %193 = math.exp %192 : vector<16x256xf32>
    %cst_85 = arith.constant 1.000000e+00 : f32
    %194 = vector.broadcast %cst_85 : f32 to vector<16x256xf32>
    %195 = arith.addf %194, %193 : vector<16x256xf32>
    %196 = arith.divf %194, %195 : vector<16x256xf32>
    %197 = vector.extract_strided_slice %175 {offsets = [0, 512], sizes = [16, 256], strides = [1, 1]} : vector<16x768xf32> to vector<16x256xf32>
    %198 = vector.extract_strided_slice %180 {offsets = [0, 512], sizes = [16, 256], strides = [1, 1]} : vector<16x768xf32> to vector<16x256xf32>
    %199 = arith.mulf %188, %198 : vector<16x256xf32>
    %200 = arith.addf %197, %199 : vector<16x256xf32>
    %201 = math.tanh %200 : vector<16x256xf32>
    %cst_86 = arith.constant 1.000000e+00 : f32
    %202 = vector.broadcast %cst_86 : f32 to vector<16x256xf32>
    %203 = arith.subf %202, %196 : vector<16x256xf32>
    %204 = arith.mulf %203, %201 : vector<16x256xf32>
    %205 = arith.mulf %196, %172 : vector<16x256xf32>
    %206 = arith.addf %204, %205 : vector<16x256xf32>
    %c0_87 = arith.constant 0 : index
    %c0_88 = arith.constant 0 : index
    %207 = vector.load %arg10[%c0_87, %c0_88] : memref<16x256xf32, #tpu.memory_space<vmem>>, vector<16x256xf32>
    tpu.vector_store %arg10[%c0_87, %c0_88], %206 {strides = array<i32>} : memref<16x256xf32, #tpu.memory_space<vmem>>, vector<16x256xf32>,
    %208 = arith.index_cast %c4_i32 : i32 to index
    %c0_89 = arith.constant 0 : index
    %c0_90 = arith.constant 0 : index
    %209 = vector.load %arg8[%208, %c0_89, %c0_90] : memref<10x16x256xf32, #tpu.memory_space<vmem>>, vector<1x16x256xf32>
    %210 = vector.shape_cast %209 : vector<1x16x256xf32> to vector<16x256xf32>
    %211 = vector.shape_cast %206 : vector<16x256xf32> to vector<1x16x256xf32>
    tpu.vector_store %arg8[%208, %c0_89, %c0_90], %211 {strides = array<i32>} : memref<10x16x256xf32, #tpu.memory_space<vmem>>, vector<1x16x256xf32>,
    %c5_i32 = arith.constant 5 : i32
    %c0_91 = arith.constant 0 : index
    %c0_92 = arith.constant 0 : index
    %212 = vector.load %arg10[%c0_91, %c0_92] : memref<16x256xf32, #tpu.memory_space<vmem>>, vector<16x256xf32>
    %213 = arith.index_cast %c5_i32 : i32 to index
    %c0_93 = arith.constant 0 : index
    %c0_94 = arith.constant 0 : index
    %214 = vector.load %arg9[%213, %c0_93, %c0_94] : memref<10x16x768xf32, #tpu.memory_space<vmem>>, vector<1x16x768xf32>
    %215 = vector.shape_cast %214 : vector<1x16x768xf32> to vector<16x768xf32>
    %c0_95 = arith.constant 0 : index
    %c0_96 = arith.constant 0 : index
    %216 = vector.load %arg6[%c0_95, %c0_96] : memref<256x768xf32, #tpu.memory_space<vmem>>, vector<256x768xf32>
    %cst_97 = arith.constant dense<0.000000e+00> : vector<16x768xf32>
    %217 = tpu.matmul %212, %216, %cst_97 {dimension_numbers = #tpu.dot_dimension_numbers<[1], [0], [0], [1], [0, 0, 1, 1], [], []>} : vector<16x256xf32>, vector<256x768xf32>, vector<16x768xf32> -> vector<16x768xf32>
    %c0_98 = arith.constant 0 : index
    %c0_99 = arith.constant 0 : index
    %218 = vector.load %arg7[%c0_98, %c0_99] : memref<1x768xf32, #tpu.memory_space<vmem>>, vector<1x768xf32>
    %219 = vector.broadcast %218 : vector<1x768xf32> to vector<16x768xf32>
    %220 = arith.addf %217, %219 : vector<16x768xf32>
    %221 = vector.extract_strided_slice %215 {offsets = [0, 0], sizes = [16, 256], strides = [1, 1]} : vector<16x768xf32> to vector<16x256xf32>
    %222 = vector.extract_strided_slice %220 {offsets = [0, 0], sizes = [16, 256], strides = [1, 1]} : vector<16x768xf32> to vector<16x256xf32>
    %223 = arith.addf %221, %222 : vector<16x256xf32>
    %224 = arith.negf %223 : vector<16x256xf32>
    %225 = math.exp %224 : vector<16x256xf32>
    %cst_100 = arith.constant 1.000000e+00 : f32
    %226 = vector.broadcast %cst_100 : f32 to vector<16x256xf32>
    %227 = arith.addf %226, %225 : vector<16x256xf32>
    %228 = arith.divf %226, %227 : vector<16x256xf32>
    %229 = vector.extract_strided_slice %215 {offsets = [0, 256], sizes = [16, 256], strides = [1, 1]} : vector<16x768xf32> to vector<16x256xf32>
    %230 = vector.extract_strided_slice %220 {offsets = [0, 256], sizes = [16, 256], strides = [1, 1]} : vector<16x768xf32> to vector<16x256xf32>
    %231 = arith.addf %229, %230 : vector<16x256xf32>
    %232 = arith.negf %231 : vector<16x256xf32>
    %233 = math.exp %232 : vector<16x256xf32>
    %cst_101 = arith.constant 1.000000e+00 : f32
    %234 = vector.broadcast %cst_101 : f32 to vector<16x256xf32>
    %235 = arith.addf %234, %233 : vector<16x256xf32>
    %236 = arith.divf %234, %235 : vector<16x256xf32>
    %237 = vector.extract_strided_slice %215 {offsets = [0, 512], sizes = [16, 256], strides = [1, 1]} : vector<16x768xf32> to vector<16x256xf32>
    %238 = vector.extract_strided_slice %220 {offsets = [0, 512], sizes = [16, 256], strides = [1, 1]} : vector<16x768xf32> to vector<16x256xf32>
    %239 = arith.mulf %228, %238 : vector<16x256xf32>
    %240 = arith.addf %237, %239 : vector<16x256xf32>
    %241 = math.tanh %240 : vector<16x256xf32>
    %cst_102 = arith.constant 1.000000e+00 : f32
    %242 = vector.broadcast %cst_102 : f32 to vector<16x256xf32>
    %243 = arith.subf %242, %236 : vector<16x256xf32>
    %244 = arith.mulf %243, %241 : vector<16x256xf32>
    %245 = arith.mulf %236, %212 : vector<16x256xf32>
    %246 = arith.addf %244, %245 : vector<16x256xf32>
    %c0_103 = arith.constant 0 : index
    %c0_104 = arith.constant 0 : index
    %247 = vector.load %arg10[%c0_103, %c0_104] : memref<16x256xf32, #tpu.memory_space<vmem>>, vector<16x256xf32>
    tpu.vector_store %arg10[%c0_103, %c0_104], %246 {strides = array<i32>} : memref<16x256xf32, #tpu.memory_space<vmem>>, vector<16x256xf32>,
    %248 = arith.index_cast %c5_i32 : i32 to index
    %c0_105 = arith.constant 0 : index
    %c0_106 = arith.constant 0 : index
    %249 = vector.load %arg8[%248, %c0_105, %c0_106] : memref<10x16x256xf32, #tpu.memory_space<vmem>>, vector<1x16x256xf32>
    %250 = vector.shape_cast %249 : vector<1x16x256xf32> to vector<16x256xf32>
    %251 = vector.shape_cast %246 : vector<16x256xf32> to vector<1x16x256xf32>
    tpu.vector_store %arg8[%248, %c0_105, %c0_106], %251 {strides = array<i32>} : memref<10x16x256xf32, #tpu.memory_space<vmem>>, vector<1x16x256xf32>,
    %c6_i32 = arith.constant 6 : i32
    %c0_107 = arith.constant 0 : index
    %c0_108 = arith.constant 0 : index
    %252 = vector.load %arg10[%c0_107, %c0_108] : memref<16x256xf32, #tpu.memory_space<vmem>>, vector<16x256xf32>
    %253 = arith.index_cast %c6_i32 : i32 to index
    %c0_109 = arith.constant 0 : index
    %c0_110 = arith.constant 0 : index
    %254 = vector.load %arg9[%253, %c0_109, %c0_110] : memref<10x16x768xf32, #tpu.memory_space<vmem>>, vector<1x16x768xf32>
    %255 = vector.shape_cast %254 : vector<1x16x768xf32> to vector<16x768xf32>
    %c0_111 = arith.constant 0 : index
    %c0_112 = arith.constant 0 : index
    %256 = vector.load %arg6[%c0_111, %c0_112] : memref<256x768xf32, #tpu.memory_space<vmem>>, vector<256x768xf32>
    %cst_113 = arith.constant dense<0.000000e+00> : vector<16x768xf32>
    %257 = tpu.matmul %252, %256, %cst_113 {dimension_numbers = #tpu.dot_dimension_numbers<[1], [0], [0], [1], [0, 0, 1, 1], [], []>} : vector<16x256xf32>, vector<256x768xf32>, vector<16x768xf32> -> vector<16x768xf32>
    %c0_114 = arith.constant 0 : index
    %c0_115 = arith.constant 0 : index
    %258 = vector.load %arg7[%c0_114, %c0_115] : memref<1x768xf32, #tpu.memory_space<vmem>>, vector<1x768xf32>
    %259 = vector.broadcast %258 : vector<1x768xf32> to vector<16x768xf32>
    %260 = arith.addf %257, %259 : vector<16x768xf32>
    %261 = vector.extract_strided_slice %255 {offsets = [0, 0], sizes = [16, 256], strides = [1, 1]} : vector<16x768xf32> to vector<16x256xf32>
    %262 = vector.extract_strided_slice %260 {offsets = [0, 0], sizes = [16, 256], strides = [1, 1]} : vector<16x768xf32> to vector<16x256xf32>
    %263 = arith.addf %261, %262 : vector<16x256xf32>
    %264 = arith.negf %263 : vector<16x256xf32>
    %265 = math.exp %264 : vector<16x256xf32>
    %cst_116 = arith.constant 1.000000e+00 : f32
    %266 = vector.broadcast %cst_116 : f32 to vector<16x256xf32>
    %267 = arith.addf %266, %265 : vector<16x256xf32>
    %268 = arith.divf %266, %267 : vector<16x256xf32>
    %269 = vector.extract_strided_slice %255 {offsets = [0, 256], sizes = [16, 256], strides = [1, 1]} : vector<16x768xf32> to vector<16x256xf32>
    %270 = vector.extract_strided_slice %260 {offsets = [0, 256], sizes = [16, 256], strides = [1, 1]} : vector<16x768xf32> to vector<16x256xf32>
    %271 = arith.addf %269, %270 : vector<16x256xf32>
    %272 = arith.negf %271 : vector<16x256xf32>
    %273 = math.exp %272 : vector<16x256xf32>
    %cst_117 = arith.constant 1.000000e+00 : f32
    %274 = vector.broadcast %cst_117 : f32 to vector<16x256xf32>
    %275 = arith.addf %274, %273 : vector<16x256xf32>
    %276 = arith.divf %274, %275 : vector<16x256xf32>
    %277 = vector.extract_strided_slice %255 {offsets = [0, 512], sizes = [16, 256], strides = [1, 1]} : vector<16x768xf32> to vector<16x256xf32>
    %278 = vector.extract_strided_slice %260 {offsets = [0, 512], sizes = [16, 256], strides = [1, 1]} : vector<16x768xf32> to vector<16x256xf32>
    %279 = arith.mulf %268, %278 : vector<16x256xf32>
    %280 = arith.addf %277, %279 : vector<16x256xf32>
    %281 = math.tanh %280 : vector<16x256xf32>
    %cst_118 = arith.constant 1.000000e+00 : f32
    %282 = vector.broadcast %cst_118 : f32 to vector<16x256xf32>
    %283 = arith.subf %282, %276 : vector<16x256xf32>
    %284 = arith.mulf %283, %281 : vector<16x256xf32>
    %285 = arith.mulf %276, %252 : vector<16x256xf32>
    %286 = arith.addf %284, %285 : vector<16x256xf32>
    %c0_119 = arith.constant 0 : index
    %c0_120 = arith.constant 0 : index
    %287 = vector.load %arg10[%c0_119, %c0_120] : memref<16x256xf32, #tpu.memory_space<vmem>>, vector<16x256xf32>
    tpu.vector_store %arg10[%c0_119, %c0_120], %286 {strides = array<i32>} : memref<16x256xf32, #tpu.memory_space<vmem>>, vector<16x256xf32>,
    %288 = arith.index_cast %c6_i32 : i32 to index
    %c0_121 = arith.constant 0 : index
    %c0_122 = arith.constant 0 : index
    %289 = vector.load %arg8[%288, %c0_121, %c0_122] : memref<10x16x256xf32, #tpu.memory_space<vmem>>, vector<1x16x256xf32>
    %290 = vector.shape_cast %289 : vector<1x16x256xf32> to vector<16x256xf32>
    %291 = vector.shape_cast %286 : vector<16x256xf32> to vector<1x16x256xf32>
    tpu.vector_store %arg8[%288, %c0_121, %c0_122], %291 {strides = array<i32>} : memref<10x16x256xf32, #tpu.memory_space<vmem>>, vector<1x16x256xf32>,
    %c7_i32 = arith.constant 7 : i32
    %c0_123 = arith.constant 0 : index
    %c0_124 = arith.constant 0 : index
    %292 = vector.load %arg10[%c0_123, %c0_124] : memref<16x256xf32, #tpu.memory_space<vmem>>, vector<16x256xf32>
    %293 = arith.index_cast %c7_i32 : i32 to index
    %c0_125 = arith.constant 0 : index
    %c0_126 = arith.constant 0 : index
    %294 = vector.load %arg9[%293, %c0_125, %c0_126] : memref<10x16x768xf32, #tpu.memory_space<vmem>>, vector<1x16x768xf32>
    %295 = vector.shape_cast %294 : vector<1x16x768xf32> to vector<16x768xf32>
    %c0_127 = arith.constant 0 : index
    %c0_128 = arith.constant 0 : index
    %296 = vector.load %arg6[%c0_127, %c0_128] : memref<256x768xf32, #tpu.memory_space<vmem>>, vector<256x768xf32>
    %cst_129 = arith.constant dense<0.000000e+00> : vector<16x768xf32>
    %297 = tpu.matmul %292, %296, %cst_129 {dimension_numbers = #tpu.dot_dimension_numbers<[1], [0], [0], [1], [0, 0, 1, 1], [], []>} : vector<16x256xf32>, vector<256x768xf32>, vector<16x768xf32> -> vector<16x768xf32>
    %c0_130 = arith.constant 0 : index
    %c0_131 = arith.constant 0 : index
    %298 = vector.load %arg7[%c0_130, %c0_131] : memref<1x768xf32, #tpu.memory_space<vmem>>, vector<1x768xf32>
    %299 = vector.broadcast %298 : vector<1x768xf32> to vector<16x768xf32>
    %300 = arith.addf %297, %299 : vector<16x768xf32>
    %301 = vector.extract_strided_slice %295 {offsets = [0, 0], sizes = [16, 256], strides = [1, 1]} : vector<16x768xf32> to vector<16x256xf32>
    %302 = vector.extract_strided_slice %300 {offsets = [0, 0], sizes = [16, 256], strides = [1, 1]} : vector<16x768xf32> to vector<16x256xf32>
    %303 = arith.addf %301, %302 : vector<16x256xf32>
    %304 = arith.negf %303 : vector<16x256xf32>
    %305 = math.exp %304 : vector<16x256xf32>
    %cst_132 = arith.constant 1.000000e+00 : f32
    %306 = vector.broadcast %cst_132 : f32 to vector<16x256xf32>
    %307 = arith.addf %306, %305 : vector<16x256xf32>
    %308 = arith.divf %306, %307 : vector<16x256xf32>
    %309 = vector.extract_strided_slice %295 {offsets = [0, 256], sizes = [16, 256], strides = [1, 1]} : vector<16x768xf32> to vector<16x256xf32>
    %310 = vector.extract_strided_slice %300 {offsets = [0, 256], sizes = [16, 256], strides = [1, 1]} : vector<16x768xf32> to vector<16x256xf32>
    %311 = arith.addf %309, %310 : vector<16x256xf32>
    %312 = arith.negf %311 : vector<16x256xf32>
    %313 = math.exp %312 : vector<16x256xf32>
    %cst_133 = arith.constant 1.000000e+00 : f32
    %314 = vector.broadcast %cst_133 : f32 to vector<16x256xf32>
    %315 = arith.addf %314, %313 : vector<16x256xf32>
    %316 = arith.divf %314, %315 : vector<16x256xf32>
    %317 = vector.extract_strided_slice %295 {offsets = [0, 512], sizes = [16, 256], strides = [1, 1]} : vector<16x768xf32> to vector<16x256xf32>
    %318 = vector.extract_strided_slice %300 {offsets = [0, 512], sizes = [16, 256], strides = [1, 1]} : vector<16x768xf32> to vector<16x256xf32>
    %319 = arith.mulf %308, %318 : vector<16x256xf32>
    %320 = arith.addf %317, %319 : vector<16x256xf32>
    %321 = math.tanh %320 : vector<16x256xf32>
    %cst_134 = arith.constant 1.000000e+00 : f32
    %322 = vector.broadcast %cst_134 : f32 to vector<16x256xf32>
    %323 = arith.subf %322, %316 : vector<16x256xf32>
    %324 = arith.mulf %323, %321 : vector<16x256xf32>
    %325 = arith.mulf %316, %292 : vector<16x256xf32>
    %326 = arith.addf %324, %325 : vector<16x256xf32>
    %c0_135 = arith.constant 0 : index
    %c0_136 = arith.constant 0 : index
    %327 = vector.load %arg10[%c0_135, %c0_136] : memref<16x256xf32, #tpu.memory_space<vmem>>, vector<16x256xf32>
    tpu.vector_store %arg10[%c0_135, %c0_136], %326 {strides = array<i32>} : memref<16x256xf32, #tpu.memory_space<vmem>>, vector<16x256xf32>,
    %328 = arith.index_cast %c7_i32 : i32 to index
    %c0_137 = arith.constant 0 : index
    %c0_138 = arith.constant 0 : index
    %329 = vector.load %arg8[%328, %c0_137, %c0_138] : memref<10x16x256xf32, #tpu.memory_space<vmem>>, vector<1x16x256xf32>
    %330 = vector.shape_cast %329 : vector<1x16x256xf32> to vector<16x256xf32>
    %331 = vector.shape_cast %326 : vector<16x256xf32> to vector<1x16x256xf32>
    tpu.vector_store %arg8[%328, %c0_137, %c0_138], %331 {strides = array<i32>} : memref<10x16x256xf32, #tpu.memory_space<vmem>>, vector<1x16x256xf32>,
    %c8_i32 = arith.constant 8 : i32
    %c0_139 = arith.constant 0 : index
    %c0_140 = arith.constant 0 : index
    %332 = vector.load %arg10[%c0_139, %c0_140] : memref<16x256xf32, #tpu.memory_space<vmem>>, vector<16x256xf32>
    %333 = arith.index_cast %c8_i32 : i32 to index
    %c0_141 = arith.constant 0 : index
    %c0_142 = arith.constant 0 : index
    %334 = vector.load %arg9[%333, %c0_141, %c0_142] : memref<10x16x768xf32, #tpu.memory_space<vmem>>, vector<1x16x768xf32>
    %335 = vector.shape_cast %334 : vector<1x16x768xf32> to vector<16x768xf32>
    %c0_143 = arith.constant 0 : index
    %c0_144 = arith.constant 0 : index
    %336 = vector.load %arg6[%c0_143, %c0_144] : memref<256x768xf32, #tpu.memory_space<vmem>>, vector<256x768xf32>
    %cst_145 = arith.constant dense<0.000000e+00> : vector<16x768xf32>
    %337 = tpu.matmul %332, %336, %cst_145 {dimension_numbers = #tpu.dot_dimension_numbers<[1], [0], [0], [1], [0, 0, 1, 1], [], []>} : vector<16x256xf32>, vector<256x768xf32>, vector<16x768xf32> -> vector<16x768xf32>
    %c0_146 = arith.constant 0 : index
    %c0_147 = arith.constant 0 : index
    %338 = vector.load %arg7[%c0_146, %c0_147] : memref<1x768xf32, #tpu.memory_space<vmem>>, vector<1x768xf32>
    %339 = vector.broadcast %338 : vector<1x768xf32> to vector<16x768xf32>
    %340 = arith.addf %337, %339 : vector<16x768xf32>
    %341 = vector.extract_strided_slice %335 {offsets = [0, 0], sizes = [16, 256], strides = [1, 1]} : vector<16x768xf32> to vector<16x256xf32>
    %342 = vector.extract_strided_slice %340 {offsets = [0, 0], sizes = [16, 256], strides = [1, 1]} : vector<16x768xf32> to vector<16x256xf32>
    %343 = arith.addf %341, %342 : vector<16x256xf32>
    %344 = arith.negf %343 : vector<16x256xf32>
    %345 = math.exp %344 : vector<16x256xf32>
    %cst_148 = arith.constant 1.000000e+00 : f32
    %346 = vector.broadcast %cst_148 : f32 to vector<16x256xf32>
    %347 = arith.addf %346, %345 : vector<16x256xf32>
    %348 = arith.divf %346, %347 : vector<16x256xf32>
    %349 = vector.extract_strided_slice %335 {offsets = [0, 256], sizes = [16, 256], strides = [1, 1]} : vector<16x768xf32> to vector<16x256xf32>
    %350 = vector.extract_strided_slice %340 {offsets = [0, 256], sizes = [16, 256], strides = [1, 1]} : vector<16x768xf32> to vector<16x256xf32>
    %351 = arith.addf %349, %350 : vector<16x256xf32>
    %352 = arith.negf %351 : vector<16x256xf32>
    %353 = math.exp %352 : vector<16x256xf32>
    %cst_149 = arith.constant 1.000000e+00 : f32
    %354 = vector.broadcast %cst_149 : f32 to vector<16x256xf32>
    %355 = arith.addf %354, %353 : vector<16x256xf32>
    %356 = arith.divf %354, %355 : vector<16x256xf32>
    %357 = vector.extract_strided_slice %335 {offsets = [0, 512], sizes = [16, 256], strides = [1, 1]} : vector<16x768xf32> to vector<16x256xf32>
    %358 = vector.extract_strided_slice %340 {offsets = [0, 512], sizes = [16, 256], strides = [1, 1]} : vector<16x768xf32> to vector<16x256xf32>
    %359 = arith.mulf %348, %358 : vector<16x256xf32>
    %360 = arith.addf %357, %359 : vector<16x256xf32>
    %361 = math.tanh %360 : vector<16x256xf32>
    %cst_150 = arith.constant 1.000000e+00 : f32
    %362 = vector.broadcast %cst_150 : f32 to vector<16x256xf32>
    %363 = arith.subf %362, %356 : vector<16x256xf32>
    %364 = arith.mulf %363, %361 : vector<16x256xf32>
    %365 = arith.mulf %356, %332 : vector<16x256xf32>
    %366 = arith.addf %364, %365 : vector<16x256xf32>
    %c0_151 = arith.constant 0 : index
    %c0_152 = arith.constant 0 : index
    %367 = vector.load %arg10[%c0_151, %c0_152] : memref<16x256xf32, #tpu.memory_space<vmem>>, vector<16x256xf32>
    tpu.vector_store %arg10[%c0_151, %c0_152], %366 {strides = array<i32>} : memref<16x256xf32, #tpu.memory_space<vmem>>, vector<16x256xf32>,
    %368 = arith.index_cast %c8_i32 : i32 to index
    %c0_153 = arith.constant 0 : index
    %c0_154 = arith.constant 0 : index
    %369 = vector.load %arg8[%368, %c0_153, %c0_154] : memref<10x16x256xf32, #tpu.memory_space<vmem>>, vector<1x16x256xf32>
    %370 = vector.shape_cast %369 : vector<1x16x256xf32> to vector<16x256xf32>
    %371 = vector.shape_cast %366 : vector<16x256xf32> to vector<1x16x256xf32>
    tpu.vector_store %arg8[%368, %c0_153, %c0_154], %371 {strides = array<i32>} : memref<10x16x256xf32, #tpu.memory_space<vmem>>, vector<1x16x256xf32>,
    %c9_i32 = arith.constant 9 : i32
    %c0_155 = arith.constant 0 : index
    %c0_156 = arith.constant 0 : index
    %372 = vector.load %arg10[%c0_155, %c0_156] : memref<16x256xf32, #tpu.memory_space<vmem>>, vector<16x256xf32>
    %373 = arith.index_cast %c9_i32 : i32 to index
    %c0_157 = arith.constant 0 : index
    %c0_158 = arith.constant 0 : index
    %374 = vector.load %arg9[%373, %c0_157, %c0_158] : memref<10x16x768xf32, #tpu.memory_space<vmem>>, vector<1x16x768xf32>
    %375 = vector.shape_cast %374 : vector<1x16x768xf32> to vector<16x768xf32>
    %c0_159 = arith.constant 0 : index
    %c0_160 = arith.constant 0 : index
    %376 = vector.load %arg6[%c0_159, %c0_160] : memref<256x768xf32, #tpu.memory_space<vmem>>, vector<256x768xf32>
    %cst_161 = arith.constant dense<0.000000e+00> : vector<16x768xf32>
    %377 = tpu.matmul %372, %376, %cst_161 {dimension_numbers = #tpu.dot_dimension_numbers<[1], [0], [0], [1], [0, 0, 1, 1], [], []>} : vector<16x256xf32>, vector<256x768xf32>, vector<16x768xf32> -> vector<16x768xf32>
    %c0_162 = arith.constant 0 : index
    %c0_163 = arith.constant 0 : index
    %378 = vector.load %arg7[%c0_162, %c0_163] : memref<1x768xf32, #tpu.memory_space<vmem>>, vector<1x768xf32>
    %379 = vector.broadcast %378 : vector<1x768xf32> to vector<16x768xf32>
    %380 = arith.addf %377, %379 : vector<16x768xf32>
    %381 = vector.extract_strided_slice %375 {offsets = [0, 0], sizes = [16, 256], strides = [1, 1]} : vector<16x768xf32> to vector<16x256xf32>
    %382 = vector.extract_strided_slice %380 {offsets = [0, 0], sizes = [16, 256], strides = [1, 1]} : vector<16x768xf32> to vector<16x256xf32>
    %383 = arith.addf %381, %382 : vector<16x256xf32>
    %384 = arith.negf %383 : vector<16x256xf32>
    %385 = math.exp %384 : vector<16x256xf32>
    %cst_164 = arith.constant 1.000000e+00 : f32
    %386 = vector.broadcast %cst_164 : f32 to vector<16x256xf32>
    %387 = arith.addf %386, %385 : vector<16x256xf32>
    %388 = arith.divf %386, %387 : vector<16x256xf32>
    %389 = vector.extract_strided_slice %375 {offsets = [0, 256], sizes = [16, 256], strides = [1, 1]} : vector<16x768xf32> to vector<16x256xf32>
    %390 = vector.extract_strided_slice %380 {offsets = [0, 256], sizes = [16, 256], strides = [1, 1]} : vector<16x768xf32> to vector<16x256xf32>
    %391 = arith.addf %389, %390 : vector<16x256xf32>
    %392 = arith.negf %391 : vector<16x256xf32>
    %393 = math.exp %392 : vector<16x256xf32>
    %cst_165 = arith.constant 1.000000e+00 : f32
    %394 = vector.broadcast %cst_165 : f32 to vector<16x256xf32>
    %395 = arith.addf %394, %393 : vector<16x256xf32>
    %396 = arith.divf %394, %395 : vector<16x256xf32>
    %397 = vector.extract_strided_slice %375 {offsets = [0, 512], sizes = [16, 256], strides = [1, 1]} : vector<16x768xf32> to vector<16x256xf32>
    %398 = vector.extract_strided_slice %380 {offsets = [0, 512], sizes = [16, 256], strides = [1, 1]} : vector<16x768xf32> to vector<16x256xf32>
    %399 = arith.mulf %388, %398 : vector<16x256xf32>
    %400 = arith.addf %397, %399 : vector<16x256xf32>
    %401 = math.tanh %400 : vector<16x256xf32>
    %cst_166 = arith.constant 1.000000e+00 : f32
    %402 = vector.broadcast %cst_166 : f32 to vector<16x256xf32>
    %403 = arith.subf %402, %396 : vector<16x256xf32>
    %404 = arith.mulf %403, %401 : vector<16x256xf32>
    %405 = arith.mulf %396, %372 : vector<16x256xf32>
    %406 = arith.addf %404, %405 : vector<16x256xf32>
    %c0_167 = arith.constant 0 : index
    %c0_168 = arith.constant 0 : index
    %407 = vector.load %arg10[%c0_167, %c0_168] : memref<16x256xf32, #tpu.memory_space<vmem>>, vector<16x256xf32>
    tpu.vector_store %arg10[%c0_167, %c0_168], %406 {strides = array<i32>} : memref<16x256xf32, #tpu.memory_space<vmem>>, vector<16x256xf32>,
    %408 = arith.index_cast %c9_i32 : i32 to index
    %c0_169 = arith.constant 0 : index
    %c0_170 = arith.constant 0 : index
    %409 = vector.load %arg8[%408, %c0_169, %c0_170] : memref<10x16x256xf32, #tpu.memory_space<vmem>>, vector<1x16x256xf32>
    %410 = vector.shape_cast %409 : vector<1x16x256xf32> to vector<16x256xf32>
    %411 = vector.shape_cast %406 : vector<16x256xf32> to vector<1x16x256xf32>
    tpu.vector_store %arg8[%408, %c0_169, %c0_170], %411 {strides = array<i32>} : memref<10x16x256xf32, #tpu.memory_space<vmem>>, vector<1x16x256xf32>,
    %c10_i32 = arith.constant 10 : i32
    return
  }
  func.func @transform_0(%arg0: i32, %arg1: i32) -> (i32, i32, i32) {
    %c0_i32 = arith.constant 0 : i32
    %c0_i32_0 = arith.constant 0 : i32
    return %arg1, %arg0, %c0_i32 : i32, i32, i32
  }
  func.func @transform_1(%arg0: i32, %arg1: i32) -> (i32, i32) {
    %c0_i32 = arith.constant 0 : i32
    %c0_i32_0 = arith.constant 0 : i32
    return %arg0, %c0_i32 : i32, i32
  }
  func.func @transform_2(%arg0: i32, %arg1: i32) -> (i32, i32) {
    %c0_i32 = arith.constant 0 : i32
    %c0_i32_0 = arith.constant 0 : i32
    %c0_i32_1 = arith.constant 0 : i32
    return %c0_i32, %c0_i32_0 : i32, i32
  }
  func.func @transform_3(%arg0: i32, %arg1: i32) -> (i32, i32) {
    %c0_i32 = arith.constant 0 : i32
    %c0_i32_0 = arith.constant 0 : i32
    %c0_i32_1 = arith.constant 0 : i32
    return %c0_i32, %c0_i32_0 : i32, i32
  }
  func.func @transform_4(%arg0: i32, %arg1: i32) -> (i32, i32) {
    %c0_i32 = arith.constant 0 : i32
    %c0_i32_0 = arith.constant 0 : i32
    %c0_i32_1 = arith.constant 0 : i32
    return %c0_i32, %c0_i32_0 : i32, i32
  }
  func.func @transform_5(%arg0: i32, %arg1: i32) -> (i32, i32) {
    %c0_i32 = arith.constant 0 : i32
    %c0_i32_0 = arith.constant 0 : i32
    %c0_i32_1 = arith.constant 0 : i32
    return %c0_i32, %c0_i32_0 : i32, i32
  }
  func.func @transform_6(%arg0: i32, %arg1: i32) -> (i32, i32, i32) {
    %c0_i32 = arith.constant 0 : i32
    %c0_i32_0 = arith.constant 0 : i32
    return %arg1, %arg0, %c0_i32 : i32, i32, i32
  }
}

</mosaic_0001>

<bundles_post_ra>
// kernel: tpu_custom_call.1
= control target key start
LH: loop header
LB: loop body
LE: loop exit
PB: predicated region body
PF: predicated region fallthrough
CT: control target
= control target key end

     0   :  { %11 = vsyncpa [#allocation5], 0  ;;  %s12267_s0 = inlined_call_operand.hbm [shape: f32[10,16,256], index: 0, kind: input, shape index: {}]   ;;  %s12268_s1 = inlined_call_operand.hbm [shape: f32[16,256], index: 1, kind: input, shape index: {}]   ;;  %s12269_s2 = inlined_call_operand.hbm [shape: f32[256,768], index: 2, kind: input, shape index: {}]   ;;  %s12270_s3 = inlined_call_operand.vmem [shape: f32[1,768], index: 3, kind: input, shape index: {}]   ;;  %s12271_s4 = inlined_call_operand.hbm [shape: f32[256,768], index: 4, kind: input, shape index: {}]   ;;  %s12272_s5 = inlined_call_operand.vmem [shape: f32[1,768], index: 5, kind: input, shape index: {}]   ;;  %s12273_s6 = inlined_call_operand.hbm [shape: f32[10,16,256], index: 6, kind: output, shape index: {}]  }
   0x1   :  { %12 = vsyncpa [#allocation8], 0 }
   0x2   :  { %13 = vsyncpa [#allocation11], 0 }
   0x3   :  { %14 = vsyncpa [#allocation6], 0  ;;  %s9660_s21 = smov [#allocation7]   ;;  %s9661_s23 = smov [#allocation4]  }
   0x4   :  { %s32_s22 = sshll.u32 %s9660_s21, 4  ;;  %s20_s24 = sshll.u32 %s9661_s23, 4  ;;  %s33_s22 = int_to_ptr.vmem [resolvable:$true] %s32_s22  ;;  %s9704_s24 = int_to_ptr.vmem [resolvable:$true] %s20_s24 }
   0x5   :  { %s9542_s27 = scalar_lea.hbm %s12268_s1, 512 }
   0x6   :  { %p9543_p0 = scmp.ne.s32.totalorder %s12268_s1, %s9542_s27  ;;  %p9546_p1 = scmp.lt.u32.totalorder %s9542_s27, %s12268_s1 }
   0x8   :  { %p9548_p2 = pnand %p9546_p1, %p9543_p0 }
   0xa   :  { %9551 = shalt.err (!%p9548_p2)
}
   0xb   :  { %s9552_s8 = scalar_lea.vmem %s33_s22, 512  ;;  %p9557_p4 = scmp.lt.s32.totalorder %s33_s22, %s33_s22 }
   0xc   :  { %p9553_p3 = scmp.ne.s32.totalorder %s33_s22, %s9552_s8  ;;  %p9558_p5 = scmp.lt.s32.totalorder %s9552_s8, %s9552_s8 }
   0xe   :  { %p9559_p6 = por %p9558_p5, %p9557_p4 }
  0x10   :  { %p9560_p7 = pnand %p9559_p6, %p9553_p3 }
  0x12   :  { %9563 = shalt.err (!%p9560_p7)
}
  0x13   :  { %s9662_s9 = smov 256   ;;  %s9663_s10 = smov 16  }
  0x14   :  { %38 = dma.hbm_to_vmem [thread:$0]  %s12268_s1, 512, %s33_s22, [#allocation8], %s9662_s9, %s9662_s9, %s9663_s10  }
  0x15   :  { %s9564_s15 = scalar_lea.hbm %s12267_s0, 5120 }
  0x16   :  { %p9565_p8 = scmp.ne.s32.totalorder %s12267_s0, %s9564_s15  ;;  %p9568_p9 = scmp.lt.u32.totalorder %s9564_s15, %s12267_s0 }
  0x18   :  { %p9570_p10 = pnand %p9568_p9, %p9565_p8 }
  0x1a   :  { %9573 = shalt.err (!%p9570_p10)
}
  0x1b   :  { %s9574_s20 = scalar_lea.vmem %s9704_s24, 5120  ;;  %p9579_p12 = scmp.lt.s32.totalorder %s9704_s24, %s9704_s24 }
  0x1c   :  { %p9575_p11 = scmp.ne.s32.totalorder %s9704_s24, %s9574_s20  ;;  %p9580_p13 = scmp.lt.s32.totalorder %s9574_s20, %s9574_s20 }
  0x1e   :  { %p9581_p0 = por %p9580_p13, %p9579_p12 }
  0x20   :  { %p9582_p1 = pnand %p9581_p0, %p9575_p11 }
  0x22   :  { %9585 = shalt.err (!%p9582_p1)
}
  0x23   :  { %26 = dma.hbm_to_vmem [thread:$0]  %s12267_s0, 5120, %s9704_s24, [#allocation5], %s9662_s9, %s9662_s9, %s9663_s10  }
  0x24   :  { %s9664_s22 = smov [#allocation9]   ;;  %s9586_s27 = scalar_lea.hbm %s12269_s2, 24576 }
  0x25   :  { %s44_s23 = sshll.u32 %s9664_s22, 4  ;;  %p9587_p2 = scmp.ne.s32.totalorder %s12269_s2, %s9586_s27  ;;  %s45_s23 = int_to_ptr.vmem [resolvable:$true] %s44_s23 }
  0x26   :  { %p9590_p3 = scmp.lt.u32.totalorder %s9586_s27, %s12269_s2 }
  0x28   :  { %p9592_p4 = pnand %p9590_p3, %p9587_p2 }
  0x2a   :  { %9595 = shalt.err (!%p9592_p4)
}
  0x2b   :  { %s9596_s8 = scalar_lea.vmem %s45_s23, 24576  ;;  %p9601_p6 = scmp.lt.s32.totalorder %s45_s23, %s45_s23 }
  0x2c   :  { %p9597_p5 = scmp.ne.s32.totalorder %s45_s23, %s9596_s8  ;;  %p9602_p7 = scmp.lt.s32.totalorder %s9596_s8, %s9596_s8 }
  0x2e   :  { %p9603_p8 = por %p9602_p7, %p9601_p6 }
  0x30   :  { %p9604_p9 = pnand %p9603_p8, %p9597_p5 }
  0x32   :  { %9607 = shalt.err (!%p9604_p9)
}
  0x33   :  { %s9665_s0 = smov 768   ;;  %s9666_s24 = smov 48  }
  0x34   :  { %50 = dma.hbm_to_vmem [thread:$0]  %s12269_s2, 24576, %s45_s23, [#allocation8], %s9665_s0, %s9665_s0, %s9666_s24  }
  0x35   :  { %s9667_s13 = smov [#allocation10]   ;;  %s9608_s17 = scalar_lea.hbm %s12271_s4, 24576 }
  0x36   :  { %s58_s14 = sshll.u32 %s9667_s13, 4  ;;  %p9609_p10 = scmp.ne.s32.totalorder %s12271_s4, %s9608_s17  ;;  %s59_s14 = int_to_ptr.vmem [resolvable:$true] %s58_s14 }
  0x37   :  { %p9612_p11 = scmp.lt.u32.totalorder %s9608_s17, %s12271_s4 }
  0x39   :  { %p9614_p12 = pnand %p9612_p11, %p9609_p10 }
  0x3b   :  { %9617 = shalt.err (!%p9614_p12)
}
  0x3c   :  { %s9618_s21 = scalar_lea.vmem %s59_s14, 24576  ;;  %p9623_p0 = scmp.lt.s32.totalorder %s59_s14, %s59_s14 }
  0x3d   :  { %p9619_p13 = scmp.ne.s32.totalorder %s59_s14, %s9618_s21  ;;  %p9624_p1 = scmp.lt.s32.totalorder %s9618_s21, %s9618_s21 }
  0x3f   :  { %p9625_p2 = por %p9624_p1, %p9623_p0 }
  0x41   :  { %p9626_p3 = pnand %p9625_p2, %p9619_p13 }
  0x43   :  { %9629 = shalt.err (!%p9626_p3)
}
  0x44   :  { %64 = dma.hbm_to_vmem [thread:$0]  %s12271_s4, 24576, %s59_s14, [#allocation11], %s9665_s0, %s9665_s0, %s9666_s24  }
  0x45   :  { %9652 = dma.done.wait [#allocation5], 5120  }
  0x46   :  { %9653 = vsyncadd [#allocation5], 4294962176 }
  0x47   :  { %9654 = dma.done.wait [#allocation8], 25088  }
  0x48   :  { %9655 = vsyncadd [#allocation8], 4294942208 }
  0x49   :  { %9656 = dma.done.wait [#allocation11], 24576  }
  0x4a   :  { %9657 = vsyncadd [#allocation11], 4294942720  ;;  %v132_v0 = vld [vmem:[#allocation9 + $0x8] sm:$0xff]  ;;  %v138_v1 = vld [vmem:[#allocation9 + $0x38] sm:$0xff] }
  0x4b   :  { %v134_v2 = vld [vmem:[#allocation9 + $0x18] sm:$0xff]  ;;  %v6777_v3 = vpack.c.bf16 %v138_v1, %v132_v0  ;;  %v140_v4 = vld [vmem:[#allocation9 + $0x48] sm:$0xff]  ;;  %v131_v5 = vld [vmem:[#allocation9] sm:$0xff] }
  0x4c   :  { %v137_v6 = vld [vmem:[#allocation9 + $0x30] sm:$0xff]  ;;  %v6841_v7 = vpack.c.bf16 %v140_v4, %v134_v2  ;;  %v139_v10 = vld [vmem:[#allocation9 + $0x40] sm:$0xff]  ;;  %v144_v11 = vld [vmem:[#allocation9 + $0x68] sm:$0xff] }
  0x4d   :  { %v6779_v8 = vpack.c.bf16 %v137_v6, %v131_v5  ;;  %v133_v9 = vld [vmem:[#allocation9 + $0x10] sm:$0xff]  ;;  %6778 = vmatprep.subr.bf16.mxu0 %v6777_v3  ;;  %v150_v13 = vld [vmem:[#allocation9 + $0x98] sm:$0xff]  ;;  %v152_v15 = vld [vmem:[#allocation9 + $0xa8] sm:$0xff] }
  0x4e   :  { %v6843_v12 = vpack.c.bf16 %v139_v10, %v133_v9  ;;  %v146_v14 = vld [vmem:[#allocation9 + $0x78] sm:$0xff]  ;;  %6842 = vmatprep.subr.bf16.mxu1 %v6841_v7  ;;  %v6781_v16 = vpack.c.bf16 %v150_v13, %v144_v11  ;;  %v143_v18 = vld [vmem:[#allocation9 + $0x60] sm:$0xff]  ;;  %v149_v19 = vld [vmem:[#allocation9 + $0x90] sm:$0xff] }
  0x4f   :  { %6780 = vmatpush1.bf16.msra.mxu0 %v6779_v8  ;;  %v6845_v17 = vpack.c.bf16 %v152_v15, %v146_v14  ;;  %v145_v20 = vld [vmem:[#allocation9 + $0x70] sm:$0xff]  ;;  %v6783_v21 = vpack.c.bf16 %v149_v19, %v143_v18  ;;  %v151_v22 = vld [vmem:[#allocation9 + $0xa0] sm:$0xff]  ;;  %v156_v23 = vld [vmem:[#allocation9 + $0xc8] sm:$0xff] }
  0x50   :  { %6844 = vmatpush1.bf16.msra.mxu1 %v6843_v12  ;;  %v162_v24 = vld [vmem:[#allocation9 + $0xf8] sm:$0xff]  ;;  %6782 = vmatprep.subr.bf16.mxu0 %v6781_v16  ;;  %v6847_v25 = vpack.c.bf16 %v151_v22, %v145_v20  ;;  %v164_v28 = vld [vmem:[#allocation9 + $0x108] sm:$0xff]  ;;  %v155_v29 = vld [vmem:[#allocation9 + $0xc0] sm:$0xff] }
  0x51   :  { %6846 = vmatprep.subr.bf16.mxu1 %v6845_v17  ;;  %v6785_v26 = vpack.c.bf16 %v162_v24, %v156_v23  ;;  %v158_v27 = vld [vmem:[#allocation9 + $0xd8] sm:$0xff]  ;;  %v161_v31 = vld [vmem:[#allocation9 + $0xf0] sm:$0xff]  ;;  %v163_v33 = vld [vmem:[#allocation9 + $0x100] sm:$0xff] }
  0x52   :  { %v6849_v30 = vpack.c.bf16 %v164_v28, %v158_v27  ;;  %v157_v32 = vld [vmem:[#allocation9 + $0xd0] sm:$0xff]  ;;  %v6787_v34 = vpack.c.bf16 %v161_v31, %v155_v29  ;;  %v168_v35 = vld [vmem:[#allocation9 + $0x128] sm:$0xff]  ;;  %v174_v36 = vld [vmem:[#allocation9 + $0x158] sm:$0xff] }
  0x53   :  { %6784 = vmatpush1.bf16.msra.mxu0 %v6783_v21  ;;  %v170_v37 = vld [vmem:[#allocation9 + $0x138] sm:$0xff]  ;;  %v6851_v38 = vpack.c.bf16 %v163_v33, %v157_v32  ;;  %v6789_v39 = vpack.c.bf16 %v174_v36, %v168_v35  ;;  %v176_v40 = vld [vmem:[#allocation9 + $0x168] sm:$0xff]  ;;  %v167_v41 = vld [vmem:[#allocation9 + $0x120] sm:$0xff] }
  0x54   :  { %6848 = vmatpush1.bf16.msra.mxu1 %v6847_v25  ;;  %6786 = vmatprep.subr.bf16.mxu0 %v6785_v26  ;;  %v173_v42 = vld [vmem:[#allocation9 + $0x150] sm:$0xff]  ;;  %v6853_v43 = vpack.c.bf16 %v176_v40, %v170_v37  ;;  %v175_v45 = vld [vmem:[#allocation9 + $0x160] sm:$0xff]  ;;  %v180_v46 = vld [vmem:[#allocation9 + $0x188] sm:$0xff] }
  0x55   :  { %6850 = vmatprep.subr.bf16.mxu1 %v6849_v30  ;;  %v169_v44 = vld [vmem:[#allocation9 + $0x130] sm:$0xff]  ;;  %v186_v47 = vld [vmem:[#allocation9 + $0x1b8] sm:$0xff]  ;;  %v188_v49 = vld [vmem:[#allocation9 + $0x1c8] sm:$0xff]  ;;  %v6791_v50 = vpack.c.bf16 %v173_v42, %v167_v41 }
  0x56   :  { %v182_v48 = vld [vmem:[#allocation9 + $0x198] sm:$0xff]  ;;  %v6855_v51 = vpack.c.bf16 %v175_v45, %v169_v44  ;;  %v6793_v52 = vpack.c.bf16 %v186_v47, %v180_v46  ;;  %v179_v53 = vld [vmem:[#allocation9 + $0x180] sm:$0xff]  ;;  %v185_v54 = vld [vmem:[#allocation9 + $0x1b0] sm:$0xff] }
  0x57   :  { %6788 = vmatpush1.bf16.msra.mxu0 %v6787_v34  ;;  %v181_v55 = vld [vmem:[#allocation9 + $0x190] sm:$0xff]  ;;  %v6857_v56 = vpack.c.bf16 %v188_v49, %v182_v48  ;;  %v187_v57 = vld [vmem:[#allocation9 + $0x1c0] sm:$0xff]  ;;  %v192_v58 = vld [vmem:[#allocation9 + $0x1e8] sm:$0xff]  ;;  %v6795_v62 = vpack.c.bf16 %v185_v54, %v179_v53 }
  0x58   :  { %6852 = vmatpush1.bf16.msra.mxu1 %v6851_v38  ;;  %6790 = vmatprep.subr.bf16.mxu0 %v6789_v39  ;;  %v198_v59 = vld [vmem:[#allocation9 + $0x218] sm:$0xff]  ;;  %v200_v61 = vld [vmem:[#allocation9 + $0x228] sm:$0xff]  ;;  %v6859_v63 = vpack.c.bf16 %v187_v57, %v181_v55  ;;  %v191_v1 = vld [vmem:[#allocation9 + $0x1e0] sm:$0xff] }
  0x59   :  { %6854 = vmatprep.subr.bf16.mxu1 %v6853_v43  ;;  %v194_v60 = vld [vmem:[#allocation9 + $0x1f8] sm:$0xff]  ;;  %v6797_v0 = vpack.c.bf16 %v198_v59, %v192_v58  ;;  %v197_v2 = vld [vmem:[#allocation9 + $0x210] sm:$0xff]  ;;  %v199_v5 = vld [vmem:[#allocation9 + $0x220] sm:$0xff] }
  0x5a   :  { %v193_v3 = vld [vmem:[#allocation9 + $0x1f0] sm:$0xff]  ;;  %v6861_v4 = vpack.c.bf16 %v200_v61, %v194_v60  ;;  %v204_v6 = vld [vmem:[#allocation9 + $0x248] sm:$0xff]  ;;  %v210_v7 = vld [vmem:[#allocation9 + $0x278] sm:$0xff]  ;;  %v6799_v10 = vpack.c.bf16 %v197_v2, %v191_v1 }
  0x5b   :  { %6792 = vmatpush1.bf16.msra.mxu0 %v6791_v50  ;;  %v206_v8 = vld [vmem:[#allocation9 + $0x258] sm:$0xff]  ;;  %v212_v9 = vld [vmem:[#allocation9 + $0x288] sm:$0xff]  ;;  %v6863_v11 = vpack.c.bf16 %v199_v5, %v193_v3  ;;  %v6801_v12 = vpack.c.bf16 %v210_v7, %v204_v6  ;;  %v203_v13 = vld [vmem:[#allocation9 + $0x240] sm:$0xff] }
  0x5c   :  { %6856 = vmatpush1.bf16.msra.mxu1 %v6855_v51  ;;  %6794 = vmatprep.subr.bf16.mxu0 %v6793_v52  ;;  %v209_v14 = vld [vmem:[#allocation9 + $0x270] sm:$0xff]  ;;  %v6865_v16 = vpack.c.bf16 %v212_v9, %v206_v8  ;;  %v211_v17 = vld [vmem:[#allocation9 + $0x280] sm:$0xff]  ;;  %v216_v18 = vld [vmem:[#allocation9 + $0x2a8] sm:$0xff] }
  0x5d   :  { %6858 = vmatprep.subr.bf16.mxu1 %v6857_v56  ;;  %v205_v15 = vld [vmem:[#allocation9 + $0x250] sm:$0xff]  ;;  %v222_v19 = vld [vmem:[#allocation9 + $0x2d8] sm:$0xff]  ;;  %v224_v21 = vld [vmem:[#allocation9 + $0x2e8] sm:$0xff]  ;;  %v6803_v22 = vpack.c.bf16 %v209_v14, %v203_v13 }
  0x5e   :  { %v218_v20 = vld [vmem:[#allocation9 + $0x2b8] sm:$0xff]  ;;  %v6867_v23 = vpack.c.bf16 %v211_v17, %v205_v15  ;;  %v6805_v24 = vpack.c.bf16 %v222_v19, %v216_v18  ;;  %v215_v25 = vld [vmem:[#allocation9 + $0x2a0] sm:$0xff]  ;;  %v221_v26 = vld [vmem:[#allocation9 + $0x2d0] sm:$0xff] }
  0x5f   :  { %6796 = vmatpush1.bf16.msra.mxu0 %v6795_v62  ;;  %v217_v27 = vld [vmem:[#allocation9 + $0x2b0] sm:$0xff]  ;;  %v6869_v28 = vpack.c.bf16 %v224_v21, %v218_v20  ;;  %v223_v29 = vld [vmem:[#allocation9 + $0x2e0] sm:$0xff]  ;;  %v228_v30 = vld [vmem:[#allocation9 + $0x308] sm:$0xff]  ;;  %v6807_v34 = vpack.c.bf16 %v221_v26, %v215_v25 }
  0x60   :  { %6860 = vmatpush1.bf16.msra.mxu1 %v6859_v63  ;;  %6798 = vmatprep.subr.bf16.mxu0 %v6797_v0  ;;  %v234_v31 = vld [vmem:[#allocation9 + $0x338] sm:$0xff]  ;;  %v236_v33 = vld [vmem:[#allocation9 + $0x348] sm:$0xff]  ;;  %v6871_v35 = vpack.c.bf16 %v223_v29, %v217_v27  ;;  %v227_v37 = vld [vmem:[#allocation9 + $0x300] sm:$0xff] }
  0x61   :  { %6862 = vmatprep.subr.bf16.mxu1 %v6861_v4  ;;  %v230_v32 = vld [vmem:[#allocation9 + $0x318] sm:$0xff]  ;;  %v6809_v36 = vpack.c.bf16 %v234_v31, %v228_v30  ;;  %v233_v38 = vld [vmem:[#allocation9 + $0x330] sm:$0xff]  ;;  %v235_v41 = vld [vmem:[#allocation9 + $0x340] sm:$0xff] }
  0x62   :  { %v229_v39 = vld [vmem:[#allocation9 + $0x310] sm:$0xff]  ;;  %v6873_v40 = vpack.c.bf16 %v236_v33, %v230_v32  ;;  %v240_v42 = vld [vmem:[#allocation9 + $0x368] sm:$0xff]  ;;  %v246_v43 = vld [vmem:[#allocation9 + $0x398] sm:$0xff]  ;;  %v6811_v46 = vpack.c.bf16 %v233_v38, %v227_v37 }
  0x63   :  { %6800 = vmatpush1.bf16.msra.mxu0 %v6799_v10  ;;  %v242_v44 = vld [vmem:[#allocation9 + $0x378] sm:$0xff]  ;;  %v248_v45 = vld [vmem:[#allocation9 + $0x3a8] sm:$0xff]  ;;  %v6875_v47 = vpack.c.bf16 %v235_v41, %v229_v39  ;;  %v6813_v48 = vpack.c.bf16 %v246_v43, %v240_v42  ;;  %v239_v49 = vld [vmem:[#allocation9 + $0x360] sm:$0xff] }
  0x64   :  { %6864 = vmatpush1.bf16.msra.mxu1 %v6863_v11  ;;  %6802 = vmatprep.subr.bf16.mxu0 %v6801_v12  ;;  %v245_v50 = vld [vmem:[#allocation9 + $0x390] sm:$0xff]  ;;  %v6877_v52 = vpack.c.bf16 %v248_v45, %v242_v44  ;;  %v247_v53 = vld [vmem:[#allocation9 + $0x3a0] sm:$0xff]  ;;  %v252_v54 = vld [vmem:[#allocation9 + $0x3c8] sm:$0xff] }
  0x65   :  { %6866 = vmatprep.subr.bf16.mxu1 %v6865_v16  ;;  %v241_v51 = vld [vmem:[#allocation9 + $0x370] sm:$0xff]  ;;  %v258_v55 = vld [vmem:[#allocation9 + $0x3f8] sm:$0xff]  ;;  %v260_v57 = vld [vmem:[#allocation9 + $0x408] sm:$0xff]  ;;  %v6815_v58 = vpack.c.bf16 %v245_v50, %v239_v49 }
  0x66   :  { %v254_v56 = vld [vmem:[#allocation9 + $0x3d8] sm:$0xff]  ;;  %v6879_v59 = vpack.c.bf16 %v247_v53, %v241_v51  ;;  %v6817_v60 = vpack.c.bf16 %v258_v55, %v252_v54  ;;  %v251_v61 = vld [vmem:[#allocation9 + $0x3c0] sm:$0xff]  ;;  %v257_v62 = vld [vmem:[#allocation9 + $0x3f0] sm:$0xff] }
  0x67   :  { %6804 = vmatpush1.bf16.msra.mxu0 %v6803_v22  ;;  %v253_v63 = vld [vmem:[#allocation9 + $0x3d0] sm:$0xff]  ;;  %v6881_v0 = vpack.c.bf16 %v260_v57, %v254_v56  ;;  %v259_v1 = vld [vmem:[#allocation9 + $0x400] sm:$0xff]  ;;  %v264_v2 = vld [vmem:[#allocation9 + $0x428] sm:$0xff]  ;;  %v6819_v6 = vpack.c.bf16 %v257_v62, %v251_v61 }
  0x68   :  { %6868 = vmatpush1.bf16.msra.mxu1 %v6867_v23  ;;  %6806 = vmatprep.subr.bf16.mxu0 %v6805_v24  ;;  %v270_v3 = vld [vmem:[#allocation9 + $0x458] sm:$0xff]  ;;  %v272_v5 = vld [vmem:[#allocation9 + $0x468] sm:$0xff]  ;;  %v263_v7 = vld [vmem:[#allocation9 + $0x420] sm:$0xff]  ;;  %v6883_v8 = vpack.c.bf16 %v259_v1, %v253_v63 }
  0x69   :  { %6870 = vmatprep.subr.bf16.mxu1 %v6869_v28  ;;  %v266_v4 = vld [vmem:[#allocation9 + $0x438] sm:$0xff]  ;;  %v6821_v9 = vpack.c.bf16 %v270_v3, %v264_v2  ;;  %v269_v10 = vld [vmem:[#allocation9 + $0x450] sm:$0xff]  ;;  %v271_v12 = vld [vmem:[#allocation9 + $0x460] sm:$0xff] }
  0x6a   :  { %v265_v11 = vld [vmem:[#allocation9 + $0x430] sm:$0xff]  ;;  %v6885_v13 = vpack.c.bf16 %v272_v5, %v266_v4  ;;  %v276_v14 = vld [vmem:[#allocation9 + $0x488] sm:$0xff]  ;;  %v282_v15 = vld [vmem:[#allocation9 + $0x4b8] sm:$0xff]  ;;  %v6823_v19 = vpack.c.bf16 %v269_v10, %v263_v7 }
  0x6b   :  { %6808 = vmatpush1.bf16.msra.mxu0 %v6807_v34  ;;  %v9765_v16 = vld [vmem:[#allocation4 + $0x8] sm:$0xff]  ;;  %v278_v17 = vld [vmem:[#allocation9 + $0x498] sm:$0xff]  ;;  %v6887_v20 = vpack.c.bf16 %v271_v12, %v265_v11  ;;  %v6825_v21 = vpack.c.bf16 %v282_v15, %v276_v14  ;;  %v275_v22 = vld [vmem:[#allocation9 + $0x480] sm:$0xff] }
  0x6c   :  { %6872 = vmatpush1.bf16.msra.mxu1 %v6871_v35  ;;  %6810 = vmatprep.subr.bf16.mxu0 %v6809_v36  ;;  %v284_v18 = vld [vmem:[#allocation9 + $0x4c8] sm:$0xff]  ;;  %v281_v23 = vld [vmem:[#allocation9 + $0x4b0] sm:$0xff]  ;;  %v283_v26 = vld [vmem:[#allocation9 + $0x4c0] sm:$0xff] }
  0x6d   :  { %6874 = vmatprep.subr.bf16.mxu1 %v6873_v40  ;;  %419 = vmatprep.mubr.f32.mxu0 %v9765_v16  ;;  %v277_v24 = vld [vmem:[#allocation9 + $0x490] sm:$0xff]  ;;  %v6889_v25 = vpack.c.bf16 %v284_v18, %v278_v17  ;;  %v288_v27 = vld [vmem:[#allocation9 + $0x4e8] sm:$0xff]  ;;  %v294_v28 = vld [vmem:[#allocation9 + $0x518] sm:$0xff]  ;;  %v6827_v31 = vpack.c.bf16 %v281_v23, %v275_v22 }
  0x6e   :  { %604 = vmatprep.mubr.f32.mxu1 %v9765_v16  ;;  %v290_v29 = vld [vmem:[#allocation9 + $0x4f8] sm:$0xff]  ;;  %v296_v30 = vld [vmem:[#allocation9 + $0x528] sm:$0xff]  ;;  %v6891_v32 = vpack.c.bf16 %v283_v26, %v277_v24  ;;  %v6829_v33 = vpack.c.bf16 %v294_v28, %v288_v27  ;;  %v287_v34 = vld [vmem:[#allocation9 + $0x4e0] sm:$0xff] }
  0x6f   :  { %6812 = vmatpush1.bf16.msra.mxu0 %v6811_v46  ;;  %v293_v35 = vld [vmem:[#allocation9 + $0x510] sm:$0xff]  ;;  %v6893_v37 = vpack.c.bf16 %v296_v30, %v290_v29  ;;  %v295_v38 = vld [vmem:[#allocation9 + $0x520] sm:$0xff]  ;;  %v300_v39 = vld [vmem:[#allocation9 + $0x548] sm:$0xff] }
  0x70   :  { %6876 = vmatpush1.bf16.msra.mxu1 %v6875_v47  ;;  %6814 = vmatprep.subr.bf16.mxu0 %v6813_v48  ;;  %v289_v36 = vld [vmem:[#allocation9 + $0x4f0] sm:$0xff]  ;;  %v306_v40 = vld [vmem:[#allocation9 + $0x578] sm:$0xff]  ;;  %v308_v42 = vld [vmem:[#allocation9 + $0x588] sm:$0xff]  ;;  %v6831_v43 = vpack.c.bf16 %v293_v35, %v287_v34 }
  0x71   :  { %6878 = vmatprep.subr.bf16.mxu1 %v6877_v52  ;;  %v302_v41 = vld [vmem:[#allocation9 + $0x558] sm:$0xff]  ;;  %v6895_v44 = vpack.c.bf16 %v295_v38, %v289_v36  ;;  %v6833_v45 = vpack.c.bf16 %v306_v40, %v300_v39  ;;  %v299_v46 = vld [vmem:[#allocation9 + $0x540] sm:$0xff]  ;;  %v305_v47 = vld [vmem:[#allocation9 + $0x570] sm:$0xff] }
  0x72   :  { %v301_v48 = vld [vmem:[#allocation9 + $0x550] sm:$0xff]  ;;  %v6897_v49 = vpack.c.bf16 %v308_v42, %v302_v41  ;;  %v307_v50 = vld [vmem:[#allocation9 + $0x580] sm:$0xff]  ;;  %v312_v51 = vld [vmem:[#allocation9 + $0x5a8] sm:$0xff]  ;;  %v6835_v55 = vpack.c.bf16 %v305_v47, %v299_v46 }
  0x73   :  { %6816 = vmatpush1.bf16.msra.mxu0 %v6815_v58  ;;  %v318_v52 = vld [vmem:[#allocation9 + $0x5d8] sm:$0xff]  ;;  %v320_v54 = vld [vmem:[#allocation9 + $0x5e8] sm:$0xff]  ;;  %v6899_v56 = vpack.c.bf16 %v307_v50, %v301_v48  ;;  %v311_v58 = vld [vmem:[#allocation9 + $0x5a0] sm:$0xff] }
  0x74   :  { %6880 = vmatpush1.bf16.msra.mxu1 %v6879_v59  ;;  %6818 = vmatprep.subr.bf16.mxu0 %v6817_v60  ;;  %v314_v53 = vld [vmem:[#allocation9 + $0x5b8] sm:$0xff]  ;;  %v6837_v57 = vpack.c.bf16 %v318_v52, %v312_v51  ;;  %v317_v59 = vld [vmem:[#allocation9 + $0x5d0] sm:$0xff]  ;;  %v319_v62 = vld [vmem:[#allocation9 + $0x5e0] sm:$0xff] }
  0x75   :  { %6882 = vmatprep.subr.bf16.mxu1 %v6881_v0  ;;  %v313_v60 = vld [vmem:[#allocation9 + $0x5b0] sm:$0xff]  ;;  %v6901_v61 = vpack.c.bf16 %v320_v54, %v314_v53  ;;  %v136_v63 = vld [vmem:[#allocation9 + $0x28] sm:$0xff]  ;;  %v142_v0 = vld [vmem:[#allocation9 + $0x58] sm:$0xff]  ;;  %v6839_v3 = vpack.c.bf16 %v317_v59, %v311_v58 }
  0x76   :  { %v1049_v1 = vld [vmem:[#allocation10 + $0x18] sm:$0xff]  ;;  %v1055_v2 = vld [vmem:[#allocation10 + $0x48] sm:$0xff]  ;;  %v6903_v4 = vpack.c.bf16 %v319_v62, %v313_v60  ;;  %v6905_v5 = vpack.c.bf16 %v142_v0, %v136_v63  ;;  %v141_v7 = vld [vmem:[#allocation9 + $0x50] sm:$0xff] }
  0x77   :  { %6820 = vmatpush1.bf16.msra.mxu0 %v6819_v6  ;;  %v135_v6 = vld [vmem:[#allocation9 + $0x20] sm:$0xff]  ;;  %v154_v10 = vld [vmem:[#allocation9 + $0xb8] sm:$0xff]  ;;  %v1048_v11 = vld [vmem:[#allocation10 + $0x10] sm:$0xff] }
  0x78   :  { %6884 = vmatpush1.bf16.msra.mxu1 %v6883_v8  ;;  %6822 = vmatprep.subr.bf16.mxu0 %v6821_v9  ;;  %v148_v8 = vld [vmem:[#allocation9 + $0x88] sm:$0xff]  ;;  %v7033_v9 = vpack.c.bf16 %v1055_v2, %v1049_v1  ;;  %v1054_v12 = vld [vmem:[#allocation10 + $0x40] sm:$0xff]  ;;  %v6907_v14 = vpack.c.bf16 %v141_v7, %v135_v6  ;;  %v1061_v15 = vld [vmem:[#allocation10 + $0x78] sm:$0xff] }
  0x79   :  { %6886 = vmatprep.subr.bf16.mxu1 %v6885_v13  ;;  %v9769_v13 = vld [vmem:[#allocation4] sm:$0xff]  ;;  %v1067_v17 = vld [vmem:[#allocation10 + $0xa8] sm:$0xff]  ;;  %v7035_v23 = vpack.c.bf16 %v1054_v12, %v1048_v11  ;;  %v166_v24 = vld [vmem:[#allocation9 + $0x118] sm:$0xff] }
  0x7a   :  { %v147_v18 = vld [vmem:[#allocation9 + $0x80] sm:$0xff]  ;;  %v160_v22 = vld [vmem:[#allocation9 + $0xe8] sm:$0xff]  ;;  %v1060_v26 = vld [vmem:[#allocation10 + $0x70] sm:$0xff] }
  0x7b   :  { %6824 = vmatpush1.bf16.msra.mxu0 %v6823_v19  ;;  %v153_v19 = vld [vmem:[#allocation9 + $0xb0] sm:$0xff]  ;;  %v1066_v27 = vld [vmem:[#allocation10 + $0xa0] sm:$0xff]  ;;  %v1073_v30 = vld [vmem:[#allocation10 + $0xd8] sm:$0xff] }
  0x7c   :  { %6888 = vmatpush1.bf16.msra.mxu1 %v6887_v20  ;;  %6826 = vmatprep.subr.bf16.mxu0 %v6825_v21  ;;  %v9771_v20 = vld [vmem:[#allocation4 + $0x18] sm:$0xff]  ;;  %v6909_v21 = vpack.c.bf16 %v154_v10, %v148_v8  ;;  %v9775_v28 = vld [vmem:[#allocation4 + $0x10] sm:$0xff]  ;;  %v6911_v29 = vpack.c.bf16 %v153_v19, %v147_v18  ;;  %v159_v34 = vld [vmem:[#allocation9 + $0xe0] sm:$0xff] }
  0x7d   :  { %6890 = vmatprep.subr.bf16.mxu1 %v6889_v25  ;;  %v7037_v25 = vpack.c.bf16 %v1067_v17, %v1061_v15  ;;  %v165_v35 = vld [vmem:[#allocation9 + $0x110] sm:$0xff]  ;;  %v172_v36 = vld [vmem:[#allocation9 + $0x148] sm:$0xff]  ;;  %v178_v38 = vld [vmem:[#allocation9 + $0x178] sm:$0xff] }
  0x7e   :  { %v1072_v40 = vld [vmem:[#allocation10 + $0xd0] sm:$0xff]  ;;  %v1078_v41 = vld [vmem:[#allocation10 + $0x100] sm:$0xff]  ;;  %v6915_v46 = vpack.c.bf16 %v165_v35, %v159_v34  ;;  %v6917_v47 = vpack.c.bf16 %v178_v38, %v172_v36  ;;  %v184_v50 = vld [vmem:[#allocation9 + $0x1a8] sm:$0xff] }
  0x7f   :  { %6828 = vmatpush1.bf16.msra.mxu0 %v6827_v31  ;;  %v1079_v31 = vld [vmem:[#allocation10 + $0x108] sm:$0xff]  ;;  %v9783_v42 = vld [vmem:[#allocation4 + $0x20] sm:$0xff]  ;;  %v7043_v51 = vpack.c.bf16 %v1078_v41, %v1072_v40  ;;  %v190_v52 = vld [vmem:[#allocation9 + $0x1d8] sm:$0xff] }
  0x80   :  { %6892 = vmatpush1.bf16.msra.mxu1 %v6891_v32  ;;  %6830 = vmatprep.subr.bf16.mxu0 %v6829_v33  ;;  %v9779_v32 = vld [vmem:[#allocation4 + $0x28] sm:$0xff]  ;;  %v6913_v33 = vpack.c.bf16 %v166_v24, %v160_v22  ;;  %v7041_v39 = vpack.c.bf16 %v1079_v31, %v1073_v30  ;;  %v171_v48 = vld [vmem:[#allocation9 + $0x140] sm:$0xff]  ;;  %v1084_v54 = vld [vmem:[#allocation10 + $0x130] sm:$0xff] }
  0x81   :  { %6894 = vmatprep.subr.bf16.mxu1 %v6893_v37  ;;  %v7039_v37 = vpack.c.bf16 %v1066_v27, %v1060_v26  ;;  %v1103_v58 = vld [vmem:[#allocation10 + $0x1c8] sm:$0xff]  ;;  %v183_v62 = vld [vmem:[#allocation9 + $0x1a0] sm:$0xff]  ;;  %v189_v63 = vld [vmem:[#allocation9 + $0x1d0] sm:$0xff] }
  0x82   :  { %v9795_v59 = vld [vmem:[#allocation4 + $0x48] sm:$0xff]  ;;  %v202_v2 = vld [vmem:[#allocation9 + $0x238] sm:$0xff]  ;;  %v9800_v6 = vld [vmem:[#allocation4 + $0x40] sm:$0xff]  ;;  %v6923_v10 = vpack.c.bf16 %v189_v63, %v183_v62 }
  0x83   :  { %6832 = vmatpush1.bf16.msra.mxu0 %v6831_v43  ;;  %v1085_v43 = vld [vmem:[#allocation10 + $0x138] sm:$0xff]  ;;  %v196_v0 = vld [vmem:[#allocation9 + $0x208] sm:$0xff]  ;;  %v195_v12 = vld [vmem:[#allocation9 + $0x200] sm:$0xff] }
  0x84   :  { %6896 = vmatpush1.bf16.msra.mxu1 %v6895_v44  ;;  %6834 = vmatprep.subr.bf16.mxu0 %v6833_v45  ;;  %v1091_v44 = vld [vmem:[#allocation10 + $0x168] sm:$0xff]  ;;  %v9787_v45 = vld [vmem:[#allocation4 + $0x38] sm:$0xff]  ;;  %v6925_v11 = vpack.c.bf16 %v202_v2, %v196_v0  ;;  %v1114_v22 = vld [vmem:[#allocation10 + $0x220] sm:$0xff] }
  0x85   :  { %6898 = vmatprep.subr.bf16.mxu1 %v6897_v49  ;;  %v177_v49 = vld [vmem:[#allocation9 + $0x170] sm:$0xff]  ;;  %v7045_v53 = vpack.c.bf16 %v1091_v44, %v1085_v43  ;;  %v1109_v7 = vld [vmem:[#allocation10 + $0x1f8] sm:$0xff]  ;;  %v1115_v8 = vld [vmem:[#allocation10 + $0x228] sm:$0xff] }
  0x86   :  { %v6919_v60 = vpack.c.bf16 %v177_v49, %v171_v48  ;;  %v208_v15 = vld [vmem:[#allocation9 + $0x268] sm:$0xff]  ;;  %v214_v18 = vld [vmem:[#allocation9 + $0x298] sm:$0xff]  ;;  %v7053_v19 = vpack.c.bf16 %v1115_v8, %v1109_v7  ;;  %v207_v30 = vld [vmem:[#allocation9 + $0x260] sm:$0xff] }
  0x87   :  { %6836 = vmatpush1.bf16.msra.mxu0 %v6835_v55  ;;  %v1090_v55 = vld [vmem:[#allocation10 + $0x160] sm:$0xff]  ;;  %v1121_v24 = vld [vmem:[#allocation10 + $0x258] sm:$0xff]  ;;  %v9811_v26 = vld [vmem:[#allocation4 + $0x68] sm:$0xff] }
  0x88   :  { %6900 = vmatpush1.bf16.msra.mxu1 %v6899_v56  ;;  %6838 = vmatprep.subr.bf16.mxu0 %v6837_v57  ;;  %v9792_v56 = vld [vmem:[#allocation4 + $0x30] sm:$0xff]  ;;  %v1097_v57 = vld [vmem:[#allocation10 + $0x198] sm:$0xff]  ;;  %v7047_v1 = vpack.c.bf16 %v1090_v55, %v1084_v54  ;;  %v1126_v38 = vld [vmem:[#allocation10 + $0x280] sm:$0xff] }
  0x89   :  { %6902 = vmatprep.subr.bf16.mxu1 %v6901_v61  ;;  %v6921_v61 = vpack.c.bf16 %v190_v52, %v184_v50  ;;  %v213_v31 = vld [vmem:[#allocation9 + $0x290] sm:$0xff]  ;;  %v226_v35 = vld [vmem:[#allocation9 + $0x2f8] sm:$0xff]  ;;  %v1139_v41 = vld [vmem:[#allocation10 + $0x2e8] sm:$0xff] }
  0x8a   :  { %v1133_v40 = vld [vmem:[#allocation10 + $0x2b8] sm:$0xff]  ;;  %v6931_v44 = vpack.c.bf16 %v213_v31, %v207_v30  ;;  %v225_v48 = vld [vmem:[#allocation9 + $0x2f0] sm:$0xff]  ;;  %v232_v49 = vld [vmem:[#allocation9 + $0x328] sm:$0xff] }
  0x8b   :  { %6840 = vmatpush1.bf16.msra.mxu0 %v6839_v3  ;;  %v7049_v3 = vpack.c.bf16 %v1103_v58, %v1097_v57  ;;  %v9819_v43 = vld [vmem:[#allocation4 + $0x78] sm:$0xff]  ;;  %v7061_v52 = vpack.c.bf16 %v1139_v41, %v1133_v40  ;;  %v1138_v54 = vld [vmem:[#allocation10 + $0x2e0] sm:$0xff]  ;;  %v9824_v55 = vld [vmem:[#allocation4 + $0x70] sm:$0xff] }
  0x8c   :  { %6904 = vmatpush1.bf16.msra.mxu1 %v6903_v4  ;;  %6906 = vmatprep.subr.bf16.mxu0 %v6905_v5  ;;  %v1096_v4 = vld [vmem:[#allocation10 + $0x190] sm:$0xff]  ;;  %v1102_v5 = vld [vmem:[#allocation10 + $0x1c0] sm:$0xff]  ;;  %v1145_v57 = vld [vmem:[#allocation10 + $0x318] sm:$0xff] }
  0x8d   :  { %7034 = vmatprep.subr.bf16.mxu1 %v7033_v9  ;;  %v9803_v9 = vld [vmem:[#allocation4 + $0x58] sm:$0xff]  ;;  %v7051_v17 = vpack.c.bf16 %v1102_v5, %v1096_v4  ;;  %v1151_v58 = vld [vmem:[#allocation10 + $0x348] sm:$0xff]  ;;  %v231_v63 = vld [vmem:[#allocation9 + $0x320] sm:$0xff] }
  0x8e   :  { %420 = vmatmul.mubr.f32.vlgmr.msra.gmra.mrb[0].mxu0 %v9769_v13  ;;  %v237_v0 = vld [vmem:[#allocation9 + $0x350] sm:$0xff]  ;;  %v7065_v4 = vpack.c.bf16 %v1151_v58, %v1145_v57  ;;  %v1150_v7 = vld [vmem:[#allocation10 + $0x340] sm:$0xff]  ;;  %v1169_v30 = vld [vmem:[#allocation10 + $0x3d8] sm:$0xff] }
  0x8f   :  { %605 = vmatmul.mubr.f32.vlgmr.msra.gmra.mrb[0].mxu1 %v9769_v13  ;;  %6908 = vmatpush1.bf16.msra.mxu0 %v6907_v14  ;;  %v201_v14 = vld [vmem:[#allocation9 + $0x230] sm:$0xff]  ;;  %v9832_v8 = vld [vmem:[#allocation4 + $0x80] sm:$0xff]  ;;  %v1175_v31 = vld [vmem:[#allocation10 + $0x408] sm:$0xff] }
  0x90   :  { %425 = vmatprep.mubr.f32.mxu0 %v9771_v20  ;;  %610 = vmatprep.mubr.f32.mxu1 %v9771_v20  ;;  %v6927_v27 = vpack.c.bf16 %v201_v14, %v195_v12  ;;  %v1144_v5 = vld [vmem:[#allocation10 + $0x310] sm:$0xff]  ;;  %v9835_v12 = vld [vmem:[#allocation4 + $0x98] sm:$0xff]  ;;  %v6939_v14 = vpack.c.bf16 %v237_v0, %v231_v63  ;;  %v268_v40 = vld [vmem:[#allocation9 + $0x448] sm:$0xff] }
  0x91   :  { %6910 = vmatprep.subr.bf16.mxu0 %v6909_v21  ;;  %7036 = vmatpush1.bf16.msra.mxu1 %v7035_v23  ;;  %v1108_v21 = vld [vmem:[#allocation10 + $0x1f0] sm:$0xff]  ;;  %v274_v41 = vld [vmem:[#allocation9 + $0x478] sm:$0xff] }
  0x92   :  { %426 = vmatmul.mubr.f32.gmra.mrb[2].mxu0 %v9775_v28  ;;  %7038 = vmatprep.subr.bf16.mxu1 %v7037_v25  ;;  %v9808_v23 = vld [vmem:[#allocation4 + $0x50] sm:$0xff]  ;;  %v1127_v25 = vld [vmem:[#allocation10 + $0x288] sm:$0xff]  ;;  %v7055_v34 = vpack.c.bf16 %v1114_v22, %v1108_v21  ;;  %v262_v22 = vld [vmem:[#allocation9 + $0x418] sm:$0xff] }
  0x93   :  { %611 = vmatmul.mubr.f32.gmra.mrb[2].mxu1 %v9775_v28  ;;  %6912 = vmatpush1.bf16.msra.mxu0 %v6911_v29  ;;  %v6929_v29 = vpack.c.bf16 %v214_v18, %v208_v15  ;;  %v7057_v36 = vpack.c.bf16 %v1127_v25, %v1121_v24  ;;  %v249_v18 = vld [vmem:[#allocation9 + $0x3b0] sm:$0xff]  ;;  %v256_v21 = vld [vmem:[#allocation9 + $0x3e8] sm:$0xff] }
  0x94   :  { %431 = vmatprep.mubr.f32.mxu0 %v9779_v32  ;;  %616 = vmatprep.mubr.f32.mxu1 %v9779_v32  ;;  %v1156_v25 = vld [vmem:[#allocation10 + $0x370] sm:$0xff] }
  0x95   :  { %6914 = vmatprep.subr.bf16.mxu0 %v6913_v33  ;;  %7040 = vmatpush1.bf16.msra.mxu1 %v7039_v37  ;;  %v220_v33 = vld [vmem:[#allocation9 + $0x2c8] sm:$0xff]  ;;  %v1120_v37 = vld [vmem:[#allocation10 + $0x250] sm:$0xff] }
  0x96   :  { %432 = vmatmul.mubr.f32.gmra.mrb[4].mxu0 %v9783_v42  ;;  %7042 = vmatprep.subr.bf16.mxu1 %v7041_v39  ;;  %v9816_v39 = vld [vmem:[#allocation4 + $0x60] sm:$0xff]  ;;  %v7059_v50 = vpack.c.bf16 %v1126_v38, %v1120_v37  ;;  %v261_v37 = vld [vmem:[#allocation9 + $0x410] sm:$0xff] }
  0x97   :  { %617 = vmatmul.mubr.f32.gmra.mrb[4].mxu1 %v9783_v42  ;;  %437 = vmatprep.mubr.f32.mxu0 %v9787_v45  ;;  %v273_v57 = vld [vmem:[#allocation9 + $0x470] sm:$0xff] }
  0x98   :  { %622 = vmatprep.mubr.f32.mxu1 %v9787_v45  ;;  %6916 = vmatpush1.bf16.msra.mxu0 %v6915_v46  ;;  %v6933_v46 = vpack.c.bf16 %v226_v35, %v220_v33  ;;  %v9843_v33 = vld [vmem:[#allocation4 + $0xa8] sm:$0xff]  ;;  %v6945_v35 = vpack.c.bf16 %v262_v22, %v256_v21  ;;  %v1180_v0 = vld [vmem:[#allocation10 + $0x430] sm:$0xff]  ;;  %v1198_v22 = vld [vmem:[#allocation10 + $0x4c0] sm:$0xff] }
  0x99   :  { %6918 = vmatprep.subr.bf16.mxu0 %v6917_v47  ;;  %7044 = vmatpush1.bf16.msra.mxu1 %v7043_v51  ;;  %v219_v47 = vld [vmem:[#allocation9 + $0x2c0] sm:$0xff]  ;;  %v238_v51 = vld [vmem:[#allocation9 + $0x358] sm:$0xff]  ;;  %v1192_v21 = vld [vmem:[#allocation10 + $0x490] sm:$0xff] }
  0x9a   :  { %438 = vmatmul.mubr.f32.gmra.mrb[6].mxu0 %v9792_v56  ;;  %7046 = vmatprep.subr.bf16.mxu1 %v7045_v53  ;;  %v1132_v53 = vld [vmem:[#allocation10 + $0x2b0] sm:$0xff]  ;;  %v6937_v62 = vpack.c.bf16 %v238_v51, %v232_v49  ;;  %v1181_v49 = vld [vmem:[#allocation10 + $0x438] sm:$0xff] }
  0x9b   :  { %623 = vmatmul.mubr.f32.gmra.mrb[6].mxu1 %v9792_v56  ;;  %443 = vmatprep.mubr.f32.mxu0 %v9795_v59  ;;  %v7063_v2 = vpack.c.bf16 %v1138_v54, %v1132_v53  ;;  %v9851_v51 = vld [vmem:[#allocation4 + $0xb8] sm:$0xff]  ;;  %v6949_v53 = vpack.c.bf16 %v274_v41, %v268_v40  ;;  %v267_v54 = vld [vmem:[#allocation9 + $0x440] sm:$0xff] }
  0x9c   :  { %628 = vmatprep.mubr.f32.mxu1 %v9795_v59  ;;  %6920 = vmatpush1.bf16.msra.mxu0 %v6919_v60  ;;  %v9827_v60 = vld [vmem:[#allocation4 + $0x88] sm:$0xff]  ;;  %v1210_v41 = vld [vmem:[#allocation10 + $0x520] sm:$0xff] }
  0x9d   :  { %6922 = vmatprep.subr.bf16.mxu0 %v6921_v61  ;;  %7048 = vmatpush1.bf16.msra.mxu1 %v7047_v1  ;;  %v6935_v61 = vpack.c.bf16 %v225_v48, %v219_v47  ;;  %v244_v1 = vld [vmem:[#allocation9 + $0x388] sm:$0xff]  ;;  %v1174_v47 = vld [vmem:[#allocation10 + $0x400] sm:$0xff] }
  0x9e   :  { %444 = vmatmul.mubr.f32.gmra.mrb[8].mxu0 %v9800_v6  ;;  %7050 = vmatprep.subr.bf16.mxu1 %v7049_v3  ;;  %v250_v3 = vld [vmem:[#allocation9 + $0x3b8] sm:$0xff]  ;;  %v9848_v48 = vld [vmem:[#allocation4 + $0xa0] sm:$0xff] }
  0x9f   :  { %629 = vmatmul.mubr.f32.gmra.mrb[8].mxu1 %v9800_v6  ;;  %449 = vmatprep.mubr.f32.mxu0 %v9803_v9  ;;  %v6941_v15 = vpack.c.bf16 %v250_v3, %v244_v1  ;;  %v1186_v1 = vld [vmem:[#allocation10 + $0x460] sm:$0xff]  ;;  %v1193_v3 = vld [vmem:[#allocation10 + $0x498] sm:$0xff] }
  0xa0   :  { %634 = vmatprep.mubr.f32.mxu1 %v9803_v9  ;;  %6924 = vmatpush1.bf16.msra.mxu0 %v6923_v10  ;;  %v1157_v10 = vld [vmem:[#allocation10 + $0x378] sm:$0xff] }
  0xa1   :  { %6926 = vmatprep.subr.bf16.mxu0 %v6925_v11  ;;  %7052 = vmatpush1.bf16.msra.mxu1 %v7051_v17  ;;  %v1163_v11 = vld [vmem:[#allocation10 + $0x3a8] sm:$0xff]  ;;  %v243_v17 = vld [vmem:[#allocation9 + $0x380] sm:$0xff] }
  0xa2   :  { %450 = vmatmul.mubr.f32.gmra.mrb[10].mxu0 %v9808_v23  ;;  %7054 = vmatprep.subr.bf16.mxu1 %v7053_v19  ;;  %v7067_v19 = vpack.c.bf16 %v1150_v7, %v1144_v5  ;;  %v7069_v24 = vpack.c.bf16 %v1163_v11, %v1157_v10  ;;  %v9859_v5 = vld [vmem:[#allocation4 + $0xc8] sm:$0xff]  ;;  %v6951_v7 = vpack.c.bf16 %v273_v57, %v267_v54  ;;  %v279_v11 = vld [vmem:[#allocation9 + $0x4a0] sm:$0xff] }
  0xa3   :  { %635 = vmatmul.mubr.f32.gmra.mrb[10].mxu1 %v9808_v23  ;;  %455 = vmatprep.mubr.f32.mxu0 %v9811_v26 }
  0xa4   :  { %640 = vmatprep.mubr.f32.mxu1 %v9811_v26  ;;  %6928 = vmatpush1.bf16.msra.mxu0 %v6927_v27  ;;  %v1162_v27 = vld [vmem:[#allocation10 + $0x3a0] sm:$0xff] }
  0xa5   :  { %6930 = vmatprep.subr.bf16.mxu0 %v6929_v29  ;;  %7056 = vmatpush1.bf16.msra.mxu1 %v7055_v34  ;;  %v9840_v29 = vld [vmem:[#allocation4 + $0x90] sm:$0xff]  ;;  %v6943_v34 = vpack.c.bf16 %v249_v18, %v243_v17  ;;  %v7071_v38 = vpack.c.bf16 %v1162_v27, %v1156_v25  ;;  %v292_v17 = vld [vmem:[#allocation9 + $0x508] sm:$0xff]  ;;  %v1205_v25 = vld [vmem:[#allocation10 + $0x4f8] sm:$0xff] }
  0xa6   :  { %456 = vmatmul.mubr.f32.gmra.mrb[12].mxu0 %v9816_v39  ;;  %7058 = vmatprep.subr.bf16.mxu1 %v7057_v36  ;;  %v255_v36 = vld [vmem:[#allocation9 + $0x3e0] sm:$0xff]  ;;  %v1211_v27 = vld [vmem:[#allocation10 + $0x528] sm:$0xff] }
  0xa7   :  { %641 = vmatmul.mubr.f32.gmra.mrb[12].mxu1 %v9816_v39  ;;  %461 = vmatprep.mubr.f32.mxu0 %v9819_v43  ;;  %v7085_v40 = vpack.c.bf16 %v1211_v27, %v1205_v25  ;;  %v1234_v25 = vld [vmem:[#allocation10 + $0x5e0] sm:$0xff]  ;;  %v1047_v27 = vld [vmem:[#allocation10 + $0x8] sm:$0xff] }
  0xa8   :  { %646 = vmatprep.mubr.f32.mxu1 %v9819_v43  ;;  %6932 = vmatpush1.bf16.msra.mxu0 %v6931_v44  ;;  %v7073_v44 = vpack.c.bf16 %v1175_v31, %v1169_v30  ;;  %v9867_v30 = vld [vmem:[#allocation4 + $0xd8] sm:$0xff] }
  0xa9   :  { %6934 = vmatprep.subr.bf16.mxu0 %v6933_v46  ;;  %7060 = vmatpush1.bf16.msra.mxu1 %v7059_v50  ;;  %v1168_v46 = vld [vmem:[#allocation10 + $0x3d0] sm:$0xff]  ;;  %v1187_v50 = vld [vmem:[#allocation10 + $0x468] sm:$0xff] }
  0xaa   :  { %462 = vmatmul.mubr.f32.gmra.mrb[14].mxu0 %v9824_v55  ;;  %7062 = vmatprep.subr.bf16.mxu1 %v7061_v52  ;;  %v6947_v52 = vpack.c.bf16 %v261_v37, %v255_v36  ;;  %v7075_v58 = vpack.c.bf16 %v1174_v47, %v1168_v46  ;;  %v7077_v63 = vpack.c.bf16 %v1187_v50, %v1181_v49  ;;  %v291_v36 = vld [vmem:[#allocation9 + $0x500] sm:$0xff]  ;;  %v297_v37 = vld [vmem:[#allocation9 + $0x530] sm:$0xff]  ;;  %v310_v46 = vld [vmem:[#allocation9 + $0x598] sm:$0xff] }
  0xab   :  { %647 = vmatmul.mubr.f32.gmra.mrb[14].mxu1 %v9824_v55  ;;  %467 = vmatprep.mubr.f32.mxu0 %v9827_v60  ;;  %v9872_v47 = vld [vmem:[#allocation4 + $0xd0] sm:$0xff]  ;;  %v1217_v49 = vld [vmem:[#allocation10 + $0x558] sm:$0xff]  ;;  %v1223_v50 = vld [vmem:[#allocation10 + $0x588] sm:$0xff] }
  0xac   :  { %652 = vmatprep.mubr.f32.mxu1 %v9827_v60  ;;  %6936 = vmatpush1.bf16.msra.mxu0 %v6935_v61  ;;  %v280_v61 = vld [vmem:[#allocation9 + $0x4a8] sm:$0xff] }
  0xad   :  { %6938 = vmatprep.subr.bf16.mxu0 %v6937_v62  ;;  %7064 = vmatpush1.bf16.msra.mxu1 %v7063_v2  ;;  %v286_v62 = vld [vmem:[#allocation9 + $0x4d8] sm:$0xff]  ;;  %v9856_v2 = vld [vmem:[#allocation4 + $0xb0] sm:$0xff] }
  0xae   :  { %468 = vmatmul.mubr.f32.gmra.mrb[16].mxu0 %v9832_v8  ;;  %7066 = vmatprep.subr.bf16.mxu1 %v7065_v4  ;;  %v1199_v4 = vld [vmem:[#allocation10 + $0x4c8] sm:$0xff]  ;;  %v6953_v10 = vpack.c.bf16 %v286_v62, %v280_v61  ;;  %v309_v61 = vld [vmem:[#allocation9 + $0x590] sm:$0xff] }
  0xaf   :  { %653 = vmatmul.mubr.f32.gmra.mrb[16].mxu1 %v9832_v8  ;;  %473 = vmatprep.mubr.f32.mxu0 %v9835_v12  ;;  %v7081_v18 = vpack.c.bf16 %v1199_v4, %v1193_v3  ;;  %v1216_v62 = vld [vmem:[#allocation10 + $0x550] sm:$0xff]  ;;  %v322_v3 = vld [vmem:[#allocation9 + $0x5f8] sm:$0xff]  ;;  %v9880_v4 = vld [vmem:[#allocation4 + $0xe0] sm:$0xff] }
  0xb0   :  { %658 = vmatprep.mubr.f32.mxu1 %v9835_v12  ;;  %6940 = vmatpush1.bf16.msra.mxu0 %v6939_v14  ;;  %v285_v14 = vld [vmem:[#allocation9 + $0x4d0] sm:$0xff] }
  0xb1   :  { %6942 = vmatprep.subr.bf16.mxu0 %v6941_v15  ;;  %7068 = vmatpush1.bf16.msra.mxu1 %v7067_v19  ;;  %v7079_v15 = vpack.c.bf16 %v1186_v1, %v1180_v0  ;;  %v298_v19 = vld [vmem:[#allocation9 + $0x538] sm:$0xff]  ;;  %v6955_v31 = vpack.c.bf16 %v285_v14, %v279_v11  ;;  %v1222_v0 = vld [vmem:[#allocation10 + $0x580] sm:$0xff]  ;;  %v316_v1 = vld [vmem:[#allocation9 + $0x5c8] sm:$0xff] }
  0xb2   :  { %474 = vmatmul.mubr.f32.gmra.mrb[18].mxu0 %v9840_v29  ;;  %7070 = vmatprep.subr.bf16.mxu1 %v7069_v24  ;;  %v9864_v24 = vld [vmem:[#allocation4 + $0xc0] sm:$0xff]  ;;  %v9883_v11 = vld [vmem:[#allocation4 + $0xf8] sm:$0xff] }
  0xb3   :  { %659 = vmatmul.mubr.f32.gmra.mrb[18].mxu1 %v9840_v29  ;;  %479 = vmatprep.mubr.f32.mxu0 %v9843_v33 }
  0xb4   :  { %664 = vmatprep.mubr.f32.mxu1 %v9843_v33  ;;  %6944 = vmatpush1.bf16.msra.mxu0 %v6943_v34  ;;  %v6957_v34 = vpack.c.bf16 %v298_v19, %v292_v17  ;;  %v6965_v17 = vpack.c.bf16 %v322_v3, %v316_v1  ;;  %v321_v19 = vld [vmem:[#allocation9 + $0x5f0] sm:$0xff]  ;;  %v1065_v1 = vld [vmem:[#allocation10 + $0x98] sm:$0xff]  ;;  %v1050_v3 = vld [vmem:[#allocation10 + $0x20] sm:$0xff] }
  0xb5   :  { %6946 = vmatprep.subr.bf16.mxu0 %v6945_v35  ;;  %7072 = vmatpush1.bf16.msra.mxu1 %v7071_v38  ;;  %v7083_v35 = vpack.c.bf16 %v1198_v22, %v1192_v21  ;;  %v1204_v38 = vld [vmem:[#allocation10 + $0x4f0] sm:$0xff] }
  0xb6   :  { %480 = vmatmul.mubr.f32.gmra.mrb[20].mxu0 %v9848_v48  ;;  %7074 = vmatprep.subr.bf16.mxu1 %v7073_v44  ;;  %v304_v44 = vld [vmem:[#allocation9 + $0x568] sm:$0xff]  ;;  %v7087_v54 = vpack.c.bf16 %v1210_v41, %v1204_v38  ;;  %v1228_v21 = vld [vmem:[#allocation10 + $0x5b0] sm:$0xff] }
  0xb7   :  { %665 = vmatmul.mubr.f32.gmra.mrb[20].mxu1 %v9848_v48  ;;  %485 = vmatprep.mubr.f32.mxu0 %v9851_v51  ;;  %v6961_v57 = vpack.c.bf16 %v310_v46, %v304_v44  ;;  %v9898_v46 = vld [vmem:[#allocation4 + $0x100] sm:$0xff] }
  0xb8   :  { %670 = vmatprep.mubr.f32.mxu1 %v9851_v51  ;;  %6948 = vmatpush1.bf16.msra.mxu0 %v6947_v52  ;;  %v9875_v52 = vld [vmem:[#allocation4 + $0xe8] sm:$0xff] }
  0xb9   :  { %6950 = vmatprep.subr.bf16.mxu0 %v6949_v53  ;;  %7076 = vmatpush1.bf16.msra.mxu1 %v7075_v58  ;;  %v6959_v53 = vpack.c.bf16 %v297_v37, %v291_v36  ;;  %v303_v58 = vld [vmem:[#allocation9 + $0x560] sm:$0xff]  ;;  %v1057_v36 = vld [vmem:[#allocation10 + $0x58] sm:$0xff]  ;;  %v9891_v37 = vld [vmem:[#allocation4 + $0x108] sm:$0xff] }
  0xba   :  { %486 = vmatmul.mubr.f32.gmra.mrb[22].mxu0 %v9856_v2  ;;  %7078 = vmatprep.subr.bf16.mxu1 %v7077_v63  ;;  %v7089_v63 = vpack.c.bf16 %v1223_v50, %v1217_v49  ;;  %v6963_v14 = vpack.c.bf16 %v309_v61, %v303_v58  ;;  %v9901_v49 = vld [vmem:[#allocation4 + $0x118] sm:$0xff]  ;;  %v9907_v50 = vld [vmem:[#allocation4 + $0x110] sm:$0xff]  ;;  %v1046_v61 = vld [vmem:[#allocation10] sm:$0xff] }
  0xbb   :  { %671 = vmatmul.mubr.f32.gmra.mrb[22].mxu1 %v9856_v2  ;;  %491 = vmatprep.mubr.f32.mxu0 %v9859_v5  ;;  %v9923_v58 = vld [vmem:[#allocation4 + $0x130] sm:$0xff] }
  0xbc   :  { %676 = vmatprep.mubr.f32.mxu1 %v9859_v5  ;;  %6952 = vmatpush1.bf16.msra.mxu0 %v6951_v7  ;;  %v1229_v7 = vld [vmem:[#allocation10 + $0x5b8] sm:$0xff] }
  0xbd   :  { %6954 = vmatprep.subr.bf16.mxu0 %v6953_v10  ;;  %7080 = vmatpush1.bf16.msra.mxu1 %v7079_v15  ;;  %v1235_v10 = vld [vmem:[#allocation10 + $0x5e8] sm:$0xff]  ;;  %v7091_v15 = vpack.c.bf16 %v1222_v0, %v1216_v62  ;;  %v1052_v62 = vld [vmem:[#allocation10 + $0x30] sm:$0xff] }
  0xbe   :  { %492 = vmatmul.mubr.f32.gmra.mrb[24].mxu0 %v9864_v24  ;;  %7082 = vmatprep.subr.bf16.mxu1 %v7081_v18  ;;  %v315_v18 = vld [vmem:[#allocation9 + $0x5c0] sm:$0xff]  ;;  %v7093_v22 = vpack.c.bf16 %v1235_v10, %v1229_v7  ;;  %v1059_v0 = vld [vmem:[#allocation10 + $0x68] sm:$0xff]  ;;  %v1056_v7 = vld [vmem:[#allocation10 + $0x50] sm:$0xff]  ;;  %v9931_v10 = vpack.c.bf16 %v1052_v62, %v1046_v61 }
  0xbf   :  { %677 = vmatmul.mubr.f32.gmra.mrb[24].mxu1 %v9864_v24  ;;  %497 = vmatprep.mubr.f32.mxu0 %v9867_v30  ;;  %v6967_v38 = vpack.c.bf16 %v321_v19, %v315_v18  ;;  %v1058_v18 = vld [vmem:[#allocation10 + $0x60] sm:$0xff]  ;;  %v1064_v19 = vld [vmem:[#allocation10 + $0x90] sm:$0xff] }
  0xc0   :  { %682 = vmatprep.mubr.f32.mxu1 %v9867_v30  ;;  %6956 = vmatpush1.bf16.msra.mxu0 %v6955_v31  ;;  %v1053_v31 = vld [vmem:[#allocation10 + $0x38] sm:$0xff]  ;;  %v9947_v61 = vld [vmem:[#allocation7 + $0x10] sm:$0xff] }
  0xc1   :  { %6958 = vmatprep.subr.bf16.mxu0 %v6957_v34  ;;  %7084 = vmatpush1.bf16.msra.mxu1 %v7083_v35  ;;  %v9888_v34 = vld [vmem:[#allocation4 + $0xf0] sm:$0xff]  ;;  %v1051_v35 = vld [vmem:[#allocation10 + $0x28] sm:$0xff]  ;;  %v9893_v41 = vpack.c.bf16 %v1053_v31, %v1047_v27  ;;  %v1077_v27 = vld [vmem:[#allocation10 + $0xf8] sm:$0xff]  ;;  %v7099_v31 = vpack.c.bf16 %v1056_v7, %v1050_v3 }
  0xc2   :  { %498 = vmatmul.mubr.f32.gmra.mrb[26].mxu0 %v9872_v47  ;;  %7086 = vmatprep.subr.bf16.mxu1 %v7085_v40  ;;  %v7095_v40 = vpack.c.bf16 %v1234_v25, %v1228_v21  ;;  %v7097_v44 = vpack.c.bf16 %v1057_v36, %v1051_v35  ;;  %v9936_v21 = vld [vmem:[#allocation7 + $0x18] sm:$0xff]  ;;  %v1071_v25 = vld [vmem:[#allocation10 + $0xc8] sm:$0xff]  ;;  %v1062_v35 = vld [vmem:[#allocation10 + $0x80] sm:$0xff] }
  0xc3   :  { %683 = vmatmul.mubr.f32.gmra.mrb[26].mxu1 %v9872_v47  ;;  %503 = vmatprep.mubr.f32.mxu0 %v9875_v52  ;;  %v1068_v36 = vld [vmem:[#allocation10 + $0xb0] sm:$0xff]  ;;  %v9949_v62 = vpack.c.bf16 %v1077_v27, %v1071_v25  ;;  %v1089_v3 = vld [vmem:[#allocation10 + $0x158] sm:$0xff] }
  0xc4   :  { %688 = vmatprep.mubr.f32.mxu1 %v9875_v52  ;;  %6960 = vmatpush1.bf16.msra.mxu0 %v6959_v53  ;;  %v9910_v53 = vld [vmem:[#allocation4 + $0x128] sm:$0xff]  ;;  %v7103_v7 = vpack.c.bf16 %v1068_v36, %v1062_v35  ;;  %v1093_v25 = vld [vmem:[#allocation10 + $0x178] sm:$0xff] }
  0xc5   :  { %7088 = vmatpush1.bf16.msra.mxu1 %v7087_v54  ;;  %6962 = vmatprep.subr.bf16.mxu0 %v6961_v57  ;;  %v9915_v54 = vld [vmem:[#allocation4 + $0x120] sm:$0xff]  ;;  %v9918_v57 = vld [vmem:[#allocation4 + $0x138] sm:$0xff] }
  0xc6   :  { %504 = vmatmul.mubr.f32.gmra.mrb[28].mxu0 %v9880_v4  ;;  %7090 = vmatprep.subr.bf16.mxu1 %v7089_v63  ;;  %v9926_v63 = vld [vmem:[#allocation7 + $0x8] sm:$0xff]  ;;  %v1101_v35 = vld [vmem:[#allocation10 + $0x1b8] sm:$0xff] }
  0xc7   :  { %689 = vmatmul.mubr.f32.gmra.mrb[28].mxu1 %v9880_v4  ;;  %509 = vmatprep.mubr.f32.mxu0 %v9883_v11 }
  0xc8   :  { %694 = vmatprep.mubr.f32.mxu1 %v9883_v11  ;;  %6964 = vmatpush1.bf16.msra.mxu0 %v6963_v14  ;;  %v1063_v14 = vld [vmem:[#allocation10 + $0x88] sm:$0xff] }
  0xc9   :  { %7092 = vmatpush1.bf16.msra.mxu1 %v7091_v15  ;;  %6966 = vmatprep.subr.bf16.mxu0 %v6965_v17  ;;  %v1069_v15 = vld [vmem:[#allocation10 + $0xb8] sm:$0xff]  ;;  %v9934_v17 = vld [vmem:[#allocation7] sm:$0xff] }
  0xca   :  { %510 = vmatmul.mubr.f32.gmra.mrb[30].mxu0 %v9888_v34  ;;  %7094 = vmatprep.subr.bf16.mxu1 %v7093_v22  ;;  %v9938_v22 = vpack.c.bf16 %v1065_v1, %v1059_v0  ;;  %v1076_v0 = vld [vmem:[#allocation10 + $0xf0] sm:$0xff]  ;;  %v1083_v1 = vld [vmem:[#allocation10 + $0x128] sm:$0xff] }
  0xcb   :  { %695 = vmatmul.mubr.f32.gmra.mrb[30].mxu1 %v9888_v34  ;;  %515 = vmatprep.mubr.f32.mxu0 %v9891_v37  ;;  %v9959_v27 = vpack.c.bf16 %v1089_v3, %v1083_v1  ;;  %v1105_v1 = vld [vmem:[#allocation10 + $0x1d8] sm:$0xff] }
  0xcc   :  { %700 = vmatprep.mubr.f32.mxu1 %v9891_v37  ;;  %6968 = vmatpush1.bf16.msra.mxu0 %v6967_v38  ;;  %v9943_v38 = vpack.c.bf16 %v1064_v19, %v1058_v18  ;;  %v1087_v19 = vld [vmem:[#allocation10 + $0x148] sm:$0xff] }
  0xcd   :  { %7096 = vmatpush1.bf16.msra.mxu1 %v7095_v40  ;;  %6970 = vmatprep.subr.bf16.mxu0 %v9893_v41  ;;  %v1075_v40 = vld [vmem:[#allocation10 + $0xe8] sm:$0xff] }
  0xce   :  { %516 = vmatmul.mubr.f32.gmra.mrb[32].mxu0 %v9898_v46  ;;  %7098 = vmatprep.subr.bf16.mxu1 %v7097_v44  ;;  %v1081_v44 = vld [vmem:[#allocation10 + $0x118] sm:$0xff] }
  0xcf   :  { %701 = vmatmul.mubr.f32.gmra.mrb[32].mxu1 %v9898_v46  ;;  %521 = vmatprep.mubr.f32.mxu0 %v9901_v49 }
  0xd0   :  { %706 = vmatprep.mubr.f32.mxu1 %v9901_v49 }
  0xd2   :  { %522 = vmatmul.mubr.f32.gmra.mrb[34].mxu0 %v9907_v50 }
  0xd3   :  { %707 = vmatmul.mubr.f32.gmra.mrb[34].mxu1 %v9907_v50  ;;  %527 = vmatprep.mubr.f32.mxu0 %v9910_v53 }
  0xd4   :  { %712 = vmatprep.mubr.f32.mxu1 %v9910_v53 }
  0xd6   :  { %528 = vmatmul.mubr.f32.gmra.mrb[36].mxu0 %v9915_v54 }
  0xd7   :  { %713 = vmatmul.mubr.f32.gmra.mrb[36].mxu1 %v9915_v54  ;;  %533 = vmatprep.mubr.f32.mxu0 %v9918_v57 }
  0xd8   :  { %718 = vmatprep.mubr.f32.mxu1 %v9918_v57 }
  0xda   :  { %534 = vmatmul.mubr.f32.gmra.mrb[38].mxu0 %v9923_v58 }
  0xdb   :  { %719 = vmatmul.mubr.f32.gmra.mrb[38].mxu1 %v9923_v58  ;;  %789 = vmatprep.mubr.f32.mxu0 %v9765_v16  ;;  %v7101_v16 = vpack.c.bf16 %v1069_v15, %v1063_v14  ;;  %v7105_v14 = vpack.c.bf16 %v1081_v44, %v1075_v40  ;;  %v1074_v15 = vld [vmem:[#allocation10 + $0xe0] sm:$0xff]  ;;  %v7109_v40 = vpack.c.bf16 %v1093_v25, %v1087_v19  ;;  %v1104_v25 = vld [vmem:[#allocation10 + $0x1d0] sm:$0xff] }
  0xdc   :  { %1411 = vmatprep.mubr.f32.mxu1 %v9926_v63  ;;  %v1086_v44 = vld [vmem:[#allocation10 + $0x140] sm:$0xff] }
  0xdd   :  { %v1098_v19 = vld [vmem:[#allocation10 + $0x1a0] sm:$0xff] }
  0xde   :  { %790 = vmatmul.mubr.f32.vlgmr.msra.gmra.mrb[40].mxu0 %v9769_v13  ;;  %v1070_v13 = vld [vmem:[#allocation10 + $0xc0] sm:$0xff] }
  0xdf   :  { %1412 = vmatmul.mubr.f32.vlgmr.msra.gmra.mrb[0].mxu1 %v9934_v17  ;;  %6972 = vmatpush1.bf16.msra.mxu0 %v9931_v10  ;;  %v9955_v18 = vpack.c.bf16 %v1076_v0, %v1070_v13  ;;  %v1092_v13 = vld [vmem:[#allocation10 + $0x170] sm:$0xff]  ;;  %v1099_v0 = vld [vmem:[#allocation10 + $0x1a8] sm:$0xff] }
  0xe0   :  { %795 = vmatprep.mubr.f32.mxu0 %v9771_v20  ;;  %1417 = vmatprep.mubr.f32.mxu1 %v9936_v21  ;;  %v1080_v20 = vld [vmem:[#allocation10 + $0x110] sm:$0xff] }
  0xe1   :  { %6974 = vmatprep.subr.bf16.mxu0 %v9938_v22  ;;  %7100 = vmatpush1.bf16.msra.mxu1 %v7099_v31  ;;  %v1082_v31 = vld [vmem:[#allocation10 + $0x120] sm:$0xff]  ;;  %v7107_v36 = vpack.c.bf16 %v1080_v20, %v1074_v15  ;;  %v1100_v15 = vld [vmem:[#allocation10 + $0x1b0] sm:$0xff]  ;;  %v1107_v20 = vld [vmem:[#allocation10 + $0x1e8] sm:$0xff] }
  0xe2   :  { %796 = vmatmul.mubr.f32.gmra.mrb[42].mxu0 %v9775_v28  ;;  %7102 = vmatprep.subr.bf16.mxu1 %v7101_v16  ;;  %v1088_v28 = vld [vmem:[#allocation10 + $0x150] sm:$0xff]  ;;  %v1095_v16 = vld [vmem:[#allocation10 + $0x188] sm:$0xff] }
  0xe3   :  { %1418 = vmatmul.mubr.f32.gmra.mrb[2].mxu1 %v9947_v61  ;;  %6976 = vmatpush1.bf16.msra.mxu0 %v9943_v38  ;;  %v9968_v3 = vpack.c.bf16 %v1101_v35, %v1095_v16  ;;  %v1117_v16 = vld [vmem:[#allocation10 + $0x238] sm:$0xff] }
  0xe4   :  { %801 = vmatprep.mubr.f32.mxu0 %v9779_v32  ;;  %6978 = vmatprep.subr.bf16.mxu0 %v9949_v62  ;;  %v9965_v32 = vpack.c.bf16 %v1088_v28, %v1082_v31  ;;  %v1111_v28 = vld [vmem:[#allocation10 + $0x208] sm:$0xff] }
  0xe5   :  { %7104 = vmatpush1.bf16.msra.mxu1 %v7103_v7  ;;  %1488 = vmatprep.mubr.f32.mxu1 %v9926_v63  ;;  %v1094_v7 = vld [vmem:[#allocation10 + $0x180] sm:$0xff] }
  0xe6   :  { %802 = vmatmul.mubr.f32.gmra.mrb[44].mxu0 %v9783_v42  ;;  %7106 = vmatprep.subr.bf16.mxu1 %v7105_v14  ;;  %v1113_v42 = vld [vmem:[#allocation10 + $0x218] sm:$0xff]  ;;  %v7111_v14 = vpack.c.bf16 %v1092_v13, %v1086_v44  ;;  %v9973_v31 = vpack.c.bf16 %v1100_v15, %v1094_v7  ;;  %v1112_v44 = vld [vmem:[#allocation10 + $0x210] sm:$0xff]  ;;  %v1119_v13 = vld [vmem:[#allocation10 + $0x248] sm:$0xff] }
  0xe7   :  { %807 = vmatprep.mubr.f32.mxu0 %v9787_v45  ;;  %6980 = vmatpush1.bf16.msra.mxu0 %v9955_v18  ;;  %v7113_v45 = vpack.c.bf16 %v1105_v1, %v1099_v0  ;;  %v9976_v35 = vpack.c.bf16 %v1113_v42, %v1107_v20  ;;  %v1110_v0 = vld [vmem:[#allocation10 + $0x200] sm:$0xff]  ;;  %v1116_v1 = vld [vmem:[#allocation10 + $0x230] sm:$0xff]  ;;  %v1123_v15 = vld [vmem:[#allocation10 + $0x268] sm:$0xff] }
  0xe8   :  { %6982 = vmatprep.subr.bf16.mxu0 %v9959_v27  ;;  %v1129_v20 = vld [vmem:[#allocation10 + $0x298] sm:$0xff] }
  0xe9   :  { %7108 = vmatpush1.bf16.msra.mxu1 %v7107_v36  ;;  %v1106_v36 = vld [vmem:[#allocation10 + $0x1e0] sm:$0xff] }
  0xea   :  { %808 = vmatmul.mubr.f32.gmra.mrb[46].mxu0 %v9792_v56  ;;  %7110 = vmatprep.subr.bf16.mxu1 %v7109_v40  ;;  %v1125_v56 = vld [vmem:[#allocation10 + $0x278] sm:$0xff]  ;;  %v7115_v40 = vpack.c.bf16 %v1104_v25, %v1098_v19  ;;  %v9981_v7 = vpack.c.bf16 %v1112_v44, %v1106_v36  ;;  %v1124_v19 = vld [vmem:[#allocation10 + $0x270] sm:$0xff]  ;;  %v1131_v25 = vld [vmem:[#allocation10 + $0x2a8] sm:$0xff] }
  0xeb   :  { %813 = vmatprep.mubr.f32.mxu0 %v9795_v59  ;;  %6984 = vmatpush1.bf16.msra.mxu0 %v9965_v32  ;;  %v7117_v59 = vpack.c.bf16 %v1117_v16, %v1111_v28  ;;  %v9984_v42 = vpack.c.bf16 %v1125_v56, %v1119_v13  ;;  %v1122_v28 = vld [vmem:[#allocation10 + $0x260] sm:$0xff]  ;;  %v1128_v16 = vld [vmem:[#allocation10 + $0x290] sm:$0xff]  ;;  %v1135_v44 = vld [vmem:[#allocation10 + $0x2c8] sm:$0xff] }
  0xec   :  { %6986 = vmatprep.subr.bf16.mxu0 %v9968_v3  ;;  %v1141_v13 = vld [vmem:[#allocation10 + $0x2f8] sm:$0xff] }
  0xed   :  { %7112 = vmatpush1.bf16.msra.mxu1 %v7111_v14  ;;  %v1118_v14 = vld [vmem:[#allocation10 + $0x240] sm:$0xff] }
  0xee   :  { %814 = vmatmul.mubr.f32.gmra.mrb[48].mxu0 %v9800_v6  ;;  %7114 = vmatprep.subr.bf16.mxu1 %v7113_v45  ;;  %v1137_v6 = vld [vmem:[#allocation10 + $0x2d8] sm:$0xff]  ;;  %v7119_v45 = vpack.c.bf16 %v1116_v1, %v1110_v0  ;;  %v9989_v36 = vpack.c.bf16 %v1124_v19, %v1118_v14  ;;  %v1136_v0 = vld [vmem:[#allocation10 + $0x2d0] sm:$0xff]  ;;  %v1143_v1 = vld [vmem:[#allocation10 + $0x308] sm:$0xff] }
  0xef   :  { %819 = vmatprep.mubr.f32.mxu0 %v9803_v9  ;;  %6988 = vmatpush1.bf16.msra.mxu0 %v9973_v31  ;;  %v7121_v9 = vpack.c.bf16 %v1129_v20, %v1123_v15  ;;  %v9992_v56 = vpack.c.bf16 %v1137_v6, %v1131_v25  ;;  %v1134_v15 = vld [vmem:[#allocation10 + $0x2c0] sm:$0xff]  ;;  %v1140_v20 = vld [vmem:[#allocation10 + $0x2f0] sm:$0xff]  ;;  %v1147_v19 = vld [vmem:[#allocation10 + $0x328] sm:$0xff] }
  0xf0   :  { %6990 = vmatprep.subr.bf16.mxu0 %v9976_v35  ;;  %v1153_v25 = vld [vmem:[#allocation10 + $0x358] sm:$0xff] }
  0xf1   :  { %7116 = vmatpush1.bf16.msra.mxu1 %v7115_v40  ;;  %v1130_v40 = vld [vmem:[#allocation10 + $0x2a0] sm:$0xff] }
  0xf2   :  { %820 = vmatmul.mubr.f32.gmra.mrb[50].mxu0 %v9808_v23  ;;  %7118 = vmatprep.subr.bf16.mxu1 %v7117_v59  ;;  %v1149_v23 = vld [vmem:[#allocation10 + $0x338] sm:$0xff]  ;;  %v7123_v59 = vpack.c.bf16 %v1128_v16, %v1122_v28  ;;  %v9997_v14 = vpack.c.bf16 %v1136_v0, %v1130_v40  ;;  %v1148_v28 = vld [vmem:[#allocation10 + $0x330] sm:$0xff]  ;;  %v1155_v16 = vld [vmem:[#allocation10 + $0x368] sm:$0xff] }
  0xf3   :  { %825 = vmatprep.mubr.f32.mxu0 %v9811_v26  ;;  %6992 = vmatpush1.bf16.msra.mxu0 %v9981_v7  ;;  %v7125_v26 = vpack.c.bf16 %v1141_v13, %v1135_v44  ;;  %v10000_v6 = vpack.c.bf16 %v1149_v23, %v1143_v1  ;;  %v1146_v44 = vld [vmem:[#allocation10 + $0x320] sm:$0xff]  ;;  %v1152_v13 = vld [vmem:[#allocation10 + $0x350] sm:$0xff]  ;;  %v1159_v0 = vld [vmem:[#allocation10 + $0x388] sm:$0xff] }
  0xf4   :  { %6994 = vmatprep.subr.bf16.mxu0 %v9984_v42  ;;  %v1165_v1 = vld [vmem:[#allocation10 + $0x3b8] sm:$0xff] }
  0xf5   :  { %7120 = vmatpush1.bf16.msra.mxu1 %v7119_v45  ;;  %v1142_v45 = vld [vmem:[#allocation10 + $0x300] sm:$0xff] }
  0xf6   :  { %826 = vmatmul.mubr.f32.gmra.mrb[52].mxu0 %v9816_v39  ;;  %7122 = vmatprep.subr.bf16.mxu1 %v7121_v9  ;;  %v1161_v39 = vld [vmem:[#allocation10 + $0x398] sm:$0xff]  ;;  %v7127_v9 = vpack.c.bf16 %v1140_v20, %v1134_v15  ;;  %v10005_v40 = vpack.c.bf16 %v1148_v28, %v1142_v45  ;;  %v1160_v15 = vld [vmem:[#allocation10 + $0x390] sm:$0xff]  ;;  %v1167_v20 = vld [vmem:[#allocation10 + $0x3c8] sm:$0xff] }
  0xf7   :  { %831 = vmatprep.mubr.f32.mxu0 %v9819_v43  ;;  %6996 = vmatpush1.bf16.msra.mxu0 %v9989_v36  ;;  %v7129_v43 = vpack.c.bf16 %v1153_v25, %v1147_v19  ;;  %v10008_v23 = vpack.c.bf16 %v1161_v39, %v1155_v16  ;;  %v1158_v19 = vld [vmem:[#allocation10 + $0x380] sm:$0xff]  ;;  %v1164_v25 = vld [vmem:[#allocation10 + $0x3b0] sm:$0xff]  ;;  %v1171_v28 = vld [vmem:[#allocation10 + $0x3e8] sm:$0xff] }
  0xf8   :  { %6998 = vmatprep.subr.bf16.mxu0 %v9992_v56  ;;  %v1177_v16 = vld [vmem:[#allocation10 + $0x418] sm:$0xff] }
  0xf9   :  { %7124 = vmatpush1.bf16.msra.mxu1 %v7123_v59  ;;  %12461 = vst [vmem:[#allocation17_spill] sm:$0xff] %v10008_v23  ;;  %v1154_v59 = vld [vmem:[#allocation10 + $0x360] sm:$0xff] }
  0xfa   :  { %832 = vmatmul.mubr.f32.gmra.mrb[54].mxu0 %v9824_v55  ;;  %7126 = vmatprep.subr.bf16.mxu1 %v7125_v26  ;;  %v1173_v55 = vld [vmem:[#allocation10 + $0x3f8] sm:$0xff]  ;;  %v7131_v26 = vpack.c.bf16 %v1152_v13, %v1146_v44  ;;  %v10013_v45 = vpack.c.bf16 %v1160_v15, %v1154_v59  ;;  %v1172_v44 = vld [vmem:[#allocation10 + $0x3f0] sm:$0xff]  ;;  %v1179_v13 = vld [vmem:[#allocation10 + $0x428] sm:$0xff] }
  0xfb   :  { %837 = vmatprep.mubr.f32.mxu0 %v9827_v60  ;;  %7000 = vmatpush1.bf16.msra.mxu0 %v9997_v14  ;;  %v7133_v60 = vpack.c.bf16 %v1165_v1, %v1159_v0  ;;  %v10016_v39 = vpack.c.bf16 %v1173_v55, %v1167_v20  ;;  %v1170_v0 = vld [vmem:[#allocation10 + $0x3e0] sm:$0xff]  ;;  %v1176_v1 = vld [vmem:[#allocation10 + $0x410] sm:$0xff]  ;;  %v1183_v15 = vld [vmem:[#allocation10 + $0x448] sm:$0xff] }
  0xfc   :  { %7002 = vmatprep.subr.bf16.mxu0 %v10000_v6  ;;  %v1189_v20 = vld [vmem:[#allocation10 + $0x478] sm:$0xff] }
  0xfd   :  { %7128 = vmatpush1.bf16.msra.mxu1 %v7127_v9  ;;  %12462 = vst [vmem:[#allocation18_spill] sm:$0xff] %v10016_v39  ;;  %v1166_v9 = vld [vmem:[#allocation10 + $0x3c0] sm:$0xff] }
  0xfe   :  { %838 = vmatmul.mubr.f32.gmra.mrb[56].mxu0 %v9832_v8  ;;  %7130 = vmatprep.subr.bf16.mxu1 %v7129_v43  ;;  %v1185_v8 = vld [vmem:[#allocation10 + $0x458] sm:$0xff]  ;;  %v7135_v43 = vpack.c.bf16 %v1164_v25, %v1158_v19  ;;  %v7011_v59 = vpack.c.bf16 %v1172_v44, %v1166_v9  ;;  %v1191_v19 = vld [vmem:[#allocation10 + $0x488] sm:$0xff] }
  0xff   :  { %843 = vmatprep.mubr.f32.mxu0 %v9835_v12  ;;  %7004 = vmatpush1.bf16.msra.mxu0 %v10005_v40  ;;  %v7137_v12 = vpack.c.bf16 %v1177_v16, %v1171_v28  ;;  %v10022_v55 = vpack.c.bf16 %v1185_v8, %v1179_v13  ;;  %v1197_v25 = vld [vmem:[#allocation10 + $0x4b8] sm:$0xff]  ;;  %v1188_v28 = vld [vmem:[#allocation10 + $0x470] sm:$0xff]  ;;  %v1195_v9 = vld [vmem:[#allocation10 + $0x4a8] sm:$0xff] }
 0x100   :  { %7006 = vmatprep.subr.bf16.mxu0 %v10008_v23  ;;  %v1178_v23 = vld [vmem:[#allocation10 + $0x420] sm:$0xff]  ;;  %v1201_v44 = vld [vmem:[#allocation10 + $0x4d8] sm:$0xff]  ;;  %v10027_v13 = vpack.c.bf16 %v1197_v25, %v1191_v19  ;;  %v1208_v19 = vld [vmem:[#allocation10 + $0x510] sm:$0xff] }
 0x101   :  { %7132 = vmatpush1.bf16.msra.mxu1 %v7131_v26  ;;  %v1184_v26 = vld [vmem:[#allocation10 + $0x450] sm:$0xff]  ;;  %v1190_v8 = vld [vmem:[#allocation10 + $0x480] sm:$0xff]  ;;  %v1215_v25 = vld [vmem:[#allocation10 + $0x548] sm:$0xff] }
 0x102   :  { %844 = vmatmul.mubr.f32.gmra.mrb[58].mxu0 %v9840_v29  ;;  %7134 = vmatprep.subr.bf16.mxu1 %v7133_v60  ;;  %v7139_v29 = vpack.c.bf16 %v1176_v1, %v1170_v0  ;;  %v7141_v60 = vpack.c.bf16 %v1189_v20, %v1183_v15  ;;  %v7015_v16 = vpack.c.bf16 %v1184_v26, %v1178_v23  ;;  %v1209_v0 = vld [vmem:[#allocation10 + $0x518] sm:$0xff]  ;;  %v1194_v1 = vld [vmem:[#allocation10 + $0x4a0] sm:$0xff] }
 0x103   :  { %849 = vmatprep.mubr.f32.mxu0 %v9843_v33  ;;  %7008 = vmatpush1.bf16.msra.mxu0 %v10013_v45  ;;  %v1182_v33 = vld [vmem:[#allocation10 + $0x440] sm:$0xff]  ;;  %v1213_v15 = vld [vmem:[#allocation10 + $0x538] sm:$0xff] }
 0x104   :  { %7010 = vmatprep.subr.bf16.mxu0 %v10016_v39  ;;  %v1196_v39 = vld [vmem:[#allocation10 + $0x4b0] sm:$0xff]  ;;  %v1202_v26 = vld [vmem:[#allocation10 + $0x4e0] sm:$0xff] }
 0x105   :  { %7136 = vmatpush1.bf16.msra.mxu1 %v7135_v43  ;;  %v1203_v43 = vld [vmem:[#allocation10 + $0x4e8] sm:$0xff]  ;;  %v7019_v23 = vpack.c.bf16 %v1196_v39, %v1190_v8  ;;  %v10036_v39 = vpack.c.bf16 %v1208_v19, %v1202_v26  ;;  %v1220_v8 = vld [vmem:[#allocation10 + $0x570] sm:$0xff] }
 0x106   :  { %850 = vmatmul.mubr.f32.gmra.mrb[60].mxu0 %v9848_v48  ;;  %7138 = vmatprep.subr.bf16.mxu1 %v7137_v12  ;;  %v7143_v48 = vpack.c.bf16 %v1188_v28, %v1182_v33  ;;  %v7145_v12 = vpack.c.bf16 %v1201_v44, %v1195_v9  ;;  %v10032_v20 = vpack.c.bf16 %v1209_v0, %v1203_v43  ;;  %v1206_v33 = vld [vmem:[#allocation10 + $0x500] sm:$0xff]  ;;  %v1219_v28 = vld [vmem:[#allocation10 + $0x568] sm:$0xff]  ;;  %v1233_v0 = vld [vmem:[#allocation10 + $0x5d8] sm:$0xff] }
 0x107   :  { %855 = vmatprep.mubr.f32.mxu0 %v9851_v51  ;;  %7012 = vmatpush1.bf16.msra.mxu0 %v7011_v59  ;;  %v1200_v51 = vld [vmem:[#allocation10 + $0x4d0] sm:$0xff]  ;;  %v1207_v59 = vld [vmem:[#allocation10 + $0x508] sm:$0xff]  ;;  %v1214_v44 = vld [vmem:[#allocation10 + $0x540] sm:$0xff] }
 0x108   :  { %7014 = vmatprep.subr.bf16.mxu0 %v10022_v55  ;;  %v1227_v43 = vld [vmem:[#allocation10 + $0x5a8] sm:$0xff]  ;;  %v1232_v26 = vld [vmem:[#allocation10 + $0x5d0] sm:$0xff] }
 0x109   :  { %7140 = vmatpush1.bf16.msra.mxu1 %v7139_v29  ;;  %v1221_v29 = vld [vmem:[#allocation10 + $0x578] sm:$0xff] }
 0x10a   :  { %856 = vmatmul.mubr.f32.gmra.mrb[62].mxu0 %v9856_v2  ;;  %7142 = vmatprep.subr.bf16.mxu1 %v7141_v60  ;;  %v7147_v2 = vpack.c.bf16 %v1200_v51, %v1194_v1  ;;  %v7149_v60 = vpack.c.bf16 %v1213_v15, %v1207_v59  ;;  %v10039_v9 = vpack.c.bf16 %v1221_v29, %v1215_v25  ;;  %v1231_v51 = vld [vmem:[#allocation10 + $0x5c8] sm:$0xff]  ;;  %v1226_v15 = vld [vmem:[#allocation10 + $0x5a0] sm:$0xff] }
 0x10b   :  { %861 = vmatprep.mubr.f32.mxu0 %v9859_v5  ;;  %7016 = vmatpush1.bf16.msra.mxu0 %v7015_v16  ;;  %v1212_v5 = vld [vmem:[#allocation10 + $0x530] sm:$0xff]  ;;  %v1225_v16 = vld [vmem:[#allocation10 + $0x598] sm:$0xff]  ;;  %v10044_v1 = vpack.c.bf16 %v1220_v8, %v1214_v44  ;;  %v10047_v59 = vpack.c.bf16 %v1233_v0, %v1227_v43  ;;  %v1230_v25 = vld [vmem:[#allocation10 + $0x5c0] sm:$0xff]  ;;  %v10052_v29 = vpack.c.bf16 %v1232_v26, %v1226_v15 }
 0x10c   :  { %7018 = vmatprep.subr.bf16.mxu0 %v10027_v13  ;;  %v1691_v44 = vld [vmem:[#allocation10 + $0x288] sm:$0xff]  ;;  %v1684_v43 = vld [vmem:[#allocation10 + $0x250] sm:$0xff]  ;;  %v1690_v0 = vld [vmem:[#allocation10 + $0x280] sm:$0xff] }
 0x10d   :  { %7144 = vmatpush1.bf16.msra.mxu1 %v7143_v48  ;;  %v7153_v48 = vpack.c.bf16 %v1225_v16, %v1219_v28  ;;  %v1685_v16 = vld [vmem:[#allocation10 + $0x258] sm:$0xff] }
 0x10e   :  { %862 = vmatmul.mubr.f32.gmra.mrb[64].mxu0 %v9864_v24  ;;  %7146 = vmatprep.subr.bf16.mxu1 %v7145_v12  ;;  %v7151_v24 = vpack.c.bf16 %v1212_v5, %v1206_v33  ;;  %v1224_v12 = vld [vmem:[#allocation10 + $0x590] sm:$0xff]  ;;  %v1678_v5 = vld [vmem:[#allocation10 + $0x220] sm:$0xff]  ;;  %v10102_v8 = vpack.c.bf16 %v1691_v44, %v1685_v16  ;;  %v1709_v26 = vld [vmem:[#allocation10 + $0x318] sm:$0xff] }
 0x10f   :  { %867 = vmatprep.mubr.f32.mxu0 %v9867_v30  ;;  %7020 = vmatpush1.bf16.msra.mxu0 %v7019_v23  ;;  %v1218_v30 = vld [vmem:[#allocation10 + $0x560] sm:$0xff]  ;;  %v1237_v23 = vld [vmem:[#allocation10 + $0x5f8] sm:$0xff]  ;;  %v1672_v33 = vld [vmem:[#allocation10 + $0x1f0] sm:$0xff] }
 0x110   :  { %7022 = vmatprep.subr.bf16.mxu0 %v10032_v20  ;;  %v7157_v19 = vpack.c.bf16 %v1237_v23, %v1231_v51  ;;  %v10098_v28 = vpack.c.bf16 %v1678_v5, %v1672_v33  ;;  %v1696_v51 = vld [vmem:[#allocation10 + $0x2b0] sm:$0xff]  ;;  %v1702_v23 = vld [vmem:[#allocation10 + $0x2e0] sm:$0xff]  ;;  %v1775_v33 = vld [vmem:[#allocation10 + $0x528] sm:$0xff] }
 0x111   :  { %7148 = vmatpush1.bf16.msra.mxu1 %v7147_v2  ;;  %v10110_v15 = vpack.c.bf16 %v1702_v23, %v1696_v51  ;;  %v1768_v16 = vld [vmem:[#allocation10 + $0x4f0] sm:$0xff]  ;;  %v1774_v44 = vld [vmem:[#allocation10 + $0x520] sm:$0xff]  ;;  %v1793_v23 = vld [vmem:[#allocation10 + $0x5b8] sm:$0xff] }
 0x112   :  { %868 = vmatmul.mubr.f32.gmra.mrb[66].mxu0 %v9872_v47  ;;  %7150 = vmatprep.subr.bf16.mxu1 %v7149_v60  ;;  %v7155_v47 = vpack.c.bf16 %v1224_v12, %v1218_v30  ;;  %v1703_v30 = vld [vmem:[#allocation10 + $0x2e8] sm:$0xff]  ;;  %v1786_v51 = vld [vmem:[#allocation10 + $0x580] sm:$0xff] }
 0x113   :  { %873 = vmatprep.mubr.f32.mxu0 %v9875_v52  ;;  %7024 = vmatpush1.bf16.msra.mxu0 %v10036_v39  ;;  %v1236_v52 = vld [vmem:[#allocation10 + $0x5f0] sm:$0xff] }
 0x114   :  { %7026 = vmatprep.subr.bf16.mxu0 %v10039_v9  ;;  %v7159_v2 = vpack.c.bf16 %v1236_v52, %v1230_v25  ;;  %v1708_v25 = vld [vmem:[#allocation10 + $0x310] sm:$0xff]  ;;  %v1714_v52 = vld [vmem:[#allocation10 + $0x340] sm:$0xff] }
 0x115   :  { %7152 = vmatpush1.bf16.msra.mxu1 %v7151_v24  ;;  %v10104_v24 = vpack.c.bf16 %v1690_v0, %v1684_v43  ;;  %v1781_v43 = vld [vmem:[#allocation10 + $0x558] sm:$0xff]  ;;  %v1787_v0 = vld [vmem:[#allocation10 + $0x588] sm:$0xff] }
 0x116   :  { %874 = vmatmul.mubr.f32.gmra.mrb[68].mxu0 %v9880_v4  ;;  %7154 = vmatprep.subr.bf16.mxu1 %v7153_v48  ;;  %v12463_v4 = vld [vmem:[#allocation17_spill] sm:$0xff]  ;;  %v1697_v48 = vld [vmem:[#allocation10 + $0x2b8] sm:$0xff] }
 0x117   :  { %879 = vmatprep.mubr.f32.mxu0 %v9883_v11  ;;  %7028 = vmatpush1.bf16.msra.mxu0 %v10044_v1  ;;  %v12464_v11 = vld [vmem:[#allocation18_spill] sm:$0xff]  ;;  %v10108_v12 = vpack.c.bf16 %v1703_v30, %v1697_v48  ;;  %v1780_v48 = vld [vmem:[#allocation10 + $0x550] sm:$0xff]  ;;  %v10162_v30 = vpack.c.bf16 %v1787_v0, %v1781_v43 }
 0x118   :  { %7030 = vmatprep.subr.bf16.mxu0 %v10047_v59 }
 0x119   :  { %7156 = vmatpush1.bf16.msra.mxu1 %v7155_v47  ;;  %v1715_v47 = vld [vmem:[#allocation10 + $0x348] sm:$0xff] }
 0x11a   :  { %880 = vmatmul.mubr.f32.gmra.mrb[70].mxu0 %v9888_v34  ;;  %7158 = vmatprep.subr.bf16.mxu1 %v7157_v19  ;;  %v1613_v34 = vld [vmem:[#allocation10 + $0x18] sm:$0xff]  ;;  %v10114_v19 = vpack.c.bf16 %v1715_v47, %v1709_v26  ;;  %v1799_v26 = vld [vmem:[#allocation10 + $0x5e8] sm:$0xff]  ;;  %v10165_v47 = vpack.c.bf16 %v1786_v51, %v1780_v48 }
 0x11b   :  { %885 = vmatprep.mubr.f32.mxu0 %v9891_v37  ;;  %7032 = vmatpush1.bf16.msra.mxu0 %v10052_v29  ;;  %v1619_v37 = vld [vmem:[#allocation10 + $0x48] sm:$0xff] }
 0x11c   :  { %7162 = vmatprep.subr.bf16.mxu0 %v9893_v41  ;;  %v7225_v41 = vpack.c.bf16 %v1619_v37, %v1613_v34  ;;  %v1720_v37 = vld [vmem:[#allocation10 + $0x370] sm:$0xff] }
 0x11d   :  { %7160 = vmatpush1.bf16.msra.mxu1 %v7159_v2  ;;  %v10116_v2 = vpack.c.bf16 %v1714_v52, %v1708_v25  ;;  %v10167_v25 = vpack.c.bf16 %v1799_v26, %v1793_v23  ;;  %v1798_v52 = vld [vmem:[#allocation10 + $0x5e0] sm:$0xff] }
 0x11e   :  { %886 = vmatmul.mubr.f32.gmra.mrb[72].mxu0 %v9898_v46  ;;  %v1612_v46 = vld [vmem:[#allocation10 + $0x10] sm:$0xff]  ;;  %7226 = vmatprep.subr.bf16.mxu1 %v7225_v41  ;;  %v1726_v41 = vld [vmem:[#allocation10 + $0x3a0] sm:$0xff] }
 0x11f   :  { %891 = vmatprep.mubr.f32.mxu0 %v9901_v49  ;;  %v1618_v49 = vld [vmem:[#allocation10 + $0x40] sm:$0xff] }
 0x120   :  { %1489 = vmatmul.mubr.f32.vlgmr.msra.gmra.mrb[40].mxu1 %v9934_v17 }
 0x121   :  { %1494 = vmatprep.mubr.f32.mxu1 %v9936_v21 }
 0x122   :  { %892 = vmatmul.mubr.f32.gmra.mrb[74].mxu0 %v9907_v50  ;;  %v7227_v50 = vpack.c.bf16 %v1618_v49, %v1612_v46  ;;  %v10122_v46 = vpack.c.bf16 %v1726_v41, %v1720_v37  ;;  %v1733_v49 = vld [vmem:[#allocation10 + $0x3d8] sm:$0xff] }
 0x123   :  { %897 = vmatprep.mubr.f32.mxu0 %v9910_v53  ;;  %v1625_v53 = vld [vmem:[#allocation10 + $0x78] sm:$0xff] }
 0x124   :  { %1495 = vmatmul.mubr.f32.gmra.mrb[42].mxu1 %v9947_v61 }
 0x125   :  { %7228 = vmatpush1.bf16.msra.mxu1 %v7227_v50  ;;  %v1739_v50 = vld [vmem:[#allocation10 + $0x408] sm:$0xff] }
 0x126   :  { %898 = vmatmul.mubr.f32.gmra.mrb[76].mxu0 %v9915_v54  ;;  %v1631_v54 = vld [vmem:[#allocation10 + $0xa8] sm:$0xff] }
 0x127   :  { %903 = vmatprep.mubr.f32.mxu0 %v9918_v57  ;;  %v7229_v57 = vpack.c.bf16 %v1631_v54, %v1625_v53  ;;  %v10126_v53 = vpack.c.bf16 %v1739_v50, %v1733_v49  ;;  %v1732_v54 = vld [vmem:[#allocation10 + $0x3d0] sm:$0xff] }
 0x129   :  { %7230 = vmatprep.subr.bf16.mxu1 %v7229_v57  ;;  %v1738_v57 = vld [vmem:[#allocation10 + $0x400] sm:$0xff] }
 0x12a   :  { %904 = vmatmul.mubr.f32.gmra.mrb[78].mxu0 %v9923_v58  ;;  %v1624_v58 = vld [vmem:[#allocation10 + $0x70] sm:$0xff] }
 0x12b   :  { %1334 = vmatprep.mubr.f32.mxu0 %v9926_v63  ;;  %v1630_v63 = vld [vmem:[#allocation10 + $0xa0] sm:$0xff] }
 0x12e   :  { %1335 = vmatmul.mubr.f32.vlgmr.msra.gmra.mrb[0].mxu0 %v9934_v17  ;;  %v1637_v17 = vld [vmem:[#allocation10 + $0xd8] sm:$0xff] }
 0x12f   :  { %1340 = vmatprep.mubr.f32.mxu0 %v9936_v21  ;;  %7164 = vmatpush1.bf16.msra.mxu0 %v9931_v10  ;;  %v7231_v10 = vpack.c.bf16 %v1630_v63, %v1624_v58  ;;  %v1643_v21 = vld [vmem:[#allocation10 + $0x108] sm:$0xff]  ;;  %v10128_v58 = vpack.c.bf16 %v1738_v57, %v1732_v54  ;;  %v1730_v63 = vld [vmem:[#allocation10 + $0x3c0] sm:$0xff] }
 0x130   :  { %7166 = vmatprep.subr.bf16.mxu0 %v9938_v22  ;;  %v7233_v22 = vpack.c.bf16 %v1643_v21, %v1637_v17  ;;  %v1745_v21 = vld [vmem:[#allocation10 + $0x438] sm:$0xff] }
 0x131   :  { %7232 = vmatpush1.bf16.msra.mxu1 %v7231_v10  ;;  %v1736_v10 = vld [vmem:[#allocation10 + $0x3f0] sm:$0xff] }
 0x132   :  { %1341 = vmatmul.mubr.f32.gmra.mrb[2].mxu0 %v9947_v61  ;;  %v1642_v61 = vld [vmem:[#allocation10 + $0x100] sm:$0xff]  ;;  %7234 = vmatprep.subr.bf16.mxu1 %v7233_v22  ;;  %v10131_v17 = vpack.c.bf16 %v1736_v10, %v1730_v63  ;;  %v1751_v22 = vld [vmem:[#allocation10 + $0x468] sm:$0xff] }
 0x133   :  { %7168 = vmatpush1.bf16.msra.mxu0 %v9943_v38  ;;  %v1636_v38 = vld [vmem:[#allocation10 + $0xd0] sm:$0xff] }
 0x134   :  { %7170 = vmatprep.subr.bf16.mxu0 %v9949_v62  ;;  %v7235_v62 = vpack.c.bf16 %v1642_v61, %v1636_v38  ;;  %v10135_v38 = vpack.c.bf16 %v1751_v22, %v1745_v21  ;;  %v1744_v61 = vld [vmem:[#allocation10 + $0x430] sm:$0xff] }
 0x136   :  { %7236 = vmatpush1.bf16.msra.mxu1 %v7235_v62  ;;  %v1750_v62 = vld [vmem:[#allocation10 + $0x460] sm:$0xff] }
 0x137   :  { %7172 = vmatpush1.bf16.msra.mxu0 %v9955_v18  ;;  %v1649_v18 = vld [vmem:[#allocation10 + $0x138] sm:$0xff] }
 0x138   :  { %7174 = vmatprep.subr.bf16.mxu0 %v9959_v27  ;;  %v1655_v27 = vld [vmem:[#allocation10 + $0x168] sm:$0xff] }
 0x13b   :  { %7176 = vmatpush1.bf16.msra.mxu0 %v9965_v32  ;;  %v7237_v32 = vpack.c.bf16 %v1655_v27, %v1649_v18  ;;  %v10138_v18 = vpack.c.bf16 %v1750_v62, %v1744_v61  ;;  %v1742_v27 = vld [vmem:[#allocation10 + $0x420] sm:$0xff] }
 0x13c   :  { %7178 = vmatprep.subr.bf16.mxu0 %v9968_v3  ;;  %v1648_v3 = vld [vmem:[#allocation10 + $0x130] sm:$0xff] }
 0x13d   :  { %7238 = vmatprep.subr.bf16.mxu1 %v7237_v32  ;;  %v1748_v32 = vld [vmem:[#allocation10 + $0x450] sm:$0xff] }
 0x13f   :  { %7180 = vmatpush1.bf16.msra.mxu0 %v9973_v31  ;;  %v1654_v31 = vld [vmem:[#allocation10 + $0x160] sm:$0xff] }
 0x140   :  { %7182 = vmatprep.subr.bf16.mxu0 %v9976_v35  ;;  %v7239_v35 = vpack.c.bf16 %v1654_v31, %v1648_v3  ;;  %v10141_v3 = vpack.c.bf16 %v1748_v32, %v1742_v27  ;;  %v1757_v31 = vld [vmem:[#allocation10 + $0x498] sm:$0xff] }
 0x142   :  { %7240 = vmatpush1.bf16.msra.mxu1 %v7239_v35  ;;  %v1763_v35 = vld [vmem:[#allocation10 + $0x4c8] sm:$0xff] }
 0x143   :  { %7184 = vmatpush1.bf16.msra.mxu0 %v9981_v7  ;;  %v1661_v7 = vld [vmem:[#allocation10 + $0x198] sm:$0xff] }
 0x144   :  { %7186 = vmatprep.subr.bf16.mxu0 %v9984_v42  ;;  %v1667_v42 = vld [vmem:[#allocation10 + $0x1c8] sm:$0xff] }
 0x147   :  { %7188 = vmatpush1.bf16.msra.mxu0 %v9989_v36  ;;  %v7241_v36 = vpack.c.bf16 %v1667_v42, %v1661_v7  ;;  %v10145_v7 = vpack.c.bf16 %v1763_v35, %v1757_v31  ;;  %v1756_v42 = vld [vmem:[#allocation10 + $0x490] sm:$0xff] }
 0x148   :  { %7190 = vmatprep.subr.bf16.mxu0 %v9992_v56  ;;  %v1660_v56 = vld [vmem:[#allocation10 + $0x190] sm:$0xff] }
 0x149   :  { %7242 = vmatprep.subr.bf16.mxu1 %v7241_v36  ;;  %v1762_v36 = vld [vmem:[#allocation10 + $0x4c0] sm:$0xff] }
 0x14b   :  { %7192 = vmatpush1.bf16.msra.mxu0 %v9997_v14  ;;  %v1666_v14 = vld [vmem:[#allocation10 + $0x1c0] sm:$0xff] }
 0x14c   :  { %7194 = vmatprep.subr.bf16.mxu0 %v10000_v6  ;;  %v10093_v6 = vpack.c.bf16 %v1666_v14, %v1660_v56  ;;  %v1754_v56 = vld [vmem:[#allocation10 + $0x480] sm:$0xff]  ;;  %v1760_v14 = vld [vmem:[#allocation10 + $0x4b0] sm:$0xff] }
 0x14e   :  { %7244 = vmatpush1.bf16.msra.mxu1 %v10093_v6 }
 0x14f   :  { %7196 = vmatpush1.bf16.msra.mxu0 %v10005_v40  ;;  %v1673_v40 = vld [vmem:[#allocation10 + $0x1f8] sm:$0xff] }
 0x150   :  { %7198 = vmatprep.subr.bf16.mxu0 %v12463_v4  ;;  %v1721_v4 = vld [vmem:[#allocation10 + $0x378] sm:$0xff] }
 0x153   :  { %7200 = vmatpush1.bf16.msra.mxu0 %v10013_v45  ;;  %v1679_v45 = vld [vmem:[#allocation10 + $0x228] sm:$0xff] }
 0x154   :  { %7202 = vmatprep.subr.bf16.mxu0 %v12464_v11  ;;  %v10096_v60 = vpack.c.bf16 %v1679_v45, %v1673_v40  ;;  %v1727_v11 = vld [vmem:[#allocation10 + $0x3a8] sm:$0xff]  ;;  %v10151_v40 = vpack.c.bf16 %v1760_v14, %v1754_v56  ;;  %v1769_v45 = vld [vmem:[#allocation10 + $0x4f8] sm:$0xff] }
 0x155   :  { %v10120_v34 = vpack.c.bf16 %v1727_v11, %v1721_v4  ;;  %v10155_v5 = vpack.c.bf16 %v1775_v33, %v1769_v45  ;;  %v1621_v11 = vld [vmem:[#allocation10 + $0x58] sm:$0xff] }
 0x156   :  { %7246 = vmatprep.subr.bf16.mxu1 %v10096_v60 }
 0x157   :  { %7248 = vmatpush1.bf16.msra.mxu1 %v10098_v28  ;;  %7204 = vmatpush1.bf16.msra.mxu0 %v10131_v17 }
 0x158   :  { %7250 = vmatprep.subr.bf16.mxu1 %v10102_v8  ;;  %7206 = vmatprep.subr.bf16.mxu0 %v10022_v55  ;;  %v10148_v55 = vpack.c.bf16 %v1762_v36, %v1756_v42 }
 0x15b   :  { %7252 = vmatpush1.bf16.msra.mxu1 %v10104_v24  ;;  %7208 = vmatpush1.bf16.msra.mxu0 %v10141_v3 }
 0x15c   :  { %7254 = vmatprep.subr.bf16.mxu1 %v10108_v12  ;;  %7210 = vmatprep.subr.bf16.mxu0 %v10027_v13  ;;  %v10158_v13 = vpack.c.bf16 %v1774_v44, %v1768_v16 }
 0x15f   :  { %7256 = vmatpush1.bf16.msra.mxu1 %v10110_v15  ;;  %7212 = vmatpush1.bf16.msra.mxu0 %v10151_v40 }
 0x160   :  { %7258 = vmatprep.subr.bf16.mxu1 %v10114_v19  ;;  %7214 = vmatprep.subr.bf16.mxu0 %v10032_v20  ;;  %v1792_v20 = vld [vmem:[#allocation10 + $0x5b0] sm:$0xff] }
 0x161   :  { %v10172_v4 = vpack.c.bf16 %v1798_v52, %v1792_v20 }
 0x163   :  { %7260 = vmatpush1.bf16.msra.mxu1 %v10116_v2  ;;  %7216 = vmatpush1.bf16.msra.mxu0 %v10036_v39  ;;  %v1615_v39 = vld [vmem:[#allocation10 + $0x28] sm:$0xff] }
 0x164   :  { %7262 = vmatprep.subr.bf16.mxu1 %v10120_v34  ;;  %7218 = vmatprep.subr.bf16.mxu0 %v10039_v9  ;;  %v10181_v41 = vpack.c.bf16 %v1621_v11, %v1615_v39  ;;  %v325_v11 = vlaneseq }
 0x167   :  { %7264 = vmatpush1.bf16.msra.mxu1 %v10122_v46  ;;  %7220 = vmatpush1.bf16.msra.mxu0 %v10044_v1 }
 0x168   :  { %7266 = vmatprep.subr.bf16.mxu1 %v10126_v53  ;;  %7222 = vmatprep.subr.bf16.mxu0 %v10047_v59 }
 0x16b   :  { %7268 = vmatpush1.bf16.msra.mxu1 %v10128_v58  ;;  %7224 = vmatpush1.bf16.msra.mxu0 %v10052_v29 }
 0x16c   :  { %7270 = vmatprep.subr.bf16.mxu1 %v10135_v38 }
 0x16f   :  { %7272 = vmatpush1.bf16.msra.mxu1 %v10138_v18 }
 0x170   :  { %7274 = vmatprep.subr.bf16.mxu1 %v10145_v7 }
 0x173   :  { %7276 = vmatpush1.bf16.msra.mxu1 %v10148_v55 }
 0x174   :  { %7278 = vmatprep.subr.bf16.mxu1 %v10155_v5 }
 0x177   :  { %7280 = vmatpush1.bf16.msra.mxu1 %v10158_v13 }
 0x178   :  { %7282 = vmatprep.subr.bf16.mxu1 %v10162_v30 }
 0x17b   :  { %7284 = vmatpush1.bf16.msra.mxu1 %v10165_v47 }
 0x17c   :  { %7286 = vmatprep.subr.bf16.mxu1 %v10167_v25 }
 0x17f   :  { %7288 = vmatpush1.bf16.msra.mxu1 %v10172_v4 }
 0x180   :  { %7290 = vmatprep.subr.bf16.mxu1 %v10181_v41 }
 0x1b1   :  { %v10178_v37 = vpop.f32.mrb[40].mxu0 }
 0x1b2   :  { %v10183_v9 = vpop.f32.mrb[0].mxu1  ;;  %v10185_v49 = vpop.f32.mrb[41].mxu0 }
 0x1b3   :  { %v10187_v50 = vpop.f32.mrb[1].mxu1 }
 0x1b5   :  { %v10190_v1 = vpop.f32.mrb[42].mxu0 }
 0x1b6   :  { %v10192_v59 = vpop.f32.mrb[2].mxu1  ;;  %v10194_v54 = vpop.f32.mrb[43].mxu0 }
 0x1b7   :  { %v10196_v57 = vpop.f32.mrb[3].mxu1 }
 0x1b9   :  { %v10198_v63 = vpop.f32.mrb[44].mxu0 }
 0x1ba   :  { %12465 = vst [vmem:[#allocation17_spill] sm:$0xff] %v10198_v63  ;;  %v10200_v29 = vpop.f32.mrb[45].mxu0 }
 0x1bb   :  { %12466 = vst [vmem:[#allocation18_spill] sm:$0xff] %v10200_v29 }
 0x1bd   :  { %v10202_v10 = vpop.f32.mrb[46].mxu0 }
 0x1be   :  { %12467 = vst [vmem:[#allocation19_spill] sm:$0xff] %v10202_v10  ;;  %v10204_v21 = vpop.f32.mrb[47].mxu0 }
 0x1bf   :  { %12468 = vst [vmem:[#allocation20_spill] sm:$0xff] %v10204_v21 }
 0x1c1   :  { %v10206_v22 = vpop.f32.mrb[48].mxu0 }
 0x1c2   :  { %12469 = vst [vmem:[#allocation21_spill] sm:$0xff] %v10206_v22  ;;  %v10208_v61 = vpop.f32.mrb[49].mxu0 }
 0x1c3   :  { %12470 = vst [vmem:[#allocation22_spill] sm:$0xff] %v10208_v61 }
 0x1c5   :  { %v10210_v62 = vpop.f32.mrb[50].mxu0 }
 0x1c6   :  { %12471 = vst [vmem:[#allocation23_spill] sm:$0xff] %v10210_v62  ;;  %v10212_v27 = vpop.f32.mrb[51].mxu0 }
 0x1c7   :  { %12472 = vst [vmem:[#allocation24_spill] sm:$0xff] %v10212_v27 }
 0x1c9   :  { %v10214_v32 = vpop.f32.mrb[52].mxu0 }
 0x1ca   :  { %12473 = vst [vmem:[#allocation25_spill] sm:$0xff] %v10214_v32  ;;  %v10216_v31 = vpop.f32.mrb[53].mxu0 }
 0x1cb   :  { %12474 = vst [vmem:[#allocation26_spill] sm:$0xff] %v10216_v31 }
 0x1cd   :  { %v10218_v35 = vpop.f32.mrb[54].mxu0 }
 0x1ce   :  { %12475 = vst [vmem:[#allocation27_spill] sm:$0xff] %v10218_v35  ;;  %v10220_v42 = vpop.f32.mrb[55].mxu0 }
 0x1cf   :  { %12476 = vst [vmem:[#allocation28_spill] sm:$0xff] %v10220_v42 }
 0x1d1   :  { %v10222_v36 = vpop.f32.mrb[56].mxu0 }
 0x1d2   :  { %12477 = vst [vmem:[#allocation29_spill] sm:$0xff] %v10222_v36  ;;  %v10224_v56 = vpop.f32.mrb[57].mxu0 }
 0x1d3   :  { %12478 = vst [vmem:[#allocation30_spill] sm:$0xff] %v10224_v56 }
 0x1d5   :  { %v10226_v14 = vpop.f32.mrb[58].mxu0 }
 0x1d6   :  { %12479 = vst [vmem:[#allocation31_spill] sm:$0xff] %v10226_v14  ;;  %v10228_v45 = vpop.f32.mrb[59].mxu0 }
 0x1d7   :  { %12480 = vst [vmem:[#allocation32_spill] sm:$0xff] %v10228_v45 }
 0x1d9   :  { %v10230_v33 = vpop.f32.mrb[60].mxu0 }
 0x1da   :  { %12481 = vst [vmem:[#allocation33_spill] sm:$0xff] %v10230_v33  ;;  %v10232_v16 = vpop.f32.mrb[61].mxu0 }
 0x1db   :  { %12482 = vst [vmem:[#allocation34_spill] sm:$0xff] %v10232_v16 }
 0x1dd   :  { %v10234_v44 = vpop.f32.mrb[62].mxu0 }
 0x1de   :  { %12483 = vst [vmem:[#allocation35_spill] sm:$0xff] %v10234_v44  ;;  %v10236_v43 = vpop.f32.mrb[63].mxu0 }
 0x1df   :  { %12484 = vst [vmem:[#allocation36_spill] sm:$0xff] %v10236_v43 }
 0x1e1   :  { %v10238_v0 = vpop.f32.mrb[64].mxu0 }
 0x1e2   :  { %12485 = vst [vmem:[#allocation37_spill] sm:$0xff] %v10238_v0  ;;  %v10240_v48 = vpop.f32.mrb[65].mxu0 }
 0x1e3   :  { %12486 = vst [vmem:[#allocation38_spill] sm:$0xff] %v10240_v48  ;;  %v10260_v48 = vshrl.u32 %v325_v11, 7  ;;  %v10281_v11 = vld [vmem:[%s12270_s3] sm:$0x3f] }
 0x1e5   :  { %v10242_v51 = vpop.f32.mrb[66].mxu0  ;;  %v10292_v16 = vsub.s32 3, %v10260_v48 }
 0x1e6   :  { %12487 = vst [vmem:[#allocation39_spill] sm:$0xff] %v10242_v51  ;;  %v10244_v23 = vpop.f32.mrb[67].mxu0 }
 0x1e7   :  { %12488 = vst [vmem:[#allocation40_spill] sm:$0xff] %v10244_v23  ;;  %12501 = vst [vmem:[#allocation53_spill] sm:$0xff] %v10292_v16 }
 0x1e9   :  { %v10246_v26 = vpop.f32.mrb[68].mxu0 }
 0x1ea   :  { %12489 = vst [vmem:[#allocation41_spill] sm:$0xff] %v10246_v26  ;;  %v10248_v20 = vpop.f32.mrb[69].mxu0 }
 0x1eb   :  { %12490 = vst [vmem:[#allocation42_spill] sm:$0xff] %v10248_v20  ;;  %v10269_v20 = vsub.s32 0, %v10260_v48 }
 0x1ed   :  { %v10250_v52 = vpop.f32.mrb[70].mxu0  ;;  %12497 = vst [vmem:[#allocation49_spill] sm:$0xff] %v10269_v20  ;;  %v10298_v45 = vrot.slane %v10281_v11, %v10269_v20 }
 0x1ee   :  { %12491 = vst [vmem:[#allocation43_spill] sm:$0xff] %v10250_v52  ;;  %v10252_v39 = vpop.f32.mrb[71].mxu0 }
 0x1ef   :  { %12492 = vst [vmem:[#allocation44_spill] sm:$0xff] %v10252_v39  ;;  %v10272_v39 = vsub.s32 1, %v10260_v48  ;;  %12503 = vst [vmem:[#allocation55_spill] sm:$0xff] %v10298_v45 }
 0x1f1   :  { %v10254_v44 = vpop.f32.mrb[72].mxu0  ;;  %12498 = vst [vmem:[#allocation50_spill] sm:$0xff] %v10272_v39  ;;  %v10303_v56 = vrot.slane %v10281_v11, %v10272_v39 }
 0x1f2   :  { %12493 = vst [vmem:[#allocation45_spill] sm:$0xff] %v10254_v44  ;;  %v10256_v43 = vpop.f32.mrb[73].mxu0 }
 0x1f3   :  { %12494 = vst [vmem:[#allocation46_spill] sm:$0xff] %v10256_v43  ;;  %v10258_v0 = vpop.f32.mrb[40].mxu1  ;;  %v10284_v43 = vsub.s32 2, %v10260_v48 }
 0x1f4   :  { %v10262_v51 = vpop.f32.mrb[41].mxu1 }
 0x1f5   :  { %v10264_v23 = vpop.f32.mrb[74].mxu0  ;;  %12499 = vst [vmem:[#allocation51_spill] sm:$0xff] %v10284_v43 }
 0x1f6   :  { %12495 = vst [vmem:[#allocation47_spill] sm:$0xff] %v10264_v23  ;;  %v10266_v26 = vpop.f32.mrb[75].mxu0 }
 0x1f7   :  { %12496 = vst [vmem:[#allocation48_spill] sm:$0xff] %v10266_v26  ;;  %v10274_v52 = vpop.f32.mrb[42].mxu1  ;;  %v1238_v26 = vld [vmem:[%s12272_s5] sm:$0x3f] }
 0x1f8   :  { %v10276_v44 = vpop.f32.mrb[43].mxu1  ;;  %v1243_v14 = vrot.slane %v1238_v26, %v10269_v20  ;;  %v1247_v36 = vrot.slane %v1238_v26, %v10272_v39  ;;  %v1251_v42 = vrot.slane %v1238_v26, %v10284_v43  ;;  %v1255_v31 = vrot.slane %v1238_v26, %v10292_v16 }
 0x1f9   :  { %v10289_v23 = vpop.f32.mrb[76].mxu0 }
 0x1fa   :  { %12500 = vst [vmem:[#allocation52_spill] sm:$0xff] %v10289_v23  ;;  %v10294_v33 = vpop.f32.mrb[77].mxu0  ;;  %v10308_v23 = vrot.slane %v10281_v11, %v10284_v43  ;;  %v8889_v27 = vadd.f32 %v1243_v14, %v10298_v45  ;;  %v8891_v62 = vadd.f32 %v1247_v36, %v10303_v56 }
 0x1fb   :  { %12502 = vst [vmem:[#allocation54_spill] sm:$0xff] %v10294_v33  ;;  %v10315_v33 = vrot.slane %v10281_v11, %v10292_v16 }
 0x1fc   :  { %12504 = vst [vmem:[#allocation56_spill] sm:$0xff] %v10308_v23  ;;  %v8969_v61 = vadd.f32 %v1251_v42, %v10308_v23 }
 0x1fd   :  { %v10311_v35 = vpop.f32.mrb[78].mxu0  ;;  %12506 = vst [vmem:[#allocation58_spill] sm:$0xff] %v10315_v33  ;;  %v8971_v21 = vadd.f32 %v1255_v31, %v10315_v33 }
 0x1fe   :  { %12505 = vst [vmem:[#allocation57_spill] sm:$0xff] %v10311_v35  ;;  %v10318_v32 = vpop.f32.mrb[79].mxu0  ;;  %v8970_v43 = vadd.f32 %v8969_v61, %v10183_v9  ;;  %v8974_v36 = vadd.f32 %v8969_v61, %v10192_v59 }
 0x1ff   :  { %12507 = vst [vmem:[#allocation59_spill] sm:$0xff] %v10318_v32  ;;  %v8972_v16 = vadd.f32 %v8971_v21, %v10187_v50  ;;  %v8976_v23 = vadd.f32 %v8971_v21, %v10196_v57  ;;  %v10329_v57 = vsub.s32 4, %v10260_v48 }
 0x201   :  { %v1336_v22 = vpop.f32.mrb[0].mxu0  ;;  %v6704_v9 = vmul.f32 -1.442695, %v8976_v23 }
 0x202   :  { %v8890_v10 = vadd.f32 %v8889_v27, %v1336_v22  ;;  %v1338_v29 = vpop.f32.mrb[1].mxu0  ;;  %v6701_v22 = vmul.f32 -1.442695, %v8970_v43 }
 0x203   :  { %v8892_v35 = vadd.f32 %v8891_v62, %v1338_v29  ;;  %v6702_v29 = vmul.f32 -1.442695, %v8972_v16 }
 0x204   :  { %v6697_v63 = vmul.f32 -1.442695, %v8890_v10  ;;  %v6703_v10 = vmul.f32 -1.442695, %v8974_v36 }
 0x205   :  { %v6698_v39 = vmul.f32 -1.442695, %v8892_v35  ;;  %v1342_v20 = vpop.f32.mrb[2].mxu0 }
 0x206   :  { %9138 = vpow2.f32 %v6697_v63  ;;  %v8894_v32 = vadd.f32 %v8889_v27, %v1342_v20  ;;  %v1344_v14 = vpop.f32.mrb[3].mxu0 }
 0x207   :  { %9140 = vpow2.f32 %v6698_v39  ;;  %v8896_v42 = vadd.f32 %v8891_v62, %v1344_v14  ;;  %v10332_v62 = vsub.s32 5, %v10260_v48  ;;  %v10338_v14 = vrot.slane %v10281_v11, %v10329_v57 }
 0x208   :  { %v6699_v31 = vmul.f32 -1.442695, %v8894_v32 }
 0x209   :  { %v6700_v33 = vmul.f32 -1.442695, %v8896_v42  ;;  %v1263_v43 = vrot.slane %v1238_v26, %v10332_v62  ;;  %v10343_v42 = vrot.slane %v10281_v11, %v10332_v62 }
 0x20a   :  { %9142 = vpow2.f32 %v6699_v31 }
 0x20b   :  { %9144 = vpow2.f32 %v6700_v33  ;;  %v1259_v33 = vrot.slane %v1238_v26, %v10329_v57 }
 0x20c   :  { %9146 = vpow2.f32 %v6701_v22  ;;  %v1493_v22 = vadd.f32 %v10262_v51, %v1263_v43 }
 0x20d   :  { %9148 = vpow2.f32 %v6702_v29  ;;  %v1491_v48 = vadd.f32 %v10258_v0, %v1259_v33  ;;  %v794_v0 = vadd.f32 %v10185_v49, %v10343_v42 }
 0x20e   :  { %9150 = vpow2.f32 %v6703_v10 }
 0x20f   :  { %9152 = vpow2.f32 %v6704_v9 }
 0x210   :  { %v9139_v50 = vpop.eup %9138 }
 0x211   :  { %v9141_v63 = vpop.eup %9140  ;;  %v1517_v27 = vadd.f32 1.0, %v9139_v50  ;;  %v792_v50 = vadd.f32 %v10178_v37, %v10338_v14  ;;  %v798_v37 = vadd.f32 %v10190_v1, %v10338_v14 }
 0x212   :  { %v1518_v59 = vadd.f32 1.0, %v9141_v63 }
 0x213   :  { %9154 = vrcp.f32 %v1517_v27  ;;  %v1497_v27 = vadd.f32 %v10274_v52, %v1259_v33  ;;  %v800_v52 = vadd.f32 %v10194_v54, %v10343_v42 }
 0x214   :  { %v9143_v61 = vpop.eup %9142  ;;  %9156 = vrcp.f32 %v1518_v59  ;;  %v1499_v59 = vadd.f32 %v10276_v44, %v1263_v43 }
 0x215   :  { %v9145_v21 = vpop.eup %9144  ;;  %v1519_v32 = vadd.f32 1.0, %v9143_v61 }
 0x216   :  { %v1520_v35 = vadd.f32 1.0, %v9145_v21  ;;  %v9147_v16 = vpop.eup %9146 }
 0x217   :  { %9158 = vrcp.f32 %v1519_v32  ;;  %v9149_v23 = vpop.eup %9148  ;;  %v1545_v36 = vadd.f32 1.0, %v9147_v16 }
 0x218   :  { %9160 = vrcp.f32 %v1520_v35  ;;  %v9151_v20 = vpop.eup %9150  ;;  %v1546_v31 = vadd.f32 1.0, %v9149_v23 }
 0x219   :  { %v9153_v39 = vpop.eup %9152  ;;  %v1547_v29 = vadd.f32 1.0, %v9151_v20  ;;  %9162 = vrcp.f32 %v1545_v36 }
 0x21a   :  { %v1548_v10 = vadd.f32 1.0, %v9153_v39  ;;  %9164 = vrcp.f32 %v1546_v31 }
 0x21b   :  { %9166 = vrcp.f32 %v1547_v29 }
 0x21c   :  { %9168 = vrcp.f32 %v1548_v10  ;;  %v1620_v10 = vld [vmem:[#allocation10 + $0x50] sm:$0xff] }
 0x21d   :  { %v9155_v26 = vpop.eup %9154 }
 0x21e   :  { %v9157_v9 = vpop.eup %9156  ;;  %v1557_v63 = vmul.f32 %v9155_v26, %v1491_v48  ;;  %v1614_v26 = vld [vmem:[#allocation10 + $0x20] sm:$0xff] }
 0x21f   :  { %v1558_v11 = vmul.f32 %v9157_v9, %v1493_v22  ;;  %v9538_v22 = vld [vmem:[#allocation7] sm:$0xff]  ;;  %v9539_v9 = vld [vmem:[#allocation7 + $0x8] sm:$0xff] }
 0x220   :  { %v1561_v51 = vadd.f32 %v1557_v63, %v792_v50  ;;  %v1627_v63 = vld [vmem:[#allocation10 + $0x88] sm:$0xff] }
 0x221   :  { %v9159_v61 = vpop.eup %9158  ;;  %v1562_v21 = vadd.f32 %v1558_v11, %v794_v0 }
 0x222   :  { %v9161_v32 = vpop.eup %9160  ;;  %9170 = vtanh.f32 %v1561_v51  ;;  %v1559_v35 = vmul.f32 %v9159_v61, %v1497_v27  ;;  %v1633_v27 = vld [vmem:[#allocation10 + $0xb8] sm:$0xff] }
 0x223   :  { %9172 = vtanh.f32 %v1562_v21  ;;  %v1560_v49 = vmul.f32 %v9161_v32, %v1499_v59  ;;  %v9163_v44 = vpop.eup %9162  ;;  %v10360_v21 = vpack.c.bf16 %v1620_v10, %v1614_v26  ;;  %v1651_v26 = vld [vmem:[#allocation10 + $0x148] sm:$0xff]  ;;  %v1657_v10 = vld [vmem:[#allocation10 + $0x178] sm:$0xff] }
 0x224   :  { %v1563_v33 = vadd.f32 %v1559_v35, %v798_v37  ;;  %v9165_v43 = vpop.eup %9164  ;;  %v1569_v39 = vsub.f32 1.0, %v9163_v44  ;;  %v1577_v29 = vmul.f32 %v9538_v22, %v9163_v44  ;;  %v10363_v37 = vpack.c.bf16 %v1633_v27, %v1627_v63  ;;  %v1656_v63 = vld [vmem:[#allocation10 + $0x170] sm:$0xff]  ;;  %v1663_v27 = vld [vmem:[#allocation10 + $0x1a8] sm:$0xff] }
 0x225   :  { %v1564_v16 = vadd.f32 %v1560_v49, %v800_v52  ;;  %v9167_v23 = vpop.eup %9166  ;;  %v1570_v48 = vsub.f32 1.0, %v9165_v43  ;;  %v1578_v50 = vmul.f32 %v9539_v9, %v9165_v43  ;;  %v9540_v52 = vld [vmem:[#allocation7 + $0x10] sm:$0xff]  ;;  %v9541_v43 = vld [vmem:[#allocation7 + $0x18] sm:$0xff]  ;;  %v10391_v9 = vpack.c.bf16 %v1657_v10, %v1651_v26  ;;  %v1699_v10 = vld [vmem:[#allocation10 + $0x2c8] sm:$0xff] }
 0x226   :  { %9174 = vtanh.f32 %v1563_v33  ;;  %v9169_v20 = vpop.eup %9168  ;;  %v1571_v0 = vsub.f32 1.0, %v9167_v23  ;;  %v1579_v49 = vmul.f32 %v9540_v52, %v9167_v23  ;;  %v1626_v33 = vld [vmem:[#allocation10 + $0x80] sm:$0xff]  ;;  %v1675_v52 = vld [vmem:[#allocation10 + $0x208] sm:$0xff]  ;;  %v1692_v26 = vld [vmem:[#allocation10 + $0x290] sm:$0xff] }
 0x227   :  { %9176 = vtanh.f32 %v1564_v16  ;;  %v1572_v51 = vsub.f32 1.0, %v9169_v20  ;;  %v1632_v16 = vld [vmem:[#allocation10 + $0xb0] sm:$0xff]  ;;  %12508 = vst [vmem:[#allocation60_spill] sm:$0xff] %v10391_v9 }
 0x22c   :  { %v9171_v36 = vpop.eup %9170 }
 0x22d   :  { %v9173_v31 = vpop.eup %9172  ;;  %v1573_v1 = vmul.f32 %v9171_v36, %v1569_v39  ;;  %v1580_v39 = vmul.f32 %v9541_v43, %v9169_v20  ;;  %v1639_v36 = vld [vmem:[#allocation10 + $0xe8] sm:$0xff]  ;;  %v1638_v20 = vld [vmem:[#allocation10 + $0xe0] sm:$0xff]  ;;  %v1680_v43 = vld [vmem:[#allocation10 + $0x230] sm:$0xff] }
 0x22e   :  { %v1574_v54 = vmul.f32 %v9173_v31, %v1570_v48  ;;  %v1645_v48 = vld [vmem:[#allocation10 + $0x118] sm:$0xff] }
 0x22f   :  { %v10356_v11 = vadd.f32 %v1577_v29, %v1573_v1  ;;  %v10375_v1 = vpack.c.bf16 %v1632_v16, %v1626_v33  ;;  %v10379_v22 = vpack.c.bf16 %v1645_v48, %v1639_v36  ;;  %v1644_v29 = vld [vmem:[#allocation10 + $0x110] sm:$0xff]  ;;  %v1693_v36 = vld [vmem:[#allocation10 + $0x298] sm:$0xff] }
 0x230   :  { %v9175_v59 = vpop.eup %9174  ;;  %v10358_v61 = vadd.f32 %v1578_v50, %v1574_v54  ;;  %v10388_v54 = vpack.c.bf16 %v1644_v29, %v1638_v20  ;;  %v1650_v50 = vld [vmem:[#allocation10 + $0x140] sm:$0xff] }
 0x231   :  { %v9177_v32 = vpop.eup %9176  ;;  %1589 = vst [vmem:[#allocation12] sm:$0xff] %v10356_v11  ;;  %v1575_v35 = vmul.f32 %v9175_v59, %v1571_v0  ;;  %v1669_v0 = vld [vmem:[#allocation10 + $0x1d8] sm:$0xff]  ;;  %v10394_v59 = vpack.c.bf16 %v1656_v63, %v1650_v50  ;;  %v1686_v29 = vld [vmem:[#allocation10 + $0x260] sm:$0xff] }
 0x232   :  { %1590 = vst [vmem:[#allocation12 + $0x8] sm:$0xff] %v10358_v61  ;;  %1898 = vmatprep.mubr.f32.mxu0 %v10358_v61  ;;  %1975 = vmatprep.mubr.f32.mxu1 %v10358_v61  ;;  %v1576_v44 = vmul.f32 %v9177_v32, %v1572_v51  ;;  %v10397_v51 = vpack.c.bf16 %v1669_v0, %v1663_v27  ;;  %v1662_v32 = vld [vmem:[#allocation10 + $0x1a0] sm:$0xff]  ;;  %v1705_v50 = vld [vmem:[#allocation10 + $0x2f8] sm:$0xff] }
 0x233   :  { %1899 = vmatmul.mubr.f32.vlgmr.msra.gmra.mrb[4].mxu0 %v10356_v11  ;;  %1976 = vmatmul.mubr.f32.vlgmr.msra.gmra.mrb[4].mxu1 %v10356_v11  ;;  %v10370_v31 = vadd.f32 %v1579_v49, %v1575_v35  ;;  %12509 = vst [vmem:[#allocation61_spill] sm:$0xff] %v10394_v59  ;;  %v1668_v35 = vld [vmem:[#allocation10 + $0x1d0] sm:$0xff]  ;;  %v1681_v49 = vld [vmem:[#allocation10 + $0x238] sm:$0xff]  ;;  %v10412_v63 = vpack.c.bf16 %v1692_v26, %v1686_v29  ;;  %v1698_v0 = vld [vmem:[#allocation10 + $0x2c0] sm:$0xff] }
 0x234   :  { %7292 = vmatpush1.bf16.msra.mxu1 %v10360_v21  ;;  %v10373_v23 = vadd.f32 %v1580_v39, %v1576_v44  ;;  %12510 = vst [vmem:[#allocation62_spill] sm:$0xff] %v10397_v51  ;;  %v10400_v33 = vpack.c.bf16 %v1668_v35, %v1662_v32  ;;  %v10403_v16 = vpack.c.bf16 %v1681_v49, %v1675_v52  ;;  %v1674_v44 = vld [vmem:[#allocation10 + $0x200] sm:$0xff]  ;;  %v1687_v39 = vld [vmem:[#allocation10 + $0x268] sm:$0xff]  ;;  %v1704_v32 = vld [vmem:[#allocation10 + $0x2f0] sm:$0xff] }
 0x235   :  { %7294 = vmatprep.subr.bf16.mxu1 %v10363_v37  ;;  %1591 = vst [vmem:[#allocation12 + $0x10] sm:$0xff] %v10370_v31  ;;  %v10406_v48 = vpack.c.bf16 %v1680_v43, %v1674_v44  ;;  %v10409_v20 = vpack.c.bf16 %v1693_v36, %v1687_v39  ;;  %12515 = vst [vmem:[#allocation67_spill] sm:$0xff] %v10412_v63  ;;  %v10415_v27 = vpack.c.bf16 %v1705_v50, %v1699_v10  ;;  %v1711_v35 = vld [vmem:[#allocation10 + $0x328] sm:$0xff]  ;;  %v1717_v52 = vld [vmem:[#allocation10 + $0x358] sm:$0xff] }
 0x236   :  { %1592 = vst [vmem:[#allocation12 + $0x18] sm:$0xff] %v10373_v23  ;;  %1904 = vmatprep.mubr.f32.mxu0 %v10373_v23  ;;  %1981 = vmatprep.mubr.f32.mxu1 %v10373_v23  ;;  %12511 = vst [vmem:[#allocation63_spill] sm:$0xff] %v10400_v33  ;;  %v10418_v49 = vpack.c.bf16 %v1704_v32, %v1698_v0  ;;  %v10421_v44 = vpack.c.bf16 %v1717_v52, %v1711_v35  ;;  %v1710_v43 = vld [vmem:[#allocation10 + $0x320] sm:$0xff]  ;;  %v1716_v39 = vld [vmem:[#allocation10 + $0x350] sm:$0xff] }
 0x237   :  { %1905 = vmatmul.mubr.f32.gmra.mrb[6].mxu0 %v10370_v31  ;;  %1982 = vmatmul.mubr.f32.gmra.mrb[6].mxu1 %v10370_v31  ;;  %12512 = vst [vmem:[#allocation64_spill] sm:$0xff] %v10403_v16  ;;  %12513 = vst [vmem:[#allocation65_spill] sm:$0xff] %v10406_v48  ;;  %v1723_v36 = vld [vmem:[#allocation10 + $0x388] sm:$0xff]  ;;  %v1729_v29 = vld [vmem:[#allocation10 + $0x3b8] sm:$0xff]  ;;  %v10424_v26 = vpack.c.bf16 %v1716_v39, %v1710_v43 }
 0x238   :  { %7296 = vmatpush1.bf16.msra.mxu1 %v10375_v1  ;;  %2052 = vmatprep.mubr.f32.mxu1 %v10358_v61  ;;  %12514 = vst [vmem:[#allocation66_spill] sm:$0xff] %v10409_v20  ;;  %12516 = vst [vmem:[#allocation68_spill] sm:$0xff] %v10415_v27  ;;  %v10427_v10 = vpack.c.bf16 %v1729_v29, %v1723_v36  ;;  %v1722_v50 = vld [vmem:[#allocation10 + $0x380] sm:$0xff]  ;;  %v1735_v0 = vld [vmem:[#allocation10 + $0x3e8] sm:$0xff] }
 0x239   :  { %7298 = vmatprep.subr.bf16.mxu1 %v10379_v22  ;;  %12517 = vst [vmem:[#allocation69_spill] sm:$0xff] %v10418_v49  ;;  %12518 = vst [vmem:[#allocation70_spill] sm:$0xff] %v10421_v44  ;;  %v1741_v32 = vld [vmem:[#allocation10 + $0x418] sm:$0xff]  ;;  %v1747_v43 = vld [vmem:[#allocation10 + $0x448] sm:$0xff] }
 0x23a   :  { %12519 = vst [vmem:[#allocation71_spill] sm:$0xff] %v10424_v26  ;;  %12520 = vst [vmem:[#allocation72_spill] sm:$0xff] %v10427_v10  ;;  %v10433_v52 = vpack.c.bf16 %v1741_v32, %v1735_v0  ;;  %v1753_v39 = vld [vmem:[#allocation10 + $0x478] sm:$0xff] }
 0x23b   :  { %v10439_v29 = vpack.c.bf16 %v1753_v39, %v1747_v43 }
 0x23c   :  { %7300 = vmatpush1.bf16.msra.mxu1 %v10388_v54  ;;  %12522 = vst [vmem:[#allocation74_spill] sm:$0xff] %v10433_v52 }
 0x23d   :  { %7302 = vmatprep.subr.bf16.mxu1 %v10391_v9  ;;  %12524 = vst [vmem:[#allocation76_spill] sm:$0xff] %v10439_v29 }
 0x240   :  { %7304 = vmatpush1.bf16.msra.mxu1 %v10394_v59  ;;  %v2229_v59 = vld [vmem:[#allocation10 + $0x1b0] sm:$0xff] }
 0x241   :  { %7306 = vmatprep.subr.bf16.mxu1 %v10397_v51  ;;  %v2230_v51 = vld [vmem:[#allocation10 + $0x1b8] sm:$0xff] }
 0x244   :  { %7308 = vmatpush1.bf16.msra.mxu1 %v10400_v33 }
 0x245   :  { %7310 = vmatprep.subr.bf16.mxu1 %v10403_v16  ;;  %v2211_v16 = vld [vmem:[#allocation10 + $0x120] sm:$0xff] }
 0x248   :  { %7312 = vmatpush1.bf16.msra.mxu1 %v10406_v48 }
 0x249   :  { %7314 = vmatprep.subr.bf16.mxu1 %v10409_v20  ;;  %v2199_v20 = vld [vmem:[#allocation10 + $0xc0] sm:$0xff] }
 0x24c   :  { %7316 = vmatpush1.bf16.msra.mxu1 %v10412_v63  ;;  %v1728_v63 = vld [vmem:[#allocation10 + $0x3b0] sm:$0xff] }
 0x24d   :  { %7318 = vmatprep.subr.bf16.mxu1 %v10415_v27  ;;  %v10430_v35 = vpack.c.bf16 %v1728_v63, %v1722_v50  ;;  %v1734_v27 = vld [vmem:[#allocation10 + $0x3e0] sm:$0xff]  ;;  %v1759_v63 = vld [vmem:[#allocation10 + $0x4a8] sm:$0xff]  ;;  %v1765_v50 = vld [vmem:[#allocation10 + $0x4d8] sm:$0xff] }
 0x24e   :  { %v10445_v32 = vpack.c.bf16 %v1765_v50, %v1759_v63 }
 0x24f   :  { %12521 = vst [vmem:[#allocation73_spill] sm:$0xff] %v10430_v35 }
 0x250   :  { %7320 = vmatpush1.bf16.msra.mxu1 %v10418_v49  ;;  %v1740_v49 = vld [vmem:[#allocation10 + $0x410] sm:$0xff]  ;;  %12526 = vst [vmem:[#allocation78_spill] sm:$0xff] %v10445_v32 }
 0x251   :  { %7322 = vmatprep.subr.bf16.mxu1 %v10421_v44  ;;  %v10436_v36 = vpack.c.bf16 %v1740_v49, %v1734_v27  ;;  %v1746_v44 = vld [vmem:[#allocation10 + $0x440] sm:$0xff]  ;;  %v1771_v27 = vld [vmem:[#allocation10 + $0x508] sm:$0xff]  ;;  %v1777_v49 = vld [vmem:[#allocation10 + $0x538] sm:$0xff] }
 0x252   :  { %v10451_v39 = vpack.c.bf16 %v1777_v49, %v1771_v27 }
 0x253   :  { %12523 = vst [vmem:[#allocation75_spill] sm:$0xff] %v10436_v36 }
 0x254   :  { %7324 = vmatpush1.bf16.msra.mxu1 %v10424_v26  ;;  %v1752_v26 = vld [vmem:[#allocation10 + $0x470] sm:$0xff]  ;;  %12528 = vst [vmem:[#allocation80_spill] sm:$0xff] %v10451_v39 }
 0x255   :  { %7326 = vmatprep.subr.bf16.mxu1 %v10427_v10  ;;  %v10442_v0 = vpack.c.bf16 %v1752_v26, %v1746_v44  ;;  %v1758_v10 = vld [vmem:[#allocation10 + $0x4a0] sm:$0xff]  ;;  %v1783_v44 = vld [vmem:[#allocation10 + $0x568] sm:$0xff]  ;;  %v1789_v26 = vld [vmem:[#allocation10 + $0x598] sm:$0xff] }
 0x256   :  { %v10457_v50 = vpack.c.bf16 %v1789_v26, %v1783_v44  ;;  %v2175_v44 = vld [vmem:[#allocation10] sm:$0xff]  ;;  %v2181_v26 = vld [vmem:[#allocation10 + $0x30] sm:$0xff] }
 0x257   :  { %12525 = vst [vmem:[#allocation77_spill] sm:$0xff] %v10442_v0 }
 0x258   :  { %7328 = vmatpush1.bf16.msra.mxu1 %v10430_v35  ;;  %v1764_v35 = vld [vmem:[#allocation10 + $0x4d0] sm:$0xff]  ;;  %12530 = vst [vmem:[#allocation82_spill] sm:$0xff] %v10457_v50 }
 0x259   :  { %7330 = vmatprep.subr.bf16.mxu1 %v10433_v52  ;;  %v10448_v43 = vpack.c.bf16 %v1764_v35, %v1758_v10  ;;  %v1770_v52 = vld [vmem:[#allocation10 + $0x500] sm:$0xff]  ;;  %v1795_v10 = vld [vmem:[#allocation10 + $0x5c8] sm:$0xff]  ;;  %v1801_v35 = vld [vmem:[#allocation10 + $0x5f8] sm:$0xff] }
 0x25a   :  { %v10463_v49 = vpack.c.bf16 %v1801_v35, %v1795_v10  ;;  %v2178_v10 = vld [vmem:[#allocation10 + $0x18] sm:$0xff]  ;;  %v10475_v35 = vpack.c.bf16 %v2181_v26, %v2175_v44  ;;  %v2193_v44 = vld [vmem:[#allocation10 + $0x90] sm:$0xff] }
 0x25b   :  { %12527 = vst [vmem:[#allocation79_spill] sm:$0xff] %v10448_v43  ;;  %v2190_v26 = vld [vmem:[#allocation10 + $0x78] sm:$0xff] }
 0x25c   :  { %7332 = vmatpush1.bf16.msra.mxu1 %v10436_v36  ;;  %v1776_v36 = vld [vmem:[#allocation10 + $0x530] sm:$0xff]  ;;  %12532 = vst [vmem:[#allocation84_spill] sm:$0xff] %v10463_v49  ;;  %12535 = vst [vmem:[#allocation87_spill] sm:$0xff] %v10475_v35 }
 0x25d   :  { %7334 = vmatprep.subr.bf16.mxu1 %v10439_v29  ;;  %v10454_v63 = vpack.c.bf16 %v1776_v36, %v1770_v52  ;;  %v1782_v29 = vld [vmem:[#allocation10 + $0x560] sm:$0xff]  ;;  %v2176_v36 = vld [vmem:[#allocation10 + $0x8] sm:$0xff] }
 0x25f   :  { %12529 = vst [vmem:[#allocation81_spill] sm:$0xff] %v10454_v63 }
 0x260   :  { %7336 = vmatpush1.bf16.msra.mxu1 %v10442_v0  ;;  %v1788_v0 = vld [vmem:[#allocation10 + $0x590] sm:$0xff] }
 0x261   :  { %7338 = vmatprep.subr.bf16.mxu1 %v10445_v32  ;;  %v10460_v27 = vpack.c.bf16 %v1788_v0, %v1782_v29  ;;  %v1794_v32 = vld [vmem:[#allocation10 + $0x5c0] sm:$0xff]  ;;  %v2182_v29 = vld [vmem:[#allocation10 + $0x38] sm:$0xff] }
 0x262   :  { %v10473_v0 = vpack.c.bf16 %v2182_v29, %v2176_v36  ;;  %v2187_v29 = vld [vmem:[#allocation10 + $0x60] sm:$0xff] }
 0x263   :  { %12531 = vst [vmem:[#allocation83_spill] sm:$0xff] %v10460_v27 }
 0x264   :  { %7340 = vmatpush1.bf16.msra.mxu1 %v10448_v43  ;;  %v1800_v43 = vld [vmem:[#allocation10 + $0x5f0] sm:$0xff]  ;;  %12534 = vst [vmem:[#allocation86_spill] sm:$0xff] %v10473_v0  ;;  %7354 = vmatprep.subr.bf16.mxu0 %v10473_v0  ;;  %v2196_v0 = vld [vmem:[#allocation10 + $0xa8] sm:$0xff] }
 0x265   :  { %7342 = vmatprep.subr.bf16.mxu1 %v10451_v39  ;;  %v10466_v52 = vpack.c.bf16 %v1800_v43, %v1794_v32  ;;  %v2184_v32 = vld [vmem:[#allocation10 + $0x48] sm:$0xff]  ;;  %v2177_v43 = vld [vmem:[#allocation10 + $0x10] sm:$0xff]  ;;  %7356 = vmatpush1.bf16.msra.mxu0 %v10475_v35  ;;  %v10487_v39 = vpack.c.bf16 %v2193_v44, %v2187_v29  ;;  %v2202_v44 = vld [vmem:[#allocation10 + $0xd8] sm:$0xff] }
 0x266   :  { %v2205_v29 = vld [vmem:[#allocation10 + $0xf0] sm:$0xff] }
 0x267   :  { %12533 = vst [vmem:[#allocation85_spill] sm:$0xff] %v10466_v52  ;;  %12537 = vst [vmem:[#allocation89_spill] sm:$0xff] %v10487_v39  ;;  %v10499_v48 = vpack.c.bf16 %v2205_v29, %v2199_v20  ;;  %v2217_v20 = vld [vmem:[#allocation10 + $0x150] sm:$0xff]  ;;  %v2214_v29 = vld [vmem:[#allocation10 + $0x138] sm:$0xff] }
 0x268   :  { %7344 = vmatpush1.bf16.msra.mxu1 %v10454_v63  ;;  %v2194_v63 = vld [vmem:[#allocation10 + $0x98] sm:$0xff]  ;;  %v10511_v33 = vpack.c.bf16 %v2217_v20, %v2211_v16  ;;  %v2232_v16 = vld [vmem:[#allocation10 + $0x1c8] sm:$0xff] }
 0x269   :  { %7346 = vmatprep.subr.bf16.mxu1 %v10457_v50  ;;  %v2188_v50 = vld [vmem:[#allocation10 + $0x68] sm:$0xff]  ;;  %12539 = vst [vmem:[#allocation91_spill] sm:$0xff] %v10499_v48 }
 0x26a   :  { %v10484_v36 = vpack.c.bf16 %v2194_v63, %v2188_v50  ;;  %v2200_v63 = vld [vmem:[#allocation10 + $0xc8] sm:$0xff]  ;;  %v2206_v50 = vld [vmem:[#allocation10 + $0xf8] sm:$0xff]  ;;  %12541 = vst [vmem:[#allocation93_spill] sm:$0xff] %v10511_v33 }
 0x26b   :  { %v10496_v35 = vpack.c.bf16 %v2206_v50, %v2200_v63  ;;  %v2212_v63 = vld [vmem:[#allocation10 + $0x128] sm:$0xff]  ;;  %v2218_v50 = vld [vmem:[#allocation10 + $0x158] sm:$0xff] }
 0x26c   :  { %7348 = vmatpush1.bf16.msra.mxu1 %v10460_v27  ;;  %12536 = vst [vmem:[#allocation88_spill] sm:$0xff] %v10484_v36  ;;  %7358 = vmatprep.subr.bf16.mxu0 %v10484_v36  ;;  %v2208_v36 = vld [vmem:[#allocation10 + $0x108] sm:$0xff] }
 0x26d   :  { %7350 = vmatprep.subr.bf16.mxu1 %v10463_v49  ;;  %v2183_v49 = vld [vmem:[#allocation10 + $0x40] sm:$0xff]  ;;  %7360 = vmatpush1.bf16.msra.mxu0 %v10487_v39  ;;  %12538 = vst [vmem:[#allocation90_spill] sm:$0xff] %v10496_v35  ;;  %v10508_v39 = vpack.c.bf16 %v2218_v50, %v2212_v63 }
 0x26e   :  { %v10480_v27 = vpack.c.bf16 %v2183_v49, %v2177_v43  ;;  %v10490_v49 = vpack.c.bf16 %v2196_v0, %v2190_v26  ;;  %v2201_v0 = vld [vmem:[#allocation10 + $0xd0] sm:$0xff]  ;;  %v2207_v26 = vld [vmem:[#allocation10 + $0x100] sm:$0xff]  ;;  %7362 = vmatprep.subr.bf16.mxu0 %v10496_v35  ;;  %v2220_v35 = vld [vmem:[#allocation10 + $0x168] sm:$0xff] }
 0x26f   :  { %v2223_v63 = vld [vmem:[#allocation10 + $0x180] sm:$0xff] }
 0x270   :  { %7352 = vmatpush1.bf16.msra.mxu1 %v10466_v52  ;;  %v10478_v52 = vpack.c.bf16 %v2184_v32, %v2178_v10  ;;  %v2189_v10 = vld [vmem:[#allocation10 + $0x70] sm:$0xff]  ;;  %v2195_v32 = vld [vmem:[#allocation10 + $0xa0] sm:$0xff]  ;;  %v10522_v20 = vpack.c.bf16 %v2229_v59, %v2223_v63 }
 0x271   :  { %v10492_v43 = vpack.c.bf16 %v2195_v32, %v2189_v10  ;;  %v10502_v10 = vpack.c.bf16 %v2208_v36, %v2202_v44  ;;  %v10504_v32 = vpack.c.bf16 %v2207_v26, %v2201_v0  ;;  %7364 = vmatpush1.bf16.msra.mxu0 %v10499_v48  ;;  %v2213_v36 = vld [vmem:[#allocation10 + $0x130] sm:$0xff]  ;;  %v2219_v44 = vld [vmem:[#allocation10 + $0x160] sm:$0xff]  ;;  %v10514_v0 = vpack.c.bf16 %v2220_v35, %v2214_v29  ;;  %v2224_v48 = vld [vmem:[#allocation10 + $0x188] sm:$0xff] }
 0x272   :  { %7418 = vmatprep.subr.bf16.mxu1 %v10478_v52  ;;  %7366 = vmatprep.subr.bf16.mxu0 %v10508_v39  ;;  %v10516_v26 = vpack.c.bf16 %v2219_v44, %v2213_v36  ;;  %v10519_v50 = vpack.c.bf16 %v2230_v51, %v2224_v48  ;;  %v2236_v35 = vld [vmem:[#allocation10 + $0x1e8] sm:$0xff]  ;;  %v2242_v29 = vld [vmem:[#allocation10 + $0x218] sm:$0xff]  ;;  %v2235_v36 = vld [vmem:[#allocation10 + $0x1e0] sm:$0xff] }
 0x273   :  { %2053 = vmatmul.mubr.f32.vlgmr.msra.gmra.mrb[44].mxu1 %v10356_v11  ;;  %12540 = vst [vmem:[#allocation92_spill] sm:$0xff] %v10504_v32  ;;  %v10528_v44 = vpack.c.bf16 %v2242_v29, %v2236_v35  ;;  %v2241_v51 = vld [vmem:[#allocation10 + $0x210] sm:$0xff]  ;;  %v2248_v48 = vld [vmem:[#allocation10 + $0x248] sm:$0xff]  ;;  %v2247_v63 = vld [vmem:[#allocation10 + $0x240] sm:$0xff] }
 0x274   :  { %2058 = vmatprep.mubr.f32.mxu1 %v10373_v23  ;;  %7420 = vmatpush1.bf16.msra.mxu1 %v10480_v27  ;;  %12542 = vst [vmem:[#allocation94_spill] sm:$0xff] %v10519_v50  ;;  %v10532_v59 = vpack.c.bf16 %v2241_v51, %v2235_v36  ;;  %v2266_v35 = vld [vmem:[#allocation10 + $0x2d8] sm:$0xff]  ;;  %v2259_v51 = vld [vmem:[#allocation10 + $0x2a0] sm:$0xff] }
 0x275   :  { %7422 = vmatprep.subr.bf16.mxu1 %v10490_v49  ;;  %7368 = vmatpush1.bf16.msra.mxu0 %v10511_v33  ;;  %12543 = vst [vmem:[#allocation95_spill] sm:$0xff] %v10528_v44  ;;  %v2254_v33 = vld [vmem:[#allocation10 + $0x278] sm:$0xff] }
 0x276   :  { %7370 = vmatprep.subr.bf16.mxu0 %v10519_v50  ;;  %v2260_v50 = vld [vmem:[#allocation10 + $0x2a8] sm:$0xff] }
 0x277   :  { %2059 = vmatmul.mubr.f32.gmra.mrb[46].mxu1 %v10370_v31  ;;  %v10543_v36 = vpack.c.bf16 %v2266_v35, %v2260_v50  ;;  %v2284_v50 = vld [vmem:[#allocation10 + $0x368] sm:$0xff]  ;;  %v2290_v35 = vld [vmem:[#allocation10 + $0x398] sm:$0xff] }
 0x278   :  { %7424 = vmatpush1.bf16.msra.mxu1 %v10492_v43 }
 0x279   :  { %7426 = vmatprep.subr.bf16.mxu1 %v10502_v10  ;;  %7372 = vmatpush1.bf16.msra.mxu0 %v10522_v20 }
 0x27a   :  { %7374 = vmatprep.subr.bf16.mxu0 %v10528_v44  ;;  %v2265_v44 = vld [vmem:[#allocation10 + $0x2d0] sm:$0xff] }
 0x27c   :  { %7428 = vmatpush1.bf16.msra.mxu1 %v10504_v32  ;;  %v2226_v32 = vld [vmem:[#allocation10 + $0x198] sm:$0xff] }
 0x27d   :  { %7430 = vmatprep.subr.bf16.mxu1 %v10514_v0  ;;  %v10524_v9 = vpack.c.bf16 %v2232_v16, %v2226_v32  ;;  %v10535_v32 = vpack.c.bf16 %v2254_v33, %v2248_v48  ;;  %v2253_v16 = vld [vmem:[#allocation10 + $0x270] sm:$0xff]  ;;  %7376 = vmatpush1.bf16.msra.mxu0 %v10532_v59  ;;  %v2272_v33 = vld [vmem:[#allocation10 + $0x308] sm:$0xff]  ;;  %v2278_v48 = vld [vmem:[#allocation10 + $0x338] sm:$0xff] }
 0x27e   :  { %v10540_v29 = vpack.c.bf16 %v2253_v16, %v2247_v63  ;;  %v2271_v63 = vld [vmem:[#allocation10 + $0x300] sm:$0xff]  ;;  %v2277_v16 = vld [vmem:[#allocation10 + $0x330] sm:$0xff] }
 0x27f   :  { %7378 = vmatprep.subr.bf16.mxu0 %v10535_v32 }
 0x280   :  { %7432 = vmatpush1.bf16.msra.mxu1 %v10516_v26 }
 0x281   :  { %7434 = vmatprep.subr.bf16.mxu1 %v10524_v9  ;;  %7380 = vmatpush1.bf16.msra.mxu0 %v10540_v29 }
 0x282   :  { %7382 = vmatprep.subr.bf16.mxu0 %v10543_v36 }
 0x284   :  { %7436 = vmatpush1.bf16.msra.mxu1 %v10093_v6  ;;  %v10548_v6 = vpack.c.bf16 %v2265_v44, %v2259_v51  ;;  %v2283_v44 = vld [vmem:[#allocation10 + $0x360] sm:$0xff]  ;;  %v2289_v51 = vld [vmem:[#allocation10 + $0x390] sm:$0xff] }
 0x285   :  { %7438 = vmatprep.subr.bf16.mxu1 %v10096_v60  ;;  %v10551_v60 = vpack.c.bf16 %v2278_v48, %v2272_v33  ;;  %v2296_v33 = vld [vmem:[#allocation10 + $0x3c8] sm:$0xff]  ;;  %v2302_v48 = vld [vmem:[#allocation10 + $0x3f8] sm:$0xff] }
 0x286   :  { %7384 = vmatpush1.bf16.msra.mxu0 %v10548_v6 }
 0x287   :  { %7386 = vmatprep.subr.bf16.mxu0 %v10551_v60 }
 0x288   :  { %7440 = vmatpush1.bf16.msra.mxu1 %v10098_v28  ;;  %v10556_v28 = vpack.c.bf16 %v2277_v16, %v2271_v63 }
 0x289   :  { %7442 = vmatprep.subr.bf16.mxu1 %v10102_v8  ;;  %v10559_v8 = vpack.c.bf16 %v2290_v35, %v2284_v50  ;;  %v2350_v50 = vld [vmem:[#allocation10 + $0x578] sm:$0xff]  ;;  %v2343_v35 = vld [vmem:[#allocation10 + $0x540] sm:$0xff] }
 0x28a   :  { %7388 = vmatpush1.bf16.msra.mxu0 %v10556_v28 }
 0x28b   :  { %7390 = vmatprep.subr.bf16.mxu0 %v10559_v8 }
 0x28c   :  { %7444 = vmatpush1.bf16.msra.mxu1 %v10104_v24  ;;  %v10564_v24 = vpack.c.bf16 %v2289_v51, %v2283_v44  ;;  %v2356_v44 = vld [vmem:[#allocation10 + $0x5a8] sm:$0xff]  ;;  %v2362_v51 = vld [vmem:[#allocation10 + $0x5d8] sm:$0xff] }
 0x28d   :  { %7446 = vmatprep.subr.bf16.mxu1 %v10108_v12  ;;  %v10567_v12 = vpack.c.bf16 %v2302_v48, %v2296_v33  ;;  %v10600_v48 = vpack.c.bf16 %v2362_v51, %v2356_v44 }
 0x28e   :  { %7392 = vmatpush1.bf16.msra.mxu0 %v10564_v24 }
 0x28f   :  { %7394 = vmatprep.subr.bf16.mxu0 %v10567_v12  ;;  %12548 = vst [vmem:[#allocation100_spill] sm:$0xff] %v10600_v48 }
 0x290   :  { %7448 = vmatpush1.bf16.msra.mxu1 %v10110_v15  ;;  %v2308_v15 = vld [vmem:[#allocation10 + $0x428] sm:$0xff] }
 0x291   :  { %7450 = vmatprep.subr.bf16.mxu1 %v10114_v19  ;;  %v2314_v19 = vld [vmem:[#allocation10 + $0x458] sm:$0xff] }
 0x292   :  { %7396 = vmatpush1.bf16.msra.mxu0 %v10131_v17  ;;  %v10576_v63 = vpack.c.bf16 %v2314_v19, %v2308_v15  ;;  %v2331_v17 = vld [vmem:[#allocation10 + $0x4e0] sm:$0xff]  ;;  %v2361_v15 = vld [vmem:[#allocation10 + $0x5d0] sm:$0xff] }
 0x294   :  { %7452 = vmatpush1.bf16.msra.mxu1 %v10116_v2  ;;  %7398 = vmatprep.subr.bf16.mxu0 %v10576_v63  ;;  %v2320_v2 = vld [vmem:[#allocation10 + $0x488] sm:$0xff] }
 0x295   :  { %7454 = vmatprep.subr.bf16.mxu1 %v10120_v34  ;;  %v2326_v34 = vld [vmem:[#allocation10 + $0x4b8] sm:$0xff] }
 0x296   :  { %7400 = vmatpush1.bf16.msra.mxu0 %v10141_v3  ;;  %v10582_v16 = vpack.c.bf16 %v2326_v34, %v2320_v2 }
 0x298   :  { %7456 = vmatpush1.bf16.msra.mxu1 %v10122_v46  ;;  %7402 = vmatprep.subr.bf16.mxu0 %v10582_v16  ;;  %v2332_v46 = vld [vmem:[#allocation10 + $0x4e8] sm:$0xff] }
 0x299   :  { %7458 = vmatprep.subr.bf16.mxu1 %v10126_v53  ;;  %v2338_v53 = vld [vmem:[#allocation10 + $0x518] sm:$0xff] }
 0x29a   :  { %7404 = vmatpush1.bf16.msra.mxu0 %v10151_v40  ;;  %v2349_v40 = vld [vmem:[#allocation10 + $0x570] sm:$0xff] }
 0x29b   :  { %v10598_v33 = vpack.c.bf16 %v2349_v40, %v2343_v35  ;;  %v12552_v40 = vld [vmem:[#allocation51_spill] sm:$0xff] }
 0x29c   :  { %7460 = vmatpush1.bf16.msra.mxu1 %v10128_v58  ;;  %v10588_v58 = vpack.c.bf16 %v2338_v53, %v2332_v46 }
 0x29d   :  { %7462 = vmatprep.subr.bf16.mxu1 %v10135_v38  ;;  %v2337_v38 = vld [vmem:[#allocation10 + $0x510] sm:$0xff]  ;;  %12547 = vst [vmem:[#allocation99_spill] sm:$0xff] %v10598_v33 }
 0x29e   :  { %12544 = vst [vmem:[#allocation96_spill] sm:$0xff] %v10588_v58  ;;  %v10591_v3 = vpack.c.bf16 %v2337_v38, %v2331_v17  ;;  %7406 = vmatprep.subr.bf16.mxu0 %v10588_v58 }
 0x2a0   :  { %7464 = vmatpush1.bf16.msra.mxu1 %v10138_v18  ;;  %12545 = vst [vmem:[#allocation97_spill] sm:$0xff] %v10591_v3  ;;  %v2344_v18 = vld [vmem:[#allocation10 + $0x548] sm:$0xff]  ;;  %7408 = vmatpush1.bf16.msra.mxu0 %v10591_v3 }
 0x2a1   :  { %7466 = vmatprep.subr.bf16.mxu1 %v10145_v7  ;;  %v10596_v7 = vpack.c.bf16 %v2350_v50, %v2344_v18  ;;  %v12551_v18 = vld [vmem:[#allocation50_spill] sm:$0xff] }
 0x2a3   :  { %12546 = vst [vmem:[#allocation98_spill] sm:$0xff] %v10596_v7  ;;  %7410 = vmatprep.subr.bf16.mxu0 %v10596_v7  ;;  %v12554_v7 = vld [vmem:[#allocation56_spill] sm:$0xff] }
 0x2a4   :  { %7468 = vmatpush1.bf16.msra.mxu1 %v10148_v55  ;;  %v2355_v55 = vld [vmem:[#allocation10 + $0x5a0] sm:$0xff]  ;;  %7412 = vmatpush1.bf16.msra.mxu0 %v10598_v33 }
 0x2a5   :  { %7470 = vmatprep.subr.bf16.mxu1 %v10155_v5  ;;  %v10606_v5 = vpack.c.bf16 %v2361_v15, %v2355_v55  ;;  %7414 = vmatprep.subr.bf16.mxu0 %v10600_v48  ;;  %v12553_v55 = vld [vmem:[#allocation53_spill] sm:$0xff] }
 0x2a7   :  { %12549 = vst [vmem:[#allocation101_spill] sm:$0xff] %v10606_v5 }
 0x2a8   :  { %7472 = vmatpush1.bf16.msra.mxu1 %v10158_v13  ;;  %7416 = vmatpush1.bf16.msra.mxu0 %v10606_v5 }
 0x2a9   :  { %7474 = vmatprep.subr.bf16.mxu1 %v10162_v30  ;;  %7482 = vmatprep.subr.bf16.mxu0 %v10181_v41 }
 0x2ac   :  { %7476 = vmatpush1.bf16.msra.mxu1 %v10165_v47  ;;  %v1802_v47 = vld [vmem:[%s12272_s5] sm:$0x3f] }
 0x2ad   :  { %7478 = vmatprep.subr.bf16.mxu1 %v10167_v25  ;;  %v12550_v25 = vld [vmem:[#allocation49_spill] sm:$0xff]  ;;  %v1811_v41 = vrot.slane %v1802_v47, %v12551_v18  ;;  %v1815_v44 = vrot.slane %v1802_v47, %v12552_v40  ;;  %v1819_v15 = vrot.slane %v1802_v47, %v12553_v55 }
 0x2ae   :  { %v1807_v38 = vrot.slane %v1802_v47, %v12550_v25  ;;  %v12555_v25 = vld [vmem:[#allocation58_spill] sm:$0xff] }
 0x2af   :  { %v8977_v3 = vadd.f32 %v1815_v44, %v12554_v7  ;;  %v8979_v58 = vadd.f32 %v1819_v15, %v12555_v25 }
 0x2b0   :  { %7480 = vmatpush1.bf16.msra.mxu1 %v10172_v4  ;;  %v8897_v4 = vadd.f32 %v1807_v38, %v10298_v45 }
 0x2b1   :  { %7610 = vmatprep.subr.bf16.mxu1 %v10478_v52  ;;  %v8899_v52 = vadd.f32 %v1811_v41, %v10303_v56 }
 0x306   :  { %v1900_v13 = vpop.f32.mrb[4].mxu0  ;;  %v1977_v30 = vpop.f32.mrb[4].mxu1 }
 0x307   :  { %v1902_v19 = vpop.f32.mrb[5].mxu0  ;;  %v1979_v2 = vpop.f32.mrb[5].mxu1  ;;  %v8898_v50 = vadd.f32 %v8897_v4, %v1900_v13  ;;  %v8978_v45 = vadd.f32 %v8977_v3, %v1977_v30 }
 0x308   :  { %v8900_v35 = vadd.f32 %v8899_v52, %v1902_v19  ;;  %v8980_v41 = vadd.f32 %v8979_v58, %v1979_v2 }
 0x309   :  { %v6705_v51 = vmul.f32 -1.442695, %v8898_v50  ;;  %v6709_v50 = vmul.f32 -1.442695, %v8978_v45 }
 0x30a   :  { %v1906_v34 = vpop.f32.mrb[6].mxu0  ;;  %v1983_v46 = vpop.f32.mrb[6].mxu1  ;;  %v6706_v48 = vmul.f32 -1.442695, %v8900_v35  ;;  %v6710_v40 = vmul.f32 -1.442695, %v8980_v41 }
 0x30b   :  { %v1908_v53 = vpop.f32.mrb[7].mxu0  ;;  %v1985_v17 = vpop.f32.mrb[7].mxu1  ;;  %v8902_v5 = vadd.f32 %v8897_v4, %v1906_v34  ;;  %9178 = vpow2.f32 %v6705_v51  ;;  %v8982_v13 = vadd.f32 %v8977_v3, %v1983_v46  ;;  %v1827_v46 = vrot.slane %v1802_v47, %v10332_v62 }
 0x30c   :  { %v8904_v33 = vadd.f32 %v8899_v52, %v1908_v53  ;;  %9180 = vpow2.f32 %v6706_v48  ;;  %v8984_v19 = vadd.f32 %v8979_v58, %v1985_v17  ;;  %v1823_v58 = vrot.slane %v1802_v47, %v10329_v57 }
 0x30d   :  { %v6707_v18 = vmul.f32 -1.442695, %v8902_v5  ;;  %v6711_v55 = vmul.f32 -1.442695, %v8982_v13 }
 0x30e   :  { %v6708_v38 = vmul.f32 -1.442695, %v8904_v33  ;;  %v6712_v4 = vmul.f32 -1.442695, %v8984_v19 }
 0x30f   :  { %9182 = vpow2.f32 %v6707_v18 }
 0x310   :  { %9184 = vpow2.f32 %v6708_v38 }
 0x311   :  { %9186 = vpow2.f32 %v6709_v50  ;;  %v12556_v50 = vld [vmem:[#allocation17_spill] sm:$0xff] }
 0x312   :  { %9188 = vpow2.f32 %v6710_v40 }
 0x313   :  { %9190 = vpow2.f32 %v6711_v55 }
 0x314   :  { %9192 = vpow2.f32 %v6712_v4 }
 0x315   :  { %v9179_v34 = vpop.eup %9178 }
 0x316   :  { %v9181_v53 = vpop.eup %9180  ;;  %v2081_v52 = vadd.f32 1.0, %v9179_v34  ;;  %v804_v34 = vadd.f32 %v12556_v50, %v10338_v14 }
 0x317   :  { %v2082_v5 = vadd.f32 1.0, %v9181_v53  ;;  %v12557_v53 = vld [vmem:[#allocation18_spill] sm:$0xff] }
 0x318   :  { %9194 = vrcp.f32 %v2081_v52  ;;  %v806_v52 = vadd.f32 %v12557_v53, %v10343_v42 }
 0x319   :  { %v9183_v35 = vpop.eup %9182  ;;  %9196 = vrcp.f32 %v2082_v5 }
 0x31a   :  { %v9185_v33 = vpop.eup %9184  ;;  %v2083_v48 = vadd.f32 1.0, %v9183_v35 }
 0x31b   :  { %v2084_v3 = vadd.f32 1.0, %v9185_v33  ;;  %v9187_v30 = vpop.eup %9186 }
 0x31c   :  { %9198 = vrcp.f32 %v2083_v48  ;;  %v9189_v45 = vpop.eup %9188  ;;  %v2109_v18 = vadd.f32 1.0, %v9187_v30 }
 0x31d   :  { %9200 = vrcp.f32 %v2084_v3  ;;  %v9191_v2 = vpop.eup %9190  ;;  %v2110_v40 = vadd.f32 1.0, %v9189_v45 }
 0x31e   :  { %v9193_v17 = vpop.eup %9192  ;;  %v2111_v51 = vadd.f32 1.0, %v9191_v2  ;;  %9202 = vrcp.f32 %v2109_v18 }
 0x31f   :  { %v2112_v41 = vadd.f32 1.0, %v9193_v17  ;;  %9204 = vrcp.f32 %v2110_v40  ;;  %v12558_v17 = vld [vmem:[#allocation19_spill] sm:$0xff] }
 0x320   :  { %9206 = vrcp.f32 %v2111_v51 }
 0x321   :  { %9208 = vrcp.f32 %v2112_v41 }
 0x322   :  { %v9195_v38 = vpop.eup %9194 }
 0x323   :  { %v9197_v19 = vpop.eup %9196 }
 0x326   :  { %v9199_v3 = vpop.eup %9198 }
 0x327   :  { %v9201_v2 = vpop.eup %9200 }
 0x346   :  { %v2054_v44 = vpop.f32.mrb[44].mxu1 }
 0x347   :  { %v2055_v55 = vadd.f32 %v2054_v44, %v1823_v58  ;;  %v2056_v15 = vpop.f32.mrb[45].mxu1  ;;  %v810_v44 = vadd.f32 %v12558_v17, %v10338_v14 }
 0x348   :  { %v2057_v13 = vadd.f32 %v2056_v15, %v1827_v46 }
 0x349   :  { %v2121_v4 = vmul.f32 %v9195_v38, %v2055_v55  ;;  %v12559_v55 = vld [vmem:[#allocation20_spill] sm:$0xff] }
 0x34a   :  { %v2122_v47 = vmul.f32 %v9197_v19, %v2057_v13  ;;  %v2060_v35 = vpop.f32.mrb[46].mxu1  ;;  %v812_v15 = vadd.f32 %v12559_v55, %v10343_v42  ;;  %v12572_v55 = vld [vmem:[#allocation71_spill] sm:$0xff] }
 0x34b   :  { %v2125_v5 = vadd.f32 %v2121_v4, %v804_v34  ;;  %v2061_v33 = vadd.f32 %v2060_v35, %v1823_v58  ;;  %v2062_v48 = vpop.f32.mrb[47].mxu1  ;;  %v9203_v58 = vpop.eup %9202 }
 0x34c   :  { %v2126_v30 = vadd.f32 %v2122_v47, %v806_v52  ;;  %v2063_v45 = vadd.f32 %v2062_v48, %v1827_v46  ;;  %v9205_v13 = vpop.eup %9204  ;;  %v2133_v46 = vsub.f32 1.0, %v9203_v58  ;;  %v2141_v52 = vmul.f32 %v9203_v58, %v10356_v11  ;;  %v12579_v58 = vld [vmem:[#allocation78_spill] sm:$0xff] }
 0x34d   :  { %9210 = vtanh.f32 %v2125_v5  ;;  %v2123_v18 = vmul.f32 %v9199_v3, %v2061_v33  ;;  %v9207_v41 = vpop.eup %9206  ;;  %v2134_v34 = vsub.f32 1.0, %v9205_v13  ;;  %v2142_v35 = vmul.f32 %v9205_v13, %v10358_v61  ;;  %v12580_v13 = vld [vmem:[#allocation79_spill] sm:$0xff] }
 0x34e   :  { %9212 = vtanh.f32 %v2126_v30  ;;  %v2124_v40 = vmul.f32 %v9201_v2, %v2063_v45  ;;  %v9209_v19 = vpop.eup %9208  ;;  %v2135_v5 = vsub.f32 1.0, %v9207_v41  ;;  %v2143_v17 = vmul.f32 %v9207_v41, %v10370_v31  ;;  %v12562_v31 = vld [vmem:[#allocation61_spill] sm:$0xff]  ;;  %v12581_v41 = vld [vmem:[#allocation80_spill] sm:$0xff] }
 0x34f   :  { %v2127_v38 = vadd.f32 %v2123_v18, %v810_v44  ;;  %v2136_v3 = vsub.f32 1.0, %v9209_v19  ;;  %v2144_v61 = vmul.f32 %v9209_v19, %v10373_v23  ;;  %v12563_v23 = vld [vmem:[#allocation62_spill] sm:$0xff]  ;;  %v12582_v19 = vld [vmem:[#allocation81_spill] sm:$0xff] }
 0x350   :  { %v2128_v51 = vadd.f32 %v2124_v40, %v812_v15  ;;  %v12575_v15 = vld [vmem:[#allocation74_spill] sm:$0xff]  ;;  %v12576_v40 = vld [vmem:[#allocation75_spill] sm:$0xff] }
 0x351   :  { %9214 = vtanh.f32 %v2127_v38  ;;  %v12577_v38 = vld [vmem:[#allocation76_spill] sm:$0xff] }
 0x352   :  { %9216 = vtanh.f32 %v2128_v51  ;;  %v12578_v51 = vld [vmem:[#allocation77_spill] sm:$0xff] }
 0x357   :  { %v9211_v50 = vpop.eup %9210 }
 0x358   :  { %v9213_v4 = vpop.eup %9212  ;;  %v2137_v53 = vmul.f32 %v9211_v50, %v2133_v46  ;;  %v12583_v46 = vld [vmem:[#allocation82_spill] sm:$0xff]  ;;  %v12584_v50 = vld [vmem:[#allocation83_spill] sm:$0xff] }
 0x359   :  { %v2138_v47 = vmul.f32 %v9213_v4, %v2134_v34  ;;  %v12585_v34 = vld [vmem:[#allocation84_spill] sm:$0xff]  ;;  %v12586_v4 = vld [vmem:[#allocation85_spill] sm:$0xff] }
 0x35a   :  { %v10638_v33 = vadd.f32 %v2141_v52, %v2137_v53  ;;  %v12587_v53 = vld [vmem:[#allocation86_spill] sm:$0xff]  ;;  %v12588_v52 = vld [vmem:[#allocation87_spill] sm:$0xff] }
 0x35b   :  { %v9215_v48 = vpop.eup %9214  ;;  %v10640_v30 = vadd.f32 %v2142_v35, %v2138_v47  ;;  %v12589_v47 = vld [vmem:[#allocation88_spill] sm:$0xff]  ;;  %v12590_v35 = vld [vmem:[#allocation89_spill] sm:$0xff] }
 0x35c   :  { %v9217_v45 = vpop.eup %9216  ;;  %2154 = vst [vmem:[#allocation12 + $0x20] sm:$0xff] %v10638_v33  ;;  %v2139_v2 = vmul.f32 %v9215_v48, %v2135_v5  ;;  %v12591_v5 = vld [vmem:[#allocation90_spill] sm:$0xff]  ;;  %v12592_v48 = vld [vmem:[#allocation91_spill] sm:$0xff] }
 0x35d   :  { %2155 = vst [vmem:[#allocation12 + $0x28] sm:$0xff] %v10640_v30  ;;  %2463 = vmatprep.mubr.f32.mxu0 %v10640_v30  ;;  %2540 = vmatprep.mubr.f32.mxu1 %v10640_v30  ;;  %v2140_v11 = vmul.f32 %v9217_v45, %v2136_v3  ;;  %v12593_v3 = vld [vmem:[#allocation93_spill] sm:$0xff]  ;;  %v12594_v45 = vld [vmem:[#allocation94_spill] sm:$0xff] }
 0x35e   :  { %2464 = vmatmul.mubr.f32.vlgmr.msra.gmra.mrb[8].mxu0 %v10638_v33  ;;  %2541 = vmatmul.mubr.f32.vlgmr.msra.gmra.mrb[8].mxu1 %v10638_v33  ;;  %v10650_v44 = vadd.f32 %v2143_v17, %v2139_v2  ;;  %v12595_v2 = vld [vmem:[#allocation95_spill] sm:$0xff] }
 0x35f   :  { %7484 = vmatpush1.bf16.msra.mxu0 %v10360_v21  ;;  %v10653_v18 = vadd.f32 %v2144_v61, %v2140_v11  ;;  %7612 = vmatpush1.bf16.msra.mxu1 %v10480_v27  ;;  %v12560_v21 = vld [vmem:[#allocation60_spill] sm:$0xff]  ;;  %v12566_v27 = vld [vmem:[#allocation65_spill] sm:$0xff]  ;;  %v2802_v17 = vld [vmem:[#allocation10 + $0x1f0] sm:$0xff] }
 0x360   :  { %7486 = vmatprep.subr.bf16.mxu0 %v10363_v37  ;;  %2156 = vst [vmem:[#allocation12 + $0x30] sm:$0xff] %v10650_v44  ;;  %7614 = vmatprep.subr.bf16.mxu1 %v10490_v49  ;;  %v12561_v37 = vld [vmem:[#allocation92_spill] sm:$0xff]  ;;  %v12568_v49 = vld [vmem:[#allocation67_spill] sm:$0xff] }
 0x361   :  { %2157 = vst [vmem:[#allocation12 + $0x38] sm:$0xff] %v10653_v18  ;;  %2469 = vmatprep.mubr.f32.mxu0 %v10653_v18  ;;  %2546 = vmatprep.mubr.f32.mxu1 %v10653_v18  ;;  %v2827_v61 = vld [vmem:[#allocation10 + $0x2b8] sm:$0xff] }
 0x362   :  { %2470 = vmatmul.mubr.f32.gmra.mrb[10].mxu0 %v10650_v44  ;;  %2547 = vmatmul.mubr.f32.gmra.mrb[10].mxu1 %v10650_v44 }
 0x363   :  { %7488 = vmatpush1.bf16.msra.mxu0 %v10375_v1  ;;  %2617 = vmatprep.mubr.f32.mxu0 %v10640_v30  ;;  %v12564_v1 = vld [vmem:[#allocation63_spill] sm:$0xff] }
 0x364   :  { %7490 = vmatprep.subr.bf16.mxu0 %v10379_v22  ;;  %7616 = vmatpush1.bf16.msra.mxu1 %v10492_v43  ;;  %v12565_v22 = vld [vmem:[#allocation64_spill] sm:$0xff] }
 0x365   :  { %7618 = vmatprep.subr.bf16.mxu1 %v10502_v10  ;;  %v12569_v43 = vld [vmem:[#allocation68_spill] sm:$0xff]  ;;  %v12570_v10 = vld [vmem:[#allocation69_spill] sm:$0xff] }
 0x367   :  { %7492 = vmatpush1.bf16.msra.mxu0 %v10388_v54  ;;  %v12567_v54 = vld [vmem:[#allocation66_spill] sm:$0xff] }
 0x368   :  { %7494 = vmatprep.subr.bf16.mxu0 %v12560_v21  ;;  %7620 = vmatpush1.bf16.msra.mxu1 %v12561_v37  ;;  %v2833_v21 = vld [vmem:[#allocation10 + $0x2e8] sm:$0xff] }
 0x369   :  { %7622 = vmatprep.subr.bf16.mxu1 %v10514_v0  ;;  %v12571_v0 = vld [vmem:[#allocation70_spill] sm:$0xff] }
 0x36b   :  { %7496 = vmatpush1.bf16.msra.mxu0 %v12562_v31  ;;  %v10738_v31 = vpack.c.bf16 %v2833_v21, %v2827_v61  ;;  %v2898_v21 = vld [vmem:[#allocation10 + $0x4f0] sm:$0xff] }
 0x36c   :  { %7498 = vmatprep.subr.bf16.mxu0 %v12563_v23  ;;  %7624 = vmatpush1.bf16.msra.mxu1 %v10516_v26  ;;  %v12573_v26 = vld [vmem:[#allocation72_spill] sm:$0xff]  ;;  %v2826_v23 = vld [vmem:[#allocation10 + $0x2b0] sm:$0xff] }
 0x36d   :  { %7626 = vmatprep.subr.bf16.mxu1 %v10524_v9  ;;  %v12574_v9 = vld [vmem:[#allocation73_spill] sm:$0xff] }
 0x36f   :  { %7500 = vmatpush1.bf16.msra.mxu0 %v12564_v1  ;;  %v2832_v1 = vld [vmem:[#allocation10 + $0x2e0] sm:$0xff] }
 0x370   :  { %7502 = vmatprep.subr.bf16.mxu0 %v12565_v22  ;;  %v2839_v22 = vld [vmem:[#allocation10 + $0x318] sm:$0xff] }
 0x373   :  { %7504 = vmatpush1.bf16.msra.mxu0 %v12566_v27  ;;  %v2845_v27 = vld [vmem:[#allocation10 + $0x348] sm:$0xff] }
 0x374   :  { %7506 = vmatprep.subr.bf16.mxu0 %v12567_v54  ;;  %v10741_v54 = vpack.c.bf16 %v2832_v1, %v2826_v23  ;;  %v2904_v23 = vld [vmem:[#allocation10 + $0x520] sm:$0xff]  ;;  %v12596_v1 = vld [vmem:[#allocation96_spill] sm:$0xff] }
 0x377   :  { %7508 = vmatpush1.bf16.msra.mxu0 %v12568_v49  ;;  %v10744_v49 = vpack.c.bf16 %v2845_v27, %v2839_v22  ;;  %v2911_v22 = vld [vmem:[#allocation10 + $0x558] sm:$0xff]  ;;  %v2917_v27 = vld [vmem:[#allocation10 + $0x588] sm:$0xff] }
 0x378   :  { %7510 = vmatprep.subr.bf16.mxu0 %v12569_v43  ;;  %v2838_v43 = vld [vmem:[#allocation10 + $0x310] sm:$0xff] }
 0x37b   :  { %7512 = vmatpush1.bf16.msra.mxu0 %v12570_v10  ;;  %v2844_v10 = vld [vmem:[#allocation10 + $0x340] sm:$0xff] }
 0x37c   :  { %7514 = vmatprep.subr.bf16.mxu0 %v12571_v0  ;;  %v2851_v0 = vld [vmem:[#allocation10 + $0x378] sm:$0xff] }
 0x37f   :  { %7516 = vmatpush1.bf16.msra.mxu0 %v12572_v55  ;;  %v2857_v55 = vld [vmem:[#allocation10 + $0x3a8] sm:$0xff] }
 0x380   :  { %7518 = vmatprep.subr.bf16.mxu0 %v12573_v26  ;;  %v10747_v26 = vpack.c.bf16 %v2844_v10, %v2838_v43  ;;  %v2910_v43 = vld [vmem:[#allocation10 + $0x550] sm:$0xff]  ;;  %v10793_v10 = vpack.c.bf16 %v2917_v27, %v2911_v22  ;;  %v12604_v22 = vld [vmem:[#allocation50_spill] sm:$0xff] }
 0x383   :  { %7520 = vmatpush1.bf16.msra.mxu0 %v12574_v9  ;;  %v10750_v9 = vpack.c.bf16 %v2857_v55, %v2851_v0  ;;  %v2916_v0 = vld [vmem:[#allocation10 + $0x580] sm:$0xff]  ;;  %v2923_v55 = vld [vmem:[#allocation10 + $0x5b8] sm:$0xff] }
 0x384   :  { %7522 = vmatprep.subr.bf16.mxu0 %v12575_v15  ;;  %v2850_v15 = vld [vmem:[#allocation10 + $0x370] sm:$0xff] }
 0x387   :  { %7524 = vmatpush1.bf16.msra.mxu0 %v12576_v40  ;;  %v2856_v40 = vld [vmem:[#allocation10 + $0x3a0] sm:$0xff] }
 0x388   :  { %7526 = vmatprep.subr.bf16.mxu0 %v12577_v38  ;;  %v2863_v38 = vld [vmem:[#allocation10 + $0x3d8] sm:$0xff] }
 0x38b   :  { %7528 = vmatpush1.bf16.msra.mxu0 %v12578_v51  ;;  %v2869_v51 = vld [vmem:[#allocation10 + $0x408] sm:$0xff] }
 0x38c   :  { %7530 = vmatprep.subr.bf16.mxu0 %v12579_v58  ;;  %v10753_v58 = vpack.c.bf16 %v2856_v40, %v2850_v15  ;;  %v2929_v15 = vld [vmem:[#allocation10 + $0x5e8] sm:$0xff]  ;;  %v12597_v40 = vld [vmem:[#allocation97_spill] sm:$0xff] }
 0x38f   :  { %7532 = vmatpush1.bf16.msra.mxu0 %v12580_v13  ;;  %v10756_v13 = vpack.c.bf16 %v2869_v51, %v2863_v38  ;;  %v10796_v38 = vpack.c.bf16 %v2916_v0, %v2910_v43  ;;  %v10798_v51 = vpack.c.bf16 %v2929_v15, %v2923_v55  ;;  %v12605_v43 = vld [vmem:[#allocation55_spill] sm:$0xff] }
 0x390   :  { %7534 = vmatprep.subr.bf16.mxu0 %v12581_v41  ;;  %v2862_v41 = vld [vmem:[#allocation10 + $0x3d0] sm:$0xff] }
 0x393   :  { %7536 = vmatpush1.bf16.msra.mxu0 %v12582_v19  ;;  %v2868_v19 = vld [vmem:[#allocation10 + $0x400] sm:$0xff] }
 0x394   :  { %7538 = vmatprep.subr.bf16.mxu0 %v12583_v46  ;;  %v10760_v46 = vpack.c.bf16 %v2868_v19, %v2862_v41  ;;  %v2922_v41 = vld [vmem:[#allocation10 + $0x5b0] sm:$0xff]  ;;  %v2928_v19 = vld [vmem:[#allocation10 + $0x5e0] sm:$0xff] }
 0x397   :  { %7540 = vmatpush1.bf16.msra.mxu0 %v12584_v50  ;;  %v2860_v50 = vld [vmem:[#allocation10 + $0x3c0] sm:$0xff] }
 0x398   :  { %7542 = vmatprep.subr.bf16.mxu0 %v12585_v34  ;;  %v2866_v34 = vld [vmem:[#allocation10 + $0x3f0] sm:$0xff] }
 0x39b   :  { %7544 = vmatpush1.bf16.msra.mxu0 %v12586_v4  ;;  %v10762_v4 = vpack.c.bf16 %v2866_v34, %v2860_v50  ;;  %v12598_v50 = vld [vmem:[#allocation98_spill] sm:$0xff]  ;;  %v10803_v34 = vpack.c.bf16 %v2928_v19, %v2922_v41  ;;  %v12606_v41 = vld [vmem:[#allocation51_spill] sm:$0xff] }
 0x39c   :  { %7546 = vmatprep.subr.bf16.mxu0 %v12587_v53  ;;  %v2875_v53 = vld [vmem:[#allocation10 + $0x438] sm:$0xff] }
 0x39d   :  { %12599 = vst [vmem:[#allocation56_spill] sm:$0xff] %v10803_v34 }
 0x39e   :  { %2618 = vmatmul.mubr.f32.vlgmr.msra.gmra.mrb[80].mxu0 %v10638_v33 }
 0x39f   :  { %2623 = vmatprep.mubr.f32.mxu0 %v10653_v18  ;;  %7548 = vmatpush1.bf16.msra.mxu0 %v12588_v52  ;;  %v2881_v52 = vld [vmem:[#allocation10 + $0x468] sm:$0xff] }
 0x3a0   :  { %7550 = vmatprep.subr.bf16.mxu0 %v12589_v47  ;;  %v10766_v47 = vpack.c.bf16 %v2881_v52, %v2875_v53  ;;  %v12600_v53 = vld [vmem:[#allocation99_spill] sm:$0xff]  ;;  %v12601_v52 = vld [vmem:[#allocation100_spill] sm:$0xff] }
 0x3a2   :  { %2624 = vmatmul.mubr.f32.gmra.mrb[82].mxu0 %v10650_v44 }
 0x3a3   :  { %7552 = vmatpush1.bf16.msra.mxu0 %v12590_v35  ;;  %v2874_v35 = vld [vmem:[#allocation10 + $0x430] sm:$0xff] }
 0x3a4   :  { %7554 = vmatprep.subr.bf16.mxu0 %v12591_v5  ;;  %v2880_v5 = vld [vmem:[#allocation10 + $0x460] sm:$0xff] }
 0x3a7   :  { %7556 = vmatpush1.bf16.msra.mxu0 %v12592_v48  ;;  %v10769_v48 = vpack.c.bf16 %v2880_v5, %v2874_v35  ;;  %v2745_v35 = vld [vmem:[#allocation10 + $0x28] sm:$0xff]  ;;  %v2751_v5 = vld [vmem:[#allocation10 + $0x58] sm:$0xff] }
 0x3a8   :  { %7558 = vmatprep.subr.bf16.mxu0 %v10508_v39  ;;  %v2790_v39 = vld [vmem:[#allocation10 + $0x190] sm:$0xff] }
 0x3ab   :  { %7560 = vmatpush1.bf16.msra.mxu0 %v12593_v3  ;;  %v2872_v3 = vld [vmem:[#allocation10 + $0x420] sm:$0xff] }
 0x3ac   :  { %7562 = vmatprep.subr.bf16.mxu0 %v12594_v45  ;;  %v2878_v45 = vld [vmem:[#allocation10 + $0x450] sm:$0xff] }
 0x3af   :  { %7564 = vmatpush1.bf16.msra.mxu0 %v10522_v20  ;;  %v2796_v20 = vld [vmem:[#allocation10 + $0x1c0] sm:$0xff] }
 0x3b0   :  { %7566 = vmatprep.subr.bf16.mxu0 %v12595_v2  ;;  %v10772_v2 = vpack.c.bf16 %v2878_v45, %v2872_v3  ;;  %v12602_v3 = vld [vmem:[#allocation101_spill] sm:$0xff]  ;;  %v10810_v45 = vpack.c.bf16 %v2751_v5, %v2745_v35 }
 0x3b3   :  { %7568 = vmatpush1.bf16.msra.mxu0 %v10532_v59  ;;  %v2803_v59 = vld [vmem:[#allocation10 + $0x1f8] sm:$0xff] }
 0x3b4   :  { %7570 = vmatprep.subr.bf16.mxu0 %v10535_v32  ;;  %v10724_v32 = vpack.c.bf16 %v2796_v20, %v2790_v39  ;;  %v2887_v39 = vld [vmem:[#allocation10 + $0x498] sm:$0xff]  ;;  %v2893_v20 = vld [vmem:[#allocation10 + $0x4c8] sm:$0xff] }
 0x3b6   :  { %7628 = vmatpush1.bf16.msra.mxu1 %v10724_v32 }
 0x3b7   :  { %7572 = vmatpush1.bf16.msra.mxu0 %v10540_v29  ;;  %v2809_v29 = vld [vmem:[#allocation10 + $0x228] sm:$0xff] }
 0x3b8   :  { %7574 = vmatprep.subr.bf16.mxu0 %v10543_v36  ;;  %v2808_v36 = vld [vmem:[#allocation10 + $0x220] sm:$0xff]  ;;  %v10726_v11 = vpack.c.bf16 %v2809_v29, %v2803_v59  ;;  %v10776_v59 = vpack.c.bf16 %v2893_v20, %v2887_v39  ;;  %v2886_v29 = vld [vmem:[#allocation10 + $0x490] sm:$0xff] }
 0x3ba   :  { %7630 = vmatprep.subr.bf16.mxu1 %v10726_v11 }
 0x3bb   :  { %7576 = vmatpush1.bf16.msra.mxu0 %v10548_v6  ;;  %v2815_v6 = vld [vmem:[#allocation10 + $0x258] sm:$0xff] }
 0x3bc   :  { %7578 = vmatprep.subr.bf16.mxu0 %v10551_v60  ;;  %v2821_v60 = vld [vmem:[#allocation10 + $0x288] sm:$0xff] }
 0x3bf   :  { %7580 = vmatpush1.bf16.msra.mxu0 %v10556_v28  ;;  %v10729_v28 = vpack.c.bf16 %v2808_v36, %v2802_v17  ;;  %v2892_v17 = vld [vmem:[#allocation10 + $0x4c0] sm:$0xff] }
 0x3c0   :  { %7582 = vmatprep.subr.bf16.mxu0 %v10559_v8  ;;  %v10732_v8 = vpack.c.bf16 %v2821_v60, %v2815_v6  ;;  %v2884_v36 = vld [vmem:[#allocation10 + $0x480] sm:$0xff]  ;;  %v2890_v6 = vld [vmem:[#allocation10 + $0x4b0] sm:$0xff] }
 0x3c1   :  { %7632 = vmatpush1.bf16.msra.mxu1 %v10729_v28  ;;  %v10782_v60 = vpack.c.bf16 %v2890_v6, %v2884_v36 }
 0x3c2   :  { %7634 = vmatprep.subr.bf16.mxu1 %v10732_v8 }
 0x3c3   :  { %7584 = vmatpush1.bf16.msra.mxu0 %v10564_v24  ;;  %v2814_v24 = vld [vmem:[#allocation10 + $0x250] sm:$0xff] }
 0x3c4   :  { %7586 = vmatprep.subr.bf16.mxu0 %v10567_v12  ;;  %v2820_v12 = vld [vmem:[#allocation10 + $0x280] sm:$0xff] }
 0x3c5   :  { %v10735_v37 = vpack.c.bf16 %v2820_v12, %v2814_v24  ;;  %v2899_v24 = vld [vmem:[#allocation10 + $0x4f8] sm:$0xff]  ;;  %v2905_v12 = vld [vmem:[#allocation10 + $0x528] sm:$0xff] }
 0x3c6   :  { %v10786_v61 = vpack.c.bf16 %v2905_v12, %v2899_v24 }
 0x3c7   :  { %7636 = vmatpush1.bf16.msra.mxu1 %v10735_v37  ;;  %7588 = vmatpush1.bf16.msra.mxu0 %v10762_v4 }
 0x3c8   :  { %7638 = vmatprep.subr.bf16.mxu1 %v10738_v31  ;;  %7590 = vmatprep.subr.bf16.mxu0 %v10576_v63  ;;  %v10779_v63 = vpack.c.bf16 %v2892_v17, %v2886_v29 }
 0x3cb   :  { %7640 = vmatpush1.bf16.msra.mxu1 %v10741_v54  ;;  %7592 = vmatpush1.bf16.msra.mxu0 %v10772_v2 }
 0x3cc   :  { %7642 = vmatprep.subr.bf16.mxu1 %v10744_v49  ;;  %7594 = vmatprep.subr.bf16.mxu0 %v10582_v16  ;;  %v10789_v16 = vpack.c.bf16 %v2904_v23, %v2898_v21  ;;  %v2367_v21 = vld [vmem:[%s12272_s5] sm:$0x3f] }
 0x3cd   :  { %v12603_v23 = vld [vmem:[#allocation49_spill] sm:$0xff]  ;;  %v2376_v27 = vrot.slane %v2367_v21, %v12604_v22  ;;  %v2380_v19 = vrot.slane %v2367_v21, %v12606_v41 }
 0x3cf   :  { %7644 = vmatpush1.bf16.msra.mxu1 %v10747_v26  ;;  %7596 = vmatpush1.bf16.msra.mxu0 %v10782_v60  ;;  %v8907_v55 = vadd.f32 %v2376_v27, %v10303_v56 }
 0x3d0   :  { %7646 = vmatprep.subr.bf16.mxu1 %v10750_v9  ;;  %7598 = vmatprep.subr.bf16.mxu0 %v12596_v1  ;;  %v2372_v1 = vrot.slane %v2367_v21, %v12603_v23 }
 0x3d2   :  { %v8905_v0 = vadd.f32 %v2372_v1, %v12605_v43 }
 0x3d3   :  { %7648 = vmatpush1.bf16.msra.mxu1 %v10753_v58  ;;  %7600 = vmatpush1.bf16.msra.mxu0 %v12597_v40 }
 0x3d4   :  { %7650 = vmatprep.subr.bf16.mxu1 %v10756_v13  ;;  %7602 = vmatprep.subr.bf16.mxu0 %v12598_v50 }
 0x3d7   :  { %7652 = vmatpush1.bf16.msra.mxu1 %v10760_v46  ;;  %7604 = vmatpush1.bf16.msra.mxu0 %v12600_v53  ;;  %v12607_v53 = vld [vmem:[#allocation53_spill] sm:$0xff] }
 0x3d8   :  { %7654 = vmatprep.subr.bf16.mxu1 %v10766_v47  ;;  %7606 = vmatprep.subr.bf16.mxu0 %v12601_v52  ;;  %v2384_v52 = vrot.slane %v2367_v21, %v12607_v53 }
 0x3da   :  { %v8987_v23 = vadd.f32 %v2384_v52, %v12555_v25 }
 0x3db   :  { %7656 = vmatpush1.bf16.msra.mxu1 %v10769_v48  ;;  %7608 = vmatpush1.bf16.msra.mxu0 %v12602_v3 }
 0x3dc   :  { %7658 = vmatprep.subr.bf16.mxu1 %v10776_v59 }
 0x3df   :  { %7660 = vmatpush1.bf16.msra.mxu1 %v10779_v63 }
 0x3e0   :  { %7662 = vmatprep.subr.bf16.mxu1 %v10786_v61 }
 0x3e3   :  { %7664 = vmatpush1.bf16.msra.mxu1 %v10789_v16 }
 0x3e4   :  { %7666 = vmatprep.subr.bf16.mxu1 %v10793_v10 }
 0x3e7   :  { %7668 = vmatpush1.bf16.msra.mxu1 %v10796_v38 }
 0x3e8   :  { %7670 = vmatprep.subr.bf16.mxu1 %v10798_v51 }
 0x3eb   :  { %7672 = vmatpush1.bf16.msra.mxu1 %v10803_v34  ;;  %v8985_v34 = vadd.f32 %v2380_v19, %v12554_v7 }
 0x3ec   :  { %7674 = vmatprep.subr.bf16.mxu1 %v10810_v45 }
 0x431   :  { %v2465_v39 = vpop.f32.mrb[8].mxu0  ;;  %v2542_v20 = vpop.f32.mrb[8].mxu1 }
 0x432   :  { %v2467_v29 = vpop.f32.mrb[9].mxu0  ;;  %v2544_v17 = vpop.f32.mrb[9].mxu1  ;;  %v8906_v15 = vadd.f32 %v8905_v0, %v2465_v39  ;;  %v8986_v43 = vadd.f32 %v8985_v34, %v2542_v20 }
 0x433   :  { %v8908_v40 = vadd.f32 %v8907_v55, %v2467_v29  ;;  %v8988_v27 = vadd.f32 %v8987_v23, %v2544_v17 }
 0x434   :  { %v6713_v50 = vmul.f32 -1.442695, %v8906_v15  ;;  %v6717_v15 = vmul.f32 -1.442695, %v8986_v43 }
 0x435   :  { %v2471_v36 = vpop.f32.mrb[10].mxu0  ;;  %v2548_v6 = vpop.f32.mrb[10].mxu1  ;;  %v6714_v5 = vmul.f32 -1.442695, %v8908_v40  ;;  %v6718_v41 = vmul.f32 -1.442695, %v8988_v27 }
 0x436   :  { %v2473_v24 = vpop.f32.mrb[11].mxu0  ;;  %v2550_v12 = vpop.f32.mrb[11].mxu1  ;;  %v8910_v35 = vadd.f32 %v8905_v0, %v2471_v36  ;;  %9218 = vpow2.f32 %v6713_v50  ;;  %v8990_v39 = vadd.f32 %v8985_v34, %v2548_v6 }
 0x437   :  { %v8912_v3 = vadd.f32 %v8907_v55, %v2473_v24  ;;  %9220 = vpow2.f32 %v6714_v5  ;;  %v8992_v29 = vadd.f32 %v8987_v23, %v2550_v12  ;;  %v2388_v12 = vrot.slane %v2367_v21, %v10329_v57 }
 0x438   :  { %v6715_v22 = vmul.f32 -1.442695, %v8910_v35  ;;  %v6719_v53 = vmul.f32 -1.442695, %v8990_v39 }
 0x439   :  { %v6716_v1 = vmul.f32 -1.442695, %v8912_v3  ;;  %v6720_v0 = vmul.f32 -1.442695, %v8992_v29 }
 0x43a   :  { %9222 = vpow2.f32 %v6715_v22  ;;  %v2392_v22 = vrot.slane %v2367_v21, %v10332_v62 }
 0x43b   :  { %9224 = vpow2.f32 %v6716_v1 }
 0x43c   :  { %9226 = vpow2.f32 %v6717_v15  ;;  %v12608_v15 = vld [vmem:[#allocation21_spill] sm:$0xff] }
 0x43d   :  { %9228 = vpow2.f32 %v6718_v41 }
 0x43e   :  { %9230 = vpow2.f32 %v6719_v53 }
 0x43f   :  { %9232 = vpow2.f32 %v6720_v0 }
 0x440   :  { %v9219_v36 = vpop.eup %9218 }
 0x441   :  { %v9221_v24 = vpop.eup %9220  ;;  %v2646_v55 = vadd.f32 1.0, %v9219_v36  ;;  %v816_v36 = vadd.f32 %v12608_v15, %v10338_v14 }
 0x442   :  { %v2647_v19 = vadd.f32 1.0, %v9221_v24  ;;  %v12609_v24 = vld [vmem:[#allocation22_spill] sm:$0xff] }
 0x443   :  { %9234 = vrcp.f32 %v2646_v55  ;;  %v818_v55 = vadd.f32 %v12609_v24, %v10343_v42 }
 0x444   :  { %v9223_v40 = vpop.eup %9222  ;;  %9236 = vrcp.f32 %v2647_v19 }
 0x445   :  { %v9225_v50 = vpop.eup %9224  ;;  %v2648_v20 = vadd.f32 1.0, %v9223_v40 }
 0x446   :  { %v2649_v34 = vadd.f32 1.0, %v9225_v50  ;;  %v9227_v17 = vpop.eup %9226 }
 0x447   :  { %9238 = vrcp.f32 %v2648_v20  ;;  %v9229_v6 = vpop.eup %9228  ;;  %v2674_v41 = vadd.f32 1.0, %v9227_v17 }
 0x448   :  { %9240 = vrcp.f32 %v2649_v34  ;;  %v9231_v23 = vpop.eup %9230  ;;  %v2675_v53 = vadd.f32 1.0, %v9229_v6 }
 0x449   :  { %v9233_v43 = vpop.eup %9232  ;;  %v2676_v35 = vadd.f32 1.0, %v9231_v23  ;;  %9242 = vrcp.f32 %v2674_v41 }
 0x44a   :  { %v2677_v27 = vadd.f32 1.0, %v9233_v43  ;;  %9244 = vrcp.f32 %v2675_v53  ;;  %v12610_v43 = vld [vmem:[#allocation23_spill] sm:$0xff] }
 0x44b   :  { %9246 = vrcp.f32 %v2676_v35 }
 0x44c   :  { %9248 = vrcp.f32 %v2677_v27 }
 0x44d   :  { %v9235_v1 = vpop.eup %9234 }
 0x44e   :  { %v9237_v29 = vpop.eup %9236 }
 0x451   :  { %v9239_v34 = vpop.eup %9238 }
 0x452   :  { %v9241_v23 = vpop.eup %9240 }
 0x471   :  { %v2619_v52 = vpop.f32.mrb[80].mxu0 }
 0x472   :  { %v2620_v5 = vadd.f32 %v2619_v52, %v2388_v12  ;;  %v2621_v3 = vpop.f32.mrb[81].mxu0  ;;  %v822_v52 = vadd.f32 %v12610_v43, %v10338_v14 }
 0x473   :  { %v2622_v39 = vadd.f32 %v2621_v3, %v2392_v22 }
 0x474   :  { %v2686_v0 = vmul.f32 %v9235_v1, %v2620_v5  ;;  %v12611_v5 = vld [vmem:[#allocation24_spill] sm:$0xff] }
 0x475   :  { %v2687_v21 = vmul.f32 %v9237_v29, %v2622_v39  ;;  %v2625_v40 = vpop.f32.mrb[82].mxu0  ;;  %v824_v3 = vadd.f32 %v12611_v5, %v10343_v42 }
 0x476   :  { %v2690_v19 = vadd.f32 %v2686_v0, %v816_v36  ;;  %v2626_v50 = vadd.f32 %v2625_v40, %v2388_v12  ;;  %v2627_v20 = vpop.f32.mrb[83].mxu0  ;;  %v9243_v12 = vpop.eup %9242  ;;  %v2750_v40 = vld [vmem:[#allocation10 + $0x50] sm:$0xff] }
 0x477   :  { %v2691_v17 = vadd.f32 %v2687_v21, %v818_v55  ;;  %v2628_v6 = vadd.f32 %v2627_v20, %v2392_v22  ;;  %v9245_v39 = vpop.eup %9244  ;;  %v2698_v22 = vsub.f32 1.0, %v9243_v12  ;;  %v2706_v55 = vmul.f32 %v9243_v12, %v10638_v33  ;;  %v2744_v21 = vld [vmem:[#allocation10 + $0x20] sm:$0xff]  ;;  %v2757_v20 = vld [vmem:[#allocation10 + $0x88] sm:$0xff] }
 0x478   :  { %9250 = vtanh.f32 %v2690_v19  ;;  %v2688_v41 = vmul.f32 %v9239_v34, %v2626_v50  ;;  %v9247_v27 = vpop.eup %9246  ;;  %v2699_v36 = vsub.f32 1.0, %v9245_v39  ;;  %v2707_v50 = vmul.f32 %v9245_v39, %v10640_v30  ;;  %v2763_v34 = vld [vmem:[#allocation10 + $0xb8] sm:$0xff]  ;;  %v2756_v30 = vld [vmem:[#allocation10 + $0x80] sm:$0xff]  ;;  %v2769_v39 = vld [vmem:[#allocation10 + $0xe8] sm:$0xff] }
 0x479   :  { %9252 = vtanh.f32 %v2691_v17  ;;  %v2689_v53 = vmul.f32 %v9241_v23, %v2628_v6  ;;  %v9249_v29 = vpop.eup %9248  ;;  %v2700_v17 = vsub.f32 1.0, %v9247_v27  ;;  %v10843_v33 = vpack.c.bf16 %v2763_v34, %v2757_v20  ;;  %v2799_v20 = vld [vmem:[#allocation10 + $0x1d8] sm:$0xff] }
 0x47a   :  { %v2692_v1 = vadd.f32 %v2688_v41, %v822_v52  ;;  %v2701_v43 = vsub.f32 1.0, %v9249_v29  ;;  %v10840_v41 = vpack.c.bf16 %v2750_v40, %v2744_v21  ;;  %v2709_v12 = vmul.f32 %v9249_v29, %v10653_v18  ;;  %v2768_v18 = vld [vmem:[#allocation10 + $0xe0] sm:$0xff]  ;;  %v2774_v29 = vld [vmem:[#allocation10 + $0x110] sm:$0xff] }
 0x47b   :  { %v2693_v35 = vadd.f32 %v2689_v53, %v824_v3  ;;  %v2708_v53 = vmul.f32 %v9247_v27, %v10650_v44  ;;  %v2780_v40 = vld [vmem:[#allocation10 + $0x140] sm:$0xff] }
 0x47c   :  { %9254 = vtanh.f32 %v2692_v1  ;;  %v2762_v1 = vld [vmem:[#allocation10 + $0xb0] sm:$0xff] }
 0x47d   :  { %9256 = vtanh.f32 %v2693_v35  ;;  %v10857_v27 = vpack.c.bf16 %v2762_v1, %v2756_v30  ;;  %v2804_v1 = vld [vmem:[#allocation10 + $0x200] sm:$0xff] }
 0x482   :  { %v9251_v15 = vpop.eup %9250 }
 0x483   :  { %v9253_v0 = vpop.eup %9252  ;;  %v2702_v24 = vmul.f32 %v9251_v15, %v2698_v22  ;;  %v2775_v22 = vld [vmem:[#allocation10 + $0x118] sm:$0xff] }
 0x484   :  { %v2703_v19 = vmul.f32 %v9253_v0, %v2699_v36  ;;  %v10861_v36 = vpack.c.bf16 %v2775_v22, %v2769_v39  ;;  %v2781_v0 = vld [vmem:[#allocation10 + $0x148] sm:$0xff]  ;;  %v2823_v39 = vld [vmem:[#allocation10 + $0x298] sm:$0xff] }
 0x485   :  { %v10836_v6 = vadd.f32 %v2706_v55, %v2702_v24  ;;  %v2787_v24 = vld [vmem:[#allocation10 + $0x178] sm:$0xff]  ;;  %v10870_v55 = vpack.c.bf16 %v2774_v29, %v2768_v18  ;;  %v2816_v29 = vld [vmem:[#allocation10 + $0x260] sm:$0xff] }
 0x486   :  { %v9255_v23 = vpop.eup %9254  ;;  %v10838_v52 = vadd.f32 %v2707_v50, %v2703_v19  ;;  %v10873_v21 = vpack.c.bf16 %v2787_v24, %v2781_v0  ;;  %v2786_v19 = vld [vmem:[#allocation10 + $0x170] sm:$0xff]  ;;  %v2793_v50 = vld [vmem:[#allocation10 + $0x1a8] sm:$0xff] }
 0x487   :  { %v9257_v5 = vpop.eup %9256  ;;  %2719 = vst [vmem:[#allocation12 + $0x40] sm:$0xff] %v10836_v6  ;;  %v2704_v3 = vmul.f32 %v9255_v23, %v2700_v17  ;;  %v10876_v34 = vpack.c.bf16 %v2786_v19, %v2780_v40  ;;  %v10879_v17 = vpack.c.bf16 %v2799_v20, %v2793_v50  ;;  %v2792_v23 = vld [vmem:[#allocation10 + $0x1a0] sm:$0xff]  ;;  %v2822_v0 = vld [vmem:[#allocation10 + $0x290] sm:$0xff]  ;;  %v2829_v24 = vld [vmem:[#allocation10 + $0x2c8] sm:$0xff] }
 0x488   :  { %2720 = vst [vmem:[#allocation12 + $0x48] sm:$0xff] %v10838_v52  ;;  %3028 = vmatprep.mubr.f32.mxu0 %v10838_v52  ;;  %3105 = vmatprep.mubr.f32.mxu1 %v10838_v52  ;;  %v2705_v35 = vmul.f32 %v9257_v5, %v2701_v43  ;;  %12612 = vst [vmem:[#allocation58_spill] sm:$0xff] %v10873_v21  ;;  %v2798_v43 = vld [vmem:[#allocation10 + $0x1d0] sm:$0xff]  ;;  %v2805_v5 = vld [vmem:[#allocation10 + $0x208] sm:$0xff]  ;;  %v10894_v19 = vpack.c.bf16 %v2822_v0, %v2816_v29 }
 0x489   :  { %3029 = vmatmul.mubr.f32.vlgmr.msra.gmra.mrb[12].mxu0 %v10836_v6  ;;  %3106 = vmatmul.mubr.f32.vlgmr.msra.gmra.mrb[12].mxu1 %v10836_v6  ;;  %v10852_v15 = vadd.f32 %v2708_v53, %v2704_v3  ;;  %12613 = vst [vmem:[#allocation17_spill] sm:$0xff] %v10876_v34  ;;  %12614 = vst [vmem:[#allocation18_spill] sm:$0xff] %v10879_v17  ;;  %v2811_v3 = vld [vmem:[#allocation10 + $0x238] sm:$0xff]  ;;  %v10882_v53 = vpack.c.bf16 %v2798_v43, %v2792_v23  ;;  %v2828_v20 = vld [vmem:[#allocation10 + $0x2c0] sm:$0xff] }
 0x48a   :  { %7676 = vmatpush1.bf16.msra.mxu1 %v10840_v41  ;;  %v10855_v44 = vadd.f32 %v2709_v12, %v2705_v35  ;;  %v10885_v30 = vpack.c.bf16 %v2811_v3, %v2805_v5  ;;  %v2810_v35 = vld [vmem:[#allocation10 + $0x230] sm:$0xff]  ;;  %v2817_v12 = vld [vmem:[#allocation10 + $0x268] sm:$0xff]  ;;  %v2835_v40 = vld [vmem:[#allocation10 + $0x2f8] sm:$0xff]  ;;  %12619 = vst [vmem:[#allocation61_spill] sm:$0xff] %v10894_v19 }
 0x48b   :  { %7678 = vmatprep.subr.bf16.mxu1 %v10843_v33  ;;  %2721 = vst [vmem:[#allocation12 + $0x50] sm:$0xff] %v10852_v15  ;;  %12615 = vst [vmem:[#allocation19_spill] sm:$0xff] %v10882_v53  ;;  %v10888_v22 = vpack.c.bf16 %v2810_v35, %v2804_v1  ;;  %v10891_v18 = vpack.c.bf16 %v2823_v39, %v2817_v12  ;;  %v10897_v50 = vpack.c.bf16 %v2835_v40, %v2829_v24  ;;  %v2834_v23 = vld [vmem:[#allocation10 + $0x2f0] sm:$0xff]  ;;  %v2841_v43 = vld [vmem:[#allocation10 + $0x328] sm:$0xff] }
 0x48c   :  { %2722 = vst [vmem:[#allocation12 + $0x58] sm:$0xff] %v10855_v44  ;;  %3034 = vmatprep.mubr.f32.mxu0 %v10855_v44  ;;  %3111 = vmatprep.mubr.f32.mxu1 %v10855_v44  ;;  %12616 = vst [vmem:[#allocation20_spill] sm:$0xff] %v10885_v30  ;;  %v2847_v5 = vld [vmem:[#allocation10 + $0x358] sm:$0xff]  ;;  %v10900_v3 = vpack.c.bf16 %v2834_v23, %v2828_v20  ;;  %v2840_v35 = vld [vmem:[#allocation10 + $0x320] sm:$0xff] }
 0x48d   :  { %3035 = vmatmul.mubr.f32.gmra.mrb[14].mxu0 %v10852_v15  ;;  %3112 = vmatmul.mubr.f32.gmra.mrb[14].mxu1 %v10852_v15  ;;  %12617 = vst [vmem:[#allocation60_spill] sm:$0xff] %v10888_v22  ;;  %12618 = vst [vmem:[#allocation92_spill] sm:$0xff] %v10891_v18  ;;  %v10903_v1 = vpack.c.bf16 %v2847_v5, %v2841_v43  ;;  %v2846_v12 = vld [vmem:[#allocation10 + $0x350] sm:$0xff]  ;;  %v2853_v39 = vld [vmem:[#allocation10 + $0x388] sm:$0xff] }
 0x48e   :  { %7680 = vmatpush1.bf16.msra.mxu1 %v10857_v27  ;;  %3182 = vmatprep.mubr.f32.mxu1 %v10838_v52  ;;  %12620 = vst [vmem:[#allocation62_spill] sm:$0xff] %v10897_v50  ;;  %12621 = vst [vmem:[#allocation63_spill] sm:$0xff] %v10900_v3  ;;  %v2859_v29 = vld [vmem:[#allocation10 + $0x3b8] sm:$0xff]  ;;  %v10906_v0 = vpack.c.bf16 %v2846_v12, %v2840_v35  ;;  %v2852_v40 = vld [vmem:[#allocation10 + $0x380] sm:$0xff] }
 0x48f   :  { %7682 = vmatprep.subr.bf16.mxu1 %v10861_v36  ;;  %12622 = vst [vmem:[#allocation64_spill] sm:$0xff] %v10903_v1  ;;  %v10909_v24 = vpack.c.bf16 %v2859_v29, %v2853_v39  ;;  %v2865_v20 = vld [vmem:[#allocation10 + $0x3e8] sm:$0xff]  ;;  %v2871_v23 = vld [vmem:[#allocation10 + $0x418] sm:$0xff] }
 0x490   :  { %12623 = vst [vmem:[#allocation65_spill] sm:$0xff] %v10906_v0  ;;  %v10915_v5 = vpack.c.bf16 %v2871_v23, %v2865_v20  ;;  %v2877_v35 = vld [vmem:[#allocation10 + $0x448] sm:$0xff]  ;;  %v2883_v12 = vld [vmem:[#allocation10 + $0x478] sm:$0xff] }
 0x491   :  { %12624 = vst [vmem:[#allocation66_spill] sm:$0xff] %v10909_v24  ;;  %v10921_v29 = vpack.c.bf16 %v2883_v12, %v2877_v35 }
 0x492   :  { %7684 = vmatpush1.bf16.msra.mxu1 %v10870_v55  ;;  %12626 = vst [vmem:[#allocation68_spill] sm:$0xff] %v10915_v5 }
 0x493   :  { %7686 = vmatprep.subr.bf16.mxu1 %v10873_v21  ;;  %12628 = vst [vmem:[#allocation70_spill] sm:$0xff] %v10921_v29 }
 0x496   :  { %7688 = vmatpush1.bf16.msra.mxu1 %v10876_v34  ;;  %v3359_v34 = vld [vmem:[#allocation10 + $0x1b0] sm:$0xff] }
 0x497   :  { %7690 = vmatprep.subr.bf16.mxu1 %v10879_v17  ;;  %v3360_v17 = vld [vmem:[#allocation10 + $0x1b8] sm:$0xff] }
 0x49a   :  { %7692 = vmatpush1.bf16.msra.mxu1 %v10882_v53 }
 0x49b   :  { %7694 = vmatprep.subr.bf16.mxu1 %v10885_v30  ;;  %v3341_v30 = vld [vmem:[#allocation10 + $0x120] sm:$0xff] }
 0x49e   :  { %7696 = vmatpush1.bf16.msra.mxu1 %v10888_v22 }
 0x49f   :  { %7698 = vmatprep.subr.bf16.mxu1 %v10891_v18  ;;  %v3329_v18 = vld [vmem:[#allocation10 + $0xc0] sm:$0xff] }
 0x4a2   :  { %7700 = vmatpush1.bf16.msra.mxu1 %v10894_v19  ;;  %v2858_v19 = vld [vmem:[#allocation10 + $0x3b0] sm:$0xff] }
 0x4a3   :  { %7702 = vmatprep.subr.bf16.mxu1 %v10897_v50  ;;  %v10912_v43 = vpack.c.bf16 %v2858_v19, %v2852_v40  ;;  %v2864_v50 = vld [vmem:[#allocation10 + $0x3e0] sm:$0xff]  ;;  %v2889_v19 = vld [vmem:[#allocation10 + $0x4a8] sm:$0xff]  ;;  %v2895_v40 = vld [vmem:[#allocation10 + $0x4d8] sm:$0xff] }
 0x4a4   :  { %v10927_v23 = vpack.c.bf16 %v2895_v40, %v2889_v19 }
 0x4a5   :  { %12625 = vst [vmem:[#allocation67_spill] sm:$0xff] %v10912_v43 }
 0x4a6   :  { %7704 = vmatpush1.bf16.msra.mxu1 %v10900_v3  ;;  %v2870_v3 = vld [vmem:[#allocation10 + $0x410] sm:$0xff]  ;;  %12630 = vst [vmem:[#allocation72_spill] sm:$0xff] %v10927_v23 }
 0x4a7   :  { %7706 = vmatprep.subr.bf16.mxu1 %v10903_v1  ;;  %v10918_v39 = vpack.c.bf16 %v2870_v3, %v2864_v50  ;;  %v2876_v1 = vld [vmem:[#allocation10 + $0x440] sm:$0xff]  ;;  %v2901_v50 = vld [vmem:[#allocation10 + $0x508] sm:$0xff]  ;;  %v2907_v3 = vld [vmem:[#allocation10 + $0x538] sm:$0xff] }
 0x4a8   :  { %v10933_v12 = vpack.c.bf16 %v2907_v3, %v2901_v50 }
 0x4a9   :  { %12627 = vst [vmem:[#allocation69_spill] sm:$0xff] %v10918_v39 }
 0x4aa   :  { %7708 = vmatpush1.bf16.msra.mxu1 %v10906_v0  ;;  %v2882_v0 = vld [vmem:[#allocation10 + $0x470] sm:$0xff]  ;;  %12632 = vst [vmem:[#allocation74_spill] sm:$0xff] %v10933_v12 }
 0x4ab   :  { %7710 = vmatprep.subr.bf16.mxu1 %v10909_v24  ;;  %v10924_v20 = vpack.c.bf16 %v2882_v0, %v2876_v1  ;;  %v2888_v24 = vld [vmem:[#allocation10 + $0x4a0] sm:$0xff]  ;;  %v2913_v1 = vld [vmem:[#allocation10 + $0x568] sm:$0xff]  ;;  %v2919_v0 = vld [vmem:[#allocation10 + $0x598] sm:$0xff] }
 0x4ac   :  { %v10939_v40 = vpack.c.bf16 %v2919_v0, %v2913_v1  ;;  %v3305_v1 = vld [vmem:[#allocation10] sm:$0xff]  ;;  %v3311_v0 = vld [vmem:[#allocation10 + $0x30] sm:$0xff] }
 0x4ad   :  { %12629 = vst [vmem:[#allocation71_spill] sm:$0xff] %v10924_v20 }
 0x4ae   :  { %7712 = vmatpush1.bf16.msra.mxu1 %v10912_v43  ;;  %v2894_v43 = vld [vmem:[#allocation10 + $0x4d0] sm:$0xff]  ;;  %12634 = vst [vmem:[#allocation76_spill] sm:$0xff] %v10939_v40 }
 0x4af   :  { %7714 = vmatprep.subr.bf16.mxu1 %v10915_v5  ;;  %v10930_v35 = vpack.c.bf16 %v2894_v43, %v2888_v24  ;;  %v2900_v5 = vld [vmem:[#allocation10 + $0x500] sm:$0xff]  ;;  %v2925_v24 = vld [vmem:[#allocation10 + $0x5c8] sm:$0xff]  ;;  %v2931_v43 = vld [vmem:[#allocation10 + $0x5f8] sm:$0xff] }
 0x4b0   :  { %v10945_v3 = vpack.c.bf16 %v2931_v43, %v2925_v24  ;;  %v3308_v24 = vld [vmem:[#allocation10 + $0x18] sm:$0xff]  ;;  %v10957_v43 = vpack.c.bf16 %v3311_v0, %v3305_v1  ;;  %v3323_v1 = vld [vmem:[#allocation10 + $0x90] sm:$0xff] }
 0x4b1   :  { %12631 = vst [vmem:[#allocation73_spill] sm:$0xff] %v10930_v35  ;;  %v3320_v0 = vld [vmem:[#allocation10 + $0x78] sm:$0xff] }
 0x4b2   :  { %7716 = vmatpush1.bf16.msra.mxu1 %v10918_v39  ;;  %v2906_v39 = vld [vmem:[#allocation10 + $0x530] sm:$0xff]  ;;  %12636 = vst [vmem:[#allocation78_spill] sm:$0xff] %v10945_v3  ;;  %12639 = vst [vmem:[#allocation81_spill] sm:$0xff] %v10957_v43 }
 0x4b3   :  { %7718 = vmatprep.subr.bf16.mxu1 %v10921_v29  ;;  %v10936_v19 = vpack.c.bf16 %v2906_v39, %v2900_v5  ;;  %v2912_v29 = vld [vmem:[#allocation10 + $0x560] sm:$0xff]  ;;  %v3306_v39 = vld [vmem:[#allocation10 + $0x8] sm:$0xff] }
 0x4b5   :  { %12633 = vst [vmem:[#allocation75_spill] sm:$0xff] %v10936_v19 }
 0x4b6   :  { %7720 = vmatpush1.bf16.msra.mxu1 %v10924_v20  ;;  %v2918_v20 = vld [vmem:[#allocation10 + $0x590] sm:$0xff] }
 0x4b7   :  { %7722 = vmatprep.subr.bf16.mxu1 %v10927_v23  ;;  %v10942_v50 = vpack.c.bf16 %v2918_v20, %v2912_v29  ;;  %v2924_v23 = vld [vmem:[#allocation10 + $0x5c0] sm:$0xff]  ;;  %v3312_v29 = vld [vmem:[#allocation10 + $0x38] sm:$0xff] }
 0x4b8   :  { %v10955_v20 = vpack.c.bf16 %v3312_v29, %v3306_v39  ;;  %v3317_v29 = vld [vmem:[#allocation10 + $0x60] sm:$0xff] }
 0x4b9   :  { %12635 = vst [vmem:[#allocation77_spill] sm:$0xff] %v10942_v50 }
 0x4ba   :  { %7724 = vmatpush1.bf16.msra.mxu1 %v10930_v35  ;;  %v2930_v35 = vld [vmem:[#allocation10 + $0x5f0] sm:$0xff]  ;;  %12638 = vst [vmem:[#allocation80_spill] sm:$0xff] %v10955_v20  ;;  %7738 = vmatprep.subr.bf16.mxu0 %v10955_v20  ;;  %v3326_v20 = vld [vmem:[#allocation10 + $0xa8] sm:$0xff] }
 0x4bb   :  { %7726 = vmatprep.subr.bf16.mxu1 %v10933_v12  ;;  %v10948_v5 = vpack.c.bf16 %v2930_v35, %v2924_v23  ;;  %v3314_v23 = vld [vmem:[#allocation10 + $0x48] sm:$0xff]  ;;  %v3307_v35 = vld [vmem:[#allocation10 + $0x10] sm:$0xff]  ;;  %7740 = vmatpush1.bf16.msra.mxu0 %v10957_v43  ;;  %v10969_v12 = vpack.c.bf16 %v3323_v1, %v3317_v29  ;;  %v3332_v1 = vld [vmem:[#allocation10 + $0xd8] sm:$0xff] }
 0x4bc   :  { %v3335_v29 = vld [vmem:[#allocation10 + $0xf0] sm:$0xff] }
 0x4bd   :  { %12637 = vst [vmem:[#allocation79_spill] sm:$0xff] %v10948_v5  ;;  %12641 = vst [vmem:[#allocation83_spill] sm:$0xff] %v10969_v12  ;;  %v10981_v22 = vpack.c.bf16 %v3335_v29, %v3329_v18  ;;  %v3347_v18 = vld [vmem:[#allocation10 + $0x150] sm:$0xff]  ;;  %v3344_v29 = vld [vmem:[#allocation10 + $0x138] sm:$0xff] }
 0x4be   :  { %7728 = vmatpush1.bf16.msra.mxu1 %v10936_v19  ;;  %v3324_v19 = vld [vmem:[#allocation10 + $0x98] sm:$0xff]  ;;  %v10993_v53 = vpack.c.bf16 %v3347_v18, %v3341_v30  ;;  %v3362_v30 = vld [vmem:[#allocation10 + $0x1c8] sm:$0xff] }
 0x4bf   :  { %7730 = vmatprep.subr.bf16.mxu1 %v10939_v40  ;;  %v3318_v40 = vld [vmem:[#allocation10 + $0x68] sm:$0xff]  ;;  %12643 = vst [vmem:[#allocation85_spill] sm:$0xff] %v10981_v22 }
 0x4c0   :  { %v10966_v39 = vpack.c.bf16 %v3324_v19, %v3318_v40  ;;  %v3330_v19 = vld [vmem:[#allocation10 + $0xc8] sm:$0xff]  ;;  %v3336_v40 = vld [vmem:[#allocation10 + $0xf8] sm:$0xff]  ;;  %12645 = vst [vmem:[#allocation87_spill] sm:$0xff] %v10993_v53 }
 0x4c1   :  { %v10978_v43 = vpack.c.bf16 %v3336_v40, %v3330_v19  ;;  %v3342_v19 = vld [vmem:[#allocation10 + $0x128] sm:$0xff]  ;;  %v3348_v40 = vld [vmem:[#allocation10 + $0x158] sm:$0xff] }
 0x4c2   :  { %7732 = vmatpush1.bf16.msra.mxu1 %v10942_v50  ;;  %12640 = vst [vmem:[#allocation82_spill] sm:$0xff] %v10966_v39  ;;  %7742 = vmatprep.subr.bf16.mxu0 %v10966_v39  ;;  %v3338_v39 = vld [vmem:[#allocation10 + $0x108] sm:$0xff] }
 0x4c3   :  { %7734 = vmatprep.subr.bf16.mxu1 %v10945_v3  ;;  %v3313_v3 = vld [vmem:[#allocation10 + $0x40] sm:$0xff]  ;;  %7744 = vmatpush1.bf16.msra.mxu0 %v10969_v12  ;;  %12642 = vst [vmem:[#allocation84_spill] sm:$0xff] %v10978_v43  ;;  %v10990_v12 = vpack.c.bf16 %v3348_v40, %v3342_v19 }
 0x4c4   :  { %v10962_v50 = vpack.c.bf16 %v3313_v3, %v3307_v35  ;;  %v10972_v3 = vpack.c.bf16 %v3326_v20, %v3320_v0  ;;  %v3331_v20 = vld [vmem:[#allocation10 + $0xd0] sm:$0xff]  ;;  %v3337_v0 = vld [vmem:[#allocation10 + $0x100] sm:$0xff]  ;;  %7746 = vmatprep.subr.bf16.mxu0 %v10978_v43  ;;  %v3350_v43 = vld [vmem:[#allocation10 + $0x168] sm:$0xff] }
 0x4c5   :  { %v3353_v19 = vld [vmem:[#allocation10 + $0x180] sm:$0xff] }
 0x4c6   :  { %7736 = vmatpush1.bf16.msra.mxu1 %v10948_v5  ;;  %v10960_v5 = vpack.c.bf16 %v3314_v23, %v3308_v24  ;;  %v3319_v24 = vld [vmem:[#allocation10 + $0x70] sm:$0xff]  ;;  %v3325_v23 = vld [vmem:[#allocation10 + $0xa0] sm:$0xff]  ;;  %v11004_v18 = vpack.c.bf16 %v3359_v34, %v3353_v19 }
 0x4c7   :  { %v10974_v35 = vpack.c.bf16 %v3325_v23, %v3319_v24  ;;  %v10984_v24 = vpack.c.bf16 %v3338_v39, %v3332_v1  ;;  %v10986_v23 = vpack.c.bf16 %v3337_v0, %v3331_v20  ;;  %7748 = vmatpush1.bf16.msra.mxu0 %v10981_v22  ;;  %v3343_v39 = vld [vmem:[#allocation10 + $0x130] sm:$0xff]  ;;  %v3349_v1 = vld [vmem:[#allocation10 + $0x160] sm:$0xff]  ;;  %v10996_v20 = vpack.c.bf16 %v3350_v43, %v3344_v29  ;;  %v3354_v22 = vld [vmem:[#allocation10 + $0x188] sm:$0xff] }
 0x4c8   :  { %7802 = vmatprep.subr.bf16.mxu1 %v10960_v5  ;;  %7750 = vmatprep.subr.bf16.mxu0 %v10990_v12  ;;  %v10998_v0 = vpack.c.bf16 %v3349_v1, %v3343_v39  ;;  %v11001_v40 = vpack.c.bf16 %v3360_v17, %v3354_v22  ;;  %v3366_v43 = vld [vmem:[#allocation10 + $0x1e8] sm:$0xff]  ;;  %v3372_v29 = vld [vmem:[#allocation10 + $0x218] sm:$0xff]  ;;  %v3365_v39 = vld [vmem:[#allocation10 + $0x1e0] sm:$0xff] }
 0x4c9   :  { %3183 = vmatmul.mubr.f32.vlgmr.msra.gmra.mrb[48].mxu1 %v10836_v6  ;;  %12644 = vst [vmem:[#allocation86_spill] sm:$0xff] %v10986_v23  ;;  %v11010_v1 = vpack.c.bf16 %v3372_v29, %v3366_v43  ;;  %v3371_v17 = vld [vmem:[#allocation10 + $0x210] sm:$0xff]  ;;  %v3378_v22 = vld [vmem:[#allocation10 + $0x248] sm:$0xff]  ;;  %v3377_v19 = vld [vmem:[#allocation10 + $0x240] sm:$0xff] }
 0x4ca   :  { %3188 = vmatprep.mubr.f32.mxu1 %v10855_v44  ;;  %7804 = vmatpush1.bf16.msra.mxu1 %v10962_v50  ;;  %12646 = vst [vmem:[#allocation88_spill] sm:$0xff] %v11001_v40  ;;  %v11014_v34 = vpack.c.bf16 %v3371_v17, %v3365_v39  ;;  %v3396_v43 = vld [vmem:[#allocation10 + $0x2d8] sm:$0xff]  ;;  %v3389_v17 = vld [vmem:[#allocation10 + $0x2a0] sm:$0xff] }
 0x4cb   :  { %7806 = vmatprep.subr.bf16.mxu1 %v10972_v3  ;;  %7752 = vmatpush1.bf16.msra.mxu0 %v10993_v53  ;;  %12647 = vst [vmem:[#allocation89_spill] sm:$0xff] %v11010_v1  ;;  %v3384_v53 = vld [vmem:[#allocation10 + $0x278] sm:$0xff] }
 0x4cc   :  { %7754 = vmatprep.subr.bf16.mxu0 %v11001_v40  ;;  %v3390_v40 = vld [vmem:[#allocation10 + $0x2a8] sm:$0xff] }
 0x4cd   :  { %3189 = vmatmul.mubr.f32.gmra.mrb[50].mxu1 %v10852_v15  ;;  %v11025_v39 = vpack.c.bf16 %v3396_v43, %v3390_v40  ;;  %v3414_v40 = vld [vmem:[#allocation10 + $0x368] sm:$0xff]  ;;  %v3420_v43 = vld [vmem:[#allocation10 + $0x398] sm:$0xff] }
 0x4ce   :  { %7808 = vmatpush1.bf16.msra.mxu1 %v10974_v35 }
 0x4cf   :  { %7810 = vmatprep.subr.bf16.mxu1 %v10984_v24  ;;  %7756 = vmatpush1.bf16.msra.mxu0 %v11004_v18 }
 0x4d0   :  { %7758 = vmatprep.subr.bf16.mxu0 %v11010_v1  ;;  %v3395_v1 = vld [vmem:[#allocation10 + $0x2d0] sm:$0xff] }
 0x4d2   :  { %7812 = vmatpush1.bf16.msra.mxu1 %v10986_v23  ;;  %v3356_v23 = vld [vmem:[#allocation10 + $0x198] sm:$0xff] }
 0x4d3   :  { %7814 = vmatprep.subr.bf16.mxu1 %v10996_v20  ;;  %v11006_v21 = vpack.c.bf16 %v3362_v30, %v3356_v23  ;;  %v11017_v23 = vpack.c.bf16 %v3384_v53, %v3378_v22  ;;  %v3383_v30 = vld [vmem:[#allocation10 + $0x270] sm:$0xff]  ;;  %7760 = vmatpush1.bf16.msra.mxu0 %v11014_v34  ;;  %v3402_v53 = vld [vmem:[#allocation10 + $0x308] sm:$0xff]  ;;  %v3408_v22 = vld [vmem:[#allocation10 + $0x338] sm:$0xff] }
 0x4d4   :  { %v11022_v29 = vpack.c.bf16 %v3383_v30, %v3377_v19  ;;  %v3401_v19 = vld [vmem:[#allocation10 + $0x300] sm:$0xff]  ;;  %v3407_v30 = vld [vmem:[#allocation10 + $0x330] sm:$0xff] }
 0x4d5   :  { %7762 = vmatprep.subr.bf16.mxu0 %v11017_v23 }
 0x4d6   :  { %7816 = vmatpush1.bf16.msra.mxu1 %v10998_v0 }
 0x4d7   :  { %7818 = vmatprep.subr.bf16.mxu1 %v11006_v21  ;;  %7764 = vmatpush1.bf16.msra.mxu0 %v11022_v29 }
 0x4d8   :  { %7766 = vmatprep.subr.bf16.mxu0 %v11025_v39 }
 0x4da   :  { %7820 = vmatpush1.bf16.msra.mxu1 %v10724_v32  ;;  %v11030_v32 = vpack.c.bf16 %v3395_v1, %v3389_v17  ;;  %v3413_v1 = vld [vmem:[#allocation10 + $0x360] sm:$0xff]  ;;  %v3419_v17 = vld [vmem:[#allocation10 + $0x390] sm:$0xff] }
 0x4db   :  { %7822 = vmatprep.subr.bf16.mxu1 %v10726_v11  ;;  %v11033_v11 = vpack.c.bf16 %v3408_v22, %v3402_v53  ;;  %v3426_v53 = vld [vmem:[#allocation10 + $0x3c8] sm:$0xff]  ;;  %v3432_v22 = vld [vmem:[#allocation10 + $0x3f8] sm:$0xff] }
 0x4dc   :  { %7768 = vmatpush1.bf16.msra.mxu0 %v11030_v32 }
 0x4dd   :  { %7770 = vmatprep.subr.bf16.mxu0 %v11033_v11 }
 0x4de   :  { %7824 = vmatpush1.bf16.msra.mxu1 %v10729_v28  ;;  %v11038_v28 = vpack.c.bf16 %v3407_v30, %v3401_v19 }
 0x4df   :  { %7826 = vmatprep.subr.bf16.mxu1 %v10732_v8  ;;  %v11041_v8 = vpack.c.bf16 %v3420_v43, %v3414_v40  ;;  %v3480_v40 = vld [vmem:[#allocation10 + $0x578] sm:$0xff]  ;;  %v3473_v43 = vld [vmem:[#allocation10 + $0x540] sm:$0xff] }
 0x4e0   :  { %7772 = vmatpush1.bf16.msra.mxu0 %v11038_v28 }
 0x4e1   :  { %7774 = vmatprep.subr.bf16.mxu0 %v11041_v8 }
 0x4e2   :  { %7828 = vmatpush1.bf16.msra.mxu1 %v10735_v37  ;;  %v11046_v37 = vpack.c.bf16 %v3419_v17, %v3413_v1  ;;  %v3486_v1 = vld [vmem:[#allocation10 + $0x5a8] sm:$0xff]  ;;  %v3492_v17 = vld [vmem:[#allocation10 + $0x5d8] sm:$0xff] }
 0x4e3   :  { %7830 = vmatprep.subr.bf16.mxu1 %v10738_v31  ;;  %v11049_v31 = vpack.c.bf16 %v3432_v22, %v3426_v53  ;;  %v11082_v22 = vpack.c.bf16 %v3492_v17, %v3486_v1 }
 0x4e4   :  { %7776 = vmatpush1.bf16.msra.mxu0 %v11046_v37 }
 0x4e5   :  { %7778 = vmatprep.subr.bf16.mxu0 %v11049_v31  ;;  %12652 = vst [vmem:[#allocation95_spill] sm:$0xff] %v11082_v22 }
 0x4e6   :  { %7832 = vmatpush1.bf16.msra.mxu1 %v10741_v54  ;;  %v3438_v54 = vld [vmem:[#allocation10 + $0x428] sm:$0xff] }
 0x4e7   :  { %7834 = vmatprep.subr.bf16.mxu1 %v10744_v49  ;;  %v3444_v49 = vld [vmem:[#allocation10 + $0x458] sm:$0xff] }
 0x4e8   :  { %7780 = vmatpush1.bf16.msra.mxu0 %v10762_v4  ;;  %v11058_v19 = vpack.c.bf16 %v3444_v49, %v3438_v54  ;;  %v3461_v4 = vld [vmem:[#allocation10 + $0x4e0] sm:$0xff]  ;;  %v3491_v54 = vld [vmem:[#allocation10 + $0x5d0] sm:$0xff]  ;;  %v12654_v49 = vld [vmem:[#allocation56_spill] sm:$0xff] }
 0x4ea   :  { %7836 = vmatpush1.bf16.msra.mxu1 %v10747_v26  ;;  %7782 = vmatprep.subr.bf16.mxu0 %v11058_v19  ;;  %v3450_v26 = vld [vmem:[#allocation10 + $0x488] sm:$0xff] }
 0x4eb   :  { %7838 = vmatprep.subr.bf16.mxu1 %v10750_v9  ;;  %v3456_v9 = vld [vmem:[#allocation10 + $0x4b8] sm:$0xff] }
 0x4ec   :  { %7784 = vmatpush1.bf16.msra.mxu0 %v10772_v2  ;;  %v11064_v30 = vpack.c.bf16 %v3456_v9, %v3450_v26 }
 0x4ee   :  { %7840 = vmatpush1.bf16.msra.mxu1 %v10753_v58  ;;  %7786 = vmatprep.subr.bf16.mxu0 %v11064_v30  ;;  %v3462_v58 = vld [vmem:[#allocation10 + $0x4e8] sm:$0xff] }
 0x4ef   :  { %7842 = vmatprep.subr.bf16.mxu1 %v10756_v13  ;;  %v3468_v13 = vld [vmem:[#allocation10 + $0x518] sm:$0xff] }
 0x4f0   :  { %7788 = vmatpush1.bf16.msra.mxu0 %v10782_v60  ;;  %v3479_v60 = vld [vmem:[#allocation10 + $0x570] sm:$0xff] }
 0x4f1   :  { %v11080_v53 = vpack.c.bf16 %v3479_v60, %v3473_v43  ;;  %v12657_v43 = vld [vmem:[#allocation55_spill] sm:$0xff] }
 0x4f2   :  { %7844 = vmatpush1.bf16.msra.mxu1 %v10760_v46  ;;  %v11070_v46 = vpack.c.bf16 %v3468_v13, %v3462_v58 }
 0x4f3   :  { %7846 = vmatprep.subr.bf16.mxu1 %v10766_v47  ;;  %v3467_v47 = vld [vmem:[#allocation10 + $0x510] sm:$0xff]  ;;  %12651 = vst [vmem:[#allocation94_spill] sm:$0xff] %v11080_v53 }
 0x4f4   :  { %12648 = vst [vmem:[#allocation90_spill] sm:$0xff] %v11070_v46  ;;  %v11073_v2 = vpack.c.bf16 %v3467_v47, %v3461_v4  ;;  %7790 = vmatprep.subr.bf16.mxu0 %v11070_v46 }
 0x4f6   :  { %7848 = vmatpush1.bf16.msra.mxu1 %v10769_v48  ;;  %12649 = vst [vmem:[#allocation91_spill] sm:$0xff] %v11073_v2  ;;  %v3474_v48 = vld [vmem:[#allocation10 + $0x548] sm:$0xff]  ;;  %7792 = vmatpush1.bf16.msra.mxu0 %v11073_v2 }
 0x4f7   :  { %7850 = vmatprep.subr.bf16.mxu1 %v10776_v59  ;;  %v11078_v59 = vpack.c.bf16 %v3480_v40, %v3474_v48  ;;  %v12656_v40 = vld [vmem:[#allocation50_spill] sm:$0xff] }
 0x4f9   :  { %12650 = vst [vmem:[#allocation93_spill] sm:$0xff] %v11078_v59  ;;  %7794 = vmatprep.subr.bf16.mxu0 %v11078_v59 }
 0x4fa   :  { %7852 = vmatpush1.bf16.msra.mxu1 %v10779_v63  ;;  %v3485_v63 = vld [vmem:[#allocation10 + $0x5a0] sm:$0xff]  ;;  %7796 = vmatpush1.bf16.msra.mxu0 %v11080_v53 }
 0x4fb   :  { %7854 = vmatprep.subr.bf16.mxu1 %v10786_v61  ;;  %v11088_v61 = vpack.c.bf16 %v3491_v54, %v3485_v63  ;;  %7798 = vmatprep.subr.bf16.mxu0 %v11082_v22  ;;  %v12658_v63 = vld [vmem:[#allocation51_spill] sm:$0xff] }
 0x4fd   :  { %12653 = vst [vmem:[#allocation96_spill] sm:$0xff] %v11088_v61 }
 0x4fe   :  { %7856 = vmatpush1.bf16.msra.mxu1 %v10789_v16  ;;  %7800 = vmatpush1.bf16.msra.mxu0 %v11088_v61  ;;  %v12659_v61 = vld [vmem:[#allocation53_spill] sm:$0xff] }
 0x4ff   :  { %7858 = vmatprep.subr.bf16.mxu1 %v10793_v10  ;;  %7866 = vmatprep.subr.bf16.mxu0 %v10810_v45 }
 0x502   :  { %7860 = vmatpush1.bf16.msra.mxu1 %v10796_v38  ;;  %v2932_v38 = vld [vmem:[%s12272_s5] sm:$0x3f] }
 0x503   :  { %7862 = vmatprep.subr.bf16.mxu1 %v10798_v51  ;;  %v12655_v51 = vld [vmem:[#allocation49_spill] sm:$0xff]  ;;  %v2941_v45 = vrot.slane %v2932_v38, %v12656_v40  ;;  %v2945_v54 = vrot.slane %v2932_v38, %v12658_v63  ;;  %v2949_v22 = vrot.slane %v2932_v38, %v12659_v61 }
 0x504   :  { %v2937_v48 = vrot.slane %v2932_v38, %v12655_v51 }
 0x505   :  { %v8993_v46 = vadd.f32 %v2945_v54, %v12554_v7  ;;  %v8995_v51 = vadd.f32 %v2949_v22, %v12555_v25 }
 0x506   :  { %7864 = vmatpush1.bf16.msra.mxu1 %v12654_v49  ;;  %v8913_v60 = vadd.f32 %v2937_v48, %v12657_v43 }
 0x507   :  { %7994 = vmatprep.subr.bf16.mxu1 %v10960_v5  ;;  %v8915_v5 = vadd.f32 %v2941_v45, %v10303_v56 }
 0x55c   :  { %v3030_v16 = vpop.f32.mrb[12].mxu0  ;;  %v3107_v10 = vpop.f32.mrb[12].mxu1 }
 0x55d   :  { %v3032_v26 = vpop.f32.mrb[13].mxu0  ;;  %v3109_v9 = vpop.f32.mrb[13].mxu1  ;;  %v8914_v1 = vadd.f32 %v8913_v60, %v3030_v16  ;;  %v8994_v43 = vadd.f32 %v8993_v46, %v3107_v10 }
 0x55e   :  { %v8916_v17 = vadd.f32 %v8915_v5, %v3032_v26  ;;  %v8996_v45 = vadd.f32 %v8995_v51, %v3109_v9 }
 0x55f   :  { %v6721_v49 = vmul.f32 -1.442695, %v8914_v1  ;;  %v6725_v1 = vmul.f32 -1.442695, %v8994_v43 }
 0x560   :  { %v3036_v58 = vpop.f32.mrb[14].mxu0  ;;  %v3113_v13 = vpop.f32.mrb[14].mxu1  ;;  %v6722_v59 = vmul.f32 -1.442695, %v8916_v17  ;;  %v6726_v63 = vmul.f32 -1.442695, %v8996_v45 }
 0x561   :  { %v3038_v4 = vpop.f32.mrb[15].mxu0  ;;  %v3115_v47 = vpop.f32.mrb[15].mxu1  ;;  %v8918_v53 = vadd.f32 %v8913_v60, %v3036_v58  ;;  %9258 = vpow2.f32 %v6721_v49  ;;  %v8998_v16 = vadd.f32 %v8993_v46, %v3113_v13  ;;  %v2953_v13 = vrot.slane %v2932_v38, %v10329_v57 }
 0x562   :  { %v8920_v2 = vadd.f32 %v8915_v5, %v3038_v4  ;;  %9260 = vpow2.f32 %v6722_v59  ;;  %v9000_v26 = vadd.f32 %v8995_v51, %v3115_v47  ;;  %v2957_v51 = vrot.slane %v2932_v38, %v10332_v62 }
 0x563   :  { %v6723_v40 = vmul.f32 -1.442695, %v8918_v53  ;;  %v6727_v61 = vmul.f32 -1.442695, %v8998_v16 }
 0x564   :  { %v6724_v48 = vmul.f32 -1.442695, %v8920_v2  ;;  %v6728_v60 = vmul.f32 -1.442695, %v9000_v26 }
 0x565   :  { %9262 = vpow2.f32 %v6723_v40 }
 0x566   :  { %9264 = vpow2.f32 %v6724_v48 }
 0x567   :  { %9266 = vpow2.f32 %v6725_v1  ;;  %v12660_v1 = vld [vmem:[#allocation25_spill] sm:$0xff] }
 0x568   :  { %9268 = vpow2.f32 %v6726_v63 }
 0x569   :  { %9270 = vpow2.f32 %v6727_v61 }
 0x56a   :  { %9272 = vpow2.f32 %v6728_v60 }
 0x56b   :  { %v9259_v58 = vpop.eup %9258 }
 0x56c   :  { %v9261_v4 = vpop.eup %9260  ;;  %v3211_v5 = vadd.f32 1.0, %v9259_v58  ;;  %v828_v58 = vadd.f32 %v12660_v1, %v10338_v14 }
 0x56d   :  { %v3212_v53 = vadd.f32 1.0, %v9261_v4  ;;  %v12661_v4 = vld [vmem:[#allocation26_spill] sm:$0xff] }
 0x56e   :  { %9274 = vrcp.f32 %v3211_v5  ;;  %v830_v5 = vadd.f32 %v12661_v4, %v10343_v42 }
 0x56f   :  { %v9263_v22 = vpop.eup %9262  ;;  %9276 = vrcp.f32 %v3212_v53 }
 0x570   :  { %v9265_v2 = vpop.eup %9264  ;;  %v3213_v59 = vadd.f32 1.0, %v9263_v22 }
 0x571   :  { %v3214_v46 = vadd.f32 1.0, %v9265_v2  ;;  %v9267_v10 = vpop.eup %9266 }
 0x572   :  { %9278 = vrcp.f32 %v3213_v59  ;;  %v9269_v9 = vpop.eup %9268  ;;  %v3239_v43 = vadd.f32 1.0, %v9267_v10 }
 0x573   :  { %9280 = vrcp.f32 %v3214_v46  ;;  %v9271_v47 = vpop.eup %9270  ;;  %v3240_v61 = vadd.f32 1.0, %v9269_v9 }
 0x574   :  { %v9273_v40 = vpop.eup %9272  ;;  %v3241_v63 = vadd.f32 1.0, %v9271_v47  ;;  %9282 = vrcp.f32 %v3239_v43 }
 0x575   :  { %v3242_v45 = vadd.f32 1.0, %v9273_v40  ;;  %9284 = vrcp.f32 %v3240_v61  ;;  %v12662_v40 = vld [vmem:[#allocation27_spill] sm:$0xff] }
 0x576   :  { %9286 = vrcp.f32 %v3241_v63 }
 0x577   :  { %9288 = vrcp.f32 %v3242_v45 }
 0x578   :  { %v9275_v48 = vpop.eup %9274 }
 0x579   :  { %v9277_v26 = vpop.eup %9276 }
 0x57c   :  { %v9279_v46 = vpop.eup %9278 }
 0x57d   :  { %v9281_v47 = vpop.eup %9280 }
 0x59c   :  { %v3184_v17 = vpop.f32.mrb[48].mxu1 }
 0x59d   :  { %v3185_v54 = vadd.f32 %v3184_v17, %v2953_v13  ;;  %v3186_v49 = vpop.f32.mrb[49].mxu1  ;;  %v834_v17 = vadd.f32 %v12662_v40, %v10338_v14 }
 0x59e   :  { %v3187_v16 = vadd.f32 %v3186_v49, %v2957_v51 }
 0x59f   :  { %v3251_v60 = vmul.f32 %v9275_v48, %v3185_v54  ;;  %v12663_v54 = vld [vmem:[#allocation28_spill] sm:$0xff] }
 0x5a0   :  { %v3252_v38 = vmul.f32 %v9277_v26, %v3187_v16  ;;  %v3190_v22 = vpop.f32.mrb[50].mxu1  ;;  %v836_v49 = vadd.f32 %v12663_v54, %v10343_v42  ;;  %v12676_v54 = vld [vmem:[#allocation65_spill] sm:$0xff] }
 0x5a1   :  { %v3255_v53 = vadd.f32 %v3251_v60, %v828_v58  ;;  %v3191_v2 = vadd.f32 %v3190_v22, %v2953_v13  ;;  %v3192_v59 = vpop.f32.mrb[51].mxu1  ;;  %v9283_v13 = vpop.eup %9282 }
 0x5a2   :  { %v3256_v10 = vadd.f32 %v3252_v38, %v830_v5  ;;  %v3193_v9 = vadd.f32 %v3192_v59, %v2957_v51  ;;  %v9285_v16 = vpop.eup %9284  ;;  %v3263_v51 = vsub.f32 1.0, %v9283_v13  ;;  %v3271_v5 = vmul.f32 %v9283_v13, %v10836_v6  ;;  %v12683_v13 = vld [vmem:[#allocation72_spill] sm:$0xff] }
 0x5a3   :  { %9290 = vtanh.f32 %v3255_v53  ;;  %v3253_v43 = vmul.f32 %v9279_v46, %v3191_v2  ;;  %v9287_v45 = vpop.eup %9286  ;;  %v3264_v58 = vsub.f32 1.0, %v9285_v16  ;;  %v3272_v22 = vmul.f32 %v9285_v16, %v10838_v52  ;;  %v12684_v16 = vld [vmem:[#allocation73_spill] sm:$0xff] }
 0x5a4   :  { %9292 = vtanh.f32 %v3256_v10  ;;  %v3254_v61 = vmul.f32 %v9281_v47, %v3193_v9  ;;  %v9289_v26 = vpop.eup %9288  ;;  %v3265_v53 = vsub.f32 1.0, %v9287_v45  ;;  %v3273_v40 = vmul.f32 %v9287_v45, %v10852_v15  ;;  %v12666_v15 = vld [vmem:[#allocation17_spill] sm:$0xff]  ;;  %v12685_v45 = vld [vmem:[#allocation74_spill] sm:$0xff] }
 0x5a5   :  { %v3257_v48 = vadd.f32 %v3253_v43, %v834_v17  ;;  %v3266_v46 = vsub.f32 1.0, %v9289_v26  ;;  %v3274_v52 = vmul.f32 %v9289_v26, %v10855_v44  ;;  %v12667_v44 = vld [vmem:[#allocation18_spill] sm:$0xff]  ;;  %v12686_v26 = vld [vmem:[#allocation75_spill] sm:$0xff] }
 0x5a6   :  { %v3258_v63 = vadd.f32 %v3254_v61, %v836_v49  ;;  %v12679_v49 = vld [vmem:[#allocation68_spill] sm:$0xff]  ;;  %v12680_v61 = vld [vmem:[#allocation69_spill] sm:$0xff] }
 0x5a7   :  { %9294 = vtanh.f32 %v3257_v48  ;;  %v12681_v48 = vld [vmem:[#allocation70_spill] sm:$0xff] }
 0x5a8   :  { %9296 = vtanh.f32 %v3258_v63  ;;  %v12682_v63 = vld [vmem:[#allocation71_spill] sm:$0xff] }
 0x5ad   :  { %v9291_v1 = vpop.eup %9290 }
 0x5ae   :  { %v9293_v60 = vpop.eup %9292  ;;  %v3267_v4 = vmul.f32 %v9291_v1, %v3263_v51  ;;  %v12687_v51 = vld [vmem:[#allocation76_spill] sm:$0xff]  ;;  %v12688_v1 = vld [vmem:[#allocation77_spill] sm:$0xff] }
 0x5af   :  { %v3268_v38 = vmul.f32 %v9293_v60, %v3264_v58  ;;  %v12689_v58 = vld [vmem:[#allocation78_spill] sm:$0xff]  ;;  %v12690_v60 = vld [vmem:[#allocation79_spill] sm:$0xff] }
 0x5b0   :  { %v11120_v2 = vadd.f32 %v3271_v5, %v3267_v4  ;;  %v12691_v4 = vld [vmem:[#allocation80_spill] sm:$0xff]  ;;  %v12692_v5 = vld [vmem:[#allocation81_spill] sm:$0xff] }
 0x5b1   :  { %v9295_v59 = vpop.eup %9294  ;;  %v11122_v10 = vadd.f32 %v3272_v22, %v3268_v38  ;;  %v12693_v38 = vld [vmem:[#allocation82_spill] sm:$0xff]  ;;  %v12694_v22 = vld [vmem:[#allocation83_spill] sm:$0xff] }
 0x5b2   :  { %v9297_v9 = vpop.eup %9296  ;;  %3284 = vst [vmem:[#allocation12 + $0x60] sm:$0xff] %v11120_v2  ;;  %v3269_v47 = vmul.f32 %v9295_v59, %v3265_v53  ;;  %v12695_v53 = vld [vmem:[#allocation84_spill] sm:$0xff]  ;;  %v12696_v59 = vld [vmem:[#allocation85_spill] sm:$0xff] }
 0x5b3   :  { %3285 = vst [vmem:[#allocation12 + $0x68] sm:$0xff] %v11122_v10  ;;  %3593 = vmatprep.mubr.f32.mxu0 %v11122_v10  ;;  %3670 = vmatprep.mubr.f32.mxu1 %v11122_v10  ;;  %v3270_v6 = vmul.f32 %v9297_v9, %v3266_v46  ;;  %v12697_v46 = vld [vmem:[#allocation87_spill] sm:$0xff]  ;;  %v12698_v9 = vld [vmem:[#allocation88_spill] sm:$0xff] }
 0x5b4   :  { %3594 = vmatmul.mubr.f32.vlgmr.msra.gmra.mrb[16].mxu0 %v11120_v2  ;;  %3671 = vmatmul.mubr.f32.vlgmr.msra.gmra.mrb[16].mxu1 %v11120_v2  ;;  %v11132_v17 = vadd.f32 %v3273_v40, %v3269_v47  ;;  %v12699_v47 = vld [vmem:[#allocation89_spill] sm:$0xff]  ;;  %v3932_v40 = vld [vmem:[#allocation10 + $0x1f0] sm:$0xff] }
 0x5b5   :  { %7868 = vmatpush1.bf16.msra.mxu0 %v10840_v41  ;;  %v11135_v43 = vadd.f32 %v3274_v52, %v3270_v6  ;;  %7996 = vmatpush1.bf16.msra.mxu1 %v10962_v50  ;;  %v12664_v41 = vld [vmem:[#allocation58_spill] sm:$0xff]  ;;  %v12670_v50 = vld [vmem:[#allocation60_spill] sm:$0xff] }
 0x5b6   :  { %7870 = vmatprep.subr.bf16.mxu0 %v10843_v33  ;;  %3286 = vst [vmem:[#allocation12 + $0x70] sm:$0xff] %v11132_v17  ;;  %7998 = vmatprep.subr.bf16.mxu1 %v10972_v3  ;;  %v12665_v33 = vld [vmem:[#allocation86_spill] sm:$0xff]  ;;  %v12672_v3 = vld [vmem:[#allocation61_spill] sm:$0xff]  ;;  %v3957_v52 = vld [vmem:[#allocation10 + $0x2b8] sm:$0xff] }
 0x5b7   :  { %3287 = vst [vmem:[#allocation12 + $0x78] sm:$0xff] %v11135_v43  ;;  %3599 = vmatprep.mubr.f32.mxu0 %v11135_v43  ;;  %3676 = vmatprep.mubr.f32.mxu1 %v11135_v43 }
 0x5b8   :  { %3600 = vmatmul.mubr.f32.gmra.mrb[18].mxu0 %v11132_v17  ;;  %3677 = vmatmul.mubr.f32.gmra.mrb[18].mxu1 %v11132_v17 }
 0x5b9   :  { %7872 = vmatpush1.bf16.msra.mxu0 %v10857_v27  ;;  %3747 = vmatprep.mubr.f32.mxu0 %v11122_v10  ;;  %v12668_v27 = vld [vmem:[#allocation19_spill] sm:$0xff] }
 0x5ba   :  { %7874 = vmatprep.subr.bf16.mxu0 %v10861_v36  ;;  %8000 = vmatpush1.bf16.msra.mxu1 %v10974_v35  ;;  %v12669_v36 = vld [vmem:[#allocation20_spill] sm:$0xff]  ;;  %v12673_v35 = vld [vmem:[#allocation62_spill] sm:$0xff] }
 0x5bb   :  { %8002 = vmatprep.subr.bf16.mxu1 %v10984_v24  ;;  %v12674_v24 = vld [vmem:[#allocation63_spill] sm:$0xff] }
 0x5bd   :  { %7876 = vmatpush1.bf16.msra.mxu0 %v10870_v55  ;;  %v12671_v55 = vld [vmem:[#allocation92_spill] sm:$0xff] }
 0x5be   :  { %7878 = vmatprep.subr.bf16.mxu0 %v12664_v41  ;;  %8004 = vmatpush1.bf16.msra.mxu1 %v12665_v33  ;;  %v3963_v41 = vld [vmem:[#allocation10 + $0x2e8] sm:$0xff] }
 0x5bf   :  { %8006 = vmatprep.subr.bf16.mxu1 %v10996_v20  ;;  %v12675_v20 = vld [vmem:[#allocation64_spill] sm:$0xff] }
 0x5c1   :  { %7880 = vmatpush1.bf16.msra.mxu0 %v12666_v15  ;;  %v11220_v15 = vpack.c.bf16 %v3963_v41, %v3957_v52  ;;  %v4028_v41 = vld [vmem:[#allocation10 + $0x4f0] sm:$0xff] }
 0x5c2   :  { %7882 = vmatprep.subr.bf16.mxu0 %v12667_v44  ;;  %8008 = vmatpush1.bf16.msra.mxu1 %v10998_v0  ;;  %v12677_v0 = vld [vmem:[#allocation66_spill] sm:$0xff]  ;;  %v3956_v44 = vld [vmem:[#allocation10 + $0x2b0] sm:$0xff] }
 0x5c3   :  { %8010 = vmatprep.subr.bf16.mxu1 %v11006_v21  ;;  %v12678_v21 = vld [vmem:[#allocation67_spill] sm:$0xff] }
 0x5c5   :  { %7884 = vmatpush1.bf16.msra.mxu0 %v12668_v27  ;;  %v3962_v27 = vld [vmem:[#allocation10 + $0x2e0] sm:$0xff] }
 0x5c6   :  { %7886 = vmatprep.subr.bf16.mxu0 %v12669_v36  ;;  %v3969_v36 = vld [vmem:[#allocation10 + $0x318] sm:$0xff] }
 0x5c9   :  { %7888 = vmatpush1.bf16.msra.mxu0 %v12670_v50  ;;  %v3975_v50 = vld [vmem:[#allocation10 + $0x348] sm:$0xff] }
 0x5ca   :  { %7890 = vmatprep.subr.bf16.mxu0 %v12671_v55  ;;  %v11223_v55 = vpack.c.bf16 %v3962_v27, %v3956_v44  ;;  %v4034_v44 = vld [vmem:[#allocation10 + $0x520] sm:$0xff]  ;;  %v12700_v27 = vld [vmem:[#allocation90_spill] sm:$0xff] }
 0x5cd   :  { %7892 = vmatpush1.bf16.msra.mxu0 %v12672_v3  ;;  %v11226_v3 = vpack.c.bf16 %v3975_v50, %v3969_v36  ;;  %v4041_v36 = vld [vmem:[#allocation10 + $0x558] sm:$0xff]  ;;  %v4047_v50 = vld [vmem:[#allocation10 + $0x588] sm:$0xff] }
 0x5ce   :  { %7894 = vmatprep.subr.bf16.mxu0 %v12673_v35  ;;  %v3968_v35 = vld [vmem:[#allocation10 + $0x310] sm:$0xff] }
 0x5d1   :  { %7896 = vmatpush1.bf16.msra.mxu0 %v12674_v24  ;;  %v3974_v24 = vld [vmem:[#allocation10 + $0x340] sm:$0xff] }
 0x5d2   :  { %7898 = vmatprep.subr.bf16.mxu0 %v12675_v20  ;;  %v3981_v20 = vld [vmem:[#allocation10 + $0x378] sm:$0xff] }
 0x5d5   :  { %7900 = vmatpush1.bf16.msra.mxu0 %v12676_v54  ;;  %v3987_v54 = vld [vmem:[#allocation10 + $0x3a8] sm:$0xff] }
 0x5d6   :  { %7902 = vmatprep.subr.bf16.mxu0 %v12677_v0  ;;  %v11229_v0 = vpack.c.bf16 %v3974_v24, %v3968_v35  ;;  %v4040_v35 = vld [vmem:[#allocation10 + $0x550] sm:$0xff]  ;;  %v11275_v24 = vpack.c.bf16 %v4047_v50, %v4041_v36  ;;  %v12708_v36 = vld [vmem:[#allocation50_spill] sm:$0xff] }
 0x5d9   :  { %7904 = vmatpush1.bf16.msra.mxu0 %v12678_v21  ;;  %v11232_v21 = vpack.c.bf16 %v3987_v54, %v3981_v20  ;;  %v4046_v20 = vld [vmem:[#allocation10 + $0x580] sm:$0xff]  ;;  %v4053_v54 = vld [vmem:[#allocation10 + $0x5b8] sm:$0xff] }
 0x5da   :  { %7906 = vmatprep.subr.bf16.mxu0 %v12679_v49  ;;  %v3980_v49 = vld [vmem:[#allocation10 + $0x370] sm:$0xff] }
 0x5dd   :  { %7908 = vmatpush1.bf16.msra.mxu0 %v12680_v61  ;;  %v3986_v61 = vld [vmem:[#allocation10 + $0x3a0] sm:$0xff] }
 0x5de   :  { %7910 = vmatprep.subr.bf16.mxu0 %v12681_v48  ;;  %v3993_v48 = vld [vmem:[#allocation10 + $0x3d8] sm:$0xff] }
 0x5e1   :  { %7912 = vmatpush1.bf16.msra.mxu0 %v12682_v63  ;;  %v3999_v63 = vld [vmem:[#allocation10 + $0x408] sm:$0xff] }
 0x5e2   :  { %7914 = vmatprep.subr.bf16.mxu0 %v12683_v13  ;;  %v11235_v13 = vpack.c.bf16 %v3986_v61, %v3980_v49  ;;  %v4059_v49 = vld [vmem:[#allocation10 + $0x5e8] sm:$0xff]  ;;  %v12701_v61 = vld [vmem:[#allocation91_spill] sm:$0xff] }
 0x5e5   :  { %7916 = vmatpush1.bf16.msra.mxu0 %v12684_v16  ;;  %v11238_v16 = vpack.c.bf16 %v3999_v63, %v3993_v48  ;;  %v11278_v48 = vpack.c.bf16 %v4046_v20, %v4040_v35  ;;  %v11280_v63 = vpack.c.bf16 %v4059_v49, %v4053_v54  ;;  %v12709_v35 = vld [vmem:[#allocation55_spill] sm:$0xff] }
 0x5e6   :  { %7918 = vmatprep.subr.bf16.mxu0 %v12685_v45  ;;  %v3992_v45 = vld [vmem:[#allocation10 + $0x3d0] sm:$0xff] }
 0x5e9   :  { %7920 = vmatpush1.bf16.msra.mxu0 %v12686_v26  ;;  %v3998_v26 = vld [vmem:[#allocation10 + $0x400] sm:$0xff] }
 0x5ea   :  { %7922 = vmatprep.subr.bf16.mxu0 %v12687_v51  ;;  %v11242_v51 = vpack.c.bf16 %v3998_v26, %v3992_v45  ;;  %v4052_v45 = vld [vmem:[#allocation10 + $0x5b0] sm:$0xff]  ;;  %v4058_v26 = vld [vmem:[#allocation10 + $0x5e0] sm:$0xff] }
 0x5ed   :  { %7924 = vmatpush1.bf16.msra.mxu0 %v12688_v1  ;;  %v3990_v1 = vld [vmem:[#allocation10 + $0x3c0] sm:$0xff] }
 0x5ee   :  { %7926 = vmatprep.subr.bf16.mxu0 %v12689_v58  ;;  %v3996_v58 = vld [vmem:[#allocation10 + $0x3f0] sm:$0xff] }
 0x5f1   :  { %7928 = vmatpush1.bf16.msra.mxu0 %v12690_v60  ;;  %v11244_v60 = vpack.c.bf16 %v3996_v58, %v3990_v1  ;;  %v12702_v1 = vld [vmem:[#allocation93_spill] sm:$0xff]  ;;  %v11285_v58 = vpack.c.bf16 %v4058_v26, %v4052_v45  ;;  %v12710_v45 = vld [vmem:[#allocation51_spill] sm:$0xff] }
 0x5f2   :  { %7930 = vmatprep.subr.bf16.mxu0 %v12691_v4  ;;  %v4005_v4 = vld [vmem:[#allocation10 + $0x438] sm:$0xff] }
 0x5f3   :  { %12703 = vst [vmem:[#allocation97_spill] sm:$0xff] %v11285_v58 }
 0x5f4   :  { %3748 = vmatmul.mubr.f32.vlgmr.msra.gmra.mrb[84].mxu0 %v11120_v2 }
 0x5f5   :  { %3753 = vmatprep.mubr.f32.mxu0 %v11135_v43  ;;  %7932 = vmatpush1.bf16.msra.mxu0 %v12692_v5  ;;  %v4011_v5 = vld [vmem:[#allocation10 + $0x468] sm:$0xff] }
 0x5f6   :  { %7934 = vmatprep.subr.bf16.mxu0 %v12693_v38  ;;  %v11248_v38 = vpack.c.bf16 %v4011_v5, %v4005_v4  ;;  %v12704_v4 = vld [vmem:[#allocation94_spill] sm:$0xff]  ;;  %v12705_v5 = vld [vmem:[#allocation95_spill] sm:$0xff] }
 0x5f8   :  { %3754 = vmatmul.mubr.f32.gmra.mrb[86].mxu0 %v11132_v17 }
 0x5f9   :  { %7936 = vmatpush1.bf16.msra.mxu0 %v12694_v22  ;;  %v4004_v22 = vld [vmem:[#allocation10 + $0x430] sm:$0xff] }
 0x5fa   :  { %7938 = vmatprep.subr.bf16.mxu0 %v12695_v53  ;;  %v4010_v53 = vld [vmem:[#allocation10 + $0x460] sm:$0xff] }
 0x5fd   :  { %7940 = vmatpush1.bf16.msra.mxu0 %v12696_v59  ;;  %v11251_v59 = vpack.c.bf16 %v4010_v53, %v4004_v22  ;;  %v3875_v22 = vld [vmem:[#allocation10 + $0x28] sm:$0xff]  ;;  %v3881_v53 = vld [vmem:[#allocation10 + $0x58] sm:$0xff] }
 0x5fe   :  { %7942 = vmatprep.subr.bf16.mxu0 %v10990_v12  ;;  %v3920_v12 = vld [vmem:[#allocation10 + $0x190] sm:$0xff] }
 0x601   :  { %7944 = vmatpush1.bf16.msra.mxu0 %v12697_v46  ;;  %v4002_v46 = vld [vmem:[#allocation10 + $0x420] sm:$0xff] }
 0x602   :  { %7946 = vmatprep.subr.bf16.mxu0 %v12698_v9  ;;  %v4008_v9 = vld [vmem:[#allocation10 + $0x450] sm:$0xff] }
 0x605   :  { %7948 = vmatpush1.bf16.msra.mxu0 %v11004_v18  ;;  %v3926_v18 = vld [vmem:[#allocation10 + $0x1c0] sm:$0xff] }
 0x606   :  { %7950 = vmatprep.subr.bf16.mxu0 %v12699_v47  ;;  %v11254_v47 = vpack.c.bf16 %v4008_v9, %v4002_v46  ;;  %v12706_v46 = vld [vmem:[#allocation96_spill] sm:$0xff]  ;;  %v11292_v9 = vpack.c.bf16 %v3881_v53, %v3875_v22 }
 0x609   :  { %7952 = vmatpush1.bf16.msra.mxu0 %v11014_v34  ;;  %v3933_v34 = vld [vmem:[#allocation10 + $0x1f8] sm:$0xff] }
 0x60a   :  { %7954 = vmatprep.subr.bf16.mxu0 %v11017_v23  ;;  %v11206_v23 = vpack.c.bf16 %v3926_v18, %v3920_v12  ;;  %v4017_v12 = vld [vmem:[#allocation10 + $0x498] sm:$0xff]  ;;  %v4023_v18 = vld [vmem:[#allocation10 + $0x4c8] sm:$0xff] }
 0x60c   :  { %8012 = vmatpush1.bf16.msra.mxu1 %v11206_v23 }
 0x60d   :  { %7956 = vmatpush1.bf16.msra.mxu0 %v11022_v29  ;;  %v3939_v29 = vld [vmem:[#allocation10 + $0x228] sm:$0xff] }
 0x60e   :  { %7958 = vmatprep.subr.bf16.mxu0 %v11025_v39  ;;  %v3938_v39 = vld [vmem:[#allocation10 + $0x220] sm:$0xff]  ;;  %v11208_v6 = vpack.c.bf16 %v3939_v29, %v3933_v34  ;;  %v11258_v34 = vpack.c.bf16 %v4023_v18, %v4017_v12  ;;  %v4016_v29 = vld [vmem:[#allocation10 + $0x490] sm:$0xff] }
 0x610   :  { %8014 = vmatprep.subr.bf16.mxu1 %v11208_v6 }
 0x611   :  { %7960 = vmatpush1.bf16.msra.mxu0 %v11030_v32  ;;  %v3945_v32 = vld [vmem:[#allocation10 + $0x258] sm:$0xff] }
 0x612   :  { %7962 = vmatprep.subr.bf16.mxu0 %v11033_v11  ;;  %v3951_v11 = vld [vmem:[#allocation10 + $0x288] sm:$0xff] }
 0x615   :  { %7964 = vmatpush1.bf16.msra.mxu0 %v11038_v28  ;;  %v11211_v28 = vpack.c.bf16 %v3938_v39, %v3932_v40  ;;  %v4022_v40 = vld [vmem:[#allocation10 + $0x4c0] sm:$0xff] }
 0x616   :  { %7966 = vmatprep.subr.bf16.mxu0 %v11041_v8  ;;  %v11214_v8 = vpack.c.bf16 %v3951_v11, %v3945_v32  ;;  %v4014_v39 = vld [vmem:[#allocation10 + $0x480] sm:$0xff]  ;;  %v4020_v32 = vld [vmem:[#allocation10 + $0x4b0] sm:$0xff] }
 0x617   :  { %8016 = vmatpush1.bf16.msra.mxu1 %v11211_v28  ;;  %v11264_v11 = vpack.c.bf16 %v4020_v32, %v4014_v39 }
 0x618   :  { %8018 = vmatprep.subr.bf16.mxu1 %v11214_v8 }
 0x619   :  { %7968 = vmatpush1.bf16.msra.mxu0 %v11046_v37  ;;  %v3944_v37 = vld [vmem:[#allocation10 + $0x250] sm:$0xff] }
 0x61a   :  { %7970 = vmatprep.subr.bf16.mxu0 %v11049_v31  ;;  %v3950_v31 = vld [vmem:[#allocation10 + $0x280] sm:$0xff] }
 0x61b   :  { %v11217_v33 = vpack.c.bf16 %v3950_v31, %v3944_v37  ;;  %v4029_v37 = vld [vmem:[#allocation10 + $0x4f8] sm:$0xff]  ;;  %v4035_v31 = vld [vmem:[#allocation10 + $0x528] sm:$0xff] }
 0x61c   :  { %v11268_v52 = vpack.c.bf16 %v4035_v31, %v4029_v37 }
 0x61d   :  { %8020 = vmatpush1.bf16.msra.mxu1 %v11217_v33  ;;  %7972 = vmatpush1.bf16.msra.mxu0 %v11244_v60 }
 0x61e   :  { %8022 = vmatprep.subr.bf16.mxu1 %v11220_v15  ;;  %7974 = vmatprep.subr.bf16.mxu0 %v11058_v19  ;;  %v11261_v19 = vpack.c.bf16 %v4022_v40, %v4016_v29 }
 0x621   :  { %8024 = vmatpush1.bf16.msra.mxu1 %v11223_v55  ;;  %7976 = vmatpush1.bf16.msra.mxu0 %v11254_v47 }
 0x622   :  { %8026 = vmatprep.subr.bf16.mxu1 %v11226_v3  ;;  %7978 = vmatprep.subr.bf16.mxu0 %v11064_v30  ;;  %v11271_v30 = vpack.c.bf16 %v4034_v44, %v4028_v41  ;;  %v3497_v41 = vld [vmem:[%s12272_s5] sm:$0x3f] }
 0x623   :  { %v12707_v44 = vld [vmem:[#allocation49_spill] sm:$0xff]  ;;  %v3506_v50 = vrot.slane %v3497_v41, %v12708_v36  ;;  %v3510_v26 = vrot.slane %v3497_v41, %v12710_v45 }
 0x625   :  { %8028 = vmatpush1.bf16.msra.mxu1 %v11229_v0  ;;  %7980 = vmatpush1.bf16.msra.mxu0 %v11264_v11  ;;  %v8923_v54 = vadd.f32 %v3506_v50, %v10303_v56 }
 0x626   :  { %8030 = vmatprep.subr.bf16.mxu1 %v11232_v21  ;;  %7982 = vmatprep.subr.bf16.mxu0 %v12700_v27  ;;  %v3502_v27 = vrot.slane %v3497_v41, %v12707_v44 }
 0x628   :  { %v8921_v20 = vadd.f32 %v3502_v27, %v12709_v35 }
 0x629   :  { %8032 = vmatpush1.bf16.msra.mxu1 %v11235_v13  ;;  %7984 = vmatpush1.bf16.msra.mxu0 %v12701_v61 }
 0x62a   :  { %8034 = vmatprep.subr.bf16.mxu1 %v11238_v16  ;;  %7986 = vmatprep.subr.bf16.mxu0 %v12702_v1 }
 0x62d   :  { %8036 = vmatpush1.bf16.msra.mxu1 %v11242_v51  ;;  %7988 = vmatpush1.bf16.msra.mxu0 %v12704_v4  ;;  %v12711_v4 = vld [vmem:[#allocation53_spill] sm:$0xff] }
 0x62e   :  { %8038 = vmatprep.subr.bf16.mxu1 %v11248_v38  ;;  %7990 = vmatprep.subr.bf16.mxu0 %v12705_v5  ;;  %v3514_v5 = vrot.slane %v3497_v41, %v12711_v4 }
 0x630   :  { %v9003_v44 = vadd.f32 %v3514_v5, %v12555_v25 }
 0x631   :  { %8040 = vmatpush1.bf16.msra.mxu1 %v11251_v59  ;;  %7992 = vmatpush1.bf16.msra.mxu0 %v12706_v46 }
 0x632   :  { %8042 = vmatprep.subr.bf16.mxu1 %v11258_v34 }
 0x635   :  { %8044 = vmatpush1.bf16.msra.mxu1 %v11261_v19 }
 0x636   :  { %8046 = vmatprep.subr.bf16.mxu1 %v11268_v52 }
 0x639   :  { %8048 = vmatpush1.bf16.msra.mxu1 %v11271_v30 }
 0x63a   :  { %8050 = vmatprep.subr.bf16.mxu1 %v11275_v24 }
 0x63d   :  { %8052 = vmatpush1.bf16.msra.mxu1 %v11278_v48 }
 0x63e   :  { %8054 = vmatprep.subr.bf16.mxu1 %v11280_v63 }
 0x641   :  { %8056 = vmatpush1.bf16.msra.mxu1 %v11285_v58  ;;  %v9001_v58 = vadd.f32 %v3510_v26, %v12554_v7 }
 0x642   :  { %8058 = vmatprep.subr.bf16.mxu1 %v11292_v9 }
 0x687   :  { %v3595_v12 = vpop.f32.mrb[16].mxu0  ;;  %v3672_v18 = vpop.f32.mrb[16].mxu1 }
 0x688   :  { %v3597_v29 = vpop.f32.mrb[17].mxu0  ;;  %v3674_v40 = vpop.f32.mrb[17].mxu1  ;;  %v8922_v49 = vadd.f32 %v8921_v20, %v3595_v12  ;;  %v9002_v35 = vadd.f32 %v9001_v58, %v3672_v18 }
 0x689   :  { %v8924_v61 = vadd.f32 %v8923_v54, %v3597_v29  ;;  %v9004_v50 = vadd.f32 %v9003_v44, %v3674_v40 }
 0x68a   :  { %v6729_v1 = vmul.f32 -1.442695, %v8922_v49  ;;  %v6733_v49 = vmul.f32 -1.442695, %v9002_v35 }
 0x68b   :  { %v3601_v39 = vpop.f32.mrb[18].mxu0  ;;  %v3678_v32 = vpop.f32.mrb[18].mxu1  ;;  %v6730_v53 = vmul.f32 -1.442695, %v8924_v61  ;;  %v6734_v45 = vmul.f32 -1.442695, %v9004_v50 }
 0x68c   :  { %v3603_v37 = vpop.f32.mrb[19].mxu0  ;;  %v3680_v31 = vpop.f32.mrb[19].mxu1  ;;  %v8926_v22 = vadd.f32 %v8921_v20, %v3601_v39  ;;  %9298 = vpow2.f32 %v6729_v1  ;;  %v9006_v12 = vadd.f32 %v9001_v58, %v3678_v32 }
 0x68d   :  { %v8928_v46 = vadd.f32 %v8923_v54, %v3603_v37  ;;  %9300 = vpow2.f32 %v6730_v53  ;;  %v9008_v29 = vadd.f32 %v9003_v44, %v3680_v31  ;;  %v3518_v31 = vrot.slane %v3497_v41, %v10329_v57 }
 0x68e   :  { %v6731_v36 = vmul.f32 -1.442695, %v8926_v22  ;;  %v6735_v4 = vmul.f32 -1.442695, %v9006_v12 }
 0x68f   :  { %v6732_v27 = vmul.f32 -1.442695, %v8928_v46  ;;  %v6736_v20 = vmul.f32 -1.442695, %v9008_v29 }
 0x690   :  { %9302 = vpow2.f32 %v6731_v36  ;;  %v3522_v36 = vrot.slane %v3497_v41, %v10332_v62 }
 0x691   :  { %9304 = vpow2.f32 %v6732_v27 }
 0x692   :  { %9306 = vpow2.f32 %v6733_v49  ;;  %v12712_v49 = vld [vmem:[#allocation29_spill] sm:$0xff] }
 0x693   :  { %9308 = vpow2.f32 %v6734_v45 }
 0x694   :  { %9310 = vpow2.f32 %v6735_v4 }
 0x695   :  { %9312 = vpow2.f32 %v6736_v20 }
 0x696   :  { %v9299_v39 = vpop.eup %9298 }
 0x697   :  { %v9301_v37 = vpop.eup %9300  ;;  %v3776_v54 = vadd.f32 1.0, %v9299_v39  ;;  %v840_v39 = vadd.f32 %v12712_v49, %v10338_v14 }
 0x698   :  { %v3777_v26 = vadd.f32 1.0, %v9301_v37  ;;  %v12713_v37 = vld [vmem:[#allocation30_spill] sm:$0xff] }
 0x699   :  { %9314 = vrcp.f32 %v3776_v54  ;;  %v842_v54 = vadd.f32 %v12713_v37, %v10343_v42 }
 0x69a   :  { %v9303_v61 = vpop.eup %9302  ;;  %9316 = vrcp.f32 %v3777_v26 }
 0x69b   :  { %v9305_v1 = vpop.eup %9304  ;;  %v3778_v18 = vadd.f32 1.0, %v9303_v61 }
 0x69c   :  { %v3779_v58 = vadd.f32 1.0, %v9305_v1  ;;  %v9307_v40 = vpop.eup %9306 }
 0x69d   :  { %9318 = vrcp.f32 %v3778_v18  ;;  %v9309_v32 = vpop.eup %9308  ;;  %v3804_v45 = vadd.f32 1.0, %v9307_v40 }
 0x69e   :  { %9320 = vrcp.f32 %v3779_v58  ;;  %v9311_v44 = vpop.eup %9310  ;;  %v3805_v4 = vadd.f32 1.0, %v9309_v32 }
 0x69f   :  { %v9313_v35 = vpop.eup %9312  ;;  %v3806_v22 = vadd.f32 1.0, %v9311_v44  ;;  %9322 = vrcp.f32 %v3804_v45 }
 0x6a0   :  { %v3807_v50 = vadd.f32 1.0, %v9313_v35  ;;  %9324 = vrcp.f32 %v3805_v4  ;;  %v12714_v35 = vld [vmem:[#allocation31_spill] sm:$0xff] }
 0x6a1   :  { %9326 = vrcp.f32 %v3806_v22 }
 0x6a2   :  { %9328 = vrcp.f32 %v3807_v50 }
 0x6a3   :  { %v9315_v27 = vpop.eup %9314 }
 0x6a4   :  { %v9317_v29 = vpop.eup %9316 }
 0x6a7   :  { %v9319_v58 = vpop.eup %9318 }
 0x6a8   :  { %v9321_v44 = vpop.eup %9320 }
 0x6c7   :  { %v3749_v5 = vpop.f32.mrb[84].mxu0 }
 0x6c8   :  { %v3750_v53 = vadd.f32 %v3749_v5, %v3518_v31  ;;  %v3751_v46 = vpop.f32.mrb[85].mxu0  ;;  %v846_v5 = vadd.f32 %v12714_v35, %v10338_v14 }
 0x6c9   :  { %v3752_v12 = vadd.f32 %v3751_v46, %v3522_v36 }
 0x6ca   :  { %v3816_v20 = vmul.f32 %v9315_v27, %v3750_v53  ;;  %v12715_v53 = vld [vmem:[#allocation32_spill] sm:$0xff] }
 0x6cb   :  { %v3817_v41 = vmul.f32 %v9317_v29, %v3752_v12  ;;  %v3755_v61 = vpop.f32.mrb[86].mxu0  ;;  %v848_v46 = vadd.f32 %v12715_v53, %v10343_v42 }
 0x6cc   :  { %v3820_v26 = vadd.f32 %v3816_v20, %v840_v39  ;;  %v3756_v1 = vadd.f32 %v3755_v61, %v3518_v31  ;;  %v3757_v18 = vpop.f32.mrb[87].mxu0  ;;  %v9323_v31 = vpop.eup %9322  ;;  %v3880_v61 = vld [vmem:[#allocation10 + $0x50] sm:$0xff] }
 0x6cd   :  { %v3821_v40 = vadd.f32 %v3817_v41, %v842_v54  ;;  %v3758_v32 = vadd.f32 %v3757_v18, %v3522_v36  ;;  %v9325_v12 = vpop.eup %9324  ;;  %v3828_v36 = vsub.f32 1.0, %v9323_v31  ;;  %v3836_v54 = vmul.f32 %v9323_v31, %v11120_v2  ;;  %v3874_v41 = vld [vmem:[#allocation10 + $0x20] sm:$0xff]  ;;  %v3887_v18 = vld [vmem:[#allocation10 + $0x88] sm:$0xff] }
 0x6ce   :  { %9330 = vtanh.f32 %v3820_v26  ;;  %v3818_v45 = vmul.f32 %v9319_v58, %v3756_v1  ;;  %v9327_v50 = vpop.eup %9326  ;;  %v3829_v39 = vsub.f32 1.0, %v9325_v12  ;;  %v3837_v1 = vmul.f32 %v9325_v12, %v11122_v10  ;;  %v3893_v58 = vld [vmem:[#allocation10 + $0xb8] sm:$0xff]  ;;  %v3886_v10 = vld [vmem:[#allocation10 + $0x80] sm:$0xff]  ;;  %v3899_v12 = vld [vmem:[#allocation10 + $0xe8] sm:$0xff] }
 0x6cf   :  { %9332 = vtanh.f32 %v3821_v40  ;;  %v3819_v4 = vmul.f32 %v9321_v44, %v3758_v32  ;;  %v9329_v29 = vpop.eup %9328  ;;  %v3830_v40 = vsub.f32 1.0, %v9327_v50  ;;  %v11325_v2 = vpack.c.bf16 %v3893_v58, %v3887_v18  ;;  %v3929_v18 = vld [vmem:[#allocation10 + $0x1d8] sm:$0xff] }
 0x6d0   :  { %v3822_v27 = vadd.f32 %v3818_v45, %v846_v5  ;;  %v3831_v35 = vsub.f32 1.0, %v9329_v29  ;;  %v11322_v45 = vpack.c.bf16 %v3880_v61, %v3874_v41  ;;  %v3839_v31 = vmul.f32 %v9329_v29, %v11135_v43  ;;  %v3898_v43 = vld [vmem:[#allocation10 + $0xe0] sm:$0xff]  ;;  %v3904_v29 = vld [vmem:[#allocation10 + $0x110] sm:$0xff] }
 0x6d1   :  { %v3823_v22 = vadd.f32 %v3819_v4, %v848_v46  ;;  %v3838_v4 = vmul.f32 %v9327_v50, %v11132_v17  ;;  %v3910_v61 = vld [vmem:[#allocation10 + $0x140] sm:$0xff] }
 0x6d2   :  { %9334 = vtanh.f32 %v3822_v27  ;;  %v3892_v27 = vld [vmem:[#allocation10 + $0xb0] sm:$0xff] }
 0x6d3   :  { %9336 = vtanh.f32 %v3823_v22  ;;  %v11339_v50 = vpack.c.bf16 %v3892_v27, %v3886_v10  ;;  %v3934_v27 = vld [vmem:[#allocation10 + $0x200] sm:$0xff] }
 0x6d8   :  { %v9331_v49 = vpop.eup %9330 }
 0x6d9   :  { %v9333_v20 = vpop.eup %9332  ;;  %v3832_v37 = vmul.f32 %v9331_v49, %v3828_v36  ;;  %v3905_v36 = vld [vmem:[#allocation10 + $0x118] sm:$0xff] }
 0x6da   :  { %v3833_v26 = vmul.f32 %v9333_v20, %v3829_v39  ;;  %v11343_v39 = vpack.c.bf16 %v3905_v36, %v3899_v12  ;;  %v3911_v20 = vld [vmem:[#allocation10 + $0x148] sm:$0xff]  ;;  %v3953_v12 = vld [vmem:[#allocation10 + $0x298] sm:$0xff] }
 0x6db   :  { %v11318_v32 = vadd.f32 %v3836_v54, %v3832_v37  ;;  %v3917_v37 = vld [vmem:[#allocation10 + $0x178] sm:$0xff]  ;;  %v11352_v54 = vpack.c.bf16 %v3904_v29, %v3898_v43  ;;  %v3946_v29 = vld [vmem:[#allocation10 + $0x260] sm:$0xff] }
 0x6dc   :  { %v9335_v44 = vpop.eup %9334  ;;  %v11320_v5 = vadd.f32 %v3837_v1, %v3833_v26  ;;  %v11355_v41 = vpack.c.bf16 %v3917_v37, %v3911_v20  ;;  %v3916_v26 = vld [vmem:[#allocation10 + $0x170] sm:$0xff]  ;;  %v3923_v1 = vld [vmem:[#allocation10 + $0x1a8] sm:$0xff] }
 0x6dd   :  { %v9337_v53 = vpop.eup %9336  ;;  %3849 = vst [vmem:[#allocation12 + $0x80] sm:$0xff] %v11318_v32  ;;  %v3834_v46 = vmul.f32 %v9335_v44, %v3830_v40  ;;  %v11358_v58 = vpack.c.bf16 %v3916_v26, %v3910_v61  ;;  %v11361_v40 = vpack.c.bf16 %v3929_v18, %v3923_v1  ;;  %v3922_v44 = vld [vmem:[#allocation10 + $0x1a0] sm:$0xff]  ;;  %v3952_v20 = vld [vmem:[#allocation10 + $0x290] sm:$0xff]  ;;  %v3959_v37 = vld [vmem:[#allocation10 + $0x2c8] sm:$0xff] }
 0x6de   :  { %3850 = vst [vmem:[#allocation12 + $0x88] sm:$0xff] %v11320_v5  ;;  %4158 = vmatprep.mubr.f32.mxu0 %v11320_v5  ;;  %4235 = vmatprep.mubr.f32.mxu1 %v11320_v5  ;;  %v3835_v22 = vmul.f32 %v9337_v53, %v3831_v35  ;;  %12716 = vst [vmem:[#allocation98_spill] sm:$0xff] %v11355_v41  ;;  %v3928_v35 = vld [vmem:[#allocation10 + $0x1d0] sm:$0xff]  ;;  %v3935_v53 = vld [vmem:[#allocation10 + $0x208] sm:$0xff]  ;;  %v11376_v26 = vpack.c.bf16 %v3952_v20, %v3946_v29 }
 0x6df   :  { %4159 = vmatmul.mubr.f32.vlgmr.msra.gmra.mrb[20].mxu0 %v11318_v32  ;;  %4236 = vmatmul.mubr.f32.vlgmr.msra.gmra.mrb[20].mxu1 %v11318_v32  ;;  %v11334_v49 = vadd.f32 %v3838_v4, %v3834_v46  ;;  %12717 = vst [vmem:[#allocation99_spill] sm:$0xff] %v11358_v58  ;;  %12718 = vst [vmem:[#allocation100_spill] sm:$0xff] %v11361_v40  ;;  %v3941_v46 = vld [vmem:[#allocation10 + $0x238] sm:$0xff]  ;;  %v11364_v4 = vpack.c.bf16 %v3928_v35, %v3922_v44  ;;  %v3958_v18 = vld [vmem:[#allocation10 + $0x2c0] sm:$0xff] }
 0x6e0   :  { %8060 = vmatpush1.bf16.msra.mxu1 %v11322_v45  ;;  %v11337_v17 = vadd.f32 %v3839_v31, %v3835_v22  ;;  %v11367_v10 = vpack.c.bf16 %v3941_v46, %v3935_v53  ;;  %v3940_v22 = vld [vmem:[#allocation10 + $0x230] sm:$0xff]  ;;  %v3947_v31 = vld [vmem:[#allocation10 + $0x268] sm:$0xff]  ;;  %v3965_v61 = vld [vmem:[#allocation10 + $0x2f8] sm:$0xff]  ;;  %12723 = vst [vmem:[#allocation24_spill] sm:$0xff] %v11376_v26 }
 0x6e1   :  { %8062 = vmatprep.subr.bf16.mxu1 %v11325_v2  ;;  %3851 = vst [vmem:[#allocation12 + $0x90] sm:$0xff] %v11334_v49  ;;  %12719 = vst [vmem:[#allocation101_spill] sm:$0xff] %v11364_v4  ;;  %v11370_v36 = vpack.c.bf16 %v3940_v22, %v3934_v27  ;;  %v11373_v43 = vpack.c.bf16 %v3953_v12, %v3947_v31  ;;  %v11379_v1 = vpack.c.bf16 %v3965_v61, %v3959_v37  ;;  %v3964_v44 = vld [vmem:[#allocation10 + $0x2f0] sm:$0xff]  ;;  %v3971_v35 = vld [vmem:[#allocation10 + $0x328] sm:$0xff] }
 0x6e2   :  { %3852 = vst [vmem:[#allocation12 + $0x98] sm:$0xff] %v11337_v17  ;;  %4164 = vmatprep.mubr.f32.mxu0 %v11337_v17  ;;  %4241 = vmatprep.mubr.f32.mxu1 %v11337_v17  ;;  %12720 = vst [vmem:[#allocation21_spill] sm:$0xff] %v11367_v10  ;;  %v3977_v53 = vld [vmem:[#allocation10 + $0x358] sm:$0xff]  ;;  %v11382_v46 = vpack.c.bf16 %v3964_v44, %v3958_v18  ;;  %v3970_v22 = vld [vmem:[#allocation10 + $0x320] sm:$0xff] }
 0x6e3   :  { %4165 = vmatmul.mubr.f32.gmra.mrb[22].mxu0 %v11334_v49  ;;  %4242 = vmatmul.mubr.f32.gmra.mrb[22].mxu1 %v11334_v49  ;;  %12721 = vst [vmem:[#allocation22_spill] sm:$0xff] %v11370_v36  ;;  %12722 = vst [vmem:[#allocation23_spill] sm:$0xff] %v11373_v43  ;;  %v11385_v27 = vpack.c.bf16 %v3977_v53, %v3971_v35  ;;  %v3976_v31 = vld [vmem:[#allocation10 + $0x350] sm:$0xff]  ;;  %v3983_v12 = vld [vmem:[#allocation10 + $0x388] sm:$0xff] }
 0x6e4   :  { %8064 = vmatpush1.bf16.msra.mxu1 %v11339_v50  ;;  %4312 = vmatprep.mubr.f32.mxu1 %v11320_v5  ;;  %12724 = vst [vmem:[#allocation56_spill] sm:$0xff] %v11379_v1  ;;  %12725 = vst [vmem:[#allocation25_spill] sm:$0xff] %v11382_v46  ;;  %v3989_v29 = vld [vmem:[#allocation10 + $0x3b8] sm:$0xff]  ;;  %v11388_v20 = vpack.c.bf16 %v3976_v31, %v3970_v22  ;;  %v3982_v61 = vld [vmem:[#allocation10 + $0x380] sm:$0xff] }
 0x6e5   :  { %8066 = vmatprep.subr.bf16.mxu1 %v11343_v39  ;;  %12726 = vst [vmem:[#allocation26_spill] sm:$0xff] %v11385_v27  ;;  %v11391_v37 = vpack.c.bf16 %v3989_v29, %v3983_v12  ;;  %v3995_v18 = vld [vmem:[#allocation10 + $0x3e8] sm:$0xff]  ;;  %v4001_v44 = vld [vmem:[#allocation10 + $0x418] sm:$0xff] }
 0x6e6   :  { %12727 = vst [vmem:[#allocation27_spill] sm:$0xff] %v11388_v20  ;;  %v11397_v53 = vpack.c.bf16 %v4001_v44, %v3995_v18  ;;  %v4007_v22 = vld [vmem:[#allocation10 + $0x448] sm:$0xff]  ;;  %v4013_v31 = vld [vmem:[#allocation10 + $0x478] sm:$0xff] }
 0x6e7   :  { %12728 = vst [vmem:[#allocation28_spill] sm:$0xff] %v11391_v37  ;;  %v11403_v29 = vpack.c.bf16 %v4013_v31, %v4007_v22 }
 0x6e8   :  { %8068 = vmatpush1.bf16.msra.mxu1 %v11352_v54  ;;  %12730 = vst [vmem:[#allocation86_spill] sm:$0xff] %v11397_v53 }
 0x6e9   :  { %8070 = vmatprep.subr.bf16.mxu1 %v11355_v41  ;;  %12732 = vst [vmem:[#allocation18_spill] sm:$0xff] %v11403_v29 }
 0x6ec   :  { %8072 = vmatpush1.bf16.msra.mxu1 %v11358_v58  ;;  %v4489_v58 = vld [vmem:[#allocation10 + $0x1b0] sm:$0xff] }
 0x6ed   :  { %8074 = vmatprep.subr.bf16.mxu1 %v11361_v40  ;;  %v4490_v40 = vld [vmem:[#allocation10 + $0x1b8] sm:$0xff] }
 0x6f0   :  { %8076 = vmatpush1.bf16.msra.mxu1 %v11364_v4 }
 0x6f1   :  { %8078 = vmatprep.subr.bf16.mxu1 %v11367_v10  ;;  %v4471_v10 = vld [vmem:[#allocation10 + $0x120] sm:$0xff] }
 0x6f4   :  { %8080 = vmatpush1.bf16.msra.mxu1 %v11370_v36 }
 0x6f5   :  { %8082 = vmatprep.subr.bf16.mxu1 %v11373_v43  ;;  %v4459_v43 = vld [vmem:[#allocation10 + $0xc0] sm:$0xff] }
 0x6f8   :  { %8084 = vmatpush1.bf16.msra.mxu1 %v11376_v26  ;;  %v3988_v26 = vld [vmem:[#allocation10 + $0x3b0] sm:$0xff] }
 0x6f9   :  { %8086 = vmatprep.subr.bf16.mxu1 %v11379_v1  ;;  %v11394_v35 = vpack.c.bf16 %v3988_v26, %v3982_v61  ;;  %v3994_v1 = vld [vmem:[#allocation10 + $0x3e0] sm:$0xff]  ;;  %v4019_v26 = vld [vmem:[#allocation10 + $0x4a8] sm:$0xff]  ;;  %v4025_v61 = vld [vmem:[#allocation10 + $0x4d8] sm:$0xff] }
 0x6fa   :  { %v11409_v44 = vpack.c.bf16 %v4025_v61, %v4019_v26 }
 0x6fb   :  { %12729 = vst [vmem:[#allocation58_spill] sm:$0xff] %v11394_v35 }
 0x6fc   :  { %8088 = vmatpush1.bf16.msra.mxu1 %v11382_v46  ;;  %v4000_v46 = vld [vmem:[#allocation10 + $0x410] sm:$0xff]  ;;  %12734 = vst [vmem:[#allocation20_spill] sm:$0xff] %v11409_v44 }
 0x6fd   :  { %8090 = vmatprep.subr.bf16.mxu1 %v11385_v27  ;;  %v11400_v12 = vpack.c.bf16 %v4000_v46, %v3994_v1  ;;  %v4006_v27 = vld [vmem:[#allocation10 + $0x440] sm:$0xff]  ;;  %v4031_v1 = vld [vmem:[#allocation10 + $0x508] sm:$0xff]  ;;  %v4037_v46 = vld [vmem:[#allocation10 + $0x538] sm:$0xff] }
 0x6fe   :  { %v11415_v31 = vpack.c.bf16 %v4037_v46, %v4031_v1 }
 0x6ff   :  { %12731 = vst [vmem:[#allocation17_spill] sm:$0xff] %v11400_v12 }
 0x700   :  { %8092 = vmatpush1.bf16.msra.mxu1 %v11388_v20  ;;  %v4012_v20 = vld [vmem:[#allocation10 + $0x470] sm:$0xff]  ;;  %12736 = vst [vmem:[#allocation92_spill] sm:$0xff] %v11415_v31 }
 0x701   :  { %8094 = vmatprep.subr.bf16.mxu1 %v11391_v37  ;;  %v11406_v18 = vpack.c.bf16 %v4012_v20, %v4006_v27  ;;  %v4018_v37 = vld [vmem:[#allocation10 + $0x4a0] sm:$0xff]  ;;  %v4043_v27 = vld [vmem:[#allocation10 + $0x568] sm:$0xff]  ;;  %v4049_v20 = vld [vmem:[#allocation10 + $0x598] sm:$0xff] }
 0x702   :  { %v11421_v61 = vpack.c.bf16 %v4049_v20, %v4043_v27  ;;  %v4435_v27 = vld [vmem:[#allocation10] sm:$0xff]  ;;  %v4441_v20 = vld [vmem:[#allocation10 + $0x30] sm:$0xff] }
 0x703   :  { %12733 = vst [vmem:[#allocation19_spill] sm:$0xff] %v11406_v18 }
 0x704   :  { %8096 = vmatpush1.bf16.msra.mxu1 %v11394_v35  ;;  %v4024_v35 = vld [vmem:[#allocation10 + $0x4d0] sm:$0xff]  ;;  %12738 = vst [vmem:[#allocation62_spill] sm:$0xff] %v11421_v61 }
 0x705   :  { %8098 = vmatprep.subr.bf16.mxu1 %v11397_v53  ;;  %v11412_v22 = vpack.c.bf16 %v4024_v35, %v4018_v37  ;;  %v4030_v53 = vld [vmem:[#allocation10 + $0x500] sm:$0xff]  ;;  %v4055_v37 = vld [vmem:[#allocation10 + $0x5c8] sm:$0xff]  ;;  %v4061_v35 = vld [vmem:[#allocation10 + $0x5f8] sm:$0xff] }
 0x706   :  { %v11427_v46 = vpack.c.bf16 %v4061_v35, %v4055_v37  ;;  %v4438_v37 = vld [vmem:[#allocation10 + $0x18] sm:$0xff]  ;;  %v11439_v35 = vpack.c.bf16 %v4441_v20, %v4435_v27  ;;  %v4453_v27 = vld [vmem:[#allocation10 + $0x90] sm:$0xff] }
 0x707   :  { %12735 = vst [vmem:[#allocation60_spill] sm:$0xff] %v11412_v22  ;;  %v4450_v20 = vld [vmem:[#allocation10 + $0x78] sm:$0xff] }
 0x708   :  { %8100 = vmatpush1.bf16.msra.mxu1 %v11400_v12  ;;  %v4036_v12 = vld [vmem:[#allocation10 + $0x530] sm:$0xff]  ;;  %12740 = vst [vmem:[#allocation64_spill] sm:$0xff] %v11427_v46  ;;  %12743 = vst [vmem:[#allocation67_spill] sm:$0xff] %v11439_v35 }
 0x709   :  { %8102 = vmatprep.subr.bf16.mxu1 %v11403_v29  ;;  %v11418_v26 = vpack.c.bf16 %v4036_v12, %v4030_v53  ;;  %v4042_v29 = vld [vmem:[#allocation10 + $0x560] sm:$0xff]  ;;  %v4436_v12 = vld [vmem:[#allocation10 + $0x8] sm:$0xff] }
 0x70b   :  { %12737 = vst [vmem:[#allocation61_spill] sm:$0xff] %v11418_v26 }
 0x70c   :  { %8104 = vmatpush1.bf16.msra.mxu1 %v11406_v18  ;;  %v4048_v18 = vld [vmem:[#allocation10 + $0x590] sm:$0xff] }
 0x70d   :  { %8106 = vmatprep.subr.bf16.mxu1 %v11409_v44  ;;  %v11424_v1 = vpack.c.bf16 %v4048_v18, %v4042_v29  ;;  %v4054_v44 = vld [vmem:[#allocation10 + $0x5c0] sm:$0xff]  ;;  %v4442_v29 = vld [vmem:[#allocation10 + $0x38] sm:$0xff] }
 0x70e   :  { %v11437_v18 = vpack.c.bf16 %v4442_v29, %v4436_v12  ;;  %v4447_v29 = vld [vmem:[#allocation10 + $0x60] sm:$0xff] }
 0x70f   :  { %12739 = vst [vmem:[#allocation63_spill] sm:$0xff] %v11424_v1 }
 0x710   :  { %8108 = vmatpush1.bf16.msra.mxu1 %v11412_v22  ;;  %v4060_v22 = vld [vmem:[#allocation10 + $0x5f0] sm:$0xff]  ;;  %12742 = vst [vmem:[#allocation66_spill] sm:$0xff] %v11437_v18  ;;  %8122 = vmatprep.subr.bf16.mxu0 %v11437_v18  ;;  %v4456_v18 = vld [vmem:[#allocation10 + $0xa8] sm:$0xff] }
 0x711   :  { %8110 = vmatprep.subr.bf16.mxu1 %v11415_v31  ;;  %v11430_v53 = vpack.c.bf16 %v4060_v22, %v4054_v44  ;;  %v4444_v44 = vld [vmem:[#allocation10 + $0x48] sm:$0xff]  ;;  %v4437_v22 = vld [vmem:[#allocation10 + $0x10] sm:$0xff]  ;;  %8124 = vmatpush1.bf16.msra.mxu0 %v11439_v35  ;;  %v11451_v31 = vpack.c.bf16 %v4453_v27, %v4447_v29  ;;  %v4462_v27 = vld [vmem:[#allocation10 + $0xd8] sm:$0xff] }
 0x712   :  { %v4465_v29 = vld [vmem:[#allocation10 + $0xf0] sm:$0xff] }
 0x713   :  { %12741 = vst [vmem:[#allocation65_spill] sm:$0xff] %v11430_v53  ;;  %12745 = vst [vmem:[#allocation69_spill] sm:$0xff] %v11451_v31  ;;  %v11463_v36 = vpack.c.bf16 %v4465_v29, %v4459_v43  ;;  %v4477_v43 = vld [vmem:[#allocation10 + $0x150] sm:$0xff]  ;;  %v4474_v29 = vld [vmem:[#allocation10 + $0x138] sm:$0xff] }
 0x714   :  { %8112 = vmatpush1.bf16.msra.mxu1 %v11418_v26  ;;  %v4454_v26 = vld [vmem:[#allocation10 + $0x98] sm:$0xff]  ;;  %v11475_v4 = vpack.c.bf16 %v4477_v43, %v4471_v10  ;;  %v4492_v10 = vld [vmem:[#allocation10 + $0x1c8] sm:$0xff] }
 0x715   :  { %8114 = vmatprep.subr.bf16.mxu1 %v11421_v61  ;;  %v4448_v61 = vld [vmem:[#allocation10 + $0x68] sm:$0xff]  ;;  %12747 = vst [vmem:[#allocation71_spill] sm:$0xff] %v11463_v36 }
 0x716   :  { %v11448_v12 = vpack.c.bf16 %v4454_v26, %v4448_v61  ;;  %v4460_v26 = vld [vmem:[#allocation10 + $0xc8] sm:$0xff]  ;;  %v4466_v61 = vld [vmem:[#allocation10 + $0xf8] sm:$0xff]  ;;  %12749 = vst [vmem:[#allocation73_spill] sm:$0xff] %v11475_v4 }
 0x717   :  { %v11460_v35 = vpack.c.bf16 %v4466_v61, %v4460_v26  ;;  %v4472_v26 = vld [vmem:[#allocation10 + $0x128] sm:$0xff]  ;;  %v4478_v61 = vld [vmem:[#allocation10 + $0x158] sm:$0xff] }
 0x718   :  { %8116 = vmatpush1.bf16.msra.mxu1 %v11424_v1  ;;  %12744 = vst [vmem:[#allocation68_spill] sm:$0xff] %v11448_v12  ;;  %8126 = vmatprep.subr.bf16.mxu0 %v11448_v12  ;;  %v4468_v12 = vld [vmem:[#allocation10 + $0x108] sm:$0xff] }
 0x719   :  { %8118 = vmatprep.subr.bf16.mxu1 %v11427_v46  ;;  %v4443_v46 = vld [vmem:[#allocation10 + $0x40] sm:$0xff]  ;;  %8128 = vmatpush1.bf16.msra.mxu0 %v11451_v31  ;;  %12746 = vst [vmem:[#allocation70_spill] sm:$0xff] %v11460_v35  ;;  %v11472_v31 = vpack.c.bf16 %v4478_v61, %v4472_v26 }
 0x71a   :  { %v11444_v1 = vpack.c.bf16 %v4443_v46, %v4437_v22  ;;  %v11454_v46 = vpack.c.bf16 %v4456_v18, %v4450_v20  ;;  %v4461_v18 = vld [vmem:[#allocation10 + $0xd0] sm:$0xff]  ;;  %v4467_v20 = vld [vmem:[#allocation10 + $0x100] sm:$0xff]  ;;  %8130 = vmatprep.subr.bf16.mxu0 %v11460_v35  ;;  %v4480_v35 = vld [vmem:[#allocation10 + $0x168] sm:$0xff] }
 0x71b   :  { %v4483_v26 = vld [vmem:[#allocation10 + $0x180] sm:$0xff] }
 0x71c   :  { %8120 = vmatpush1.bf16.msra.mxu1 %v11430_v53  ;;  %v11442_v53 = vpack.c.bf16 %v4444_v44, %v4438_v37  ;;  %v4449_v37 = vld [vmem:[#allocation10 + $0x70] sm:$0xff]  ;;  %v4455_v44 = vld [vmem:[#allocation10 + $0xa0] sm:$0xff]  ;;  %v11486_v43 = vpack.c.bf16 %v4489_v58, %v4483_v26 }
 0x71d   :  { %v11456_v22 = vpack.c.bf16 %v4455_v44, %v4449_v37  ;;  %v11466_v37 = vpack.c.bf16 %v4468_v12, %v4462_v27  ;;  %v11468_v44 = vpack.c.bf16 %v4467_v20, %v4461_v18  ;;  %8132 = vmatpush1.bf16.msra.mxu0 %v11463_v36  ;;  %v4473_v12 = vld [vmem:[#allocation10 + $0x130] sm:$0xff]  ;;  %v4479_v27 = vld [vmem:[#allocation10 + $0x160] sm:$0xff]  ;;  %v11478_v18 = vpack.c.bf16 %v4480_v35, %v4474_v29  ;;  %v4484_v36 = vld [vmem:[#allocation10 + $0x188] sm:$0xff] }
 0x71e   :  { %8186 = vmatprep.subr.bf16.mxu1 %v11442_v53  ;;  %8134 = vmatprep.subr.bf16.mxu0 %v11472_v31  ;;  %v11480_v20 = vpack.c.bf16 %v4479_v27, %v4473_v12  ;;  %v11483_v61 = vpack.c.bf16 %v4490_v40, %v4484_v36  ;;  %v4496_v35 = vld [vmem:[#allocation10 + $0x1e8] sm:$0xff]  ;;  %v4502_v29 = vld [vmem:[#allocation10 + $0x218] sm:$0xff]  ;;  %v4495_v12 = vld [vmem:[#allocation10 + $0x1e0] sm:$0xff] }
 0x71f   :  { %4313 = vmatmul.mubr.f32.vlgmr.msra.gmra.mrb[52].mxu1 %v11318_v32  ;;  %12748 = vst [vmem:[#allocation72_spill] sm:$0xff] %v11468_v44  ;;  %v11492_v27 = vpack.c.bf16 %v4502_v29, %v4496_v35  ;;  %v4501_v40 = vld [vmem:[#allocation10 + $0x210] sm:$0xff]  ;;  %v4508_v36 = vld [vmem:[#allocation10 + $0x248] sm:$0xff]  ;;  %v4507_v26 = vld [vmem:[#allocation10 + $0x240] sm:$0xff] }
 0x720   :  { %4318 = vmatprep.mubr.f32.mxu1 %v11337_v17  ;;  %8188 = vmatpush1.bf16.msra.mxu1 %v11444_v1  ;;  %12750 = vst [vmem:[#allocation74_spill] sm:$0xff] %v11483_v61  ;;  %v11496_v58 = vpack.c.bf16 %v4501_v40, %v4495_v12  ;;  %v4526_v35 = vld [vmem:[#allocation10 + $0x2d8] sm:$0xff]  ;;  %v4519_v40 = vld [vmem:[#allocation10 + $0x2a0] sm:$0xff] }
 0x721   :  { %8190 = vmatprep.subr.bf16.mxu1 %v11454_v46  ;;  %8136 = vmatpush1.bf16.msra.mxu0 %v11475_v4  ;;  %12751 = vst [vmem:[#allocation75_spill] sm:$0xff] %v11492_v27  ;;  %v4514_v4 = vld [vmem:[#allocation10 + $0x278] sm:$0xff] }
 0x722   :  { %8138 = vmatprep.subr.bf16.mxu0 %v11483_v61  ;;  %v4520_v61 = vld [vmem:[#allocation10 + $0x2a8] sm:$0xff] }
 0x723   :  { %4319 = vmatmul.mubr.f32.gmra.mrb[54].mxu1 %v11334_v49  ;;  %v11507_v12 = vpack.c.bf16 %v4526_v35, %v4520_v61  ;;  %v4544_v61 = vld [vmem:[#allocation10 + $0x368] sm:$0xff]  ;;  %v4550_v35 = vld [vmem:[#allocation10 + $0x398] sm:$0xff] }
 0x724   :  { %8192 = vmatpush1.bf16.msra.mxu1 %v11456_v22 }
 0x725   :  { %8194 = vmatprep.subr.bf16.mxu1 %v11466_v37  ;;  %8140 = vmatpush1.bf16.msra.mxu0 %v11486_v43 }
 0x726   :  { %8142 = vmatprep.subr.bf16.mxu0 %v11492_v27  ;;  %v4525_v27 = vld [vmem:[#allocation10 + $0x2d0] sm:$0xff] }
 0x728   :  { %8196 = vmatpush1.bf16.msra.mxu1 %v11468_v44  ;;  %v4486_v44 = vld [vmem:[#allocation10 + $0x198] sm:$0xff] }
 0x729   :  { %8198 = vmatprep.subr.bf16.mxu1 %v11478_v18  ;;  %v11488_v41 = vpack.c.bf16 %v4492_v10, %v4486_v44  ;;  %v11499_v44 = vpack.c.bf16 %v4514_v4, %v4508_v36  ;;  %v4513_v10 = vld [vmem:[#allocation10 + $0x270] sm:$0xff]  ;;  %8144 = vmatpush1.bf16.msra.mxu0 %v11496_v58  ;;  %v4532_v4 = vld [vmem:[#allocation10 + $0x308] sm:$0xff]  ;;  %v4538_v36 = vld [vmem:[#allocation10 + $0x338] sm:$0xff] }
 0x72a   :  { %v11504_v29 = vpack.c.bf16 %v4513_v10, %v4507_v26  ;;  %v4531_v26 = vld [vmem:[#allocation10 + $0x300] sm:$0xff]  ;;  %v4537_v10 = vld [vmem:[#allocation10 + $0x330] sm:$0xff] }
 0x72b   :  { %8146 = vmatprep.subr.bf16.mxu0 %v11499_v44 }
 0x72c   :  { %8200 = vmatpush1.bf16.msra.mxu1 %v11480_v20 }
 0x72d   :  { %8202 = vmatprep.subr.bf16.mxu1 %v11488_v41  ;;  %8148 = vmatpush1.bf16.msra.mxu0 %v11504_v29 }
 0x72e   :  { %8150 = vmatprep.subr.bf16.mxu0 %v11507_v12 }
 0x730   :  { %8204 = vmatpush1.bf16.msra.mxu1 %v11206_v23  ;;  %v11512_v23 = vpack.c.bf16 %v4525_v27, %v4519_v40  ;;  %v4543_v27 = vld [vmem:[#allocation10 + $0x360] sm:$0xff]  ;;  %v4549_v40 = vld [vmem:[#allocation10 + $0x390] sm:$0xff] }
 0x731   :  { %8206 = vmatprep.subr.bf16.mxu1 %v11208_v6  ;;  %v11515_v6 = vpack.c.bf16 %v4538_v36, %v4532_v4  ;;  %v4556_v4 = vld [vmem:[#allocation10 + $0x3c8] sm:$0xff]  ;;  %v4562_v36 = vld [vmem:[#allocation10 + $0x3f8] sm:$0xff] }
 0x732   :  { %8152 = vmatpush1.bf16.msra.mxu0 %v11512_v23 }
 0x733   :  { %8154 = vmatprep.subr.bf16.mxu0 %v11515_v6 }
 0x734   :  { %8208 = vmatpush1.bf16.msra.mxu1 %v11211_v28  ;;  %v11520_v28 = vpack.c.bf16 %v4537_v10, %v4531_v26 }
 0x735   :  { %8210 = vmatprep.subr.bf16.mxu1 %v11214_v8  ;;  %v11523_v8 = vpack.c.bf16 %v4550_v35, %v4544_v61  ;;  %v4610_v61 = vld [vmem:[#allocation10 + $0x578] sm:$0xff]  ;;  %v4603_v35 = vld [vmem:[#allocation10 + $0x540] sm:$0xff] }
 0x736   :  { %8156 = vmatpush1.bf16.msra.mxu0 %v11520_v28 }
 0x737   :  { %8158 = vmatprep.subr.bf16.mxu0 %v11523_v8 }
 0x738   :  { %8212 = vmatpush1.bf16.msra.mxu1 %v11217_v33  ;;  %v11528_v33 = vpack.c.bf16 %v4549_v40, %v4543_v27  ;;  %v4616_v27 = vld [vmem:[#allocation10 + $0x5a8] sm:$0xff]  ;;  %v4622_v40 = vld [vmem:[#allocation10 + $0x5d8] sm:$0xff] }
 0x739   :  { %8214 = vmatprep.subr.bf16.mxu1 %v11220_v15  ;;  %v11531_v15 = vpack.c.bf16 %v4562_v36, %v4556_v4  ;;  %v11564_v36 = vpack.c.bf16 %v4622_v40, %v4616_v27 }
 0x73a   :  { %8160 = vmatpush1.bf16.msra.mxu0 %v11528_v33 }
 0x73b   :  { %8162 = vmatprep.subr.bf16.mxu0 %v11531_v15  ;;  %12756 = vst [vmem:[#allocation80_spill] sm:$0xff] %v11564_v36 }
 0x73c   :  { %8216 = vmatpush1.bf16.msra.mxu1 %v11223_v55  ;;  %v4568_v55 = vld [vmem:[#allocation10 + $0x428] sm:$0xff] }
 0x73d   :  { %8218 = vmatprep.subr.bf16.mxu1 %v11226_v3  ;;  %v4574_v3 = vld [vmem:[#allocation10 + $0x458] sm:$0xff] }
 0x73e   :  { %8164 = vmatpush1.bf16.msra.mxu0 %v11244_v60  ;;  %v11540_v26 = vpack.c.bf16 %v4574_v3, %v4568_v55  ;;  %v4591_v60 = vld [vmem:[#allocation10 + $0x4e0] sm:$0xff]  ;;  %v4621_v55 = vld [vmem:[#allocation10 + $0x5d0] sm:$0xff] }
 0x73f   :  { %v12758_v3 = vld [vmem:[#allocation97_spill] sm:$0xff] }
 0x740   :  { %8220 = vmatpush1.bf16.msra.mxu1 %v11229_v0  ;;  %8166 = vmatprep.subr.bf16.mxu0 %v11540_v26  ;;  %v4580_v0 = vld [vmem:[#allocation10 + $0x488] sm:$0xff] }
 0x741   :  { %8222 = vmatprep.subr.bf16.mxu1 %v11232_v21  ;;  %v4586_v21 = vld [vmem:[#allocation10 + $0x4b8] sm:$0xff] }
 0x742   :  { %8168 = vmatpush1.bf16.msra.mxu0 %v11254_v47  ;;  %v11546_v10 = vpack.c.bf16 %v4586_v21, %v4580_v0 }
 0x744   :  { %8224 = vmatpush1.bf16.msra.mxu1 %v11235_v13  ;;  %8170 = vmatprep.subr.bf16.mxu0 %v11546_v10  ;;  %v4592_v13 = vld [vmem:[#allocation10 + $0x4e8] sm:$0xff] }
 0x745   :  { %8226 = vmatprep.subr.bf16.mxu1 %v11238_v16  ;;  %v4598_v16 = vld [vmem:[#allocation10 + $0x518] sm:$0xff] }
 0x746   :  { %8172 = vmatpush1.bf16.msra.mxu0 %v11264_v11  ;;  %v4609_v11 = vld [vmem:[#allocation10 + $0x570] sm:$0xff] }
 0x747   :  { %v11562_v4 = vpack.c.bf16 %v4609_v11, %v4603_v35  ;;  %v12761_v35 = vld [vmem:[#allocation55_spill] sm:$0xff] }
 0x748   :  { %8228 = vmatpush1.bf16.msra.mxu1 %v11242_v51  ;;  %v11552_v51 = vpack.c.bf16 %v4598_v16, %v4592_v13 }
 0x749   :  { %8230 = vmatprep.subr.bf16.mxu1 %v11248_v38  ;;  %v4597_v38 = vld [vmem:[#allocation10 + $0x510] sm:$0xff]  ;;  %12755 = vst [vmem:[#allocation79_spill] sm:$0xff] %v11562_v4 }
 0x74a   :  { %12752 = vst [vmem:[#allocation76_spill] sm:$0xff] %v11552_v51  ;;  %v11555_v47 = vpack.c.bf16 %v4597_v38, %v4591_v60  ;;  %8174 = vmatprep.subr.bf16.mxu0 %v11552_v51 }
 0x74c   :  { %8232 = vmatpush1.bf16.msra.mxu1 %v11251_v59  ;;  %12753 = vst [vmem:[#allocation77_spill] sm:$0xff] %v11555_v47  ;;  %v4604_v59 = vld [vmem:[#allocation10 + $0x548] sm:$0xff]  ;;  %8176 = vmatpush1.bf16.msra.mxu0 %v11555_v47 }
 0x74d   :  { %8234 = vmatprep.subr.bf16.mxu1 %v11258_v34  ;;  %v11560_v34 = vpack.c.bf16 %v4610_v61, %v4604_v59  ;;  %v12760_v61 = vld [vmem:[#allocation50_spill] sm:$0xff] }
 0x74f   :  { %12754 = vst [vmem:[#allocation78_spill] sm:$0xff] %v11560_v34  ;;  %8178 = vmatprep.subr.bf16.mxu0 %v11560_v34 }
 0x750   :  { %8236 = vmatpush1.bf16.msra.mxu1 %v11261_v19  ;;  %v4615_v19 = vld [vmem:[#allocation10 + $0x5a0] sm:$0xff]  ;;  %8180 = vmatpush1.bf16.msra.mxu0 %v11562_v4 }
 0x751   :  { %8238 = vmatprep.subr.bf16.mxu1 %v11268_v52  ;;  %v11570_v52 = vpack.c.bf16 %v4621_v55, %v4615_v19  ;;  %8182 = vmatprep.subr.bf16.mxu0 %v11564_v36  ;;  %v12762_v19 = vld [vmem:[#allocation51_spill] sm:$0xff] }
 0x753   :  { %12757 = vst [vmem:[#allocation81_spill] sm:$0xff] %v11570_v52 }
 0x754   :  { %8240 = vmatpush1.bf16.msra.mxu1 %v11271_v30  ;;  %8184 = vmatpush1.bf16.msra.mxu0 %v11570_v52  ;;  %v12763_v52 = vld [vmem:[#allocation53_spill] sm:$0xff] }
 0x755   :  { %8242 = vmatprep.subr.bf16.mxu1 %v11275_v24  ;;  %8250 = vmatprep.subr.bf16.mxu0 %v11292_v9 }
 0x758   :  { %8244 = vmatpush1.bf16.msra.mxu1 %v11278_v48  ;;  %v4062_v48 = vld [vmem:[%s12272_s5] sm:$0x3f] }
 0x759   :  { %8246 = vmatprep.subr.bf16.mxu1 %v11280_v63  ;;  %v12759_v63 = vld [vmem:[#allocation49_spill] sm:$0xff]  ;;  %v4071_v9 = vrot.slane %v4062_v48, %v12760_v61  ;;  %v4075_v55 = vrot.slane %v4062_v48, %v12762_v19  ;;  %v4079_v36 = vrot.slane %v4062_v48, %v12763_v52 }
 0x75a   :  { %v4067_v59 = vrot.slane %v4062_v48, %v12759_v63 }
 0x75b   :  { %v9009_v51 = vadd.f32 %v4075_v55, %v12554_v7  ;;  %v9011_v63 = vadd.f32 %v4079_v36, %v12555_v25 }
 0x75c   :  { %8248 = vmatpush1.bf16.msra.mxu1 %v12758_v3  ;;  %v8929_v11 = vadd.f32 %v4067_v59, %v12761_v35 }
 0x75d   :  { %8378 = vmatprep.subr.bf16.mxu1 %v11442_v53  ;;  %v8931_v53 = vadd.f32 %v4071_v9, %v10303_v56 }
 0x7b2   :  { %v4160_v30 = vpop.f32.mrb[20].mxu0  ;;  %v4237_v24 = vpop.f32.mrb[20].mxu1 }
 0x7b3   :  { %v4162_v0 = vpop.f32.mrb[21].mxu0  ;;  %v4239_v21 = vpop.f32.mrb[21].mxu1  ;;  %v8930_v27 = vadd.f32 %v8929_v11, %v4160_v30  ;;  %v9010_v35 = vadd.f32 %v9009_v51, %v4237_v24 }
 0x7b4   :  { %v8932_v40 = vadd.f32 %v8931_v53, %v4162_v0  ;;  %v9012_v9 = vadd.f32 %v9011_v63, %v4239_v21 }
 0x7b5   :  { %v6737_v3 = vmul.f32 -1.442695, %v8930_v27  ;;  %v6741_v27 = vmul.f32 -1.442695, %v9010_v35 }
 0x7b6   :  { %v4166_v13 = vpop.f32.mrb[22].mxu0  ;;  %v4243_v16 = vpop.f32.mrb[22].mxu1  ;;  %v6738_v34 = vmul.f32 -1.442695, %v8932_v40  ;;  %v6742_v19 = vmul.f32 -1.442695, %v9012_v9 }
 0x7b7   :  { %v4168_v60 = vpop.f32.mrb[23].mxu0  ;;  %v4245_v38 = vpop.f32.mrb[23].mxu1  ;;  %v8934_v4 = vadd.f32 %v8929_v11, %v4166_v13  ;;  %9338 = vpow2.f32 %v6737_v3  ;;  %v9014_v30 = vadd.f32 %v9009_v51, %v4243_v16  ;;  %v4083_v16 = vrot.slane %v4062_v48, %v10329_v57 }
 0x7b8   :  { %v8936_v47 = vadd.f32 %v8931_v53, %v4168_v60  ;;  %9340 = vpow2.f32 %v6738_v34  ;;  %v9016_v0 = vadd.f32 %v9011_v63, %v4245_v38  ;;  %v4087_v63 = vrot.slane %v4062_v48, %v10332_v62 }
 0x7b9   :  { %v6739_v61 = vmul.f32 -1.442695, %v8934_v4  ;;  %v6743_v52 = vmul.f32 -1.442695, %v9014_v30 }
 0x7ba   :  { %v6740_v59 = vmul.f32 -1.442695, %v8936_v47  ;;  %v6744_v11 = vmul.f32 -1.442695, %v9016_v0 }
 0x7bb   :  { %9342 = vpow2.f32 %v6739_v61 }
 0x7bc   :  { %9344 = vpow2.f32 %v6740_v59 }
 0x7bd   :  { %9346 = vpow2.f32 %v6741_v27  ;;  %v12764_v27 = vld [vmem:[#allocation33_spill] sm:$0xff] }
 0x7be   :  { %9348 = vpow2.f32 %v6742_v19 }
 0x7bf   :  { %9350 = vpow2.f32 %v6743_v52 }
 0x7c0   :  { %9352 = vpow2.f32 %v6744_v11 }
 0x7c1   :  { %v9339_v13 = vpop.eup %9338 }
 0x7c2   :  { %v9341_v60 = vpop.eup %9340  ;;  %v4341_v53 = vadd.f32 1.0, %v9339_v13  ;;  %v852_v13 = vadd.f32 %v12764_v27, %v10338_v14 }
 0x7c3   :  { %v4342_v4 = vadd.f32 1.0, %v9341_v60  ;;  %v12765_v60 = vld [vmem:[#allocation34_spill] sm:$0xff] }
 0x7c4   :  { %9354 = vrcp.f32 %v4341_v53  ;;  %v854_v53 = vadd.f32 %v12765_v60, %v10343_v42 }
 0x7c5   :  { %v9343_v36 = vpop.eup %9342  ;;  %9356 = vrcp.f32 %v4342_v4 }
 0x7c6   :  { %v9345_v47 = vpop.eup %9344  ;;  %v4343_v34 = vadd.f32 1.0, %v9343_v36 }
 0x7c7   :  { %v4344_v51 = vadd.f32 1.0, %v9345_v47  ;;  %v9347_v24 = vpop.eup %9346 }
 0x7c8   :  { %9358 = vrcp.f32 %v4343_v34  ;;  %v9349_v21 = vpop.eup %9348  ;;  %v4369_v35 = vadd.f32 1.0, %v9347_v24 }
 0x7c9   :  { %9360 = vrcp.f32 %v4344_v51  ;;  %v9351_v38 = vpop.eup %9350  ;;  %v4370_v52 = vadd.f32 1.0, %v9349_v21 }
 0x7ca   :  { %v9353_v61 = vpop.eup %9352  ;;  %v4371_v19 = vadd.f32 1.0, %v9351_v38  ;;  %9362 = vrcp.f32 %v4369_v35 }
 0x7cb   :  { %v4372_v9 = vadd.f32 1.0, %v9353_v61  ;;  %9364 = vrcp.f32 %v4370_v52  ;;  %v12766_v61 = vld [vmem:[#allocation35_spill] sm:$0xff] }
 0x7cc   :  { %9366 = vrcp.f32 %v4371_v19 }
 0x7cd   :  { %9368 = vrcp.f32 %v4372_v9 }
 0x7ce   :  { %v9355_v59 = vpop.eup %9354 }
 0x7cf   :  { %v9357_v0 = vpop.eup %9356 }
 0x7d2   :  { %v9359_v51 = vpop.eup %9358 }
 0x7d3   :  { %v9361_v38 = vpop.eup %9360 }
 0x7f2   :  { %v4314_v40 = vpop.f32.mrb[52].mxu1 }
 0x7f3   :  { %v4315_v55 = vadd.f32 %v4314_v40, %v4083_v16  ;;  %v4316_v3 = vpop.f32.mrb[53].mxu1  ;;  %v858_v40 = vadd.f32 %v12766_v61, %v10338_v14 }
 0x7f4   :  { %v4317_v30 = vadd.f32 %v4316_v3, %v4087_v63 }
 0x7f5   :  { %v4381_v11 = vmul.f32 %v9355_v59, %v4315_v55  ;;  %v12767_v55 = vld [vmem:[#allocation36_spill] sm:$0xff] }
 0x7f6   :  { %v4382_v48 = vmul.f32 %v9357_v0, %v4317_v30  ;;  %v4320_v36 = vpop.f32.mrb[54].mxu1  ;;  %v860_v3 = vadd.f32 %v12767_v55, %v10343_v42  ;;  %v12780_v55 = vld [vmem:[#allocation27_spill] sm:$0xff] }
 0x7f7   :  { %v4385_v4 = vadd.f32 %v4381_v11, %v852_v13  ;;  %v4321_v47 = vadd.f32 %v4320_v36, %v4083_v16  ;;  %v4322_v34 = vpop.f32.mrb[55].mxu1  ;;  %v9363_v16 = vpop.eup %9362 }
 0x7f8   :  { %v4386_v24 = vadd.f32 %v4382_v48, %v854_v53  ;;  %v4323_v21 = vadd.f32 %v4322_v34, %v4087_v63  ;;  %v9365_v30 = vpop.eup %9364  ;;  %v4393_v63 = vsub.f32 1.0, %v9363_v16  ;;  %v4401_v53 = vmul.f32 %v9363_v16, %v11318_v32  ;;  %v12787_v16 = vld [vmem:[#allocation20_spill] sm:$0xff] }
 0x7f9   :  { %9370 = vtanh.f32 %v4385_v4  ;;  %v4383_v35 = vmul.f32 %v9359_v51, %v4321_v47  ;;  %v9367_v9 = vpop.eup %9366  ;;  %v4394_v13 = vsub.f32 1.0, %v9365_v30  ;;  %v4402_v36 = vmul.f32 %v9365_v30, %v11320_v5  ;;  %v12788_v30 = vld [vmem:[#allocation60_spill] sm:$0xff] }
 0x7fa   :  { %9372 = vtanh.f32 %v4386_v24  ;;  %v4384_v52 = vmul.f32 %v9361_v38, %v4323_v21  ;;  %v9369_v0 = vpop.eup %9368  ;;  %v4395_v4 = vsub.f32 1.0, %v9367_v9  ;;  %v4403_v61 = vmul.f32 %v9367_v9, %v11334_v49  ;;  %v12770_v49 = vld [vmem:[#allocation99_spill] sm:$0xff]  ;;  %v12789_v9 = vld [vmem:[#allocation92_spill] sm:$0xff] }
 0x7fb   :  { %v4387_v59 = vadd.f32 %v4383_v35, %v858_v40  ;;  %v4396_v51 = vsub.f32 1.0, %v9369_v0  ;;  %v4404_v5 = vmul.f32 %v9369_v0, %v11337_v17  ;;  %v12771_v17 = vld [vmem:[#allocation100_spill] sm:$0xff]  ;;  %v12790_v0 = vld [vmem:[#allocation61_spill] sm:$0xff] }
 0x7fc   :  { %v4388_v19 = vadd.f32 %v4384_v52, %v860_v3  ;;  %v12783_v3 = vld [vmem:[#allocation86_spill] sm:$0xff]  ;;  %v12784_v52 = vld [vmem:[#allocation17_spill] sm:$0xff] }
 0x7fd   :  { %9374 = vtanh.f32 %v4387_v59  ;;  %v12785_v59 = vld [vmem:[#allocation18_spill] sm:$0xff] }
 0x7fe   :  { %9376 = vtanh.f32 %v4388_v19  ;;  %v12786_v19 = vld [vmem:[#allocation19_spill] sm:$0xff] }
 0x803   :  { %v9371_v27 = vpop.eup %9370 }
 0x804   :  { %v9373_v11 = vpop.eup %9372  ;;  %v4397_v60 = vmul.f32 %v9371_v27, %v4393_v63  ;;  %v12791_v63 = vld [vmem:[#allocation62_spill] sm:$0xff]  ;;  %v12792_v27 = vld [vmem:[#allocation63_spill] sm:$0xff] }
 0x805   :  { %v4398_v48 = vmul.f32 %v9373_v11, %v4394_v13  ;;  %v12793_v13 = vld [vmem:[#allocation64_spill] sm:$0xff]  ;;  %v12794_v11 = vld [vmem:[#allocation65_spill] sm:$0xff] }
 0x806   :  { %v11602_v47 = vadd.f32 %v4401_v53, %v4397_v60  ;;  %v12795_v60 = vld [vmem:[#allocation66_spill] sm:$0xff]  ;;  %v12796_v53 = vld [vmem:[#allocation67_spill] sm:$0xff] }
 0x807   :  { %v9375_v34 = vpop.eup %9374  ;;  %v11604_v24 = vadd.f32 %v4402_v36, %v4398_v48  ;;  %v12797_v48 = vld [vmem:[#allocation68_spill] sm:$0xff]  ;;  %v12798_v36 = vld [vmem:[#allocation69_spill] sm:$0xff] }
 0x808   :  { %v9377_v21 = vpop.eup %9376  ;;  %4414 = vst [vmem:[#allocation12 + $0xa0] sm:$0xff] %v11602_v47  ;;  %v4399_v38 = vmul.f32 %v9375_v34, %v4395_v4  ;;  %v12799_v4 = vld [vmem:[#allocation70_spill] sm:$0xff]  ;;  %v12800_v34 = vld [vmem:[#allocation71_spill] sm:$0xff] }
 0x809   :  { %4415 = vst [vmem:[#allocation12 + $0xa8] sm:$0xff] %v11604_v24  ;;  %4723 = vmatprep.mubr.f32.mxu0 %v11604_v24  ;;  %4800 = vmatprep.mubr.f32.mxu1 %v11604_v24  ;;  %v4400_v32 = vmul.f32 %v9377_v21, %v4396_v51  ;;  %v12801_v51 = vld [vmem:[#allocation73_spill] sm:$0xff]  ;;  %v12802_v21 = vld [vmem:[#allocation74_spill] sm:$0xff] }
 0x80a   :  { %4724 = vmatmul.mubr.f32.vlgmr.msra.gmra.mrb[24].mxu0 %v11602_v47  ;;  %4801 = vmatmul.mubr.f32.vlgmr.msra.gmra.mrb[24].mxu1 %v11602_v47  ;;  %v11614_v40 = vadd.f32 %v4403_v61, %v4399_v38  ;;  %v12803_v38 = vld [vmem:[#allocation75_spill] sm:$0xff] }
 0x80b   :  { %8252 = vmatpush1.bf16.msra.mxu0 %v11322_v45  ;;  %v11617_v35 = vadd.f32 %v4404_v5, %v4400_v32  ;;  %8380 = vmatpush1.bf16.msra.mxu1 %v11444_v1  ;;  %v12768_v45 = vld [vmem:[#allocation98_spill] sm:$0xff]  ;;  %v5062_v61 = vld [vmem:[#allocation10 + $0x1f0] sm:$0xff]  ;;  %v5087_v5 = vld [vmem:[#allocation10 + $0x2b8] sm:$0xff] }
 0x80c   :  { %8254 = vmatprep.subr.bf16.mxu0 %v11325_v2  ;;  %4416 = vst [vmem:[#allocation12 + $0xb0] sm:$0xff] %v11614_v40  ;;  %8382 = vmatprep.subr.bf16.mxu1 %v11454_v46  ;;  %v12769_v2 = vld [vmem:[#allocation72_spill] sm:$0xff]  ;;  %v12774_v1 = vld [vmem:[#allocation22_spill] sm:$0xff] }
 0x80d   :  { %4417 = vst [vmem:[#allocation12 + $0xb8] sm:$0xff] %v11617_v35  ;;  %4729 = vmatprep.mubr.f32.mxu0 %v11617_v35  ;;  %4806 = vmatprep.mubr.f32.mxu1 %v11617_v35  ;;  %v12776_v46 = vld [vmem:[#allocation24_spill] sm:$0xff] }
 0x80e   :  { %4730 = vmatmul.mubr.f32.gmra.mrb[26].mxu0 %v11614_v40  ;;  %4807 = vmatmul.mubr.f32.gmra.mrb[26].mxu1 %v11614_v40 }
 0x80f   :  { %8256 = vmatpush1.bf16.msra.mxu0 %v11339_v50  ;;  %4877 = vmatprep.mubr.f32.mxu0 %v11604_v24  ;;  %v12772_v50 = vld [vmem:[#allocation101_spill] sm:$0xff] }
 0x810   :  { %8258 = vmatprep.subr.bf16.mxu0 %v11343_v39  ;;  %8384 = vmatpush1.bf16.msra.mxu1 %v11456_v22  ;;  %v12773_v39 = vld [vmem:[#allocation21_spill] sm:$0xff]  ;;  %v12777_v22 = vld [vmem:[#allocation56_spill] sm:$0xff] }
 0x811   :  { %8386 = vmatprep.subr.bf16.mxu1 %v11466_v37  ;;  %v12778_v37 = vld [vmem:[#allocation25_spill] sm:$0xff] }
 0x813   :  { %8260 = vmatpush1.bf16.msra.mxu0 %v11352_v54  ;;  %v12775_v54 = vld [vmem:[#allocation23_spill] sm:$0xff] }
 0x814   :  { %8262 = vmatprep.subr.bf16.mxu0 %v12768_v45  ;;  %8388 = vmatpush1.bf16.msra.mxu1 %v12769_v2  ;;  %v5093_v45 = vld [vmem:[#allocation10 + $0x2e8] sm:$0xff] }
 0x815   :  { %8390 = vmatprep.subr.bf16.mxu1 %v11478_v18  ;;  %v12779_v18 = vld [vmem:[#allocation26_spill] sm:$0xff] }
 0x817   :  { %8264 = vmatpush1.bf16.msra.mxu0 %v12770_v49  ;;  %v11702_v49 = vpack.c.bf16 %v5093_v45, %v5087_v5  ;;  %v5158_v45 = vld [vmem:[#allocation10 + $0x4f0] sm:$0xff] }
 0x818   :  { %8266 = vmatprep.subr.bf16.mxu0 %v12771_v17  ;;  %8392 = vmatpush1.bf16.msra.mxu1 %v11480_v20  ;;  %v12781_v20 = vld [vmem:[#allocation28_spill] sm:$0xff]  ;;  %v5086_v17 = vld [vmem:[#allocation10 + $0x2b0] sm:$0xff] }
 0x819   :  { %8394 = vmatprep.subr.bf16.mxu1 %v11488_v41  ;;  %v12782_v41 = vld [vmem:[#allocation58_spill] sm:$0xff] }
 0x81b   :  { %8268 = vmatpush1.bf16.msra.mxu0 %v12772_v50  ;;  %v5092_v50 = vld [vmem:[#allocation10 + $0x2e0] sm:$0xff] }
 0x81c   :  { %8270 = vmatprep.subr.bf16.mxu0 %v12773_v39  ;;  %v5099_v39 = vld [vmem:[#allocation10 + $0x318] sm:$0xff] }
 0x81f   :  { %8272 = vmatpush1.bf16.msra.mxu0 %v12774_v1  ;;  %v5105_v1 = vld [vmem:[#allocation10 + $0x348] sm:$0xff] }
 0x820   :  { %8274 = vmatprep.subr.bf16.mxu0 %v12775_v54  ;;  %v11705_v54 = vpack.c.bf16 %v5092_v50, %v5086_v17  ;;  %v5164_v17 = vld [vmem:[#allocation10 + $0x520] sm:$0xff]  ;;  %v12804_v50 = vld [vmem:[#allocation76_spill] sm:$0xff] }
 0x823   :  { %8276 = vmatpush1.bf16.msra.mxu0 %v12776_v46  ;;  %v11708_v46 = vpack.c.bf16 %v5105_v1, %v5099_v39  ;;  %v5171_v39 = vld [vmem:[#allocation10 + $0x558] sm:$0xff]  ;;  %v5177_v1 = vld [vmem:[#allocation10 + $0x588] sm:$0xff] }
 0x824   :  { %8278 = vmatprep.subr.bf16.mxu0 %v12777_v22  ;;  %v5098_v22 = vld [vmem:[#allocation10 + $0x310] sm:$0xff] }
 0x827   :  { %8280 = vmatpush1.bf16.msra.mxu0 %v12778_v37  ;;  %v5104_v37 = vld [vmem:[#allocation10 + $0x340] sm:$0xff] }
 0x828   :  { %8282 = vmatprep.subr.bf16.mxu0 %v12779_v18  ;;  %v5111_v18 = vld [vmem:[#allocation10 + $0x378] sm:$0xff] }
 0x82b   :  { %8284 = vmatpush1.bf16.msra.mxu0 %v12780_v55  ;;  %v5117_v55 = vld [vmem:[#allocation10 + $0x3a8] sm:$0xff] }
 0x82c   :  { %8286 = vmatprep.subr.bf16.mxu0 %v12781_v20  ;;  %v11711_v20 = vpack.c.bf16 %v5104_v37, %v5098_v22  ;;  %v5170_v22 = vld [vmem:[#allocation10 + $0x550] sm:$0xff]  ;;  %v11757_v37 = vpack.c.bf16 %v5177_v1, %v5171_v39  ;;  %v12812_v39 = vld [vmem:[#allocation50_spill] sm:$0xff] }
 0x82f   :  { %8288 = vmatpush1.bf16.msra.mxu0 %v12782_v41  ;;  %v11714_v41 = vpack.c.bf16 %v5117_v55, %v5111_v18  ;;  %v5176_v18 = vld [vmem:[#allocation10 + $0x580] sm:$0xff]  ;;  %v5183_v55 = vld [vmem:[#allocation10 + $0x5b8] sm:$0xff] }
 0x830   :  { %8290 = vmatprep.subr.bf16.mxu0 %v12783_v3  ;;  %v5110_v3 = vld [vmem:[#allocation10 + $0x370] sm:$0xff] }
 0x833   :  { %8292 = vmatpush1.bf16.msra.mxu0 %v12784_v52  ;;  %v5116_v52 = vld [vmem:[#allocation10 + $0x3a0] sm:$0xff] }
 0x834   :  { %8294 = vmatprep.subr.bf16.mxu0 %v12785_v59  ;;  %v5123_v59 = vld [vmem:[#allocation10 + $0x3d8] sm:$0xff] }
 0x837   :  { %8296 = vmatpush1.bf16.msra.mxu0 %v12786_v19  ;;  %v5129_v19 = vld [vmem:[#allocation10 + $0x408] sm:$0xff] }
 0x838   :  { %8298 = vmatprep.subr.bf16.mxu0 %v12787_v16  ;;  %v11717_v16 = vpack.c.bf16 %v5116_v52, %v5110_v3  ;;  %v5189_v3 = vld [vmem:[#allocation10 + $0x5e8] sm:$0xff]  ;;  %v12805_v52 = vld [vmem:[#allocation77_spill] sm:$0xff] }
 0x83b   :  { %8300 = vmatpush1.bf16.msra.mxu0 %v12788_v30  ;;  %v11720_v30 = vpack.c.bf16 %v5129_v19, %v5123_v59  ;;  %v11760_v59 = vpack.c.bf16 %v5176_v18, %v5170_v22  ;;  %v11762_v19 = vpack.c.bf16 %v5189_v3, %v5183_v55  ;;  %v12813_v22 = vld [vmem:[#allocation55_spill] sm:$0xff] }
 0x83c   :  { %8302 = vmatprep.subr.bf16.mxu0 %v12789_v9  ;;  %v5122_v9 = vld [vmem:[#allocation10 + $0x3d0] sm:$0xff] }
 0x83f   :  { %8304 = vmatpush1.bf16.msra.mxu0 %v12790_v0  ;;  %v5128_v0 = vld [vmem:[#allocation10 + $0x400] sm:$0xff] }
 0x840   :  { %8306 = vmatprep.subr.bf16.mxu0 %v12791_v63  ;;  %v11724_v63 = vpack.c.bf16 %v5128_v0, %v5122_v9  ;;  %v5182_v9 = vld [vmem:[#allocation10 + $0x5b0] sm:$0xff]  ;;  %v5188_v0 = vld [vmem:[#allocation10 + $0x5e0] sm:$0xff] }
 0x843   :  { %8308 = vmatpush1.bf16.msra.mxu0 %v12792_v27  ;;  %v5120_v27 = vld [vmem:[#allocation10 + $0x3c0] sm:$0xff] }
 0x844   :  { %8310 = vmatprep.subr.bf16.mxu0 %v12793_v13  ;;  %v5126_v13 = vld [vmem:[#allocation10 + $0x3f0] sm:$0xff] }
 0x847   :  { %8312 = vmatpush1.bf16.msra.mxu0 %v12794_v11  ;;  %v11726_v11 = vpack.c.bf16 %v5126_v13, %v5120_v27  ;;  %v12806_v27 = vld [vmem:[#allocation78_spill] sm:$0xff]  ;;  %v11767_v13 = vpack.c.bf16 %v5188_v0, %v5182_v9  ;;  %v12814_v9 = vld [vmem:[#allocation51_spill] sm:$0xff] }
 0x848   :  { %8314 = vmatprep.subr.bf16.mxu0 %v12795_v60  ;;  %v5135_v60 = vld [vmem:[#allocation10 + $0x438] sm:$0xff] }
 0x849   :  { %12807 = vst [vmem:[#allocation82_spill] sm:$0xff] %v11767_v13 }
 0x84a   :  { %4878 = vmatmul.mubr.f32.vlgmr.msra.gmra.mrb[88].mxu0 %v11602_v47 }
 0x84b   :  { %4883 = vmatprep.mubr.f32.mxu0 %v11617_v35  ;;  %8316 = vmatpush1.bf16.msra.mxu0 %v12796_v53  ;;  %v5141_v53 = vld [vmem:[#allocation10 + $0x468] sm:$0xff] }
 0x84c   :  { %8318 = vmatprep.subr.bf16.mxu0 %v12797_v48  ;;  %v11730_v48 = vpack.c.bf16 %v5141_v53, %v5135_v60  ;;  %v12808_v60 = vld [vmem:[#allocation79_spill] sm:$0xff]  ;;  %v12809_v53 = vld [vmem:[#allocation80_spill] sm:$0xff] }
 0x84e   :  { %4884 = vmatmul.mubr.f32.gmra.mrb[90].mxu0 %v11614_v40 }
 0x84f   :  { %8320 = vmatpush1.bf16.msra.mxu0 %v12798_v36  ;;  %v5134_v36 = vld [vmem:[#allocation10 + $0x430] sm:$0xff] }
 0x850   :  { %8322 = vmatprep.subr.bf16.mxu0 %v12799_v4  ;;  %v5140_v4 = vld [vmem:[#allocation10 + $0x460] sm:$0xff] }
 0x853   :  { %8324 = vmatpush1.bf16.msra.mxu0 %v12800_v34  ;;  %v11733_v34 = vpack.c.bf16 %v5140_v4, %v5134_v36  ;;  %v5005_v36 = vld [vmem:[#allocation10 + $0x28] sm:$0xff]  ;;  %v5011_v4 = vld [vmem:[#allocation10 + $0x58] sm:$0xff] }
 0x854   :  { %8326 = vmatprep.subr.bf16.mxu0 %v11472_v31  ;;  %v5050_v31 = vld [vmem:[#allocation10 + $0x190] sm:$0xff] }
 0x857   :  { %8328 = vmatpush1.bf16.msra.mxu0 %v12801_v51  ;;  %v5132_v51 = vld [vmem:[#allocation10 + $0x420] sm:$0xff] }
 0x858   :  { %8330 = vmatprep.subr.bf16.mxu0 %v12802_v21  ;;  %v5138_v21 = vld [vmem:[#allocation10 + $0x450] sm:$0xff] }
 0x85b   :  { %8332 = vmatpush1.bf16.msra.mxu0 %v11486_v43  ;;  %v5056_v43 = vld [vmem:[#allocation10 + $0x1c0] sm:$0xff] }
 0x85c   :  { %8334 = vmatprep.subr.bf16.mxu0 %v12803_v38  ;;  %v11736_v38 = vpack.c.bf16 %v5138_v21, %v5132_v51  ;;  %v12810_v51 = vld [vmem:[#allocation81_spill] sm:$0xff]  ;;  %v11774_v21 = vpack.c.bf16 %v5011_v4, %v5005_v36 }
 0x85f   :  { %8336 = vmatpush1.bf16.msra.mxu0 %v11496_v58  ;;  %v5063_v58 = vld [vmem:[#allocation10 + $0x1f8] sm:$0xff] }
 0x860   :  { %8338 = vmatprep.subr.bf16.mxu0 %v11499_v44  ;;  %v11688_v44 = vpack.c.bf16 %v5056_v43, %v5050_v31  ;;  %v5147_v31 = vld [vmem:[#allocation10 + $0x498] sm:$0xff]  ;;  %v5153_v43 = vld [vmem:[#allocation10 + $0x4c8] sm:$0xff] }
 0x862   :  { %8396 = vmatpush1.bf16.msra.mxu1 %v11688_v44 }
 0x863   :  { %8340 = vmatpush1.bf16.msra.mxu0 %v11504_v29  ;;  %v5069_v29 = vld [vmem:[#allocation10 + $0x228] sm:$0xff] }
 0x864   :  { %8342 = vmatprep.subr.bf16.mxu0 %v11507_v12  ;;  %v5068_v12 = vld [vmem:[#allocation10 + $0x220] sm:$0xff]  ;;  %v11690_v32 = vpack.c.bf16 %v5069_v29, %v5063_v58  ;;  %v11740_v58 = vpack.c.bf16 %v5153_v43, %v5147_v31  ;;  %v5146_v29 = vld [vmem:[#allocation10 + $0x490] sm:$0xff] }
 0x866   :  { %8398 = vmatprep.subr.bf16.mxu1 %v11690_v32 }
 0x867   :  { %8344 = vmatpush1.bf16.msra.mxu0 %v11512_v23  ;;  %v5075_v23 = vld [vmem:[#allocation10 + $0x258] sm:$0xff] }
 0x868   :  { %8346 = vmatprep.subr.bf16.mxu0 %v11515_v6  ;;  %v5081_v6 = vld [vmem:[#allocation10 + $0x288] sm:$0xff] }
 0x86b   :  { %8348 = vmatpush1.bf16.msra.mxu0 %v11520_v28  ;;  %v11693_v28 = vpack.c.bf16 %v5068_v12, %v5062_v61  ;;  %v5152_v61 = vld [vmem:[#allocation10 + $0x4c0] sm:$0xff] }
 0x86c   :  { %8350 = vmatprep.subr.bf16.mxu0 %v11523_v8  ;;  %v11696_v8 = vpack.c.bf16 %v5081_v6, %v5075_v23  ;;  %v5144_v12 = vld [vmem:[#allocation10 + $0x480] sm:$0xff]  ;;  %v5150_v23 = vld [vmem:[#allocation10 + $0x4b0] sm:$0xff] }
 0x86d   :  { %8400 = vmatpush1.bf16.msra.mxu1 %v11693_v28  ;;  %v11746_v6 = vpack.c.bf16 %v5150_v23, %v5144_v12 }
 0x86e   :  { %8402 = vmatprep.subr.bf16.mxu1 %v11696_v8 }
 0x86f   :  { %8352 = vmatpush1.bf16.msra.mxu0 %v11528_v33  ;;  %v5074_v33 = vld [vmem:[#allocation10 + $0x250] sm:$0xff] }
 0x870   :  { %8354 = vmatprep.subr.bf16.mxu0 %v11531_v15  ;;  %v5080_v15 = vld [vmem:[#allocation10 + $0x280] sm:$0xff] }
 0x871   :  { %v11699_v2 = vpack.c.bf16 %v5080_v15, %v5074_v33  ;;  %v5159_v33 = vld [vmem:[#allocation10 + $0x4f8] sm:$0xff]  ;;  %v5165_v15 = vld [vmem:[#allocation10 + $0x528] sm:$0xff] }
 0x872   :  { %v11750_v5 = vpack.c.bf16 %v5165_v15, %v5159_v33 }
 0x873   :  { %8404 = vmatpush1.bf16.msra.mxu1 %v11699_v2  ;;  %8356 = vmatpush1.bf16.msra.mxu0 %v11726_v11 }
 0x874   :  { %8406 = vmatprep.subr.bf16.mxu1 %v11702_v49  ;;  %8358 = vmatprep.subr.bf16.mxu0 %v11540_v26  ;;  %v11743_v26 = vpack.c.bf16 %v5152_v61, %v5146_v29 }
 0x877   :  { %8408 = vmatpush1.bf16.msra.mxu1 %v11705_v54  ;;  %8360 = vmatpush1.bf16.msra.mxu0 %v11736_v38 }
 0x878   :  { %8410 = vmatprep.subr.bf16.mxu1 %v11708_v46  ;;  %8362 = vmatprep.subr.bf16.mxu0 %v11546_v10  ;;  %v11753_v10 = vpack.c.bf16 %v5164_v17, %v5158_v45  ;;  %v4627_v45 = vld [vmem:[%s12272_s5] sm:$0x3f] }
 0x879   :  { %v12811_v17 = vld [vmem:[#allocation49_spill] sm:$0xff]  ;;  %v4636_v1 = vrot.slane %v4627_v45, %v12812_v39  ;;  %v4640_v0 = vrot.slane %v4627_v45, %v12814_v9 }
 0x87b   :  { %8412 = vmatpush1.bf16.msra.mxu1 %v11711_v20  ;;  %8364 = vmatpush1.bf16.msra.mxu0 %v11746_v6  ;;  %v8939_v55 = vadd.f32 %v4636_v1, %v10303_v56 }
 0x87c   :  { %8414 = vmatprep.subr.bf16.mxu1 %v11714_v41  ;;  %8366 = vmatprep.subr.bf16.mxu0 %v12804_v50  ;;  %v4632_v50 = vrot.slane %v4627_v45, %v12811_v17 }
 0x87e   :  { %v8937_v18 = vadd.f32 %v4632_v50, %v12813_v22 }
 0x87f   :  { %8416 = vmatpush1.bf16.msra.mxu1 %v11717_v16  ;;  %8368 = vmatpush1.bf16.msra.mxu0 %v12805_v52 }
 0x880   :  { %8418 = vmatprep.subr.bf16.mxu1 %v11720_v30  ;;  %8370 = vmatprep.subr.bf16.mxu0 %v12806_v27 }
 0x883   :  { %8420 = vmatpush1.bf16.msra.mxu1 %v11724_v63  ;;  %8372 = vmatpush1.bf16.msra.mxu0 %v12808_v60  ;;  %v12815_v60 = vld [vmem:[#allocation53_spill] sm:$0xff] }
 0x884   :  { %8422 = vmatprep.subr.bf16.mxu1 %v11730_v48  ;;  %8374 = vmatprep.subr.bf16.mxu0 %v12809_v53  ;;  %v4644_v53 = vrot.slane %v4627_v45, %v12815_v60 }
 0x886   :  { %v9019_v17 = vadd.f32 %v4644_v53, %v12555_v25 }
 0x887   :  { %8424 = vmatpush1.bf16.msra.mxu1 %v11733_v34  ;;  %8376 = vmatpush1.bf16.msra.mxu0 %v12810_v51 }
 0x888   :  { %8426 = vmatprep.subr.bf16.mxu1 %v11740_v58 }
 0x88b   :  { %8428 = vmatpush1.bf16.msra.mxu1 %v11743_v26 }
 0x88c   :  { %8430 = vmatprep.subr.bf16.mxu1 %v11750_v5 }
 0x88f   :  { %8432 = vmatpush1.bf16.msra.mxu1 %v11753_v10 }
 0x890   :  { %8434 = vmatprep.subr.bf16.mxu1 %v11757_v37 }
 0x893   :  { %8436 = vmatpush1.bf16.msra.mxu1 %v11760_v59 }
 0x894   :  { %8438 = vmatprep.subr.bf16.mxu1 %v11762_v19 }
 0x897   :  { %8440 = vmatpush1.bf16.msra.mxu1 %v11767_v13  ;;  %v9017_v13 = vadd.f32 %v4640_v0, %v12554_v7 }
 0x898   :  { %8442 = vmatprep.subr.bf16.mxu1 %v11774_v21 }
 0x8dd   :  { %v4725_v31 = vpop.f32.mrb[24].mxu0  ;;  %v4802_v43 = vpop.f32.mrb[24].mxu1 }
 0x8de   :  { %v4727_v29 = vpop.f32.mrb[25].mxu0  ;;  %v4804_v61 = vpop.f32.mrb[25].mxu1  ;;  %v8938_v3 = vadd.f32 %v8937_v18, %v4725_v31  ;;  %v9018_v22 = vadd.f32 %v9017_v13, %v4802_v43 }
 0x8df   :  { %v8940_v52 = vadd.f32 %v8939_v55, %v4727_v29  ;;  %v9020_v1 = vadd.f32 %v9019_v17, %v4804_v61 }
 0x8e0   :  { %v6745_v27 = vmul.f32 -1.442695, %v8938_v3  ;;  %v6749_v3 = vmul.f32 -1.442695, %v9018_v22 }
 0x8e1   :  { %v4731_v12 = vpop.f32.mrb[26].mxu0  ;;  %v4808_v23 = vpop.f32.mrb[26].mxu1  ;;  %v6746_v4 = vmul.f32 -1.442695, %v8940_v52  ;;  %v6750_v9 = vmul.f32 -1.442695, %v9020_v1 }
 0x8e2   :  { %v4733_v33 = vpop.f32.mrb[27].mxu0  ;;  %v4810_v15 = vpop.f32.mrb[27].mxu1  ;;  %v8942_v36 = vadd.f32 %v8937_v18, %v4731_v12  ;;  %9378 = vpow2.f32 %v6745_v27  ;;  %v9022_v31 = vadd.f32 %v9017_v13, %v4808_v23 }
 0x8e3   :  { %v8944_v51 = vadd.f32 %v8939_v55, %v4733_v33  ;;  %9380 = vpow2.f32 %v6746_v4  ;;  %v9024_v29 = vadd.f32 %v9019_v17, %v4810_v15  ;;  %v4648_v15 = vrot.slane %v4627_v45, %v10329_v57 }
 0x8e4   :  { %v6747_v39 = vmul.f32 -1.442695, %v8942_v36  ;;  %v6751_v60 = vmul.f32 -1.442695, %v9022_v31 }
 0x8e5   :  { %v6748_v50 = vmul.f32 -1.442695, %v8944_v51  ;;  %v6752_v18 = vmul.f32 -1.442695, %v9024_v29 }
 0x8e6   :  { %9382 = vpow2.f32 %v6747_v39  ;;  %v4652_v39 = vrot.slane %v4627_v45, %v10332_v62 }
 0x8e7   :  { %9384 = vpow2.f32 %v6748_v50 }
 0x8e8   :  { %9386 = vpow2.f32 %v6749_v3  ;;  %v12816_v3 = vld [vmem:[#allocation37_spill] sm:$0xff] }
 0x8e9   :  { %9388 = vpow2.f32 %v6750_v9 }
 0x8ea   :  { %9390 = vpow2.f32 %v6751_v60 }
 0x8eb   :  { %9392 = vpow2.f32 %v6752_v18 }
 0x8ec   :  { %v9379_v12 = vpop.eup %9378 }
 0x8ed   :  { %v9381_v33 = vpop.eup %9380  ;;  %v4906_v55 = vadd.f32 1.0, %v9379_v12  ;;  %v864_v12 = vadd.f32 %v12816_v3, %v10338_v14 }
 0x8ee   :  { %v4907_v0 = vadd.f32 1.0, %v9381_v33  ;;  %v12817_v33 = vld [vmem:[#allocation38_spill] sm:$0xff] }
 0x8ef   :  { %9394 = vrcp.f32 %v4906_v55  ;;  %v866_v55 = vadd.f32 %v12817_v33, %v10343_v42 }
 0x8f0   :  { %v9383_v52 = vpop.eup %9382  ;;  %9396 = vrcp.f32 %v4907_v0 }
 0x8f1   :  { %v9385_v27 = vpop.eup %9384  ;;  %v4908_v43 = vadd.f32 1.0, %v9383_v52 }
 0x8f2   :  { %v4909_v13 = vadd.f32 1.0, %v9385_v27  ;;  %v9387_v61 = vpop.eup %9386 }
 0x8f3   :  { %9398 = vrcp.f32 %v4908_v43  ;;  %v9389_v23 = vpop.eup %9388  ;;  %v4934_v9 = vadd.f32 1.0, %v9387_v61 }
 0x8f4   :  { %9400 = vrcp.f32 %v4909_v13  ;;  %v9391_v17 = vpop.eup %9390  ;;  %v4935_v60 = vadd.f32 1.0, %v9389_v23 }
 0x8f5   :  { %v9393_v22 = vpop.eup %9392  ;;  %v4936_v36 = vadd.f32 1.0, %v9391_v17  ;;  %9402 = vrcp.f32 %v4934_v9 }
 0x8f6   :  { %v4937_v1 = vadd.f32 1.0, %v9393_v22  ;;  %9404 = vrcp.f32 %v4935_v60  ;;  %v12818_v22 = vld [vmem:[#allocation39_spill] sm:$0xff] }
 0x8f7   :  { %9406 = vrcp.f32 %v4936_v36 }
 0x8f8   :  { %9408 = vrcp.f32 %v4937_v1 }
 0x8f9   :  { %v9395_v50 = vpop.eup %9394 }
 0x8fa   :  { %v9397_v29 = vpop.eup %9396 }
 0x8fd   :  { %v9399_v13 = vpop.eup %9398 }
 0x8fe   :  { %v9401_v17 = vpop.eup %9400 }
 0x91d   :  { %v4879_v53 = vpop.f32.mrb[88].mxu0 }
 0x91e   :  { %v4880_v4 = vadd.f32 %v4879_v53, %v4648_v15  ;;  %v4881_v51 = vpop.f32.mrb[89].mxu0  ;;  %v870_v53 = vadd.f32 %v12818_v22, %v10338_v14 }
 0x91f   :  { %v4882_v31 = vadd.f32 %v4881_v51, %v4652_v39 }
 0x920   :  { %v4946_v18 = vmul.f32 %v9395_v50, %v4880_v4  ;;  %v12819_v4 = vld [vmem:[#allocation40_spill] sm:$0xff] }
 0x921   :  { %v4947_v45 = vmul.f32 %v9397_v29, %v4882_v31  ;;  %v4885_v52 = vpop.f32.mrb[90].mxu0  ;;  %v872_v51 = vadd.f32 %v12819_v4, %v10343_v42 }
 0x922   :  { %v4950_v0 = vadd.f32 %v4946_v18, %v864_v12  ;;  %v4886_v27 = vadd.f32 %v4885_v52, %v4648_v15  ;;  %v4887_v43 = vpop.f32.mrb[91].mxu0  ;;  %v9403_v15 = vpop.eup %9402  ;;  %v5010_v52 = vld [vmem:[#allocation10 + $0x50] sm:$0xff] }
 0x923   :  { %v4951_v61 = vadd.f32 %v4947_v45, %v866_v55  ;;  %v4888_v23 = vadd.f32 %v4887_v43, %v4652_v39  ;;  %v9405_v31 = vpop.eup %9404  ;;  %v4958_v39 = vsub.f32 1.0, %v9403_v15  ;;  %v4966_v55 = vmul.f32 %v9403_v15, %v11602_v47  ;;  %v5004_v45 = vld [vmem:[#allocation10 + $0x20] sm:$0xff]  ;;  %v5017_v43 = vld [vmem:[#allocation10 + $0x88] sm:$0xff] }
 0x924   :  { %9410 = vtanh.f32 %v4950_v0  ;;  %v4948_v9 = vmul.f32 %v9399_v13, %v4886_v27  ;;  %v9407_v1 = vpop.eup %9406  ;;  %v4959_v12 = vsub.f32 1.0, %v9405_v31  ;;  %v4967_v27 = vmul.f32 %v9405_v31, %v11604_v24  ;;  %v5023_v13 = vld [vmem:[#allocation10 + $0xb8] sm:$0xff]  ;;  %v5016_v24 = vld [vmem:[#allocation10 + $0x80] sm:$0xff]  ;;  %v5029_v31 = vld [vmem:[#allocation10 + $0xe8] sm:$0xff] }
 0x925   :  { %9412 = vtanh.f32 %v4951_v61  ;;  %v4949_v60 = vmul.f32 %v9401_v17, %v4888_v23  ;;  %v9409_v29 = vpop.eup %9408  ;;  %v4960_v61 = vsub.f32 1.0, %v9407_v1  ;;  %v11807_v47 = vpack.c.bf16 %v5023_v13, %v5017_v43  ;;  %v5059_v43 = vld [vmem:[#allocation10 + $0x1d8] sm:$0xff] }
 0x926   :  { %v4952_v50 = vadd.f32 %v4948_v9, %v870_v53  ;;  %v4961_v22 = vsub.f32 1.0, %v9409_v29  ;;  %v11804_v9 = vpack.c.bf16 %v5010_v52, %v5004_v45  ;;  %v4969_v15 = vmul.f32 %v9409_v29, %v11617_v35  ;;  %v5028_v35 = vld [vmem:[#allocation10 + $0xe0] sm:$0xff]  ;;  %v5034_v29 = vld [vmem:[#allocation10 + $0x110] sm:$0xff] }
 0x927   :  { %v4953_v36 = vadd.f32 %v4949_v60, %v872_v51  ;;  %v4968_v60 = vmul.f32 %v9407_v1, %v11614_v40  ;;  %v5040_v52 = vld [vmem:[#allocation10 + $0x140] sm:$0xff] }
 0x928   :  { %9414 = vtanh.f32 %v4952_v50  ;;  %v5022_v50 = vld [vmem:[#allocation10 + $0xb0] sm:$0xff] }
 0x929   :  { %9416 = vtanh.f32 %v4953_v36  ;;  %v11821_v1 = vpack.c.bf16 %v5022_v50, %v5016_v24  ;;  %v5064_v50 = vld [vmem:[#allocation10 + $0x200] sm:$0xff] }
 0x92e   :  { %v9411_v3 = vpop.eup %9410 }
 0x92f   :  { %v9413_v18 = vpop.eup %9412  ;;  %v4962_v33 = vmul.f32 %v9411_v3, %v4958_v39  ;;  %v5035_v39 = vld [vmem:[#allocation10 + $0x118] sm:$0xff] }
 0x930   :  { %v4963_v0 = vmul.f32 %v9413_v18, %v4959_v12  ;;  %v11825_v12 = vpack.c.bf16 %v5035_v39, %v5029_v31  ;;  %v5041_v18 = vld [vmem:[#allocation10 + $0x148] sm:$0xff]  ;;  %v5083_v31 = vld [vmem:[#allocation10 + $0x298] sm:$0xff] }
 0x931   :  { %v11800_v23 = vadd.f32 %v4966_v55, %v4962_v33  ;;  %v5047_v33 = vld [vmem:[#allocation10 + $0x178] sm:$0xff]  ;;  %v11834_v55 = vpack.c.bf16 %v5034_v29, %v5028_v35  ;;  %v5076_v29 = vld [vmem:[#allocation10 + $0x260] sm:$0xff] }
 0x932   :  { %v9415_v17 = vpop.eup %9414  ;;  %v11802_v53 = vadd.f32 %v4967_v27, %v4963_v0  ;;  %v11837_v45 = vpack.c.bf16 %v5047_v33, %v5041_v18  ;;  %v5046_v0 = vld [vmem:[#allocation10 + $0x170] sm:$0xff]  ;;  %v5053_v27 = vld [vmem:[#allocation10 + $0x1a8] sm:$0xff] }
 0x933   :  { %v9417_v4 = vpop.eup %9416  ;;  %4979 = vst [vmem:[#allocation12 + $0xc0] sm:$0xff] %v11800_v23  ;;  %v4964_v51 = vmul.f32 %v9415_v17, %v4960_v61  ;;  %v11840_v13 = vpack.c.bf16 %v5046_v0, %v5040_v52  ;;  %v11843_v61 = vpack.c.bf16 %v5059_v43, %v5053_v27  ;;  %v5052_v17 = vld [vmem:[#allocation10 + $0x1a0] sm:$0xff]  ;;  %v5082_v18 = vld [vmem:[#allocation10 + $0x290] sm:$0xff]  ;;  %v5089_v33 = vld [vmem:[#allocation10 + $0x2c8] sm:$0xff] }
 0x934   :  { %4980 = vst [vmem:[#allocation12 + $0xc8] sm:$0xff] %v11802_v53  ;;  %5288 = vmatprep.mubr.f32.mxu0 %v11802_v53  ;;  %5365 = vmatprep.mubr.f32.mxu1 %v11802_v53  ;;  %v4965_v36 = vmul.f32 %v9417_v4, %v4961_v22  ;;  %12820 = vst [vmem:[#allocation83_spill] sm:$0xff] %v11837_v45  ;;  %v5058_v22 = vld [vmem:[#allocation10 + $0x1d0] sm:$0xff]  ;;  %v5065_v4 = vld [vmem:[#allocation10 + $0x208] sm:$0xff]  ;;  %v11858_v0 = vpack.c.bf16 %v5082_v18, %v5076_v29 }
 0x935   :  { %5289 = vmatmul.mubr.f32.vlgmr.msra.gmra.mrb[28].mxu0 %v11800_v23  ;;  %5366 = vmatmul.mubr.f32.vlgmr.msra.gmra.mrb[28].mxu1 %v11800_v23  ;;  %v11816_v3 = vadd.f32 %v4968_v60, %v4964_v51  ;;  %12821 = vst [vmem:[#allocation84_spill] sm:$0xff] %v11840_v13  ;;  %12822 = vst [vmem:[#allocation85_spill] sm:$0xff] %v11843_v61  ;;  %v5071_v51 = vld [vmem:[#allocation10 + $0x238] sm:$0xff]  ;;  %v11846_v60 = vpack.c.bf16 %v5058_v22, %v5052_v17  ;;  %v5088_v43 = vld [vmem:[#allocation10 + $0x2c0] sm:$0xff] }
 0x936   :  { %8444 = vmatpush1.bf16.msra.mxu1 %v11804_v9  ;;  %v11819_v40 = vadd.f32 %v4969_v15, %v4965_v36  ;;  %v11849_v24 = vpack.c.bf16 %v5071_v51, %v5065_v4  ;;  %v5070_v36 = vld [vmem:[#allocation10 + $0x230] sm:$0xff]  ;;  %v5077_v15 = vld [vmem:[#allocation10 + $0x268] sm:$0xff]  ;;  %v5095_v52 = vld [vmem:[#allocation10 + $0x2f8] sm:$0xff]  ;;  %12827 = vst [vmem:[#allocation91_spill] sm:$0xff] %v11858_v0 }
 0x937   :  { %8446 = vmatprep.subr.bf16.mxu1 %v11807_v47  ;;  %4981 = vst [vmem:[#allocation12 + $0xd0] sm:$0xff] %v11816_v3  ;;  %12823 = vst [vmem:[#allocation87_spill] sm:$0xff] %v11846_v60  ;;  %v11852_v39 = vpack.c.bf16 %v5070_v36, %v5064_v50  ;;  %v11855_v35 = vpack.c.bf16 %v5083_v31, %v5077_v15  ;;  %v11861_v27 = vpack.c.bf16 %v5095_v52, %v5089_v33  ;;  %v5094_v17 = vld [vmem:[#allocation10 + $0x2f0] sm:$0xff]  ;;  %v5101_v22 = vld [vmem:[#allocation10 + $0x328] sm:$0xff] }
 0x938   :  { %4982 = vst [vmem:[#allocation12 + $0xd8] sm:$0xff] %v11819_v40  ;;  %5294 = vmatprep.mubr.f32.mxu0 %v11819_v40  ;;  %5371 = vmatprep.mubr.f32.mxu1 %v11819_v40  ;;  %12824 = vst [vmem:[#allocation88_spill] sm:$0xff] %v11849_v24  ;;  %v5107_v4 = vld [vmem:[#allocation10 + $0x358] sm:$0xff]  ;;  %v11864_v51 = vpack.c.bf16 %v5094_v17, %v5088_v43  ;;  %v5100_v36 = vld [vmem:[#allocation10 + $0x320] sm:$0xff] }
 0x939   :  { %5295 = vmatmul.mubr.f32.gmra.mrb[30].mxu0 %v11816_v3  ;;  %5372 = vmatmul.mubr.f32.gmra.mrb[30].mxu1 %v11816_v3  ;;  %12825 = vst [vmem:[#allocation89_spill] sm:$0xff] %v11852_v39  ;;  %12826 = vst [vmem:[#allocation90_spill] sm:$0xff] %v11855_v35  ;;  %v11867_v50 = vpack.c.bf16 %v5107_v4, %v5101_v22  ;;  %v5106_v15 = vld [vmem:[#allocation10 + $0x350] sm:$0xff]  ;;  %v5113_v31 = vld [vmem:[#allocation10 + $0x388] sm:$0xff] }
 0x93a   :  { %8448 = vmatpush1.bf16.msra.mxu1 %v11821_v1  ;;  %5442 = vmatprep.mubr.f32.mxu1 %v11802_v53  ;;  %12828 = vst [vmem:[#allocation93_spill] sm:$0xff] %v11861_v27  ;;  %12829 = vst [vmem:[#allocation94_spill] sm:$0xff] %v11864_v51  ;;  %v5119_v29 = vld [vmem:[#allocation10 + $0x3b8] sm:$0xff]  ;;  %v11870_v18 = vpack.c.bf16 %v5106_v15, %v5100_v36  ;;  %v5112_v52 = vld [vmem:[#allocation10 + $0x380] sm:$0xff] }
 0x93b   :  { %8450 = vmatprep.subr.bf16.mxu1 %v11825_v12  ;;  %12830 = vst [vmem:[#allocation95_spill] sm:$0xff] %v11867_v50  ;;  %v11873_v33 = vpack.c.bf16 %v5119_v29, %v5113_v31  ;;  %v5125_v43 = vld [vmem:[#allocation10 + $0x3e8] sm:$0xff]  ;;  %v5131_v17 = vld [vmem:[#allocation10 + $0x418] sm:$0xff] }
 0x93c   :  { %12831 = vst [vmem:[#allocation96_spill] sm:$0xff] %v11870_v18  ;;  %v11879_v4 = vpack.c.bf16 %v5131_v17, %v5125_v43  ;;  %v5137_v36 = vld [vmem:[#allocation10 + $0x448] sm:$0xff]  ;;  %v5143_v15 = vld [vmem:[#allocation10 + $0x478] sm:$0xff] }
 0x93d   :  { %12832 = vst [vmem:[#allocation29_spill] sm:$0xff] %v11873_v33  ;;  %v11885_v29 = vpack.c.bf16 %v5143_v15, %v5137_v36 }
 0x93e   :  { %8452 = vmatpush1.bf16.msra.mxu1 %v11834_v55  ;;  %12834 = vst [vmem:[#allocation31_spill] sm:$0xff] %v11879_v4 }
 0x93f   :  { %8454 = vmatprep.subr.bf16.mxu1 %v11837_v45  ;;  %12836 = vst [vmem:[#allocation97_spill] sm:$0xff] %v11885_v29 }
 0x942   :  { %8456 = vmatpush1.bf16.msra.mxu1 %v11840_v13  ;;  %v5619_v13 = vld [vmem:[#allocation10 + $0x1b0] sm:$0xff] }
 0x943   :  { %8458 = vmatprep.subr.bf16.mxu1 %v11843_v61  ;;  %v5620_v61 = vld [vmem:[#allocation10 + $0x1b8] sm:$0xff] }
 0x946   :  { %8460 = vmatpush1.bf16.msra.mxu1 %v11846_v60 }
 0x947   :  { %8462 = vmatprep.subr.bf16.mxu1 %v11849_v24  ;;  %v5601_v24 = vld [vmem:[#allocation10 + $0x120] sm:$0xff] }
 0x94a   :  { %8464 = vmatpush1.bf16.msra.mxu1 %v11852_v39 }
 0x94b   :  { %8466 = vmatprep.subr.bf16.mxu1 %v11855_v35  ;;  %v5589_v35 = vld [vmem:[#allocation10 + $0xc0] sm:$0xff] }
 0x94e   :  { %8468 = vmatpush1.bf16.msra.mxu1 %v11858_v0  ;;  %v5118_v0 = vld [vmem:[#allocation10 + $0x3b0] sm:$0xff] }
 0x94f   :  { %8470 = vmatprep.subr.bf16.mxu1 %v11861_v27  ;;  %v11876_v22 = vpack.c.bf16 %v5118_v0, %v5112_v52  ;;  %v5124_v27 = vld [vmem:[#allocation10 + $0x3e0] sm:$0xff]  ;;  %v5149_v0 = vld [vmem:[#allocation10 + $0x4a8] sm:$0xff]  ;;  %v5155_v52 = vld [vmem:[#allocation10 + $0x4d8] sm:$0xff] }
 0x950   :  { %v11891_v17 = vpack.c.bf16 %v5155_v52, %v5149_v0 }
 0x951   :  { %12833 = vst [vmem:[#allocation30_spill] sm:$0xff] %v11876_v22 }
 0x952   :  { %8472 = vmatpush1.bf16.msra.mxu1 %v11864_v51  ;;  %v5130_v51 = vld [vmem:[#allocation10 + $0x410] sm:$0xff]  ;;  %12838 = vst [vmem:[#allocation34_spill] sm:$0xff] %v11891_v17 }
 0x953   :  { %8474 = vmatprep.subr.bf16.mxu1 %v11867_v50  ;;  %v11882_v31 = vpack.c.bf16 %v5130_v51, %v5124_v27  ;;  %v5136_v50 = vld [vmem:[#allocation10 + $0x440] sm:$0xff]  ;;  %v5161_v27 = vld [vmem:[#allocation10 + $0x508] sm:$0xff]  ;;  %v5167_v51 = vld [vmem:[#allocation10 + $0x538] sm:$0xff] }
 0x954   :  { %v11897_v15 = vpack.c.bf16 %v5167_v51, %v5161_v27 }
 0x955   :  { %12835 = vst [vmem:[#allocation32_spill] sm:$0xff] %v11882_v31 }
 0x956   :  { %8476 = vmatpush1.bf16.msra.mxu1 %v11870_v18  ;;  %v5142_v18 = vld [vmem:[#allocation10 + $0x470] sm:$0xff]  ;;  %12840 = vst [vmem:[#allocation36_spill] sm:$0xff] %v11897_v15 }
 0x957   :  { %8478 = vmatprep.subr.bf16.mxu1 %v11873_v33  ;;  %v11888_v43 = vpack.c.bf16 %v5142_v18, %v5136_v50  ;;  %v5148_v33 = vld [vmem:[#allocation10 + $0x4a0] sm:$0xff]  ;;  %v5173_v50 = vld [vmem:[#allocation10 + $0x568] sm:$0xff]  ;;  %v5179_v18 = vld [vmem:[#allocation10 + $0x598] sm:$0xff] }
 0x958   :  { %v11903_v52 = vpack.c.bf16 %v5179_v18, %v5173_v50  ;;  %v5565_v50 = vld [vmem:[#allocation10] sm:$0xff]  ;;  %v5571_v18 = vld [vmem:[#allocation10 + $0x30] sm:$0xff] }
 0x959   :  { %12837 = vst [vmem:[#allocation33_spill] sm:$0xff] %v11888_v43 }
 0x95a   :  { %8480 = vmatpush1.bf16.msra.mxu1 %v11876_v22  ;;  %v5154_v22 = vld [vmem:[#allocation10 + $0x4d0] sm:$0xff]  ;;  %12842 = vst [vmem:[#allocation72_spill] sm:$0xff] %v11903_v52 }
 0x95b   :  { %8482 = vmatprep.subr.bf16.mxu1 %v11879_v4  ;;  %v11894_v36 = vpack.c.bf16 %v5154_v22, %v5148_v33  ;;  %v5160_v4 = vld [vmem:[#allocation10 + $0x500] sm:$0xff]  ;;  %v5185_v33 = vld [vmem:[#allocation10 + $0x5c8] sm:$0xff]  ;;  %v5191_v22 = vld [vmem:[#allocation10 + $0x5f8] sm:$0xff] }
 0x95c   :  { %v11909_v51 = vpack.c.bf16 %v5191_v22, %v5185_v33  ;;  %v5568_v33 = vld [vmem:[#allocation10 + $0x18] sm:$0xff]  ;;  %v11921_v22 = vpack.c.bf16 %v5571_v18, %v5565_v50  ;;  %v5583_v50 = vld [vmem:[#allocation10 + $0x90] sm:$0xff] }
 0x95d   :  { %12839 = vst [vmem:[#allocation35_spill] sm:$0xff] %v11894_v36  ;;  %v5580_v18 = vld [vmem:[#allocation10 + $0x78] sm:$0xff] }
 0x95e   :  { %8484 = vmatpush1.bf16.msra.mxu1 %v11882_v31  ;;  %v5166_v31 = vld [vmem:[#allocation10 + $0x530] sm:$0xff]  ;;  %12844 = vst [vmem:[#allocation100_spill] sm:$0xff] %v11909_v51  ;;  %12847 = vst [vmem:[#allocation22_spill] sm:$0xff] %v11921_v22 }
 0x95f   :  { %8486 = vmatprep.subr.bf16.mxu1 %v11885_v29  ;;  %v11900_v0 = vpack.c.bf16 %v5166_v31, %v5160_v4  ;;  %v5172_v29 = vld [vmem:[#allocation10 + $0x560] sm:$0xff]  ;;  %v5566_v31 = vld [vmem:[#allocation10 + $0x8] sm:$0xff] }
 0x961   :  { %12841 = vst [vmem:[#allocation98_spill] sm:$0xff] %v11900_v0 }
 0x962   :  { %8488 = vmatpush1.bf16.msra.mxu1 %v11888_v43  ;;  %v5178_v43 = vld [vmem:[#allocation10 + $0x590] sm:$0xff] }
 0x963   :  { %8490 = vmatprep.subr.bf16.mxu1 %v11891_v17  ;;  %v11906_v27 = vpack.c.bf16 %v5178_v43, %v5172_v29  ;;  %v5184_v17 = vld [vmem:[#allocation10 + $0x5c0] sm:$0xff]  ;;  %v5572_v29 = vld [vmem:[#allocation10 + $0x38] sm:$0xff] }
 0x964   :  { %v11919_v43 = vpack.c.bf16 %v5572_v29, %v5566_v31  ;;  %v5577_v29 = vld [vmem:[#allocation10 + $0x60] sm:$0xff] }
 0x965   :  { %12843 = vst [vmem:[#allocation99_spill] sm:$0xff] %v11906_v27 }
 0x966   :  { %8492 = vmatpush1.bf16.msra.mxu1 %v11894_v36  ;;  %v5190_v36 = vld [vmem:[#allocation10 + $0x5f0] sm:$0xff]  ;;  %12846 = vst [vmem:[#allocation21_spill] sm:$0xff] %v11919_v43  ;;  %8506 = vmatprep.subr.bf16.mxu0 %v11919_v43  ;;  %v5586_v43 = vld [vmem:[#allocation10 + $0xa8] sm:$0xff] }
 0x967   :  { %8494 = vmatprep.subr.bf16.mxu1 %v11897_v15  ;;  %v11912_v4 = vpack.c.bf16 %v5190_v36, %v5184_v17  ;;  %v5574_v17 = vld [vmem:[#allocation10 + $0x48] sm:$0xff]  ;;  %v5567_v36 = vld [vmem:[#allocation10 + $0x10] sm:$0xff]  ;;  %8508 = vmatpush1.bf16.msra.mxu0 %v11921_v22  ;;  %v11933_v15 = vpack.c.bf16 %v5583_v50, %v5577_v29  ;;  %v5592_v50 = vld [vmem:[#allocation10 + $0xd8] sm:$0xff] }
 0x968   :  { %v5595_v29 = vld [vmem:[#allocation10 + $0xf0] sm:$0xff] }
 0x969   :  { %12845 = vst [vmem:[#allocation101_spill] sm:$0xff] %v11912_v4  ;;  %12849 = vst [vmem:[#allocation24_spill] sm:$0xff] %v11933_v15  ;;  %v11945_v39 = vpack.c.bf16 %v5595_v29, %v5589_v35  ;;  %v5607_v35 = vld [vmem:[#allocation10 + $0x150] sm:$0xff]  ;;  %v5604_v29 = vld [vmem:[#allocation10 + $0x138] sm:$0xff] }
 0x96a   :  { %8496 = vmatpush1.bf16.msra.mxu1 %v11900_v0  ;;  %v5584_v0 = vld [vmem:[#allocation10 + $0x98] sm:$0xff]  ;;  %v11957_v60 = vpack.c.bf16 %v5607_v35, %v5601_v24  ;;  %v5622_v24 = vld [vmem:[#allocation10 + $0x1c8] sm:$0xff] }
 0x96b   :  { %8498 = vmatprep.subr.bf16.mxu1 %v11903_v52  ;;  %v5578_v52 = vld [vmem:[#allocation10 + $0x68] sm:$0xff]  ;;  %12851 = vst [vmem:[#allocation25_spill] sm:$0xff] %v11945_v39 }
 0x96c   :  { %v11930_v31 = vpack.c.bf16 %v5584_v0, %v5578_v52  ;;  %v5590_v0 = vld [vmem:[#allocation10 + $0xc8] sm:$0xff]  ;;  %v5596_v52 = vld [vmem:[#allocation10 + $0xf8] sm:$0xff]  ;;  %12853 = vst [vmem:[#allocation27_spill] sm:$0xff] %v11957_v60 }
 0x96d   :  { %v11942_v22 = vpack.c.bf16 %v5596_v52, %v5590_v0  ;;  %v5602_v0 = vld [vmem:[#allocation10 + $0x128] sm:$0xff]  ;;  %v5608_v52 = vld [vmem:[#allocation10 + $0x158] sm:$0xff] }
 0x96e   :  { %8500 = vmatpush1.bf16.msra.mxu1 %v11906_v27  ;;  %12848 = vst [vmem:[#allocation23_spill] sm:$0xff] %v11930_v31  ;;  %8510 = vmatprep.subr.bf16.mxu0 %v11930_v31  ;;  %v5598_v31 = vld [vmem:[#allocation10 + $0x108] sm:$0xff] }
 0x96f   :  { %8502 = vmatprep.subr.bf16.mxu1 %v11909_v51  ;;  %v5573_v51 = vld [vmem:[#allocation10 + $0x40] sm:$0xff]  ;;  %8512 = vmatpush1.bf16.msra.mxu0 %v11933_v15  ;;  %12850 = vst [vmem:[#allocation56_spill] sm:$0xff] %v11942_v22  ;;  %v11954_v15 = vpack.c.bf16 %v5608_v52, %v5602_v0 }
 0x970   :  { %v11926_v27 = vpack.c.bf16 %v5573_v51, %v5567_v36  ;;  %v11936_v51 = vpack.c.bf16 %v5586_v43, %v5580_v18  ;;  %v5591_v43 = vld [vmem:[#allocation10 + $0xd0] sm:$0xff]  ;;  %v5597_v18 = vld [vmem:[#allocation10 + $0x100] sm:$0xff]  ;;  %8514 = vmatprep.subr.bf16.mxu0 %v11942_v22  ;;  %v5610_v22 = vld [vmem:[#allocation10 + $0x168] sm:$0xff] }
 0x971   :  { %v5613_v0 = vld [vmem:[#allocation10 + $0x180] sm:$0xff] }
 0x972   :  { %8504 = vmatpush1.bf16.msra.mxu1 %v11912_v4  ;;  %v11924_v4 = vpack.c.bf16 %v5574_v17, %v5568_v33  ;;  %v5579_v33 = vld [vmem:[#allocation10 + $0x70] sm:$0xff]  ;;  %v5585_v17 = vld [vmem:[#allocation10 + $0xa0] sm:$0xff]  ;;  %v11968_v35 = vpack.c.bf16 %v5619_v13, %v5613_v0 }
 0x973   :  { %v11938_v36 = vpack.c.bf16 %v5585_v17, %v5579_v33  ;;  %v11948_v33 = vpack.c.bf16 %v5598_v31, %v5592_v50  ;;  %v11950_v17 = vpack.c.bf16 %v5597_v18, %v5591_v43  ;;  %8516 = vmatpush1.bf16.msra.mxu0 %v11945_v39  ;;  %v5603_v31 = vld [vmem:[#allocation10 + $0x130] sm:$0xff]  ;;  %v5609_v50 = vld [vmem:[#allocation10 + $0x160] sm:$0xff]  ;;  %v11960_v43 = vpack.c.bf16 %v5610_v22, %v5604_v29  ;;  %v5614_v39 = vld [vmem:[#allocation10 + $0x188] sm:$0xff] }
 0x974   :  { %8570 = vmatprep.subr.bf16.mxu1 %v11924_v4  ;;  %8518 = vmatprep.subr.bf16.mxu0 %v11954_v15  ;;  %v11962_v18 = vpack.c.bf16 %v5609_v50, %v5603_v31  ;;  %v11965_v52 = vpack.c.bf16 %v5620_v61, %v5614_v39  ;;  %v5626_v22 = vld [vmem:[#allocation10 + $0x1e8] sm:$0xff]  ;;  %v5632_v29 = vld [vmem:[#allocation10 + $0x218] sm:$0xff]  ;;  %v5625_v31 = vld [vmem:[#allocation10 + $0x1e0] sm:$0xff] }
 0x975   :  { %5443 = vmatmul.mubr.f32.vlgmr.msra.gmra.mrb[56].mxu1 %v11800_v23  ;;  %12852 = vst [vmem:[#allocation26_spill] sm:$0xff] %v11950_v17  ;;  %v11974_v50 = vpack.c.bf16 %v5632_v29, %v5626_v22  ;;  %v5631_v61 = vld [vmem:[#allocation10 + $0x210] sm:$0xff]  ;;  %v5638_v39 = vld [vmem:[#allocation10 + $0x248] sm:$0xff]  ;;  %v5637_v0 = vld [vmem:[#allocation10 + $0x240] sm:$0xff] }
 0x976   :  { %5448 = vmatprep.mubr.f32.mxu1 %v11819_v40  ;;  %8572 = vmatpush1.bf16.msra.mxu1 %v11926_v27  ;;  %12854 = vst [vmem:[#allocation28_spill] sm:$0xff] %v11965_v52  ;;  %v11978_v13 = vpack.c.bf16 %v5631_v61, %v5625_v31  ;;  %v5656_v22 = vld [vmem:[#allocation10 + $0x2d8] sm:$0xff]  ;;  %v5649_v61 = vld [vmem:[#allocation10 + $0x2a0] sm:$0xff] }
 0x977   :  { %8574 = vmatprep.subr.bf16.mxu1 %v11936_v51  ;;  %8520 = vmatpush1.bf16.msra.mxu0 %v11957_v60  ;;  %12855 = vst [vmem:[#allocation58_spill] sm:$0xff] %v11974_v50  ;;  %v5644_v60 = vld [vmem:[#allocation10 + $0x278] sm:$0xff] }
 0x978   :  { %8522 = vmatprep.subr.bf16.mxu0 %v11965_v52  ;;  %v5650_v52 = vld [vmem:[#allocation10 + $0x2a8] sm:$0xff] }
 0x979   :  { %5449 = vmatmul.mubr.f32.gmra.mrb[58].mxu1 %v11816_v3  ;;  %v11989_v31 = vpack.c.bf16 %v5656_v22, %v5650_v52  ;;  %v5674_v52 = vld [vmem:[#allocation10 + $0x368] sm:$0xff]  ;;  %v5680_v22 = vld [vmem:[#allocation10 + $0x398] sm:$0xff] }
 0x97a   :  { %8576 = vmatpush1.bf16.msra.mxu1 %v11938_v36 }
 0x97b   :  { %8578 = vmatprep.subr.bf16.mxu1 %v11948_v33  ;;  %8524 = vmatpush1.bf16.msra.mxu0 %v11968_v35 }
 0x97c   :  { %8526 = vmatprep.subr.bf16.mxu0 %v11974_v50  ;;  %v5655_v50 = vld [vmem:[#allocation10 + $0x2d0] sm:$0xff] }
 0x97e   :  { %8580 = vmatpush1.bf16.msra.mxu1 %v11950_v17  ;;  %v5616_v17 = vld [vmem:[#allocation10 + $0x198] sm:$0xff] }
 0x97f   :  { %8582 = vmatprep.subr.bf16.mxu1 %v11960_v43  ;;  %v11970_v45 = vpack.c.bf16 %v5622_v24, %v5616_v17  ;;  %v11981_v17 = vpack.c.bf16 %v5644_v60, %v5638_v39  ;;  %v5643_v24 = vld [vmem:[#allocation10 + $0x270] sm:$0xff]  ;;  %8528 = vmatpush1.bf16.msra.mxu0 %v11978_v13  ;;  %v5662_v60 = vld [vmem:[#allocation10 + $0x308] sm:$0xff]  ;;  %v5668_v39 = vld [vmem:[#allocation10 + $0x338] sm:$0xff] }
 0x980   :  { %v11986_v29 = vpack.c.bf16 %v5643_v24, %v5637_v0  ;;  %v5661_v0 = vld [vmem:[#allocation10 + $0x300] sm:$0xff]  ;;  %v5667_v24 = vld [vmem:[#allocation10 + $0x330] sm:$0xff] }
 0x981   :  { %8530 = vmatprep.subr.bf16.mxu0 %v11981_v17 }
 0x982   :  { %8584 = vmatpush1.bf16.msra.mxu1 %v11962_v18 }
 0x983   :  { %8586 = vmatprep.subr.bf16.mxu1 %v11970_v45  ;;  %8532 = vmatpush1.bf16.msra.mxu0 %v11986_v29 }
 0x984   :  { %8534 = vmatprep.subr.bf16.mxu0 %v11989_v31 }
 0x986   :  { %8588 = vmatpush1.bf16.msra.mxu1 %v11688_v44  ;;  %v11994_v44 = vpack.c.bf16 %v5655_v50, %v5649_v61  ;;  %v5673_v50 = vld [vmem:[#allocation10 + $0x360] sm:$0xff]  ;;  %v5679_v61 = vld [vmem:[#allocation10 + $0x390] sm:$0xff] }
 0x987   :  { %8590 = vmatprep.subr.bf16.mxu1 %v11690_v32  ;;  %v11997_v32 = vpack.c.bf16 %v5668_v39, %v5662_v60  ;;  %v5686_v60 = vld [vmem:[#allocation10 + $0x3c8] sm:$0xff]  ;;  %v5692_v39 = vld [vmem:[#allocation10 + $0x3f8] sm:$0xff] }
 0x988   :  { %8536 = vmatpush1.bf16.msra.mxu0 %v11994_v44 }
 0x989   :  { %8538 = vmatprep.subr.bf16.mxu0 %v11997_v32 }
 0x98a   :  { %8592 = vmatpush1.bf16.msra.mxu1 %v11693_v28  ;;  %v12002_v28 = vpack.c.bf16 %v5667_v24, %v5661_v0 }
 0x98b   :  { %8594 = vmatprep.subr.bf16.mxu1 %v11696_v8  ;;  %v12005_v8 = vpack.c.bf16 %v5680_v22, %v5674_v52  ;;  %v5740_v52 = vld [vmem:[#allocation10 + $0x578] sm:$0xff]  ;;  %v5733_v22 = vld [vmem:[#allocation10 + $0x540] sm:$0xff] }
 0x98c   :  { %8540 = vmatpush1.bf16.msra.mxu0 %v12002_v28 }
 0x98d   :  { %8542 = vmatprep.subr.bf16.mxu0 %v12005_v8 }
 0x98e   :  { %8596 = vmatpush1.bf16.msra.mxu1 %v11699_v2  ;;  %v12010_v2 = vpack.c.bf16 %v5679_v61, %v5673_v50  ;;  %v5746_v50 = vld [vmem:[#allocation10 + $0x5a8] sm:$0xff]  ;;  %v5752_v61 = vld [vmem:[#allocation10 + $0x5d8] sm:$0xff] }
 0x98f   :  { %8598 = vmatprep.subr.bf16.mxu1 %v11702_v49  ;;  %v12013_v49 = vpack.c.bf16 %v5692_v39, %v5686_v60  ;;  %v12046_v39 = vpack.c.bf16 %v5752_v61, %v5746_v50 }
 0x990   :  { %8544 = vmatpush1.bf16.msra.mxu0 %v12010_v2 }
 0x991   :  { %8546 = vmatprep.subr.bf16.mxu0 %v12013_v49  ;;  %12860 = vst [vmem:[#allocation20_spill] sm:$0xff] %v12046_v39 }
 0x992   :  { %8600 = vmatpush1.bf16.msra.mxu1 %v11705_v54  ;;  %v5698_v54 = vld [vmem:[#allocation10 + $0x428] sm:$0xff] }
 0x993   :  { %8602 = vmatprep.subr.bf16.mxu1 %v11708_v46  ;;  %v5704_v46 = vld [vmem:[#allocation10 + $0x458] sm:$0xff] }
 0x994   :  { %8548 = vmatpush1.bf16.msra.mxu0 %v11726_v11  ;;  %v12022_v0 = vpack.c.bf16 %v5704_v46, %v5698_v54  ;;  %v5721_v11 = vld [vmem:[#allocation10 + $0x4e0] sm:$0xff]  ;;  %v5751_v54 = vld [vmem:[#allocation10 + $0x5d0] sm:$0xff]  ;;  %v12862_v46 = vld [vmem:[#allocation82_spill] sm:$0xff] }
 0x996   :  { %8604 = vmatpush1.bf16.msra.mxu1 %v11711_v20  ;;  %8550 = vmatprep.subr.bf16.mxu0 %v12022_v0  ;;  %v5710_v20 = vld [vmem:[#allocation10 + $0x488] sm:$0xff] }
 0x997   :  { %8606 = vmatprep.subr.bf16.mxu1 %v11714_v41  ;;  %v5716_v41 = vld [vmem:[#allocation10 + $0x4b8] sm:$0xff] }
 0x998   :  { %8552 = vmatpush1.bf16.msra.mxu0 %v11736_v38  ;;  %v12028_v24 = vpack.c.bf16 %v5716_v41, %v5710_v20 }
 0x99a   :  { %8608 = vmatpush1.bf16.msra.mxu1 %v11717_v16  ;;  %8554 = vmatprep.subr.bf16.mxu0 %v12028_v24  ;;  %v5722_v16 = vld [vmem:[#allocation10 + $0x4e8] sm:$0xff] }
 0x99b   :  { %8610 = vmatprep.subr.bf16.mxu1 %v11720_v30  ;;  %v5728_v30 = vld [vmem:[#allocation10 + $0x518] sm:$0xff] }
 0x99c   :  { %8556 = vmatpush1.bf16.msra.mxu0 %v11746_v6  ;;  %v5739_v6 = vld [vmem:[#allocation10 + $0x570] sm:$0xff] }
 0x99d   :  { %v12044_v60 = vpack.c.bf16 %v5739_v6, %v5733_v22  ;;  %v12865_v22 = vld [vmem:[#allocation55_spill] sm:$0xff] }
 0x99e   :  { %8612 = vmatpush1.bf16.msra.mxu1 %v11724_v63  ;;  %v12034_v63 = vpack.c.bf16 %v5728_v30, %v5722_v16 }
 0x99f   :  { %8614 = vmatprep.subr.bf16.mxu1 %v11730_v48  ;;  %v5727_v48 = vld [vmem:[#allocation10 + $0x510] sm:$0xff]  ;;  %12859 = vst [vmem:[#allocation19_spill] sm:$0xff] %v12044_v60 }
 0x9a0   :  { %12856 = vst [vmem:[#allocation86_spill] sm:$0xff] %v12034_v63  ;;  %v12037_v38 = vpack.c.bf16 %v5727_v48, %v5721_v11  ;;  %8558 = vmatprep.subr.bf16.mxu0 %v12034_v63 }
 0x9a2   :  { %8616 = vmatpush1.bf16.msra.mxu1 %v11733_v34  ;;  %12857 = vst [vmem:[#allocation17_spill] sm:$0xff] %v12037_v38  ;;  %v5734_v34 = vld [vmem:[#allocation10 + $0x548] sm:$0xff]  ;;  %8560 = vmatpush1.bf16.msra.mxu0 %v12037_v38 }
 0x9a3   :  { %8618 = vmatprep.subr.bf16.mxu1 %v11740_v58  ;;  %v12042_v58 = vpack.c.bf16 %v5740_v52, %v5734_v34  ;;  %v12864_v52 = vld [vmem:[#allocation50_spill] sm:$0xff] }
 0x9a5   :  { %12858 = vst [vmem:[#allocation18_spill] sm:$0xff] %v12042_v58  ;;  %8562 = vmatprep.subr.bf16.mxu0 %v12042_v58 }
 0x9a6   :  { %8620 = vmatpush1.bf16.msra.mxu1 %v11743_v26  ;;  %v5745_v26 = vld [vmem:[#allocation10 + $0x5a0] sm:$0xff]  ;;  %8564 = vmatpush1.bf16.msra.mxu0 %v12044_v60 }
 0x9a7   :  { %8622 = vmatprep.subr.bf16.mxu1 %v11750_v5  ;;  %v12052_v5 = vpack.c.bf16 %v5751_v54, %v5745_v26  ;;  %8566 = vmatprep.subr.bf16.mxu0 %v12046_v39  ;;  %v12866_v26 = vld [vmem:[#allocation51_spill] sm:$0xff] }
 0x9a9   :  { %12861 = vst [vmem:[#allocation60_spill] sm:$0xff] %v12052_v5 }
 0x9aa   :  { %8624 = vmatpush1.bf16.msra.mxu1 %v11753_v10  ;;  %8568 = vmatpush1.bf16.msra.mxu0 %v12052_v5  ;;  %v12867_v5 = vld [vmem:[#allocation53_spill] sm:$0xff] }
 0x9ab   :  { %8626 = vmatprep.subr.bf16.mxu1 %v11757_v37  ;;  %8634 = vmatprep.subr.bf16.mxu0 %v11774_v21 }
 0x9ae   :  { %8628 = vmatpush1.bf16.msra.mxu1 %v11760_v59  ;;  %v5192_v59 = vld [vmem:[%s12272_s5] sm:$0x3f] }
 0x9af   :  { %8630 = vmatprep.subr.bf16.mxu1 %v11762_v19  ;;  %v12863_v19 = vld [vmem:[#allocation49_spill] sm:$0xff]  ;;  %v5201_v21 = vrot.slane %v5192_v59, %v12864_v52  ;;  %v5205_v54 = vrot.slane %v5192_v59, %v12866_v26  ;;  %v5209_v39 = vrot.slane %v5192_v59, %v12867_v5 }
 0x9b0   :  { %v5197_v34 = vrot.slane %v5192_v59, %v12863_v19 }
 0x9b1   :  { %v9025_v63 = vadd.f32 %v5205_v54, %v12554_v7  ;;  %v9027_v19 = vadd.f32 %v5209_v39, %v12555_v25 }
 0x9b2   :  { %8632 = vmatpush1.bf16.msra.mxu1 %v12862_v46  ;;  %v8945_v6 = vadd.f32 %v5197_v34, %v12865_v22 }
 0x9b3   :  { %8762 = vmatprep.subr.bf16.mxu1 %v11924_v4  ;;  %v8947_v4 = vadd.f32 %v5201_v21, %v10303_v56 }
 0xa08   :  { %v5290_v10 = vpop.f32.mrb[28].mxu0  ;;  %v5367_v37 = vpop.f32.mrb[28].mxu1 }
 0xa09   :  { %v5292_v20 = vpop.f32.mrb[29].mxu0  ;;  %v5369_v41 = vpop.f32.mrb[29].mxu1  ;;  %v8946_v50 = vadd.f32 %v8945_v6, %v5290_v10  ;;  %v9026_v22 = vadd.f32 %v9025_v63, %v5367_v37 }
 0xa0a   :  { %v8948_v61 = vadd.f32 %v8947_v4, %v5292_v20  ;;  %v9028_v21 = vadd.f32 %v9027_v19, %v5369_v41 }
 0xa0b   :  { %v6753_v46 = vmul.f32 -1.442695, %v8946_v50  ;;  %v6757_v50 = vmul.f32 -1.442695, %v9026_v22 }
 0xa0c   :  { %v5296_v16 = vpop.f32.mrb[30].mxu0  ;;  %v5373_v30 = vpop.f32.mrb[30].mxu1  ;;  %v6754_v58 = vmul.f32 -1.442695, %v8948_v61  ;;  %v6758_v26 = vmul.f32 -1.442695, %v9028_v21 }
 0xa0d   :  { %v5298_v11 = vpop.f32.mrb[31].mxu0  ;;  %v5375_v48 = vpop.f32.mrb[31].mxu1  ;;  %v8950_v60 = vadd.f32 %v8945_v6, %v5296_v16  ;;  %9418 = vpow2.f32 %v6753_v46  ;;  %v9030_v10 = vadd.f32 %v9025_v63, %v5373_v30  ;;  %v5213_v30 = vrot.slane %v5192_v59, %v10329_v57 }
 0xa0e   :  { %v8952_v38 = vadd.f32 %v8947_v4, %v5298_v11  ;;  %9420 = vpow2.f32 %v6754_v58  ;;  %v9032_v20 = vadd.f32 %v9027_v19, %v5375_v48  ;;  %v5217_v19 = vrot.slane %v5192_v59, %v10332_v62 }
 0xa0f   :  { %v6755_v52 = vmul.f32 -1.442695, %v8950_v60  ;;  %v6759_v5 = vmul.f32 -1.442695, %v9030_v10 }
 0xa10   :  { %v6756_v34 = vmul.f32 -1.442695, %v8952_v38  ;;  %v6760_v6 = vmul.f32 -1.442695, %v9032_v20 }
 0xa11   :  { %9422 = vpow2.f32 %v6755_v52 }
 0xa12   :  { %9424 = vpow2.f32 %v6756_v34 }
 0xa13   :  { %9426 = vpow2.f32 %v6757_v50  ;;  %v12868_v50 = vld [vmem:[#allocation41_spill] sm:$0xff] }
 0xa14   :  { %9428 = vpow2.f32 %v6758_v26 }
 0xa15   :  { %9430 = vpow2.f32 %v6759_v5 }
 0xa16   :  { %9432 = vpow2.f32 %v6760_v6 }
 0xa17   :  { %v9419_v16 = vpop.eup %9418 }
 0xa18   :  { %v9421_v11 = vpop.eup %9420  ;;  %v5471_v4 = vadd.f32 1.0, %v9419_v16  ;;  %v876_v16 = vadd.f32 %v12868_v50, %v10338_v14 }
 0xa19   :  { %v5472_v60 = vadd.f32 1.0, %v9421_v11  ;;  %v12869_v11 = vld [vmem:[#allocation42_spill] sm:$0xff] }
 0xa1a   :  { %9434 = vrcp.f32 %v5471_v4  ;;  %v878_v4 = vadd.f32 %v12869_v11, %v10343_v42 }
 0xa1b   :  { %v9423_v39 = vpop.eup %9422  ;;  %9436 = vrcp.f32 %v5472_v60 }
 0xa1c   :  { %v9425_v38 = vpop.eup %9424  ;;  %v5473_v58 = vadd.f32 1.0, %v9423_v39 }
 0xa1d   :  { %v5474_v63 = vadd.f32 1.0, %v9425_v38  ;;  %v9427_v37 = vpop.eup %9426 }
 0xa1e   :  { %9438 = vrcp.f32 %v5473_v58  ;;  %v9429_v41 = vpop.eup %9428  ;;  %v5499_v22 = vadd.f32 1.0, %v9427_v37 }
 0xa1f   :  { %9440 = vrcp.f32 %v5474_v63  ;;  %v9431_v48 = vpop.eup %9430  ;;  %v5500_v5 = vadd.f32 1.0, %v9429_v41 }
 0xa20   :  { %v9433_v52 = vpop.eup %9432  ;;  %v5501_v26 = vadd.f32 1.0, %v9431_v48  ;;  %9442 = vrcp.f32 %v5499_v22 }
 0xa21   :  { %v5502_v21 = vadd.f32 1.0, %v9433_v52  ;;  %9444 = vrcp.f32 %v5500_v5  ;;  %v12870_v52 = vld [vmem:[#allocation43_spill] sm:$0xff] }
 0xa22   :  { %9446 = vrcp.f32 %v5501_v26 }
 0xa23   :  { %9448 = vrcp.f32 %v5502_v21 }
 0xa24   :  { %v9435_v34 = vpop.eup %9434 }
 0xa25   :  { %v9437_v20 = vpop.eup %9436 }
 0xa28   :  { %v9439_v63 = vpop.eup %9438 }
 0xa29   :  { %v9441_v48 = vpop.eup %9440 }
 0xa48   :  { %v5444_v61 = vpop.f32.mrb[56].mxu1 }
 0xa49   :  { %v5445_v54 = vadd.f32 %v5444_v61, %v5213_v30  ;;  %v5446_v46 = vpop.f32.mrb[57].mxu1  ;;  %v882_v61 = vadd.f32 %v12870_v52, %v10338_v14 }
 0xa4a   :  { %v5447_v10 = vadd.f32 %v5446_v46, %v5217_v19 }
 0xa4b   :  { %v5511_v6 = vmul.f32 %v9435_v34, %v5445_v54  ;;  %v12871_v54 = vld [vmem:[#allocation44_spill] sm:$0xff] }
 0xa4c   :  { %v5512_v59 = vmul.f32 %v9437_v20, %v5447_v10  ;;  %v5450_v39 = vpop.f32.mrb[58].mxu1  ;;  %v884_v46 = vadd.f32 %v12871_v54, %v10343_v42  ;;  %v12884_v54 = vld [vmem:[#allocation96_spill] sm:$0xff] }
 0xa4d   :  { %v5515_v60 = vadd.f32 %v5511_v6, %v876_v16  ;;  %v5451_v38 = vadd.f32 %v5450_v39, %v5213_v30  ;;  %v5452_v58 = vpop.f32.mrb[59].mxu1  ;;  %v9443_v30 = vpop.eup %9442 }
 0xa4e   :  { %v5516_v37 = vadd.f32 %v5512_v59, %v878_v4  ;;  %v5453_v41 = vadd.f32 %v5452_v58, %v5217_v19  ;;  %v9445_v10 = vpop.eup %9444  ;;  %v5523_v19 = vsub.f32 1.0, %v9443_v30  ;;  %v5531_v4 = vmul.f32 %v9443_v30, %v11800_v23  ;;  %v12891_v30 = vld [vmem:[#allocation34_spill] sm:$0xff] }
 0xa4f   :  { %9450 = vtanh.f32 %v5515_v60  ;;  %v5513_v22 = vmul.f32 %v9439_v63, %v5451_v38  ;;  %v9447_v21 = vpop.eup %9446  ;;  %v5524_v16 = vsub.f32 1.0, %v9445_v10  ;;  %v5532_v39 = vmul.f32 %v9445_v10, %v11802_v53  ;;  %v12892_v10 = vld [vmem:[#allocation35_spill] sm:$0xff] }
 0xa50   :  { %9452 = vtanh.f32 %v5516_v37  ;;  %v5514_v5 = vmul.f32 %v9441_v48, %v5453_v41  ;;  %v9449_v20 = vpop.eup %9448  ;;  %v5525_v60 = vsub.f32 1.0, %v9447_v21  ;;  %v5533_v52 = vmul.f32 %v9447_v21, %v11816_v3  ;;  %v12874_v3 = vld [vmem:[#allocation84_spill] sm:$0xff] }
 0xa51   :  { %v5517_v34 = vadd.f32 %v5513_v22, %v882_v61  ;;  %v5526_v63 = vsub.f32 1.0, %v9449_v20  ;;  %v5534_v53 = vmul.f32 %v9449_v20, %v11819_v40  ;;  %v12875_v40 = vld [vmem:[#allocation85_spill] sm:$0xff]  ;;  %v12893_v21 = vld [vmem:[#allocation36_spill] sm:$0xff]  ;;  %v12894_v20 = vld [vmem:[#allocation98_spill] sm:$0xff] }
 0xa52   :  { %v5518_v26 = vadd.f32 %v5514_v5, %v884_v46  ;;  %v12887_v46 = vld [vmem:[#allocation31_spill] sm:$0xff]  ;;  %v12888_v5 = vld [vmem:[#allocation32_spill] sm:$0xff] }
 0xa53   :  { %9454 = vtanh.f32 %v5517_v34  ;;  %v12889_v34 = vld [vmem:[#allocation97_spill] sm:$0xff] }
 0xa54   :  { %9456 = vtanh.f32 %v5518_v26  ;;  %v12890_v26 = vld [vmem:[#allocation33_spill] sm:$0xff] }
 0xa59   :  { %v9451_v50 = vpop.eup %9450 }
 0xa5a   :  { %v9453_v6 = vpop.eup %9452  ;;  %v5527_v11 = vmul.f32 %v9451_v50, %v5523_v19  ;;  %v12895_v19 = vld [vmem:[#allocation72_spill] sm:$0xff]  ;;  %v12896_v50 = vld [vmem:[#allocation99_spill] sm:$0xff] }
 0xa5b   :  { %v5528_v59 = vmul.f32 %v9453_v6, %v5524_v16  ;;  %v12897_v16 = vld [vmem:[#allocation100_spill] sm:$0xff]  ;;  %v12898_v6 = vld [vmem:[#allocation101_spill] sm:$0xff] }
 0xa5c   :  { %v12084_v38 = vadd.f32 %v5531_v4, %v5527_v11  ;;  %v12899_v11 = vld [vmem:[#allocation21_spill] sm:$0xff]  ;;  %v12900_v4 = vld [vmem:[#allocation22_spill] sm:$0xff] }
 0xa5d   :  { %v9455_v58 = vpop.eup %9454  ;;  %v12086_v37 = vadd.f32 %v5532_v39, %v5528_v59  ;;  %v12901_v59 = vld [vmem:[#allocation23_spill] sm:$0xff]  ;;  %v12902_v39 = vld [vmem:[#allocation24_spill] sm:$0xff] }
 0xa5e   :  { %v9457_v41 = vpop.eup %9456  ;;  %5544 = vst [vmem:[#allocation12 + $0xe0] sm:$0xff] %v12084_v38  ;;  %v5529_v48 = vmul.f32 %v9455_v58, %v5525_v60  ;;  %v12903_v60 = vld [vmem:[#allocation56_spill] sm:$0xff]  ;;  %v12904_v58 = vld [vmem:[#allocation25_spill] sm:$0xff] }
 0xa5f   :  { %5545 = vst [vmem:[#allocation12 + $0xe8] sm:$0xff] %v12086_v37  ;;  %5853 = vmatprep.mubr.f32.mxu0 %v12086_v37  ;;  %5930 = vmatprep.mubr.f32.mxu1 %v12086_v37  ;;  %v5530_v23 = vmul.f32 %v9457_v41, %v5526_v63  ;;  %v12905_v63 = vld [vmem:[#allocation27_spill] sm:$0xff]  ;;  %v12906_v41 = vld [vmem:[#allocation28_spill] sm:$0xff] }
 0xa60   :  { %5854 = vmatmul.mubr.f32.vlgmr.msra.gmra.mrb[32].mxu0 %v12084_v38  ;;  %5931 = vmatmul.mubr.f32.vlgmr.msra.gmra.mrb[32].mxu1 %v12084_v38  ;;  %v12096_v61 = vadd.f32 %v5533_v52, %v5529_v48  ;;  %v12907_v48 = vld [vmem:[#allocation58_spill] sm:$0xff] }
 0xa61   :  { %8636 = vmatpush1.bf16.msra.mxu0 %v11804_v9  ;;  %v12099_v22 = vadd.f32 %v5534_v53, %v5530_v23  ;;  %8764 = vmatpush1.bf16.msra.mxu1 %v11926_v27  ;;  %v12872_v9 = vld [vmem:[#allocation83_spill] sm:$0xff]  ;;  %v12878_v27 = vld [vmem:[#allocation89_spill] sm:$0xff]  ;;  %v6199_v52 = vld [vmem:[#allocation10 + $0x228] sm:$0xff] }
 0xa62   :  { %8638 = vmatprep.subr.bf16.mxu0 %v11807_v47  ;;  %5546 = vst [vmem:[#allocation12 + $0xf0] sm:$0xff] %v12096_v61  ;;  %8766 = vmatprep.subr.bf16.mxu1 %v11936_v51  ;;  %v12873_v47 = vld [vmem:[#allocation26_spill] sm:$0xff]  ;;  %v12880_v51 = vld [vmem:[#allocation91_spill] sm:$0xff]  ;;  %v6198_v23 = vld [vmem:[#allocation10 + $0x220] sm:$0xff] }
 0xa63   :  { %5547 = vst [vmem:[#allocation12 + $0xf8] sm:$0xff] %v12099_v22  ;;  %5859 = vmatprep.mubr.f32.mxu0 %v12099_v22  ;;  %5936 = vmatprep.mubr.f32.mxu1 %v12099_v22  ;;  %v6205_v53 = vld [vmem:[#allocation10 + $0x258] sm:$0xff] }
 0xa64   :  { %5860 = vmatmul.mubr.f32.gmra.mrb[34].mxu0 %v12096_v61  ;;  %5937 = vmatmul.mubr.f32.gmra.mrb[34].mxu1 %v12096_v61 }
 0xa65   :  { %8640 = vmatpush1.bf16.msra.mxu0 %v11821_v1  ;;  %6007 = vmatprep.mubr.f32.mxu0 %v12086_v37  ;;  %v12876_v1 = vld [vmem:[#allocation87_spill] sm:$0xff] }
 0xa66   :  { %8642 = vmatprep.subr.bf16.mxu0 %v11825_v12  ;;  %8768 = vmatpush1.bf16.msra.mxu1 %v11938_v36  ;;  %v12877_v12 = vld [vmem:[#allocation88_spill] sm:$0xff]  ;;  %v12881_v36 = vld [vmem:[#allocation93_spill] sm:$0xff] }
 0xa67   :  { %8770 = vmatprep.subr.bf16.mxu1 %v11948_v33  ;;  %v12882_v33 = vld [vmem:[#allocation94_spill] sm:$0xff] }
 0xa69   :  { %8644 = vmatpush1.bf16.msra.mxu0 %v11834_v55  ;;  %v12879_v55 = vld [vmem:[#allocation90_spill] sm:$0xff] }
 0xa6a   :  { %8646 = vmatprep.subr.bf16.mxu0 %v12872_v9  ;;  %8772 = vmatpush1.bf16.msra.mxu1 %v12873_v47  ;;  %v6204_v9 = vld [vmem:[#allocation10 + $0x250] sm:$0xff]  ;;  %v6217_v47 = vld [vmem:[#allocation10 + $0x2b8] sm:$0xff] }
 0xa6b   :  { %8774 = vmatprep.subr.bf16.mxu1 %v11960_v43  ;;  %v12883_v43 = vld [vmem:[#allocation95_spill] sm:$0xff] }
 0xa6d   :  { %8648 = vmatpush1.bf16.msra.mxu0 %v12874_v3 }
 0xa6e   :  { %8650 = vmatprep.subr.bf16.mxu0 %v12875_v40  ;;  %8776 = vmatpush1.bf16.msra.mxu1 %v11962_v18  ;;  %v12885_v18 = vld [vmem:[#allocation29_spill] sm:$0xff]  ;;  %v6216_v40 = vld [vmem:[#allocation10 + $0x2b0] sm:$0xff] }
 0xa6f   :  { %8778 = vmatprep.subr.bf16.mxu1 %v11970_v45  ;;  %v12886_v45 = vld [vmem:[#allocation30_spill] sm:$0xff] }
 0xa71   :  { %8652 = vmatpush1.bf16.msra.mxu0 %v12876_v1  ;;  %v6222_v1 = vld [vmem:[#allocation10 + $0x2e0] sm:$0xff] }
 0xa72   :  { %8654 = vmatprep.subr.bf16.mxu0 %v12877_v12  ;;  %v6229_v12 = vld [vmem:[#allocation10 + $0x318] sm:$0xff] }
 0xa75   :  { %8656 = vmatpush1.bf16.msra.mxu0 %v12878_v27  ;;  %v6235_v27 = vld [vmem:[#allocation10 + $0x348] sm:$0xff] }
 0xa76   :  { %8658 = vmatprep.subr.bf16.mxu0 %v12879_v55  ;;  %v8791_v55 = vpack.c.bf16 %v6222_v1, %v6216_v40  ;;  %v6306_v40 = vld [vmem:[#allocation10 + $0x580] sm:$0xff]  ;;  %v6313_v1 = vld [vmem:[#allocation10 + $0x5b8] sm:$0xff] }
 0xa79   :  { %8660 = vmatpush1.bf16.msra.mxu0 %v12880_v51  ;;  %v8793_v51 = vpack.c.bf16 %v6235_v27, %v6229_v12  ;;  %v6319_v12 = vld [vmem:[#allocation10 + $0x5e8] sm:$0xff]  ;;  %v12909_v27 = vld [vmem:[#allocation17_spill] sm:$0xff] }
 0xa7a   :  { %8662 = vmatprep.subr.bf16.mxu0 %v12881_v36  ;;  %v6228_v36 = vld [vmem:[#allocation10 + $0x310] sm:$0xff] }
 0xa7d   :  { %8664 = vmatpush1.bf16.msra.mxu0 %v12882_v33  ;;  %v6234_v33 = vld [vmem:[#allocation10 + $0x340] sm:$0xff] }
 0xa7e   :  { %8666 = vmatprep.subr.bf16.mxu0 %v12883_v43  ;;  %v6241_v43 = vld [vmem:[#allocation10 + $0x378] sm:$0xff] }
 0xa81   :  { %8668 = vmatpush1.bf16.msra.mxu0 %v12884_v54  ;;  %v6247_v54 = vld [vmem:[#allocation10 + $0x3a8] sm:$0xff] }
 0xa82   :  { %8670 = vmatprep.subr.bf16.mxu0 %v12885_v18  ;;  %v8795_v18 = vpack.c.bf16 %v6234_v33, %v6228_v36  ;;  %v6312_v36 = vld [vmem:[#allocation10 + $0x5b0] sm:$0xff]  ;;  %v6318_v33 = vld [vmem:[#allocation10 + $0x5e0] sm:$0xff] }
 0xa85   :  { %8672 = vmatpush1.bf16.msra.mxu0 %v12886_v45  ;;  %v8797_v45 = vpack.c.bf16 %v6247_v54, %v6241_v43  ;;  %v12910_v43 = vld [vmem:[#allocation18_spill] sm:$0xff]  ;;  %v8823_v54 = vpack.c.bf16 %v6318_v33, %v6312_v36 }
 0xa86   :  { %8674 = vmatprep.subr.bf16.mxu0 %v12887_v46  ;;  %v6240_v46 = vld [vmem:[#allocation10 + $0x370] sm:$0xff] }
 0xa89   :  { %8676 = vmatpush1.bf16.msra.mxu0 %v12888_v5  ;;  %v6246_v5 = vld [vmem:[#allocation10 + $0x3a0] sm:$0xff] }
 0xa8a   :  { %8678 = vmatprep.subr.bf16.mxu0 %v12889_v34  ;;  %v6253_v34 = vld [vmem:[#allocation10 + $0x3d8] sm:$0xff] }
 0xa8d   :  { %8680 = vmatpush1.bf16.msra.mxu0 %v12890_v26  ;;  %v6259_v26 = vld [vmem:[#allocation10 + $0x408] sm:$0xff] }
 0xa8e   :  { %8682 = vmatprep.subr.bf16.mxu0 %v12891_v30  ;;  %v8799_v30 = vpack.c.bf16 %v6246_v5, %v6240_v46  ;;  %v6135_v46 = vld [vmem:[#allocation10 + $0x28] sm:$0xff]  ;;  %v6141_v5 = vld [vmem:[#allocation10 + $0x58] sm:$0xff] }
 0xa91   :  { %8684 = vmatpush1.bf16.msra.mxu0 %v12892_v10  ;;  %v8801_v10 = vpack.c.bf16 %v6259_v26, %v6253_v34  ;;  %v12913_v34 = vld [vmem:[#allocation60_spill] sm:$0xff]  ;;  %v8825_v26 = vpack.c.bf16 %v6141_v5, %v6135_v46 }
 0xa92   :  { %8686 = vmatprep.subr.bf16.mxu0 %v12893_v21  ;;  %v6252_v21 = vld [vmem:[#allocation10 + $0x3d0] sm:$0xff] }
 0xa95   :  { %8688 = vmatpush1.bf16.msra.mxu0 %v12894_v20  ;;  %v6258_v20 = vld [vmem:[#allocation10 + $0x400] sm:$0xff] }
 0xa96   :  { %8690 = vmatprep.subr.bf16.mxu0 %v12895_v19  ;;  %v8803_v19 = vpack.c.bf16 %v6258_v20, %v6252_v21 }
 0xa99   :  { %8692 = vmatpush1.bf16.msra.mxu0 %v12896_v50  ;;  %v6250_v50 = vld [vmem:[#allocation10 + $0x3c0] sm:$0xff] }
 0xa9a   :  { %8694 = vmatprep.subr.bf16.mxu0 %v12897_v16  ;;  %v6256_v16 = vld [vmem:[#allocation10 + $0x3f0] sm:$0xff] }
 0xa9d   :  { %8696 = vmatpush1.bf16.msra.mxu0 %v12898_v6  ;;  %v8739_v6 = vpack.c.bf16 %v6256_v16, %v6250_v50 }
 0xa9e   :  { %8698 = vmatprep.subr.bf16.mxu0 %v12899_v11  ;;  %v6265_v11 = vld [vmem:[#allocation10 + $0x438] sm:$0xff] }
 0xaa0   :  { %6008 = vmatmul.mubr.f32.vlgmr.msra.gmra.mrb[92].mxu0 %v12084_v38 }
 0xaa1   :  { %6013 = vmatprep.mubr.f32.mxu0 %v12099_v22  ;;  %8700 = vmatpush1.bf16.msra.mxu0 %v12900_v4  ;;  %v6271_v4 = vld [vmem:[#allocation10 + $0x468] sm:$0xff] }
 0xaa2   :  { %8702 = vmatprep.subr.bf16.mxu0 %v12901_v59  ;;  %v8805_v59 = vpack.c.bf16 %v6271_v4, %v6265_v11  ;;  %v5757_v11 = vld [vmem:[%s12272_s5] sm:$0x3f] }
 0xaa3   :  { %v12914_v4 = vld [vmem:[#allocation49_spill] sm:$0xff]  ;;  %v5782_v5 = vrot.slane %v5757_v11, %v10332_v62 }
 0xaa4   :  { %6014 = vmatmul.mubr.f32.gmra.mrb[94].mxu0 %v12096_v61 }
 0xaa5   :  { %8704 = vmatpush1.bf16.msra.mxu0 %v12902_v39  ;;  %v6264_v39 = vld [vmem:[#allocation10 + $0x430] sm:$0xff] }
 0xaa6   :  { %8706 = vmatprep.subr.bf16.mxu0 %v12903_v60  ;;  %v6270_v60 = vld [vmem:[#allocation10 + $0x460] sm:$0xff] }
 0xaa9   :  { %8708 = vmatpush1.bf16.msra.mxu0 %v12904_v58  ;;  %v8807_v58 = vpack.c.bf16 %v6270_v60, %v6264_v39  ;;  %v12915_v39 = vld [vmem:[#allocation50_spill] sm:$0xff] }
 0xaaa   :  { %8710 = vmatprep.subr.bf16.mxu0 %v11954_v15  ;;  %v6180_v15 = vld [vmem:[#allocation10 + $0x190] sm:$0xff]  ;;  %v5766_v60 = vrot.slane %v5757_v11, %v12915_v39 }
 0xaad   :  { %8712 = vmatpush1.bf16.msra.mxu0 %v12905_v63  ;;  %v6262_v63 = vld [vmem:[#allocation10 + $0x420] sm:$0xff] }
 0xaae   :  { %8714 = vmatprep.subr.bf16.mxu0 %v12906_v41  ;;  %v6268_v41 = vld [vmem:[#allocation10 + $0x450] sm:$0xff] }
 0xab1   :  { %8716 = vmatpush1.bf16.msra.mxu0 %v11968_v35  ;;  %v6186_v35 = vld [vmem:[#allocation10 + $0x1c0] sm:$0xff] }
 0xab2   :  { %8718 = vmatprep.subr.bf16.mxu0 %v12907_v48  ;;  %v8743_v48 = vpack.c.bf16 %v6268_v41, %v6262_v63  ;;  %v8955_v41 = vadd.f32 %v5766_v60, %v10303_v56  ;;  %v12919_v60 = vld [vmem:[#allocation45_spill] sm:$0xff] }
 0xab5   :  { %8720 = vmatpush1.bf16.msra.mxu0 %v11978_v13  ;;  %v6193_v13 = vld [vmem:[#allocation10 + $0x1f8] sm:$0xff] }
 0xab6   :  { %8722 = vmatprep.subr.bf16.mxu0 %v11981_v17  ;;  %v8779_v17 = vpack.c.bf16 %v6186_v35, %v6180_v15  ;;  %v6277_v15 = vld [vmem:[#allocation10 + $0x498] sm:$0xff]  ;;  %v6283_v35 = vld [vmem:[#allocation10 + $0x4c8] sm:$0xff] }
 0xab8   :  { %8780 = vmatpush1.bf16.msra.mxu1 %v8779_v17  ;;  %v6276_v17 = vld [vmem:[#allocation10 + $0x490] sm:$0xff] }
 0xab9   :  { %8724 = vmatpush1.bf16.msra.mxu0 %v11986_v29  ;;  %v6192_v29 = vld [vmem:[#allocation10 + $0x1f0] sm:$0xff] }
 0xaba   :  { %8726 = vmatprep.subr.bf16.mxu0 %v11989_v31  ;;  %v8781_v31 = vpack.c.bf16 %v6199_v52, %v6193_v13  ;;  %v8809_v13 = vpack.c.bf16 %v6283_v35, %v6277_v15  ;;  %v6282_v52 = vld [vmem:[#allocation10 + $0x4c0] sm:$0xff]  ;;  %v12917_v35 = vld [vmem:[#allocation51_spill] sm:$0xff] }
 0xabc   :  { %8782 = vmatprep.subr.bf16.mxu1 %v8781_v31  ;;  %v6280_v31 = vld [vmem:[#allocation10 + $0x4b0] sm:$0xff] }
 0xabd   :  { %8728 = vmatpush1.bf16.msra.mxu0 %v11994_v44  ;;  %v6211_v44 = vld [vmem:[#allocation10 + $0x288] sm:$0xff] }
 0xabe   :  { %8730 = vmatprep.subr.bf16.mxu0 %v11997_v32  ;;  %v8783_v32 = vpack.c.bf16 %v6198_v23, %v6192_v29  ;;  %v8811_v29 = vpack.c.bf16 %v6282_v52, %v6276_v17  ;;  %v6274_v23 = vld [vmem:[#allocation10 + $0x480] sm:$0xff] }
 0xabf   :  { %v12918_v52 = vld [vmem:[#allocation53_spill] sm:$0xff] }
 0xac0   :  { %8784 = vmatpush1.bf16.msra.mxu1 %v8783_v32 }
 0xac1   :  { %8732 = vmatpush1.bf16.msra.mxu0 %v12002_v28  ;;  %v8785_v28 = vpack.c.bf16 %v6211_v44, %v6205_v53  ;;  %v8747_v53 = vpack.c.bf16 %v6280_v31, %v6274_v23  ;;  %v6295_v44 = vld [vmem:[#allocation10 + $0x528] sm:$0xff] }
 0xac2   :  { %8734 = vmatprep.subr.bf16.mxu0 %v12005_v8  ;;  %v6210_v8 = vld [vmem:[#allocation10 + $0x280] sm:$0xff] }
 0xac3   :  { %8786 = vmatprep.subr.bf16.mxu1 %v8785_v28  ;;  %v6288_v28 = vld [vmem:[#allocation10 + $0x4f0] sm:$0xff] }
 0xac5   :  { %8736 = vmatpush1.bf16.msra.mxu0 %v12010_v2  ;;  %v6223_v2 = vld [vmem:[#allocation10 + $0x2e8] sm:$0xff] }
 0xac6   :  { %8738 = vmatprep.subr.bf16.mxu0 %v12013_v49  ;;  %v8787_v49 = vpack.c.bf16 %v6210_v8, %v6204_v9  ;;  %v8789_v3 = vpack.c.bf16 %v6223_v2, %v6217_v47  ;;  %v6294_v9 = vld [vmem:[#allocation10 + $0x520] sm:$0xff]  ;;  %v12908_v8 = vld [vmem:[#allocation86_spill] sm:$0xff]  ;;  %v6301_v2 = vld [vmem:[#allocation10 + $0x558] sm:$0xff] }
 0xac7   :  { %v8815_v47 = vpack.c.bf16 %v6294_v9, %v6288_v28 }
 0xac8   :  { %8788 = vmatpush1.bf16.msra.mxu1 %v8787_v49  ;;  %v6307_v49 = vld [vmem:[#allocation10 + $0x588] sm:$0xff] }
 0xac9   :  { %8790 = vmatprep.subr.bf16.mxu1 %v8789_v3  ;;  %8740 = vmatpush1.bf16.msra.mxu0 %v8739_v6  ;;  %v6300_v3 = vld [vmem:[#allocation10 + $0x550] sm:$0xff] }
 0xaca   :  { %8742 = vmatprep.subr.bf16.mxu0 %v12022_v0  ;;  %v6289_v0 = vld [vmem:[#allocation10 + $0x4f8] sm:$0xff] }
 0xacb   :  { %v8813_v32 = vpack.c.bf16 %v6295_v44, %v6289_v0 }
 0xacc   :  { %8792 = vmatpush1.bf16.msra.mxu1 %v8791_v55  ;;  %v8819_v55 = vpack.c.bf16 %v6306_v40, %v6300_v3 }
 0xacd   :  { %8794 = vmatprep.subr.bf16.mxu1 %v8793_v51  ;;  %8744 = vmatpush1.bf16.msra.mxu0 %v8743_v48  ;;  %v8821_v51 = vpack.c.bf16 %v6319_v12, %v6313_v1 }
 0xace   :  { %8746 = vmatprep.subr.bf16.mxu0 %v12028_v24  ;;  %v8817_v24 = vpack.c.bf16 %v6307_v49, %v6301_v2 }
 0xad0   :  { %8796 = vmatpush1.bf16.msra.mxu1 %v8795_v18  ;;  %v12911_v18 = vld [vmem:[#allocation19_spill] sm:$0xff] }
 0xad1   :  { %8798 = vmatprep.subr.bf16.mxu1 %v8797_v45  ;;  %8748 = vmatpush1.bf16.msra.mxu0 %v8747_v53  ;;  %v12912_v45 = vld [vmem:[#allocation20_spill] sm:$0xff] }
 0xad2   :  { %8750 = vmatprep.subr.bf16.mxu0 %v12908_v8 }
 0xad4   :  { %8800 = vmatpush1.bf16.msra.mxu1 %v8799_v30 }
 0xad5   :  { %8802 = vmatprep.subr.bf16.mxu1 %v8801_v10  ;;  %8752 = vmatpush1.bf16.msra.mxu0 %v12909_v27 }
 0xad6   :  { %8754 = vmatprep.subr.bf16.mxu0 %v12910_v43 }
 0xad8   :  { %8804 = vmatpush1.bf16.msra.mxu1 %v8803_v19 }
 0xad9   :  { %8806 = vmatprep.subr.bf16.mxu1 %v8805_v59  ;;  %8756 = vmatpush1.bf16.msra.mxu0 %v12911_v18  ;;  %v5762_v59 = vrot.slane %v5757_v11, %v12914_v4 }
 0xada   :  { %8758 = vmatprep.subr.bf16.mxu0 %v12912_v45  ;;  %v5778_v45 = vrot.slane %v5757_v11, %v10329_v57 }
 0xadc   :  { %8808 = vmatpush1.bf16.msra.mxu1 %v8807_v58  ;;  %v12916_v58 = vld [vmem:[#allocation55_spill] sm:$0xff] }
 0xadd   :  { %8810 = vmatprep.subr.bf16.mxu1 %v8809_v13  ;;  %8760 = vmatpush1.bf16.msra.mxu0 %v12913_v34  ;;  %v8953_v63 = vadd.f32 %v5762_v59, %v12916_v58  ;;  %v5770_v13 = vrot.slane %v5757_v11, %v12917_v35 }
 0xadf   :  { %v9033_v0 = vadd.f32 %v5770_v13, %v12554_v7 }
 0xae0   :  { %8812 = vmatpush1.bf16.msra.mxu1 %v8811_v29  ;;  %v5774_v29 = vrot.slane %v5757_v11, %v12918_v52 }
 0xae1   :  { %8814 = vmatprep.subr.bf16.mxu1 %v8813_v32 }
 0xae2   :  { %v9035_v44 = vadd.f32 %v5774_v29, %v12555_v25 }
 0xae4   :  { %8816 = vmatpush1.bf16.msra.mxu1 %v8815_v47 }
 0xae5   :  { %8818 = vmatprep.subr.bf16.mxu1 %v8817_v24 }
 0xae8   :  { %8820 = vmatpush1.bf16.msra.mxu1 %v8819_v55 }
 0xae9   :  { %8822 = vmatprep.subr.bf16.mxu1 %v8821_v51 }
 0xaec   :  { %8824 = vmatpush1.bf16.msra.mxu1 %v8823_v54 }
 0xaed   :  { %8826 = vmatprep.subr.bf16.mxu1 %v8825_v26 }
 0xb33   :  { %v5855_v30 = vpop.f32.mrb[32].mxu0  ;;  %v5932_v10 = vpop.f32.mrb[32].mxu1 }
 0xb34   :  { %v5857_v21 = vpop.f32.mrb[33].mxu0  ;;  %v5934_v20 = vpop.f32.mrb[33].mxu1  ;;  %v8954_v48 = vadd.f32 %v8953_v63, %v5855_v30  ;;  %v9034_v9 = vadd.f32 %v9033_v0, %v5932_v10 }
 0xb35   :  { %v8956_v15 = vadd.f32 %v8955_v41, %v5857_v21  ;;  %v9036_v8 = vadd.f32 %v9035_v44, %v5934_v20 }
 0xb36   :  { %v6761_v17 = vmul.f32 -1.442695, %v8954_v48  ;;  %v6765_v49 = vmul.f32 -1.442695, %v9034_v9  ;;  %v12920_v48 = vld [vmem:[#allocation46_spill] sm:$0xff] }
 0xb37   :  { %v5861_v19 = vpop.f32.mrb[34].mxu0  ;;  %v5938_v50 = vpop.f32.mrb[34].mxu1  ;;  %v6762_v31 = vmul.f32 -1.442695, %v8956_v15  ;;  %v6766_v3 = vmul.f32 -1.442695, %v9036_v8  ;;  %v890_v15 = vadd.f32 %v12920_v48, %v10343_v42 }
 0xb38   :  { %v5863_v16 = vpop.f32.mrb[35].mxu0  ;;  %v5940_v6 = vpop.f32.mrb[35].mxu1  ;;  %v8958_v23 = vadd.f32 %v8953_v63, %v5861_v19  ;;  %9458 = vpow2.f32 %v6761_v17  ;;  %v9038_v47 = vadd.f32 %v9033_v0, %v5938_v50  ;;  %v888_v63 = vadd.f32 %v12919_v60, %v10338_v14  ;;  %v12922_v8 = vld [vmem:[#allocation48_spill] sm:$0xff]  ;;  %v6152_v60 = vld [vmem:[#allocation10 + $0xb0] sm:$0xff] }
 0xb39   :  { %v8960_v53 = vadd.f32 %v8955_v41, %v5863_v16  ;;  %9460 = vpow2.f32 %v6762_v31  ;;  %v9040_v2 = vadd.f32 %v9035_v44, %v5940_v6  ;;  %v6165_v48 = vld [vmem:[#allocation10 + $0x118] sm:$0xff] }
 0xb3a   :  { %v6763_v32 = vmul.f32 -1.442695, %v8958_v23  ;;  %v6767_v24 = vmul.f32 -1.442695, %v9038_v47  ;;  %v896_v47 = vadd.f32 %v12922_v8, %v10343_v42 }
 0xb3b   :  { %v6764_v28 = vmul.f32 -1.442695, %v8960_v53  ;;  %v6768_v1 = vmul.f32 -1.442695, %v9040_v2 }
 0xb3c   :  { %9462 = vpow2.f32 %v6763_v32  ;;  %v12921_v32 = vld [vmem:[#allocation47_spill] sm:$0xff] }
 0xb3d   :  { %9464 = vpow2.f32 %v6764_v28  ;;  %v894_v28 = vadd.f32 %v12921_v32, %v10338_v14  ;;  %v6183_v32 = vld [vmem:[#allocation10 + $0x1a8] sm:$0xff] }
 0xb3e   :  { %9466 = vpow2.f32 %v6765_v49 }
 0xb3f   :  { %9468 = vpow2.f32 %v6766_v3 }
 0xb40   :  { %9470 = vpow2.f32 %v6767_v24 }
 0xb41   :  { %9472 = vpow2.f32 %v6768_v1 }
 0xb42   :  { %v9459_v40 = vpop.eup %9458 }
 0xb43   :  { %v9461_v12 = vpop.eup %9460  ;;  %v6036_v27 = vadd.f32 1.0, %v9459_v40 }
 0xb44   :  { %v6037_v51 = vadd.f32 1.0, %v9461_v12 }
 0xb45   :  { %9474 = vrcp.f32 %v6036_v27 }
 0xb46   :  { %v9463_v55 = vpop.eup %9462  ;;  %9476 = vrcp.f32 %v6037_v51 }
 0xb47   :  { %v9465_v36 = vpop.eup %9464  ;;  %v6038_v33 = vadd.f32 1.0, %v9463_v55 }
 0xb48   :  { %v6039_v43 = vadd.f32 1.0, %v9465_v36  ;;  %v9467_v54 = vpop.eup %9466 }
 0xb49   :  { %9478 = vrcp.f32 %v6038_v33  ;;  %v9469_v18 = vpop.eup %9468  ;;  %v6064_v26 = vadd.f32 1.0, %v9467_v54  ;;  %v6134_v54 = vld [vmem:[#allocation10 + $0x20] sm:$0xff] }
 0xb4a   :  { %9480 = vrcp.f32 %v6039_v43  ;;  %v9471_v46 = vpop.eup %9470  ;;  %v6065_v30 = vadd.f32 1.0, %v9469_v18  ;;  %v6140_v18 = vld [vmem:[#allocation10 + $0x50] sm:$0xff] }
 0xb4b   :  { %v9473_v34 = vpop.eup %9472  ;;  %v6066_v21 = vadd.f32 1.0, %v9471_v46  ;;  %9482 = vrcp.f32 %v6064_v26 }
 0xb4c   :  { %v6067_v16 = vadd.f32 1.0, %v9473_v34  ;;  %9484 = vrcp.f32 %v6065_v30  ;;  %v6153_v34 = vld [vmem:[#allocation10 + $0xb8] sm:$0xff] }
 0xb4d   :  { %9486 = vrcp.f32 %v6066_v21 }
 0xb4e   :  { %9488 = vrcp.f32 %v6067_v16 }
 0xb4f   :  { %v9475_v50 = vpop.eup %9474 }
 0xb50   :  { %v9477_v59 = vpop.eup %9476 }
 0xb53   :  { %v9479_v31 = vpop.eup %9478 }
 0xb54   :  { %v9481_v44 = vpop.eup %9480 }
 0xb55   :  { %v9483_v24 = vpop.eup %9482 }
 0xb56   :  { %v9485_v40 = vpop.eup %9484  ;;  %v6088_v27 = vsub.f32 1.0, %v9483_v24  ;;  %v6096_v43 = vmul.f32 %v9483_v24, %v12084_v38 }
 0xb57   :  { %v9487_v1 = vpop.eup %9486  ;;  %v6089_v51 = vsub.f32 1.0, %v9485_v40  ;;  %v6097_v46 = vmul.f32 %v9485_v40, %v12086_v37 }
 0xb58   :  { %v9489_v12 = vpop.eup %9488  ;;  %v6090_v26 = vsub.f32 1.0, %v9487_v1 }
 0xb59   :  { %v6091_v21 = vsub.f32 1.0, %v9489_v12 }
 0xb73   :  { %v6009_v10 = vpop.f32.mrb[92].mxu0 }
 0xb74   :  { %v6010_v20 = vadd.f32 %v6009_v10, %v5778_v45  ;;  %v6011_v19 = vpop.f32.mrb[93].mxu0 }
 0xb75   :  { %v6012_v6 = vadd.f32 %v6011_v19, %v5782_v5  ;;  %v8827_v19 = vpack.c.bf16 %v6140_v18, %v6134_v54  ;;  %v6219_v54 = vld [vmem:[#allocation10 + $0x2c8] sm:$0xff]  ;;  %v6225_v18 = vld [vmem:[#allocation10 + $0x2f8] sm:$0xff] }
 0xb76   :  { %v6076_v41 = vmul.f32 %v9475_v50, %v6010_v20 }
 0xb77   :  { %v6077_v11 = vmul.f32 %v9477_v59, %v6012_v6  ;;  %v6015_v13 = vpop.f32.mrb[94].mxu0  ;;  %v6098_v6 = vmul.f32 %v9487_v1, %v12096_v61  ;;  %v6146_v59 = vld [vmem:[#allocation10 + $0x80] sm:$0xff] }
 0xb78   :  { %v6080_v17 = vadd.f32 %v6076_v41, %v888_v63  ;;  %v6016_v29 = vadd.f32 %v6015_v13, %v5778_v45  ;;  %v6017_v23 = vpop.f32.mrb[95].mxu0  ;;  %v6099_v63 = vmul.f32 %v9489_v12, %v12099_v22  ;;  %v6159_v41 = vld [vmem:[#allocation10 + $0xe8] sm:$0xff]  ;;  %v6194_v1 = vld [vmem:[#allocation10 + $0x200] sm:$0xff]  ;;  %v6200_v12 = vld [vmem:[#allocation10 + $0x230] sm:$0xff] }
 0xb79   :  { %v6081_v53 = vadd.f32 %v6077_v11, %v890_v15  ;;  %v6018_v0 = vadd.f32 %v6017_v23, %v5782_v5  ;;  %v6147_v5 = vld [vmem:[#allocation10 + $0x88] sm:$0xff]  ;;  %v8831_v11 = vpack.c.bf16 %v6152_v60, %v6146_v59  ;;  %v8833_v13 = vpack.c.bf16 %v6165_v48, %v6159_v41  ;;  %v6177_v23 = vld [vmem:[#allocation10 + $0x178] sm:$0xff] }
 0xb7a   :  { %9490 = vtanh.f32 %v6080_v17  ;;  %v6078_v9 = vmul.f32 %v9479_v31, %v6016_v29  ;;  %v8829_v16 = vpack.c.bf16 %v6153_v34, %v6147_v5  ;;  %v6158_v17 = vld [vmem:[#allocation10 + $0xe0] sm:$0xff]  ;;  %v6164_v29 = vld [vmem:[#allocation10 + $0x110] sm:$0xff]  ;;  %v6171_v22 = vld [vmem:[#allocation10 + $0x148] sm:$0xff] }
 0xb7b   :  { %9492 = vtanh.f32 %v6081_v53  ;;  %v6079_v2 = vmul.f32 %v9481_v44, %v6018_v0  ;;  %v8835_v31 = vpack.c.bf16 %v6164_v29, %v6158_v17  ;;  %v8837_v53 = vpack.c.bf16 %v6177_v23, %v6171_v22  ;;  %v6170_v0 = vld [vmem:[#allocation10 + $0x140] sm:$0xff]  ;;  %v6176_v44 = vld [vmem:[#allocation10 + $0x170] sm:$0xff]  ;;  %v6255_v41 = vld [vmem:[#allocation10 + $0x3e8] sm:$0xff] }
 0xb7c   :  { %v6082_v49 = vadd.f32 %v6078_v9, %v894_v28  ;;  %v6189_v28 = vld [vmem:[#allocation10 + $0x1d8] sm:$0xff]  ;;  %v8839_v9 = vpack.c.bf16 %v6176_v44, %v6170_v0  ;;  %v6218_v5 = vld [vmem:[#allocation10 + $0x2c0] sm:$0xff]  ;;  %v6224_v34 = vld [vmem:[#allocation10 + $0x2f0] sm:$0xff] }
 0xb7d   :  { %v6083_v3 = vadd.f32 %v6079_v2, %v896_v47  ;;  %v8841_v8 = vpack.c.bf16 %v6189_v28, %v6183_v32  ;;  %v6182_v47 = vld [vmem:[#allocation10 + $0x1a0] sm:$0xff]  ;;  %v6188_v2 = vld [vmem:[#allocation10 + $0x1d0] sm:$0xff]  ;;  %v6261_v48 = vld [vmem:[#allocation10 + $0x418] sm:$0xff] }
 0xb7e   :  { %9494 = vtanh.f32 %v6082_v49  ;;  %v6195_v49 = vld [vmem:[#allocation10 + $0x208] sm:$0xff]  ;;  %v8843_v24 = vpack.c.bf16 %v6188_v2, %v6182_v47  ;;  %v6254_v17 = vld [vmem:[#allocation10 + $0x3e0] sm:$0xff]  ;;  %v6260_v29 = vld [vmem:[#allocation10 + $0x410] sm:$0xff] }
 0xb7f   :  { %9496 = vtanh.f32 %v6083_v3  ;;  %v6201_v3 = vld [vmem:[#allocation10 + $0x238] sm:$0xff]  ;;  %v6267_v22 = vld [vmem:[#allocation10 + $0x448] sm:$0xff]  ;;  %v6266_v0 = vld [vmem:[#allocation10 + $0x440] sm:$0xff] }
 0xb80   :  { %v8845_v40 = vpack.c.bf16 %v6201_v3, %v6195_v49  ;;  %v6273_v23 = vld [vmem:[#allocation10 + $0x478] sm:$0xff]  ;;  %v6272_v44 = vld [vmem:[#allocation10 + $0x470] sm:$0xff]  ;;  %v6279_v32 = vld [vmem:[#allocation10 + $0x4a8] sm:$0xff] }
 0xb81   :  { %v6285_v28 = vld [vmem:[#allocation10 + $0x4d8] sm:$0xff]  ;;  %v6278_v47 = vld [vmem:[#allocation10 + $0x4a0] sm:$0xff]  ;;  %v6284_v2 = vld [vmem:[#allocation10 + $0x4d0] sm:$0xff] }
 0xb82   :  { %v6291_v49 = vld [vmem:[#allocation10 + $0x508] sm:$0xff]  ;;  %v6297_v3 = vld [vmem:[#allocation10 + $0x538] sm:$0xff] }
 0xb84   :  { %v9491_v55 = vpop.eup %9490 }
 0xb85   :  { %v9493_v36 = vpop.eup %9492  ;;  %v6092_v33 = vmul.f32 %v9491_v55, %v6088_v27  ;;  %v6207_v27 = vld [vmem:[#allocation10 + $0x268] sm:$0xff]  ;;  %v6213_v55 = vld [vmem:[#allocation10 + $0x298] sm:$0xff] }
 0xb86   :  { %v6093_v45 = vmul.f32 %v9493_v36, %v6089_v51  ;;  %v8847_v51 = vpack.c.bf16 %v6200_v12, %v6194_v1  ;;  %v8849_v36 = vpack.c.bf16 %v6213_v55, %v6207_v27  ;;  %v6290_v1 = vld [vmem:[#allocation10 + $0x500] sm:$0xff]  ;;  %v6296_v12 = vld [vmem:[#allocation10 + $0x530] sm:$0xff]  ;;  %v6303_v27 = vld [vmem:[#allocation10 + $0x568] sm:$0xff] }
 0xb87   :  { %v12201_v30 = vadd.f32 %v6096_v43, %v6092_v33  ;;  %v6206_v33 = vld [vmem:[#allocation10 + $0x260] sm:$0xff]  ;;  %v6212_v43 = vld [vmem:[#allocation10 + $0x290] sm:$0xff]  ;;  %v6309_v55 = vld [vmem:[#allocation10 + $0x598] sm:$0xff] }
 0xb88   :  { %v9495_v10 = vpop.eup %9494  ;;  %v12203_v20 = vadd.f32 %v6097_v46, %v6093_v45  ;;  %v8851_v45 = vpack.c.bf16 %v6212_v43, %v6206_v33  ;;  %v8853_v46 = vpack.c.bf16 %v6225_v18, %v6219_v54  ;;  %v6302_v33 = vld [vmem:[#allocation10 + $0x560] sm:$0xff]  ;;  %v6308_v43 = vld [vmem:[#allocation10 + $0x590] sm:$0xff]  ;;  %v6315_v54 = vld [vmem:[#allocation10 + $0x5c8] sm:$0xff] }
 0xb89   :  { %v9497_v50 = vpop.eup %9496  ;;  %6109 = vst [vmem:[#allocation12 + $0x100] sm:$0xff] %v12201_v30  ;;  %v6094_v38 = vmul.f32 %v9495_v10, %v6090_v26  ;;  %v6231_v26 = vld [vmem:[#allocation10 + $0x328] sm:$0xff]  ;;  %v6237_v10 = vld [vmem:[#allocation10 + $0x358] sm:$0xff] }
 0xb8a   :  { %6110 = vst [vmem:[#allocation12 + $0x108] sm:$0xff] %v12203_v20  ;;  %6418 = vmatprep.mubr.f32.mxu0 %v12203_v20  ;;  %6495 = vmatprep.mubr.f32.mxu1 %v12203_v20  ;;  %v6095_v37 = vmul.f32 %v9497_v50, %v6091_v21  ;;  %v8855_v21 = vpack.c.bf16 %v6224_v34, %v6218_v5  ;;  %v6230_v50 = vld [vmem:[#allocation10 + $0x320] sm:$0xff]  ;;  %v6321_v18 = vld [vmem:[#allocation10 + $0x5f8] sm:$0xff]  ;;  %v6320_v34 = vld [vmem:[#allocation10 + $0x5f0] sm:$0xff] }
 0xb8b   :  { %6419 = vmatmul.mubr.f32.vlgmr.msra.gmra.mrb[36].mxu0 %v12201_v30  ;;  %6496 = vmatmul.mubr.f32.vlgmr.msra.gmra.mrb[36].mxu1 %v12201_v30  ;;  %v12213_v15 = vadd.f32 %v6098_v6, %v6094_v38  ;;  %v6243_v38 = vld [vmem:[#allocation10 + $0x388] sm:$0xff]  ;;  %v6249_v6 = vld [vmem:[#allocation10 + $0x3b8] sm:$0xff]  ;;  %v6314_v5 = vld [vmem:[#allocation10 + $0x5c0] sm:$0xff] }
 0xb8c   :  { %8828 = vmatpush1.bf16.msra.mxu1 %v8827_v19  ;;  %v12215_v61 = vadd.f32 %v6099_v63, %v6095_v37  ;;  %v8857_v19 = vpack.c.bf16 %v6237_v10, %v6231_v26  ;;  %v8861_v60 = vpack.c.bf16 %v6249_v6, %v6243_v38  ;;  %v6242_v37 = vld [vmem:[#allocation10 + $0x380] sm:$0xff]  ;;  %v6248_v63 = vld [vmem:[#allocation10 + $0x3b0] sm:$0xff]  ;;  %v8887_v26 = vpack.c.bf16 %v6320_v34, %v6314_v5 }
 0xb8d   :  { %8830 = vmatprep.subr.bf16.mxu1 %v8829_v16  ;;  %6111 = vst [vmem:[#allocation12 + $0x110] sm:$0xff] %v12213_v15  ;;  %v6236_v16 = vld [vmem:[#allocation10 + $0x350] sm:$0xff] }
 0xb8e   :  { %6112 = vst [vmem:[#allocation12 + $0x118] sm:$0xff] %v12215_v61  ;;  %6424 = vmatprep.mubr.f32.mxu0 %v12215_v61  ;;  %6501 = vmatprep.mubr.f32.mxu1 %v12215_v61  ;;  %v8859_v59 = vpack.c.bf16 %v6236_v16, %v6230_v50 }
 0xb8f   :  { %6425 = vmatmul.mubr.f32.gmra.mrb[38].mxu0 %v12213_v15  ;;  %6502 = vmatmul.mubr.f32.gmra.mrb[38].mxu1 %v12213_v15 }
 0xb90   :  { %8832 = vmatpush1.bf16.msra.mxu1 %v8831_v11  ;;  %6572 = vmatprep.mubr.f32.mxu1 %v12203_v20  ;;  %v8863_v11 = vpack.c.bf16 %v6248_v63, %v6242_v37 }
 0xb91   :  { %8834 = vmatprep.subr.bf16.mxu1 %v8833_v13  ;;  %v8865_v13 = vpack.c.bf16 %v6261_v48, %v6255_v41 }
 0xb94   :  { %8836 = vmatpush1.bf16.msra.mxu1 %v8835_v31  ;;  %v8867_v31 = vpack.c.bf16 %v6260_v29, %v6254_v17 }
 0xb95   :  { %8838 = vmatprep.subr.bf16.mxu1 %v8837_v53  ;;  %v8869_v53 = vpack.c.bf16 %v6273_v23, %v6267_v22 }
 0xb98   :  { %8840 = vmatpush1.bf16.msra.mxu1 %v8839_v9  ;;  %v8871_v9 = vpack.c.bf16 %v6272_v44, %v6266_v0 }
 0xb99   :  { %8842 = vmatprep.subr.bf16.mxu1 %v8841_v8  ;;  %v8873_v8 = vpack.c.bf16 %v6285_v28, %v6279_v32 }
 0xb9c   :  { %8844 = vmatpush1.bf16.msra.mxu1 %v8843_v24  ;;  %v8875_v24 = vpack.c.bf16 %v6284_v2, %v6278_v47 }
 0xb9d   :  { %8846 = vmatprep.subr.bf16.mxu1 %v8845_v40  ;;  %v8877_v40 = vpack.c.bf16 %v6297_v3, %v6291_v49 }
 0xba0   :  { %8848 = vmatpush1.bf16.msra.mxu1 %v8847_v51  ;;  %v8879_v51 = vpack.c.bf16 %v6296_v12, %v6290_v1 }
 0xba1   :  { %8850 = vmatprep.subr.bf16.mxu1 %v8849_v36  ;;  %v8881_v36 = vpack.c.bf16 %v6309_v55, %v6303_v27 }
 0xba4   :  { %8852 = vmatpush1.bf16.msra.mxu1 %v8851_v45  ;;  %v8883_v45 = vpack.c.bf16 %v6308_v43, %v6302_v33 }
 0xba5   :  { %8854 = vmatprep.subr.bf16.mxu1 %v8853_v46  ;;  %v8885_v46 = vpack.c.bf16 %v6321_v18, %v6315_v54 }
 0xba8   :  { %8856 = vmatpush1.bf16.msra.mxu1 %v8855_v21 }
 0xba9   :  { %8858 = vmatprep.subr.bf16.mxu1 %v8857_v19 }
 0xbac   :  { %8860 = vmatpush1.bf16.msra.mxu1 %v8859_v59 }
 0xbad   :  { %8862 = vmatprep.subr.bf16.mxu1 %v8861_v60  ;;  %v6322_v60 = vld [vmem:[%s12272_s5] sm:$0x3f]  ;;  %s9668_s5 = smov [#allocation12]  }
 0xbae   :  { %v6327_v37 = vrot.slane %v6322_v60, %v12914_v4  ;;  %v6331_v63 = vrot.slane %v6322_v60, %v12915_v39  ;;  %v6335_v17 = vrot.slane %v6322_v60, %v12917_v35  ;;  %v6339_v22 = vrot.slane %v6322_v60, %v12918_v52  ;;  %s6683_s20 = sshll.u32 %s9668_s5, 4  ;;  %s6684_s20 = int_to_ptr.vmem [resolvable:$true] %s6683_s20 }
 0xbaf   :  { %v6343_v27 = vrot.slane %v6322_v60, %v10329_v57  ;;  %v12924_v57 = vld [vmem:[#allocation54_spill] sm:$0xff]  ;;  %s9630_s1 = scalar_lea.vmem %s6684_s20, 5120  ;;  %p9635_p5 = scmp.lt.s32.totalorder %s6684_s20, %s6684_s20 }
 0xbb0   :  { %8864 = vmatpush1.bf16.msra.mxu1 %v8863_v11  ;;  %v8961_v41 = vadd.f32 %v6327_v37, %v12916_v58  ;;  %v8963_v48 = vadd.f32 %v6331_v63, %v10303_v56  ;;  %v9041_v0 = vadd.f32 %v6335_v17, %v12554_v7  ;;  %v9043_v4 = vadd.f32 %v6339_v22, %v12555_v25  ;;  %p9631_p4 = scmp.ne.s32.totalorder %s6684_s20, %s9630_s1  ;;  %p9636_p6 = scmp.lt.s32.totalorder %s9630_s1, %s9630_s1 }
 0xbb1   :  { %8866 = vmatprep.subr.bf16.mxu1 %v8865_v13 }
 0xbb2   :  { %p9637_p7 = por %p9636_p6, %p9635_p5 }
 0xbb4   :  { %8868 = vmatpush1.bf16.msra.mxu1 %v8867_v31  ;;  %p9638_p8 = pnand %p9637_p7, %p9631_p4 }
 0xbb5   :  { %8870 = vmatprep.subr.bf16.mxu1 %v8869_v53 }
 0xbb8   :  { %8872 = vmatpush1.bf16.msra.mxu1 %v8871_v9 }
 0xbb9   :  { %8874 = vmatprep.subr.bf16.mxu1 %v8873_v8 }
 0xbbc   :  { %8876 = vmatpush1.bf16.msra.mxu1 %v8875_v24 }
 0xbbd   :  { %8878 = vmatprep.subr.bf16.mxu1 %v8877_v40 }
 0xbc0   :  { %8880 = vmatpush1.bf16.msra.mxu1 %v8879_v51  ;;  %v6347_v51 = vrot.slane %v6322_v60, %v10332_v62 }
 0xbc1   :  { %8882 = vmatprep.subr.bf16.mxu1 %v8881_v36 }
 0xbc4   :  { %8884 = vmatpush1.bf16.msra.mxu1 %v8883_v45 }
 0xbc5   :  { %8886 = vmatprep.subr.bf16.mxu1 %v8885_v46 }
 0xbc8   :  { %8888 = vmatpush1.bf16.msra.mxu1 %v8887_v26 }
 0xbcb   :  { %6573 = vmatmul.mubr.f32.vlgmr.msra.gmra.mrb[60].mxu1 %v12201_v30 }
 0xbcc   :  { %6578 = vmatprep.mubr.f32.mxu1 %v12215_v61 }
 0xbcf   :  { %6579 = vmatmul.mubr.f32.gmra.mrb[62].mxu1 %v12213_v15 }
 0xc5e   :  { %v6420_v10 = vpop.f32.mrb[36].mxu0  ;;  %v6497_v21 = vpop.f32.mrb[36].mxu1 }
 0xc5f   :  { %v6422_v19 = vpop.f32.mrb[37].mxu0  ;;  %v6499_v50 = vpop.f32.mrb[37].mxu1  ;;  %v8962_v11 = vadd.f32 %v8961_v41, %v6420_v10  ;;  %v9042_v44 = vadd.f32 %v9041_v0, %v6497_v21  ;;  %v12923_v21 = vld [vmem:[#allocation52_spill] sm:$0xff] }
 0xc60   :  { %v8964_v13 = vadd.f32 %v8963_v48, %v6422_v19  ;;  %v9044_v56 = vadd.f32 %v9043_v4, %v6499_v50  ;;  %v900_v19 = vadd.f32 %v12923_v21, %v10338_v14 }
 0xc61   :  { %v6769_v29 = vmul.f32 -1.442695, %v8962_v11  ;;  %v6773_v28 = vmul.f32 -1.442695, %v9042_v44  ;;  %v12925_v11 = vld [vmem:[#allocation57_spill] sm:$0xff] }
 0xc62   :  { %v6426_v16 = vpop.f32.mrb[38].mxu0  ;;  %v6503_v38 = vpop.f32.mrb[38].mxu1  ;;  %v6770_v31 = vmul.f32 -1.442695, %v8964_v13  ;;  %v6774_v9 = vmul.f32 -1.442695, %v9044_v56  ;;  %v906_v13 = vadd.f32 %v12925_v11, %v10338_v14 }
 0xc63   :  { %v6428_v6 = vpop.f32.mrb[39].mxu0  ;;  %v6505_v59 = vpop.f32.mrb[39].mxu1  ;;  %v8966_v23 = vadd.f32 %v8961_v41, %v6426_v16  ;;  %9498 = vpow2.f32 %v6769_v29  ;;  %v9046_v32 = vadd.f32 %v9041_v0, %v6503_v38  ;;  %v902_v16 = vadd.f32 %v12924_v57, %v10343_v42  ;;  %v12926_v29 = vld [vmem:[#allocation59_spill] sm:$0xff] }
 0xc64   :  { %v8968_v53 = vadd.f32 %v8963_v48, %v6428_v6  ;;  %9500 = vpow2.f32 %v6770_v31  ;;  %v9048_v35 = vadd.f32 %v9043_v4, %v6505_v59  ;;  %v908_v22 = vadd.f32 %v12926_v29, %v10343_v42 }
 0xc65   :  { %v6771_v39 = vmul.f32 -1.442695, %v8966_v23  ;;  %v6775_v52 = vmul.f32 -1.442695, %v9046_v32 }
 0xc66   :  { %v6772_v58 = vmul.f32 -1.442695, %v8968_v53  ;;  %v6776_v47 = vmul.f32 -1.442695, %v9048_v35 }
 0xc67   :  { %9502 = vpow2.f32 %v6771_v39 }
 0xc68   :  { %9504 = vpow2.f32 %v6772_v58 }
 0xc69   :  { %9506 = vpow2.f32 %v6773_v28 }
 0xc6a   :  { %9508 = vpow2.f32 %v6774_v9 }
 0xc6b   :  { %9510 = vpow2.f32 %v6775_v52 }
 0xc6c   :  { %9512 = vpow2.f32 %v6776_v47 }
 0xc6d   :  { %v9499_v8 = vpop.eup %9498 }
 0xc6e   :  { %v9501_v2 = vpop.eup %9500  ;;  %v6601_v7 = vadd.f32 1.0, %v9499_v8 }
 0xc6f   :  { %v6602_v49 = vadd.f32 1.0, %v9501_v2 }
 0xc70   :  { %9514 = vrcp.f32 %v6601_v7 }
 0xc71   :  { %v9503_v25 = vpop.eup %9502  ;;  %9516 = vrcp.f32 %v6602_v49 }
 0xc72   :  { %v9505_v3 = vpop.eup %9504  ;;  %v6603_v24 = vadd.f32 1.0, %v9503_v25 }
 0xc73   :  { %v6604_v40 = vadd.f32 1.0, %v9505_v3  ;;  %v9507_v1 = vpop.eup %9506 }
 0xc74   :  { %9518 = vrcp.f32 %v6603_v24  ;;  %v9509_v12 = vpop.eup %9508  ;;  %v6629_v33 = vadd.f32 1.0, %v9507_v1 }
 0xc75   :  { %9520 = vrcp.f32 %v6604_v40  ;;  %v9511_v55 = vpop.eup %9510  ;;  %v6630_v43 = vadd.f32 1.0, %v9509_v12 }
 0xc76   :  { %v9513_v36 = vpop.eup %9512  ;;  %v6631_v18 = vadd.f32 1.0, %v9511_v55  ;;  %9522 = vrcp.f32 %v6629_v33 }
 0xc77   :  { %v6632_v34 = vadd.f32 1.0, %v9513_v36  ;;  %9524 = vrcp.f32 %v6630_v43 }
 0xc78   :  { %9526 = vrcp.f32 %v6631_v18 }
 0xc79   :  { %9528 = vrcp.f32 %v6632_v34 }
 0xc7a   :  { %v9515_v5 = vpop.eup %9514 }
 0xc7b   :  { %v9517_v10 = vpop.eup %9516 }
 0xc7e   :  { %v9519_v37 = vpop.eup %9518 }
 0xc7f   :  { %v9521_v48 = vpop.eup %9520 }
 0xc80   :  { %v9523_v0 = vpop.eup %9522 }
 0xc81   :  { %v9525_v4 = vpop.eup %9524  ;;  %v6653_v44 = vsub.f32 1.0, %v9523_v0  ;;  %v6661_v14 = vmul.f32 %v9523_v0, %v12201_v30 }
 0xc82   :  { %v9527_v39 = vpop.eup %9526  ;;  %v6654_v32 = vsub.f32 1.0, %v9525_v4  ;;  %v6662_v9 = vmul.f32 %v9525_v4, %v12203_v20 }
 0xc83   :  { %v9529_v58 = vpop.eup %9528  ;;  %v6655_v52 = vsub.f32 1.0, %v9527_v39  ;;  %v6663_v49 = vmul.f32 %v9527_v39, %v12213_v15 }
 0xc84   :  { %v6656_v2 = vsub.f32 1.0, %v9529_v58  ;;  %v6664_v24 = vmul.f32 %v9529_v58, %v12215_v61 }
 0xc9e   :  { %v6574_v54 = vpop.f32.mrb[60].mxu1 }
 0xc9f   :  { %v6575_v45 = vadd.f32 %v6574_v54, %v6343_v27  ;;  %v6576_v46 = vpop.f32.mrb[61].mxu1 }
 0xca0   :  { %v6577_v26 = vadd.f32 %v6576_v46, %v6347_v51 }
 0xca1   :  { %v6641_v50 = vmul.f32 %v9515_v5, %v6575_v45 }
 0xca2   :  { %v6642_v62 = vmul.f32 %v9517_v10, %v6577_v26  ;;  %v6580_v38 = vpop.f32.mrb[62].mxu1 }
 0xca3   :  { %v6645_v6 = vadd.f32 %v6641_v50, %v900_v19  ;;  %v6581_v59 = vadd.f32 %v6580_v38, %v6343_v27  ;;  %v6582_v60 = vpop.f32.mrb[63].mxu1 }
 0xca4   :  { %v6646_v63 = vadd.f32 %v6642_v62, %v902_v16  ;;  %v6583_v41 = vadd.f32 %v6582_v60, %v6347_v51 }
 0xca5   :  { %9530 = vtanh.f32 %v6645_v6  ;;  %v6643_v17 = vmul.f32 %v9519_v37, %v6581_v59 }
 0xca6   :  { %9532 = vtanh.f32 %v6646_v63  ;;  %v6644_v23 = vmul.f32 %v9521_v48, %v6583_v41 }
 0xca7   :  { %v6647_v31 = vadd.f32 %v6643_v17, %v906_v13 }
 0xca8   :  { %v6648_v53 = vadd.f32 %v6644_v23, %v908_v22 }
 0xca9   :  { %9534 = vtanh.f32 %v6647_v31 }
 0xcaa   :  { %9536 = vtanh.f32 %v6648_v53 }
 0xcaf   :  { %v9531_v56 = vpop.eup %9530 }
 0xcb0   :  { %v9533_v35 = vpop.eup %9532  ;;  %v6657_v28 = vmul.f32 %v9531_v56, %v6653_v44 }
 0xcb1   :  { %v6658_v42 = vmul.f32 %v9533_v35, %v6654_v32 }
 0xcb2   :  { %v6665_v8 = vadd.f32 %v6661_v14, %v6657_v28 }
 0xcb3   :  { %v9535_v47 = vpop.eup %9534  ;;  %v6666_v7 = vadd.f32 %v6662_v9, %v6658_v42 }
 0xcb4   :  { %v9537_v25 = vpop.eup %9536  ;;  %6674 = vst [vmem:[#allocation12 + $0x120] sm:$0xff] %v6665_v8  ;;  %v6659_v3 = vmul.f32 %v9535_v47, %v6655_v52 }
 0xcb5   :  { %6675 = vst [vmem:[#allocation12 + $0x128] sm:$0xff] %v6666_v7  ;;  %v6660_v30 = vmul.f32 %v9537_v25, %v6656_v2 }
 0xcb6   :  { %v6667_v40 = vadd.f32 %v6663_v49, %v6659_v3 }
 0xcb7   :  { %v6668_v1 = vadd.f32 %v6664_v24, %v6660_v30 }
 0xcb8   :  { %6676 = vst [vmem:[#allocation12 + $0x130] sm:$0xff] %v6667_v40 }
 0xcb9   :  { %6677 = vst [vmem:[#allocation12 + $0x138] sm:$0xff] %v6668_v1 }
 0xcba   :  { %9641 = shalt.err (!%p9638_p8)
}
 0xcbb   :  { %s9642_s22 = scalar_lea.hbm %s12273_s6, 5120 }
 0xcbc   :  { %p9643_p9 = scmp.ne.s32.totalorder %s12273_s6, %s9642_s22  ;;  %p9646_p10 = scmp.lt.u32.totalorder %s9642_s22, %s12273_s6 }
 0xcbe   :  { %p9648_p11 = pnand %p9646_p10, %p9643_p9 }
 0xcc0   :  { %9651 = shalt.err (!%p9648_p11)
}
 0xcc1   :  { %6689 = dma.vmem_to_hbm [thread:$0]  %s6684_s20, 5120, %s12273_s6, [#allocation6], %s9662_s9, %s9662_s9, %s9663_s10  }
 0xcc2   :  { %9658 = dma.done.wait [#allocation6], 5120  }
 0xcc3   :  { %9659 = vsyncadd [#allocation6], 4294962176 }
 0xcc4   :  { %6693 = vsyncpa [#allocation5], 1 }
 0xcc5   :  { %6694 = vsyncpa [#allocation8], 1 }
 0xcc6   :  { %6695 = vsyncpa [#allocation11], 1 }
 0xcc7   :  { %6696 = vsyncpa [#allocation6], 1 }

</bundles_post_ra>
